<compile_context>
chip_gen: v5e
topology: v5e:2x2
jax: 0.10.0
libtpu: 0.0.40
codegen_flags: <defaults>
</compile_context>

<pallas_src>
import jax
import jax.numpy as jnp
from jax.experimental import pallas as pl
from jax.experimental.pallas import tpu as pltpu


# ----------------------------------------------------------------------------
# Conv 3x3 (+ folded BatchNorm + ReLU): single im2col GEMM per layer
# ----------------------------------------------------------------------------
def _conv_gemm_kernel(p_ref, w_ref, s_ref, b_ref, o_ref):
    # p_ref: (tm, 9*Cin) bf16; w_ref: (9*Cin, Cout) bf16
    # s_ref/b_ref: (1, Cout) f32 folded BN; o_ref: (tm, Cout) bf16
    y = jnp.dot(p_ref[...], w_ref[...], preferred_element_type=jnp.float32)
    y = y * s_ref[...] + b_ref[...]              # folded BN (+ conv bias), f32
    o_ref[...] = jnp.maximum(y, 0.0).astype(o_ref.dtype)   # ReLU


def conv3x3_bn_relu(x, w, scale, bias, *, padding="valid", tm=512):
    """x: (N,H,W,Cin); w: (3,3,Cin,Cout); scale/bias: (Cout,) folded BN."""
    N, H, W, Cin = x.shape
    Cout = w.shape[-1]
    if padding == "same":
        x = jnp.pad(x, ((0, 0), (1, 1), (1, 1), (0, 0)))
        H, W = H + 2, W + 2
    Ho, Wo = H - 2, W - 2
    M = N * Ho * Wo
    K = 9 * Cin

    # im2col glue (pure JAX), emitted directly in the fused (M, 9*Cin) layout
    # so the kernel streams it exactly once as the GEMM LHS (K=27/288/576/1152
    # feeds the MXU contraction properly instead of 9 tiny-K matmuls).
    xb = x.astype(jnp.bfloat16)
    cols = [xb[:, kh:kh + Ho, kw:kw + Wo, :]
            for kh in range(3) for kw in range(3)]
    patches = jnp.concatenate(cols, axis=-1).reshape(M, K)
    w9 = w.reshape(K, Cout).astype(jnp.bfloat16)
    s2 = scale.reshape(1, Cout).astype(jnp.float32)
    b2 = bias.reshape(1, Cout).astype(jnp.float32)

    tm = min(tm, M)                       # tm==M (full) or 512 (multiple of 8)
    grid = (pl.cdiv(M, tm),)

    out = pl.pallas_call(
        _conv_gemm_kernel,
        out_shape=jax.ShapeDtypeStruct((M, Cout), jnp.bfloat16),
        grid=grid,
        in_specs=[
            pl.BlockSpec((tm, K), lambda i: (i, 0)),
            pl.BlockSpec((K, Cout), lambda i: (0, 0)),
            pl.BlockSpec((1, Cout), lambda i: (0, 0)),
            pl.BlockSpec((1, Cout), lambda i: (0, 0)),
        ],
        out_specs=pl.BlockSpec((tm, Cout), lambda i: (i, 0)),
        compiler_params=pltpu.CompilerParams(
            dimension_semantics=("parallel",)),
    )(patches, w9, s2, b2)
    return out.reshape(N, Ho, Wo, Cout)


# ----------------------------------------------------------------------------
# 2x2 max-pool kernel (stride 2), one image per grid step, input read once
# ----------------------------------------------------------------------------
def _maxpool_kernel(x_ref, o_ref):
    # x_ref: (1, Hp, 2, W, C); o_ref: (1, Hp, Wp, C)
    _, Hp, _, W, C = x_ref.shape
    Wp = W // 2
    a = x_ref[0, :, 0, :, :]        # even input rows  (Hp, W, C)
    b = x_ref[0, :, 1, :, :]        # odd  input rows  (Hp, W, C)
    z = jnp.maximum(a, b)           # pooled over H
    # W-pooling: gather even/odd columns with 0/1 selection matrices on the
    # MXU (avoids unaligned sublane/lane slicing), then elementwise max.
    rows = jax.lax.broadcasted_iota(jnp.int32, (Wp, W), 0)
    cols = jax.lax.broadcasted_iota(jnp.int32, (Wp, W), 1)
    s_even = (cols == 2 * rows).astype(z.dtype)
    s_odd = (cols == 2 * rows + 1).astype(z.dtype)
    for hp in range(Hp):            # static, Hp <= 12
        zh = z[hp]                  # (W, C)
        e = jnp.dot(s_even, zh, preferred_element_type=jnp.float32)
        o = jnp.dot(s_odd, zh, preferred_element_type=jnp.float32)
        o_ref[0, hp, :, :] = jnp.maximum(e, o).astype(o_ref.dtype)


def maxpool2x2(x):
    """x: (N,H,W,C) with even H, W."""
    N, H, W, C = x.shape
    assert H % 2 == 0 and W % 2 == 0, "maxpool2x2 requires even H, W"
    Hp, Wp = H // 2, W // 2
    xr = x.reshape(N, Hp, 2, W, C)  # free reshape: h = hp*2 + parity
    return pl.pallas_call(
        _maxpool_kernel,
        out_shape=jax.ShapeDtypeStruct((N, Hp, Wp, C), x.dtype),
        grid=(N,),
        in_specs=[pl.BlockSpec((1, Hp, 2, W, C),
                               lambda n: (n, 0, 0, 0, 0))],
        out_specs=pl.BlockSpec((1, Hp, Wp, C), lambda n: (n, 0, 0, 0)),
        compiler_params=pltpu.CompilerParams(
            dimension_semantics=("parallel",)),
    )(xr)


# ----------------------------------------------------------------------------
# Fused: final 2x2 max-pool + flatten + FC head
#   Linear(128,128)+ReLU -> Linear(128,32)+ReLU -> Linear(32,n_classes)
# ----------------------------------------------------------------------------
def _pool_fc_kernel(x_ref, w1_ref, b1_ref, w2_ref, b2_ref, w3_ref, b3_ref,
                    o_ref):
    # x_ref: (N, 4*F) bf16 -- flattened (N, 2, 2, F) NHWC feature map.
    F = w1_ref.shape[0]
    x = x_ref[...].astype(jnp.float32)
    # fused final 2x2 max-pool: the four F-wide (128-aligned) lane chunks are
    # the (h, w) window positions of the 2x2xF feature map.
    h = jnp.maximum(jnp.maximum(x[:, 0 * F:1 * F], x[:, 1 * F:2 * F]),
                    jnp.maximum(x[:, 2 * F:3 * F], x[:, 3 * F:4 * F]))
    h = jnp.maximum(
        jnp.dot(h, w1_ref[...], preferred_element_type=jnp.float32)
        + b1_ref[...], 0.0)
    # TODO(synk): Dropout2d(0.5) is identity in eval mode (not modeled).
    h = jnp.maximum(
        jnp.dot(h, w2_ref[...], preferred_element_type=jnp.float32)
        + b2_ref[...], 0.0)
    o_ref[...] = (jnp.dot(h, w3_ref[...], preferred_element_type=jnp.float32)
                  + b3_ref[...])


def pool_fc_head(x, w1, b1, w2, b2, w3, b3):
    # x: (N, 2, 2, 128) conv feature map (before the final max-pool), NHWC.
    N, Hf, Wf, C = x.shape
    assert Hf == 2 and Wf == 2 and C == w1.shape[0]
    xf = x.reshape(N, Hf * Wf * C)                     # free reshape
    n_out = w3.shape[1]
    args = (xf, w1, b1.reshape(1, -1), w2, b2.reshape(1, -1),
            w3, b3.reshape(1, -1))
    vmem = pl.BlockSpec(memory_space=pltpu.MemorySpace.VMEM)
    return pl.pallas_call(
        _pool_fc_kernel,
        out_shape=jax.ShapeDtypeStruct((N, n_out), jnp.float32),
        in_specs=[vmem] * len(args),
        out_specs=vmem,
    )(*args)


# ----------------------------------------------------------------------------
# Parameter init (deterministic, synthetic) + BN folding
# ----------------------------------------------------------------------------
def _fold_bn(key, c_out, conv_bias):
    kg, kb, km = jax.random.split(key, 3)
    gamma = 1.0 + 0.1 * jax.random.normal(kg, (c_out,), jnp.float32)
    beta = 0.1 * jax.random.normal(kb, (c_out,), jnp.float32)
    running_mean = 0.1 * jax.random.normal(km, (c_out,), jnp.float32)
    running_var = jnp.ones((c_out,), jnp.float32)
    eps = 1e-5
    scale = gamma / jnp.sqrt(running_var + eps)
    bias = (conv_bias - running_mean) * scale + beta
    return scale, bias


def init_params(key, n_in_channels, n_classes):
    conv_dims = [(n_in_channels, 32), (32, 32), (32, 64),
                 (64, 64), (64, 128), (128, 128)]
    conv_params = []
    for cin, cout in conv_dims:
        key, kw, kb, kbn = jax.random.split(key, 4)
        w = 0.1 * jax.random.normal(kw, (3, 3, cin, cout), jnp.float32)
        b = 0.05 * jax.random.normal(kb, (cout,), jnp.float32)
        scale, bias = _fold_bn(kbn, cout, b)
        conv_params.append((w, scale, bias))

    fc_dims = [(128, 128), (128, 32), (32, n_classes)]
    fc_params = []
    for din, dout in fc_dims:
        key, kw, kb = jax.random.split(key, 3)
        w = (1.0 / jnp.sqrt(din)) * jax.random.normal(kw, (din, dout),
                                                      jnp.float32)
        b = 0.05 * jax.random.normal(kb, (dout,), jnp.float32)
        fc_params.append((w, b))
    return {"conv": conv_params, "fc": fc_params}


# ----------------------------------------------------------------------------
# Full forward (eval mode), matching the PyTorch module
# ----------------------------------------------------------------------------
def cnn_forward(params, x_nchw):
    N, _, H, W = x_nchw.shape
    # The Linear(128, ...) head (and the flatten) silently require 28x28 input.
    assert (H, W) == (28, 28), "CNN head requires 28x28 spatial input"
    # NCHW (PyTorch convention) -> NHWC (kernel layout)
    x = jnp.transpose(x_nchw, (0, 2, 3, 1)).astype(jnp.float32)

    c = params["conv"]
    x = conv3x3_bn_relu(x, *c[0])                   # (N,26,26, 32) valid
    x = conv3x3_bn_relu(x, *c[1])                   # (N,24,24, 32) valid
    x = maxpool2x2(x)                               # (N,12,12, 32)
    x = conv3x3_bn_relu(x, *c[2])                   # (N,10,10, 64) valid
    x = conv3x3_bn_relu(x, *c[3])                   # (N, 8, 8, 64) valid
    x = maxpool2x2(x)                               # (N, 4, 4, 64)
    x = conv3x3_bn_relu(x, *c[4])                   # (N, 2, 2,128) valid
    x = conv3x3_bn_relu(x, *c[5], padding="same")   # (N, 2, 2,128) same

    # Final 2x2 max-pool + flatten + FC head fused into one kernel.  The
    # NHWC flatten equals torch's NCHW .view() because spatial is 1x1 here.
    (w1, b1), (w2, b2), (w3, b3) = params["fc"]
    # TODO(synk): Dropout2d(0.5) / BatchNorm training-mode batch statistics are
    # not modeled; this is inference (eval) semantics.
    return pool_fc_head(x, w1, b1, w2, b2, w3, b3)


if __name__ == "__main__":
    n_in_channels = 3
    n_classes = 10
    key = jax.random.PRNGKey(0)
    kp, kx = jax.random.split(key)
    params = init_params(kp, n_in_channels, n_classes)
    # 28x28 input: the only spatial size for which the flatten yields exactly
    # 128 features (as the Linear(128, ...) head requires).
    x = jax.random.normal(kx, (2, n_in_channels, 28, 28), jnp.float32)

    fwd = jax.jit(cnn_forward)
    out = jax.block_until_ready(fwd(params, x))
    assert out.shape == (2, n_classes), out.shape
    assert bool(jnp.all(jnp.isfinite(out)))
    print("KERNEL_OK")
</pallas_src>

<mosaic_0001>
module attributes {stable_mosaic.version = 11 : i64} {
  func.func @_conv_gemm_kernel(%arg0: i32, %arg1: memref<512x27xbf16, #tpu.memory_space<vmem>>, %arg2: memref<27x32xbf16, #tpu.memory_space<vmem>>, %arg3: memref<1x32xf32, #tpu.memory_space<vmem>>, %arg4: memref<1x32xf32, #tpu.memory_space<vmem>>, %arg5: memref<512x32xbf16, #tpu.memory_space<vmem>>) attributes {dimension_semantics = [#tpu.dimension_semantics<parallel>], iteration_bounds = array<i64: 3>, scalar_prefetch = 0 : i64, scratch_operands = 0 : i64, tpu.core_type = #tpu.core_type<tc>, window_params = [{transform_indices = @transform_0, window_bounds = array<i64: 512, 27>}, {pipeline_mode = #tpu.pipeline_mode<synchronous>, transform_indices = @transform_1, window_bounds = array<i64: 27, 32>}, {pipeline_mode = #tpu.pipeline_mode<synchronous>, transform_indices = @transform_2, window_bounds = array<i64: 1, 32>}, {pipeline_mode = #tpu.pipeline_mode<synchronous>, transform_indices = @transform_3, window_bounds = array<i64: 1, 32>}, {transform_indices = @transform_4, window_bounds = array<i64: 512, 32>}]} {
    %c0 = arith.constant 0 : index
    %c0_0 = arith.constant 0 : index
    %0 = vector.load %arg1[%c0, %c0_0] : memref<512x27xbf16, #tpu.memory_space<vmem>>, vector<512x27xbf16>
    %c0_1 = arith.constant 0 : index
    %c0_2 = arith.constant 0 : index
    %1 = vector.load %arg2[%c0_1, %c0_2] : memref<27x32xbf16, #tpu.memory_space<vmem>>, vector<27x32xbf16>
    %cst = arith.constant dense<0.000000e+00> : vector<512x32xf32>
    %2 = tpu.matmul %0, %1, %cst {dimension_numbers = #tpu.dot_dimension_numbers<[1], [0], [0], [1], [0, 0, 1, 1], [], []>} : vector<512x27xbf16>, vector<27x32xbf16>, vector<512x32xf32> -> vector<512x32xf32>
    %c0_3 = arith.constant 0 : index
    %c0_4 = arith.constant 0 : index
    %3 = vector.load %arg3[%c0_3, %c0_4] : memref<1x32xf32, #tpu.memory_space<vmem>>, vector<1x32xf32>
    %4 = vector.broadcast %3 : vector<1x32xf32> to vector<512x32xf32>
    %5 = arith.mulf %2, %4 : vector<512x32xf32>
    %c0_5 = arith.constant 0 : index
    %c0_6 = arith.constant 0 : index
    %6 = vector.load %arg4[%c0_5, %c0_6] : memref<1x32xf32, #tpu.memory_space<vmem>>, vector<1x32xf32>
    %7 = vector.broadcast %6 : vector<1x32xf32> to vector<512x32xf32>
    %8 = arith.addf %5, %7 : vector<512x32xf32>
    %cst_7 = arith.constant 0.000000e+00 : f32
    %9 = vector.broadcast %cst_7 : f32 to vector<512x32xf32>
    %10 = arith.maximumf %8, %9 : vector<512x32xf32>
    %11 = arith.truncf %10 : vector<512x32xf32> to vector<512x32xbf16>
    %c0_8 = arith.constant 0 : index
    %c0_9 = arith.constant 0 : index
    %12 = vector.load %arg5[%c0_8, %c0_9] : memref<512x32xbf16, #tpu.memory_space<vmem>>, vector<512x32xbf16>
    tpu.vector_store %arg5[%c0_8, %c0_9], %11 {strides = array<i32>} : memref<512x32xbf16, #tpu.memory_space<vmem>>, vector<512x32xbf16>,
    return
  }
  func.func @transform_0(%arg0: i32) -> (i32, i32) {
    %c0_i32 = arith.constant 0 : i32
    %c0_i32_0 = arith.constant 0 : i32
    return %arg0, %c0_i32 : i32, i32
  }
  func.func @transform_1(%arg0: i32) -> (i32, i32) {
    %c0_i32 = arith.constant 0 : i32
    %c0_i32_0 = arith.constant 0 : i32
    %c0_i32_1 = arith.constant 0 : i32
    return %c0_i32, %c0_i32_0 : i32, i32
  }
  func.func @transform_2(%arg0: i32) -> (i32, i32) {
    %c0_i32 = arith.constant 0 : i32
    %c0_i32_0 = arith.constant 0 : i32
    %c0_i32_1 = arith.constant 0 : i32
    return %c0_i32, %c0_i32_0 : i32, i32
  }
  func.func @transform_3(%arg0: i32) -> (i32, i32) {
    %c0_i32 = arith.constant 0 : i32
    %c0_i32_0 = arith.constant 0 : i32
    %c0_i32_1 = arith.constant 0 : i32
    return %c0_i32, %c0_i32_0 : i32, i32
  }
  func.func @transform_4(%arg0: i32) -> (i32, i32) {
    %c0_i32 = arith.constant 0 : i32
    %c0_i32_0 = arith.constant 0 : i32
    return %arg0, %c0_i32 : i32, i32
  }
}

module attributes {stable_mosaic.version = 11 : i64} {
  func.func @_conv_gemm_kernel(%arg0: i32, %arg1: memref<512x288xbf16, #tpu.memory_space<vmem>>, %arg2: memref<288x32xbf16, #tpu.memory_space<vmem>>, %arg3: memref<1x32xf32, #tpu.memory_space<vmem>>, %arg4: memref<1x32xf32, #tpu.memory_space<vmem>>, %arg5: memref<512x32xbf16, #tpu.memory_space<vmem>>) attributes {dimension_semantics = [#tpu.dimension_semantics<parallel>], iteration_bounds = array<i64: 3>, scalar_prefetch = 0 : i64, scratch_operands = 0 : i64, tpu.core_type = #tpu.core_type<tc>, window_params = [{transform_indices = @transform_0, window_bounds = array<i64: 512, 288>}, {pipeline_mode = #tpu.pipeline_mode<synchronous>, transform_indices = @transform_1, window_bounds = array<i64: 288, 32>}, {pipeline_mode = #tpu.pipeline_mode<synchronous>, transform_indices = @transform_2, window_bounds = array<i64: 1, 32>}, {pipeline_mode = #tpu.pipeline_mode<synchronous>, transform_indices = @transform_3, window_bounds = array<i64: 1, 32>}, {transform_indices = @transform_4, window_bounds = array<i64: 512, 32>}]} {
    %c0 = arith.constant 0 : index
    %c0_0 = arith.constant 0 : index
    %0 = vector.load %arg1[%c0, %c0_0] : memref<512x288xbf16, #tpu.memory_space<vmem>>, vector<512x288xbf16>
    %c0_1 = arith.constant 0 : index
    %c0_2 = arith.constant 0 : index
    %1 = vector.load %arg2[%c0_1, %c0_2] : memref<288x32xbf16, #tpu.memory_space<vmem>>, vector<288x32xbf16>
    %cst = arith.constant dense<0.000000e+00> : vector<512x32xf32>
    %2 = tpu.matmul %0, %1, %cst {dimension_numbers = #tpu.dot_dimension_numbers<[1], [0], [0], [1], [0, 0, 1, 1], [], []>} : vector<512x288xbf16>, vector<288x32xbf16>, vector<512x32xf32> -> vector<512x32xf32>
    %c0_3 = arith.constant 0 : index
    %c0_4 = arith.constant 0 : index
    %3 = vector.load %arg3[%c0_3, %c0_4] : memref<1x32xf32, #tpu.memory_space<vmem>>, vector<1x32xf32>
    %4 = vector.broadcast %3 : vector<1x32xf32> to vector<512x32xf32>
    %5 = arith.mulf %2, %4 : vector<512x32xf32>
    %c0_5 = arith.constant 0 : index
    %c0_6 = arith.constant 0 : index
    %6 = vector.load %arg4[%c0_5, %c0_6] : memref<1x32xf32, #tpu.memory_space<vmem>>, vector<1x32xf32>
    %7 = vector.broadcast %6 : vector<1x32xf32> to vector<512x32xf32>
    %8 = arith.addf %5, %7 : vector<512x32xf32>
    %cst_7 = arith.constant 0.000000e+00 : f32
    %9 = vector.broadcast %cst_7 : f32 to vector<512x32xf32>
    %10 = arith.maximumf %8, %9 : vector<512x32xf32>
    %11 = arith.truncf %10 : vector<512x32xf32> to vector<512x32xbf16>
    %c0_8 = arith.constant 0 : index
    %c0_9 = arith.constant 0 : index
    %12 = vector.load %arg5[%c0_8, %c0_9] : memref<512x32xbf16, #tpu.memory_space<vmem>>, vector<512x32xbf16>
    tpu.vector_store %arg5[%c0_8, %c0_9], %11 {strides = array<i32>} : memref<512x32xbf16, #tpu.memory_space<vmem>>, vector<512x32xbf16>,
    return
  }
  func.func @transform_0(%arg0: i32) -> (i32, i32) {
    %c0_i32 = arith.constant 0 : i32
    %c0_i32_0 = arith.constant 0 : i32
    return %arg0, %c0_i32 : i32, i32
  }
  func.func @transform_1(%arg0: i32) -> (i32, i32) {
    %c0_i32 = arith.constant 0 : i32
    %c0_i32_0 = arith.constant 0 : i32
    %c0_i32_1 = arith.constant 0 : i32
    return %c0_i32, %c0_i32_0 : i32, i32
  }
  func.func @transform_2(%arg0: i32) -> (i32, i32) {
    %c0_i32 = arith.constant 0 : i32
    %c0_i32_0 = arith.constant 0 : i32
    %c0_i32_1 = arith.constant 0 : i32
    return %c0_i32, %c0_i32_0 : i32, i32
  }
  func.func @transform_3(%arg0: i32) -> (i32, i32) {
    %c0_i32 = arith.constant 0 : i32
    %c0_i32_0 = arith.constant 0 : i32
    %c0_i32_1 = arith.constant 0 : i32
    return %c0_i32, %c0_i32_0 : i32, i32
  }
  func.func @transform_4(%arg0: i32) -> (i32, i32) {
    %c0_i32 = arith.constant 0 : i32
    %c0_i32_0 = arith.constant 0 : i32
    return %arg0, %c0_i32 : i32, i32
  }
}

module attributes {stable_mosaic.version = 11 : i64} {
  func.func @_maxpool_kernel(%arg0: i32, %arg1: memref<1x12x2x24x32xbf16, #tpu.memory_space<vmem>>, %arg2: memref<1x12x12x32xbf16, #tpu.memory_space<vmem>>) attributes {dimension_semantics = [#tpu.dimension_semantics<parallel>], iteration_bounds = array<i64: 2>, scalar_prefetch = 0 : i64, scratch_operands = 0 : i64, tpu.core_type = #tpu.core_type<tc>, window_params = [{transform_indices = @transform_0, window_bounds = array<i64: 1, 12, 2, 24, 32>}, {transform_indices = @transform_1, window_bounds = array<i64: 1, 12, 12, 32>}]} {
    %c0 = arith.constant 0 : index
    %c0_0 = arith.constant 0 : index
    %c0_1 = arith.constant 0 : index
    %c0_2 = arith.constant 0 : index
    %c0_3 = arith.constant 0 : index
    %0 = vector.load %arg1[%c0, %c0_0, %c0_1, %c0_2, %c0_3] : memref<1x12x2x24x32xbf16, #tpu.memory_space<vmem>>, vector<1x12x1x24x32xbf16>
    %1 = vector.shape_cast %0 : vector<1x12x1x24x32xbf16> to vector<12x24x32xbf16>
    %c0_4 = arith.constant 0 : index
    %c0_5 = arith.constant 0 : index
    %c1 = arith.constant 1 : index
    %c0_6 = arith.constant 0 : index
    %c0_7 = arith.constant 0 : index
    %2 = vector.load %arg1[%c0_4, %c0_5, %c1, %c0_6, %c0_7] : memref<1x12x2x24x32xbf16, #tpu.memory_space<vmem>>, vector<1x12x1x24x32xbf16>
    %3 = vector.shape_cast %2 : vector<1x12x1x24x32xbf16> to vector<12x24x32xbf16>
    %4 = arith.maximumf %1, %3 : vector<12x24x32xbf16>
    %5 = tpu.iota {dimensions = array<i32: 0>} : vector<12x24xi32>
    %6 = tpu.iota {dimensions = array<i32: 1>} : vector<12x24xi32>
    %c2_i32 = arith.constant 2 : i32
    %7 = vector.broadcast %c2_i32 : i32 to vector<12x24xi32>
    %8 = arith.muli %7, %5 : vector<12x24xi32>
    %9 = arith.cmpi eq, %6, %8 : vector<12x24xi32>
    %10 = arith.extui %9 : vector<12x24xi1> to vector<12x24xi32>
    %11 = arith.sitofp %10 : vector<12x24xi32> to vector<12x24xf32>
    %12 = arith.truncf %11 : vector<12x24xf32> to vector<12x24xbf16>
    %c2_i32_8 = arith.constant 2 : i32
    %13 = vector.broadcast %c2_i32_8 : i32 to vector<12x24xi32>
    %14 = arith.muli %13, %5 : vector<12x24xi32>
    %c1_i32 = arith.constant 1 : i32
    %15 = vector.broadcast %c1_i32 : i32 to vector<12x24xi32>
    %16 = arith.addi %14, %15 : vector<12x24xi32>
    %17 = arith.cmpi eq, %6, %16 : vector<12x24xi32>
    %18 = arith.extui %17 : vector<12x24xi1> to vector<12x24xi32>
    %19 = arith.sitofp %18 : vector<12x24xi32> to vector<12x24xf32>
    %20 = arith.truncf %19 : vector<12x24xf32> to vector<12x24xbf16>
    %21 = vector.extract_strided_slice %4 {offsets = [0, 0, 0], sizes = [1, 24, 32], strides = [1, 1, 1]} : vector<12x24x32xbf16> to vector<1x24x32xbf16>
    %22 = vector.shape_cast %21 : vector<1x24x32xbf16> to vector<24x32xbf16>
    %cst = arith.constant dense<0.000000e+00> : vector<12x32xf32>
    %23 = tpu.matmul %12, %22, %cst {dimension_numbers = #tpu.dot_dimension_numbers<[1], [0], [0], [1], [0, 0, 1, 1], [], []>} : vector<12x24xbf16>, vector<24x32xbf16>, vector<12x32xf32> -> vector<12x32xf32>
    %cst_9 = arith.constant dense<0.000000e+00> : vector<12x32xf32>
    %24 = tpu.matmul %20, %22, %cst_9 {dimension_numbers = #tpu.dot_dimension_numbers<[1], [0], [0], [1], [0, 0, 1, 1], [], []>} : vector<12x24xbf16>, vector<24x32xbf16>, vector<12x32xf32> -> vector<12x32xf32>
    %25 = arith.maximumf %23, %24 : vector<12x32xf32>
    %26 = arith.truncf %25 : vector<12x32xf32> to vector<12x32xbf16>
    %c0_10 = arith.constant 0 : index
    %c0_11 = arith.constant 0 : index
    %c0_12 = arith.constant 0 : index
    %c0_13 = arith.constant 0 : index
    %27 = vector.load %arg2[%c0_10, %c0_11, %c0_12, %c0_13] : memref<1x12x12x32xbf16, #tpu.memory_space<vmem>>, vector<1x1x12x32xbf16>
    %28 = vector.shape_cast %27 : vector<1x1x12x32xbf16> to vector<12x32xbf16>
    %29 = vector.shape_cast %26 : vector<12x32xbf16> to vector<1x1x12x32xbf16>
    tpu.vector_store %arg2[%c0_10, %c0_11, %c0_12, %c0_13], %29 {strides = array<i32>} : memref<1x12x12x32xbf16, #tpu.memory_space<vmem>>, vector<1x1x12x32xbf16>,
    %30 = vector.extract_strided_slice %4 {offsets = [1, 0, 0], sizes = [1, 24, 32], strides = [1, 1, 1]} : vector<12x24x32xbf16> to vector<1x24x32xbf16>
    %31 = vector.shape_cast %30 : vector<1x24x32xbf16> to vector<24x32xbf16>
    %cst_14 = arith.constant dense<0.000000e+00> : vector<12x32xf32>
    %32 = tpu.matmul %12, %31, %cst_14 {dimension_numbers = #tpu.dot_dimension_numbers<[1], [0], [0], [1], [0, 0, 1, 1], [], []>} : vector<12x24xbf16>, vector<24x32xbf16>, vector<12x32xf32> -> vector<12x32xf32>
    %cst_15 = arith.constant dense<0.000000e+00> : vector<12x32xf32>
    %33 = tpu.matmul %20, %31, %cst_15 {dimension_numbers = #tpu.dot_dimension_numbers<[1], [0], [0], [1], [0, 0, 1, 1], [], []>} : vector<12x24xbf16>, vector<24x32xbf16>, vector<12x32xf32> -> vector<12x32xf32>
    %34 = arith.maximumf %32, %33 : vector<12x32xf32>
    %35 = arith.truncf %34 : vector<12x32xf32> to vector<12x32xbf16>
    %c0_16 = arith.constant 0 : index
    %c1_17 = arith.constant 1 : index
    %c0_18 = arith.constant 0 : index
    %c0_19 = arith.constant 0 : index
    %36 = vector.load %arg2[%c0_16, %c1_17, %c0_18, %c0_19] : memref<1x12x12x32xbf16, #tpu.memory_space<vmem>>, vector<1x1x12x32xbf16>
    %37 = vector.shape_cast %36 : vector<1x1x12x32xbf16> to vector<12x32xbf16>
    %38 = vector.shape_cast %35 : vector<12x32xbf16> to vector<1x1x12x32xbf16>
    tpu.vector_store %arg2[%c0_16, %c1_17, %c0_18, %c0_19], %38 {strides = array<i32>} : memref<1x12x12x32xbf16, #tpu.memory_space<vmem>>, vector<1x1x12x32xbf16>,
    %39 = vector.extract_strided_slice %4 {offsets = [2, 0, 0], sizes = [1, 24, 32], strides = [1, 1, 1]} : vector<12x24x32xbf16> to vector<1x24x32xbf16>
    %40 = vector.shape_cast %39 : vector<1x24x32xbf16> to vector<24x32xbf16>
    %cst_20 = arith.constant dense<0.000000e+00> : vector<12x32xf32>
    %41 = tpu.matmul %12, %40, %cst_20 {dimension_numbers = #tpu.dot_dimension_numbers<[1], [0], [0], [1], [0, 0, 1, 1], [], []>} : vector<12x24xbf16>, vector<24x32xbf16>, vector<12x32xf32> -> vector<12x32xf32>
    %cst_21 = arith.constant dense<0.000000e+00> : vector<12x32xf32>
    %42 = tpu.matmul %20, %40, %cst_21 {dimension_numbers = #tpu.dot_dimension_numbers<[1], [0], [0], [1], [0, 0, 1, 1], [], []>} : vector<12x24xbf16>, vector<24x32xbf16>, vector<12x32xf32> -> vector<12x32xf32>
    %43 = arith.maximumf %41, %42 : vector<12x32xf32>
    %44 = arith.truncf %43 : vector<12x32xf32> to vector<12x32xbf16>
    %c0_22 = arith.constant 0 : index
    %c2 = arith.constant 2 : index
    %c0_23 = arith.constant 0 : index
    %c0_24 = arith.constant 0 : index
    %45 = vector.load %arg2[%c0_22, %c2, %c0_23, %c0_24] : memref<1x12x12x32xbf16, #tpu.memory_space<vmem>>, vector<1x1x12x32xbf16>
    %46 = vector.shape_cast %45 : vector<1x1x12x32xbf16> to vector<12x32xbf16>
    %47 = vector.shape_cast %44 : vector<12x32xbf16> to vector<1x1x12x32xbf16>
    tpu.vector_store %arg2[%c0_22, %c2, %c0_23, %c0_24], %47 {strides = array<i32>} : memref<1x12x12x32xbf16, #tpu.memory_space<vmem>>, vector<1x1x12x32xbf16>,
    %48 = vector.extract_strided_slice %4 {offsets = [3, 0, 0], sizes = [1, 24, 32], strides = [1, 1, 1]} : vector<12x24x32xbf16> to vector<1x24x32xbf16>
    %49 = vector.shape_cast %48 : vector<1x24x32xbf16> to vector<24x32xbf16>
    %cst_25 = arith.constant dense<0.000000e+00> : vector<12x32xf32>
    %50 = tpu.matmul %12, %49, %cst_25 {dimension_numbers = #tpu.dot_dimension_numbers<[1], [0], [0], [1], [0, 0, 1, 1], [], []>} : vector<12x24xbf16>, vector<24x32xbf16>, vector<12x32xf32> -> vector<12x32xf32>
    %cst_26 = arith.constant dense<0.000000e+00> : vector<12x32xf32>
    %51 = tpu.matmul %20, %49, %cst_26 {dimension_numbers = #tpu.dot_dimension_numbers<[1], [0], [0], [1], [0, 0, 1, 1], [], []>} : vector<12x24xbf16>, vector<24x32xbf16>, vector<12x32xf32> -> vector<12x32xf32>
    %52 = arith.maximumf %50, %51 : vector<12x32xf32>
    %53 = arith.truncf %52 : vector<12x32xf32> to vector<12x32xbf16>
    %c0_27 = arith.constant 0 : index
    %c3 = arith.constant 3 : index
    %c0_28 = arith.constant 0 : index
    %c0_29 = arith.constant 0 : index
    %54 = vector.load %arg2[%c0_27, %c3, %c0_28, %c0_29] : memref<1x12x12x32xbf16, #tpu.memory_space<vmem>>, vector<1x1x12x32xbf16>
    %55 = vector.shape_cast %54 : vector<1x1x12x32xbf16> to vector<12x32xbf16>
    %56 = vector.shape_cast %53 : vector<12x32xbf16> to vector<1x1x12x32xbf16>
    tpu.vector_store %arg2[%c0_27, %c3, %c0_28, %c0_29], %56 {strides = array<i32>} : memref<1x12x12x32xbf16, #tpu.memory_space<vmem>>, vector<1x1x12x32xbf16>,
    %57 = vector.extract_strided_slice %4 {offsets = [4, 0, 0], sizes = [1, 24, 32], strides = [1, 1, 1]} : vector<12x24x32xbf16> to vector<1x24x32xbf16>
    %58 = vector.shape_cast %57 : vector<1x24x32xbf16> to vector<24x32xbf16>
    %cst_30 = arith.constant dense<0.000000e+00> : vector<12x32xf32>
    %59 = tpu.matmul %12, %58, %cst_30 {dimension_numbers = #tpu.dot_dimension_numbers<[1], [0], [0], [1], [0, 0, 1, 1], [], []>} : vector<12x24xbf16>, vector<24x32xbf16>, vector<12x32xf32> -> vector<12x32xf32>
    %cst_31 = arith.constant dense<0.000000e+00> : vector<12x32xf32>
    %60 = tpu.matmul %20, %58, %cst_31 {dimension_numbers = #tpu.dot_dimension_numbers<[1], [0], [0], [1], [0, 0, 1, 1], [], []>} : vector<12x24xbf16>, vector<24x32xbf16>, vector<12x32xf32> -> vector<12x32xf32>
    %61 = arith.maximumf %59, %60 : vector<12x32xf32>
    %62 = arith.truncf %61 : vector<12x32xf32> to vector<12x32xbf16>
    %c0_32 = arith.constant 0 : index
    %c4 = arith.constant 4 : index
    %c0_33 = arith.constant 0 : index
    %c0_34 = arith.constant 0 : index
    %63 = vector.load %arg2[%c0_32, %c4, %c0_33, %c0_34] : memref<1x12x12x32xbf16, #tpu.memory_space<vmem>>, vector<1x1x12x32xbf16>
    %64 = vector.shape_cast %63 : vector<1x1x12x32xbf16> to vector<12x32xbf16>
    %65 = vector.shape_cast %62 : vector<12x32xbf16> to vector<1x1x12x32xbf16>
    tpu.vector_store %arg2[%c0_32, %c4, %c0_33, %c0_34], %65 {strides = array<i32>} : memref<1x12x12x32xbf16, #tpu.memory_space<vmem>>, vector<1x1x12x32xbf16>,
    %66 = vector.extract_strided_slice %4 {offsets = [5, 0, 0], sizes = [1, 24, 32], strides = [1, 1, 1]} : vector<12x24x32xbf16> to vector<1x24x32xbf16>
    %67 = vector.shape_cast %66 : vector<1x24x32xbf16> to vector<24x32xbf16>
    %cst_35 = arith.constant dense<0.000000e+00> : vector<12x32xf32>
    %68 = tpu.matmul %12, %67, %cst_35 {dimension_numbers = #tpu.dot_dimension_numbers<[1], [0], [0], [1], [0, 0, 1, 1], [], []>} : vector<12x24xbf16>, vector<24x32xbf16>, vector<12x32xf32> -> vector<12x32xf32>
    %cst_36 = arith.constant dense<0.000000e+00> : vector<12x32xf32>
    %69 = tpu.matmul %20, %67, %cst_36 {dimension_numbers = #tpu.dot_dimension_numbers<[1], [0], [0], [1], [0, 0, 1, 1], [], []>} : vector<12x24xbf16>, vector<24x32xbf16>, vector<12x32xf32> -> vector<12x32xf32>
    %70 = arith.maximumf %68, %69 : vector<12x32xf32>
    %71 = arith.truncf %70 : vector<12x32xf32> to vector<12x32xbf16>
    %c0_37 = arith.constant 0 : index
    %c5 = arith.constant 5 : index
    %c0_38 = arith.constant 0 : index
    %c0_39 = arith.constant 0 : index
    %72 = vector.load %arg2[%c0_37, %c5, %c0_38, %c0_39] : memref<1x12x12x32xbf16, #tpu.memory_space<vmem>>, vector<1x1x12x32xbf16>
    %73 = vector.shape_cast %72 : vector<1x1x12x32xbf16> to vector<12x32xbf16>
    %74 = vector.shape_cast %71 : vector<12x32xbf16> to vector<1x1x12x32xbf16>
    tpu.vector_store %arg2[%c0_37, %c5, %c0_38, %c0_39], %74 {strides = array<i32>} : memref<1x12x12x32xbf16, #tpu.memory_space<vmem>>, vector<1x1x12x32xbf16>,
    %75 = vector.extract_strided_slice %4 {offsets = [6, 0, 0], sizes = [1, 24, 32], strides = [1, 1, 1]} : vector<12x24x32xbf16> to vector<1x24x32xbf16>
    %76 = vector.shape_cast %75 : vector<1x24x32xbf16> to vector<24x32xbf16>
    %cst_40 = arith.constant dense<0.000000e+00> : vector<12x32xf32>
    %77 = tpu.matmul %12, %76, %cst_40 {dimension_numbers = #tpu.dot_dimension_numbers<[1], [0], [0], [1], [0, 0, 1, 1], [], []>} : vector<12x24xbf16>, vector<24x32xbf16>, vector<12x32xf32> -> vector<12x32xf32>
    %cst_41 = arith.constant dense<0.000000e+00> : vector<12x32xf32>
    %78 = tpu.matmul %20, %76, %cst_41 {dimension_numbers = #tpu.dot_dimension_numbers<[1], [0], [0], [1], [0, 0, 1, 1], [], []>} : vector<12x24xbf16>, vector<24x32xbf16>, vector<12x32xf32> -> vector<12x32xf32>
    %79 = arith.maximumf %77, %78 : vector<12x32xf32>
    %80 = arith.truncf %79 : vector<12x32xf32> to vector<12x32xbf16>
    %c0_42 = arith.constant 0 : index
    %c6 = arith.constant 6 : index
    %c0_43 = arith.constant 0 : index
    %c0_44 = arith.constant 0 : index
    %81 = vector.load %arg2[%c0_42, %c6, %c0_43, %c0_44] : memref<1x12x12x32xbf16, #tpu.memory_space<vmem>>, vector<1x1x12x32xbf16>
    %82 = vector.shape_cast %81 : vector<1x1x12x32xbf16> to vector<12x32xbf16>
    %83 = vector.shape_cast %80 : vector<12x32xbf16> to vector<1x1x12x32xbf16>
    tpu.vector_store %arg2[%c0_42, %c6, %c0_43, %c0_44], %83 {strides = array<i32>} : memref<1x12x12x32xbf16, #tpu.memory_space<vmem>>, vector<1x1x12x32xbf16>,
    %84 = vector.extract_strided_slice %4 {offsets = [7, 0, 0], sizes = [1, 24, 32], strides = [1, 1, 1]} : vector<12x24x32xbf16> to vector<1x24x32xbf16>
    %85 = vector.shape_cast %84 : vector<1x24x32xbf16> to vector<24x32xbf16>
    %cst_45 = arith.constant dense<0.000000e+00> : vector<12x32xf32>
    %86 = tpu.matmul %12, %85, %cst_45 {dimension_numbers = #tpu.dot_dimension_numbers<[1], [0], [0], [1], [0, 0, 1, 1], [], []>} : vector<12x24xbf16>, vector<24x32xbf16>, vector<12x32xf32> -> vector<12x32xf32>
    %cst_46 = arith.constant dense<0.000000e+00> : vector<12x32xf32>
    %87 = tpu.matmul %20, %85, %cst_46 {dimension_numbers = #tpu.dot_dimension_numbers<[1], [0], [0], [1], [0, 0, 1, 1], [], []>} : vector<12x24xbf16>, vector<24x32xbf16>, vector<12x32xf32> -> vector<12x32xf32>
    %88 = arith.maximumf %86, %87 : vector<12x32xf32>
    %89 = arith.truncf %88 : vector<12x32xf32> to vector<12x32xbf16>
    %c0_47 = arith.constant 0 : index
    %c7 = arith.constant 7 : index
    %c0_48 = arith.constant 0 : index
    %c0_49 = arith.constant 0 : index
    %90 = vector.load %arg2[%c0_47, %c7, %c0_48, %c0_49] : memref<1x12x12x32xbf16, #tpu.memory_space<vmem>>, vector<1x1x12x32xbf16>
    %91 = vector.shape_cast %90 : vector<1x1x12x32xbf16> to vector<12x32xbf16>
    %92 = vector.shape_cast %89 : vector<12x32xbf16> to vector<1x1x12x32xbf16>
    tpu.vector_store %arg2[%c0_47, %c7, %c0_48, %c0_49], %92 {strides = array<i32>} : memref<1x12x12x32xbf16, #tpu.memory_space<vmem>>, vector<1x1x12x32xbf16>,
    %93 = vector.extract_strided_slice %4 {offsets = [8, 0, 0], sizes = [1, 24, 32], strides = [1, 1, 1]} : vector<12x24x32xbf16> to vector<1x24x32xbf16>
    %94 = vector.shape_cast %93 : vector<1x24x32xbf16> to vector<24x32xbf16>
    %cst_50 = arith.constant dense<0.000000e+00> : vector<12x32xf32>
    %95 = tpu.matmul %12, %94, %cst_50 {dimension_numbers = #tpu.dot_dimension_numbers<[1], [0], [0], [1], [0, 0, 1, 1], [], []>} : vector<12x24xbf16>, vector<24x32xbf16>, vector<12x32xf32> -> vector<12x32xf32>
    %cst_51 = arith.constant dense<0.000000e+00> : vector<12x32xf32>
    %96 = tpu.matmul %20, %94, %cst_51 {dimension_numbers = #tpu.dot_dimension_numbers<[1], [0], [0], [1], [0, 0, 1, 1], [], []>} : vector<12x24xbf16>, vector<24x32xbf16>, vector<12x32xf32> -> vector<12x32xf32>
    %97 = arith.maximumf %95, %96 : vector<12x32xf32>
    %98 = arith.truncf %97 : vector<12x32xf32> to vector<12x32xbf16>
    %c0_52 = arith.constant 0 : index
    %c8 = arith.constant 8 : index
    %c0_53 = arith.constant 0 : index
    %c0_54 = arith.constant 0 : index
    %99 = vector.load %arg2[%c0_52, %c8, %c0_53, %c0_54] : memref<1x12x12x32xbf16, #tpu.memory_space<vmem>>, vector<1x1x12x32xbf16>
    %100 = vector.shape_cast %99 : vector<1x1x12x32xbf16> to vector<12x32xbf16>
    %101 = vector.shape_cast %98 : vector<12x32xbf16> to vector<1x1x12x32xbf16>
    tpu.vector_store %arg2[%c0_52, %c8, %c0_53, %c0_54], %101 {strides = array<i32>} : memref<1x12x12x32xbf16, #tpu.memory_space<vmem>>, vector<1x1x12x32xbf16>,
    %102 = vector.extract_strided_slice %4 {offsets = [9, 0, 0], sizes = [1, 24, 32], strides = [1, 1, 1]} : vector<12x24x32xbf16> to vector<1x24x32xbf16>
    %103 = vector.shape_cast %102 : vector<1x24x32xbf16> to vector<24x32xbf16>
    %cst_55 = arith.constant dense<0.000000e+00> : vector<12x32xf32>
    %104 = tpu.matmul %12, %103, %cst_55 {dimension_numbers = #tpu.dot_dimension_numbers<[1], [0], [0], [1], [0, 0, 1, 1], [], []>} : vector<12x24xbf16>, vector<24x32xbf16>, vector<12x32xf32> -> vector<12x32xf32>
    %cst_56 = arith.constant dense<0.000000e+00> : vector<12x32xf32>
    %105 = tpu.matmul %20, %103, %cst_56 {dimension_numbers = #tpu.dot_dimension_numbers<[1], [0], [0], [1], [0, 0, 1, 1], [], []>} : vector<12x24xbf16>, vector<24x32xbf16>, vector<12x32xf32> -> vector<12x32xf32>
    %106 = arith.maximumf %104, %105 : vector<12x32xf32>
    %107 = arith.truncf %106 : vector<12x32xf32> to vector<12x32xbf16>
    %c0_57 = arith.constant 0 : index
    %c9 = arith.constant 9 : index
    %c0_58 = arith.constant 0 : index
    %c0_59 = arith.constant 0 : index
    %108 = vector.load %arg2[%c0_57, %c9, %c0_58, %c0_59] : memref<1x12x12x32xbf16, #tpu.memory_space<vmem>>, vector<1x1x12x32xbf16>
    %109 = vector.shape_cast %108 : vector<1x1x12x32xbf16> to vector<12x32xbf16>
    %110 = vector.shape_cast %107 : vector<12x32xbf16> to vector<1x1x12x32xbf16>
    tpu.vector_store %arg2[%c0_57, %c9, %c0_58, %c0_59], %110 {strides = array<i32>} : memref<1x12x12x32xbf16, #tpu.memory_space<vmem>>, vector<1x1x12x32xbf16>,
    %111 = vector.extract_strided_slice %4 {offsets = [10, 0, 0], sizes = [1, 24, 32], strides = [1, 1, 1]} : vector<12x24x32xbf16> to vector<1x24x32xbf16>
    %112 = vector.shape_cast %111 : vector<1x24x32xbf16> to vector<24x32xbf16>
    %cst_60 = arith.constant dense<0.000000e+00> : vector<12x32xf32>
    %113 = tpu.matmul %12, %112, %cst_60 {dimension_numbers = #tpu.dot_dimension_numbers<[1], [0], [0], [1], [0, 0, 1, 1], [], []>} : vector<12x24xbf16>, vector<24x32xbf16>, vector<12x32xf32> -> vector<12x32xf32>
    %cst_61 = arith.constant dense<0.000000e+00> : vector<12x32xf32>
    %114 = tpu.matmul %20, %112, %cst_61 {dimension_numbers = #tpu.dot_dimension_numbers<[1], [0], [0], [1], [0, 0, 1, 1], [], []>} : vector<12x24xbf16>, vector<24x32xbf16>, vector<12x32xf32> -> vector<12x32xf32>
    %115 = arith.maximumf %113, %114 : vector<12x32xf32>
    %116 = arith.truncf %115 : vector<12x32xf32> to vector<12x32xbf16>
    %c0_62 = arith.constant 0 : index
    %c10 = arith.constant 10 : index
    %c0_63 = arith.constant 0 : index
    %c0_64 = arith.constant 0 : index
    %117 = vector.load %arg2[%c0_62, %c10, %c0_63, %c0_64] : memref<1x12x12x32xbf16, #tpu.memory_space<vmem>>, vector<1x1x12x32xbf16>
    %118 = vector.shape_cast %117 : vector<1x1x12x32xbf16> to vector<12x32xbf16>
    %119 = vector.shape_cast %116 : vector<12x32xbf16> to vector<1x1x12x32xbf16>
    tpu.vector_store %arg2[%c0_62, %c10, %c0_63, %c0_64], %119 {strides = array<i32>} : memref<1x12x12x32xbf16, #tpu.memory_space<vmem>>, vector<1x1x12x32xbf16>,
    %120 = vector.extract_strided_slice %4 {offsets = [11, 0, 0], sizes = [1, 24, 32], strides = [1, 1, 1]} : vector<12x24x32xbf16> to vector<1x24x32xbf16>
    %121 = vector.shape_cast %120 : vector<1x24x32xbf16> to vector<24x32xbf16>
    %cst_65 = arith.constant dense<0.000000e+00> : vector<12x32xf32>
    %122 = tpu.matmul %12, %121, %cst_65 {dimension_numbers = #tpu.dot_dimension_numbers<[1], [0], [0], [1], [0, 0, 1, 1], [], []>} : vector<12x24xbf16>, vector<24x32xbf16>, vector<12x32xf32> -> vector<12x32xf32>
    %cst_66 = arith.constant dense<0.000000e+00> : vector<12x32xf32>
    %123 = tpu.matmul %20, %121, %cst_66 {dimension_numbers = #tpu.dot_dimension_numbers<[1], [0], [0], [1], [0, 0, 1, 1], [], []>} : vector<12x24xbf16>, vector<24x32xbf16>, vector<12x32xf32> -> vector<12x32xf32>
    %124 = arith.maximumf %122, %123 : vector<12x32xf32>
    %125 = arith.truncf %124 : vector<12x32xf32> to vector<12x32xbf16>
    %c0_67 = arith.constant 0 : index
    %c11 = arith.constant 11 : index
    %c0_68 = arith.constant 0 : index
    %c0_69 = arith.constant 0 : index
    %126 = vector.load %arg2[%c0_67, %c11, %c0_68, %c0_69] : memref<1x12x12x32xbf16, #tpu.memory_space<vmem>>, vector<1x1x12x32xbf16>
    %127 = vector.shape_cast %126 : vector<1x1x12x32xbf16> to vector<12x32xbf16>
    %128 = vector.shape_cast %125 : vector<12x32xbf16> to vector<1x1x12x32xbf16>
    tpu.vector_store %arg2[%c0_67, %c11, %c0_68, %c0_69], %128 {strides = array<i32>} : memref<1x12x12x32xbf16, #tpu.memory_space<vmem>>, vector<1x1x12x32xbf16>,
    return
  }
  func.func @transform_0(%arg0: i32) -> (i32, i32, i32, i32, i32) {
    %c0_i32 = arith.constant 0 : i32
    %c0_i32_0 = arith.constant 0 : i32
    %c0_i32_1 = arith.constant 0 : i32
    %c0_i32_2 = arith.constant 0 : i32
    %c0_i32_3 = arith.constant 0 : i32
    return %arg0, %c0_i32, %c0_i32_0, %c0_i32_1, %c0_i32_2 : i32, i32, i32, i32, i32
  }
  func.func @transform_1(%arg0: i32) -> (i32, i32, i32, i32) {
    %c0_i32 = arith.constant 0 : i32
    %c0_i32_0 = arith.constant 0 : i32
    %c0_i32_1 = arith.constant 0 : i32
    %c0_i32_2 = arith.constant 0 : i32
    return %arg0, %c0_i32, %c0_i32_0, %c0_i32_1 : i32, i32, i32, i32
  }
}

module attributes {stable_mosaic.version = 11 : i64} {
  func.func @_conv_gemm_kernel(%arg0: i32, %arg1: memref<200x288xbf16, #tpu.memory_space<vmem>>, %arg2: memref<288x64xbf16, #tpu.memory_space<vmem>>, %arg3: memref<1x64xf32, #tpu.memory_space<vmem>>, %arg4: memref<1x64xf32, #tpu.memory_space<vmem>>, %arg5: memref<200x64xbf16, #tpu.memory_space<vmem>>) attributes {dimension_semantics = [#tpu.dimension_semantics<parallel>], iteration_bounds = array<i64: 1>, scalar_prefetch = 0 : i64, scratch_operands = 0 : i64, tpu.core_type = #tpu.core_type<tc>, window_params = [{transform_indices = @transform_0, window_bounds = array<i64: 200, 288>}, {pipeline_mode = #tpu.pipeline_mode<synchronous>, transform_indices = @transform_1, window_bounds = array<i64: 288, 64>}, {pipeline_mode = #tpu.pipeline_mode<synchronous>, transform_indices = @transform_2, window_bounds = array<i64: 1, 64>}, {pipeline_mode = #tpu.pipeline_mode<synchronous>, transform_indices = @transform_3, window_bounds = array<i64: 1, 64>}, {transform_indices = @transform_4, window_bounds = array<i64: 200, 64>}]} {
    %c0 = arith.constant 0 : index
    %c0_0 = arith.constant 0 : index
    %0 = vector.load %arg1[%c0, %c0_0] : memref<200x288xbf16, #tpu.memory_space<vmem>>, vector<200x288xbf16>
    %c0_1 = arith.constant 0 : index
    %c0_2 = arith.constant 0 : index
    %1 = vector.load %arg2[%c0_1, %c0_2] : memref<288x64xbf16, #tpu.memory_space<vmem>>, vector<288x64xbf16>
    %cst = arith.constant dense<0.000000e+00> : vector<200x64xf32>
    %2 = tpu.matmul %0, %1, %cst {dimension_numbers = #tpu.dot_dimension_numbers<[1], [0], [0], [1], [0, 0, 1, 1], [], []>} : vector<200x288xbf16>, vector<288x64xbf16>, vector<200x64xf32> -> vector<200x64xf32>
    %c0_3 = arith.constant 0 : index
    %c0_4 = arith.constant 0 : index
    %3 = vector.load %arg3[%c0_3, %c0_4] : memref<1x64xf32, #tpu.memory_space<vmem>>, vector<1x64xf32>
    %4 = vector.broadcast %3 : vector<1x64xf32> to vector<200x64xf32>
    %5 = arith.mulf %2, %4 : vector<200x64xf32>
    %c0_5 = arith.constant 0 : index
    %c0_6 = arith.constant 0 : index
    %6 = vector.load %arg4[%c0_5, %c0_6] : memref<1x64xf32, #tpu.memory_space<vmem>>, vector<1x64xf32>
    %7 = vector.broadcast %6 : vector<1x64xf32> to vector<200x64xf32>
    %8 = arith.addf %5, %7 : vector<200x64xf32>
    %cst_7 = arith.constant 0.000000e+00 : f32
    %9 = vector.broadcast %cst_7 : f32 to vector<200x64xf32>
    %10 = arith.maximumf %8, %9 : vector<200x64xf32>
    %11 = arith.truncf %10 : vector<200x64xf32> to vector<200x64xbf16>
    %c0_8 = arith.constant 0 : index
    %c0_9 = arith.constant 0 : index
    %12 = vector.load %arg5[%c0_8, %c0_9] : memref<200x64xbf16, #tpu.memory_space<vmem>>, vector<200x64xbf16>
    tpu.vector_store %arg5[%c0_8, %c0_9], %11 {strides = array<i32>} : memref<200x64xbf16, #tpu.memory_space<vmem>>, vector<200x64xbf16>,
    return
  }
  func.func @transform_0(%arg0: i32) -> (i32, i32) {
    %c0_i32 = arith.constant 0 : i32
    %c0_i32_0 = arith.constant 0 : i32
    return %arg0, %c0_i32 : i32, i32
  }
  func.func @transform_1(%arg0: i32) -> (i32, i32) {
    %c0_i32 = arith.constant 0 : i32
    %c0_i32_0 = arith.constant 0 : i32
    %c0_i32_1 = arith.constant 0 : i32
    return %c0_i32, %c0_i32_0 : i32, i32
  }
  func.func @transform_2(%arg0: i32) -> (i32, i32) {
    %c0_i32 = arith.constant 0 : i32
    %c0_i32_0 = arith.constant 0 : i32
    %c0_i32_1 = arith.constant 0 : i32
    return %c0_i32, %c0_i32_0 : i32, i32
  }
  func.func @transform_3(%arg0: i32) -> (i32, i32) {
    %c0_i32 = arith.constant 0 : i32
    %c0_i32_0 = arith.constant 0 : i32
    %c0_i32_1 = arith.constant 0 : i32
    return %c0_i32, %c0_i32_0 : i32, i32
  }
  func.func @transform_4(%arg0: i32) -> (i32, i32) {
    %c0_i32 = arith.constant 0 : i32
    %c0_i32_0 = arith.constant 0 : i32
    return %arg0, %c0_i32 : i32, i32
  }
}

module attributes {stable_mosaic.version = 11 : i64} {
  func.func @_conv_gemm_kernel(%arg0: i32, %arg1: memref<128x576xbf16, #tpu.memory_space<vmem>>, %arg2: memref<576x64xbf16, #tpu.memory_space<vmem>>, %arg3: memref<1x64xf32, #tpu.memory_space<vmem>>, %arg4: memref<1x64xf32, #tpu.memory_space<vmem>>, %arg5: memref<128x64xbf16, #tpu.memory_space<vmem>>) attributes {dimension_semantics = [#tpu.dimension_semantics<parallel>], iteration_bounds = array<i64: 1>, scalar_prefetch = 0 : i64, scratch_operands = 0 : i64, tpu.core_type = #tpu.core_type<tc>, window_params = [{transform_indices = @transform_0, window_bounds = array<i64: 128, 576>}, {pipeline_mode = #tpu.pipeline_mode<synchronous>, transform_indices = @transform_1, window_bounds = array<i64: 576, 64>}, {pipeline_mode = #tpu.pipeline_mode<synchronous>, transform_indices = @transform_2, window_bounds = array<i64: 1, 64>}, {pipeline_mode = #tpu.pipeline_mode<synchronous>, transform_indices = @transform_3, window_bounds = array<i64: 1, 64>}, {transform_indices = @transform_4, window_bounds = array<i64: 128, 64>}]} {
    %c0 = arith.constant 0 : index
    %c0_0 = arith.constant 0 : index
    %0 = vector.load %arg1[%c0, %c0_0] : memref<128x576xbf16, #tpu.memory_space<vmem>>, vector<128x576xbf16>
    %c0_1 = arith.constant 0 : index
    %c0_2 = arith.constant 0 : index
    %1 = vector.load %arg2[%c0_1, %c0_2] : memref<576x64xbf16, #tpu.memory_space<vmem>>, vector<576x64xbf16>
    %cst = arith.constant dense<0.000000e+00> : vector<128x64xf32>
    %2 = tpu.matmul %0, %1, %cst {dimension_numbers = #tpu.dot_dimension_numbers<[1], [0], [0], [1], [0, 0, 1, 1], [], []>} : vector<128x576xbf16>, vector<576x64xbf16>, vector<128x64xf32> -> vector<128x64xf32>
    %c0_3 = arith.constant 0 : index
    %c0_4 = arith.constant 0 : index
    %3 = vector.load %arg3[%c0_3, %c0_4] : memref<1x64xf32, #tpu.memory_space<vmem>>, vector<1x64xf32>
    %4 = vector.broadcast %3 : vector<1x64xf32> to vector<128x64xf32>
    %5 = arith.mulf %2, %4 : vector<128x64xf32>
    %c0_5 = arith.constant 0 : index
    %c0_6 = arith.constant 0 : index
    %6 = vector.load %arg4[%c0_5, %c0_6] : memref<1x64xf32, #tpu.memory_space<vmem>>, vector<1x64xf32>
    %7 = vector.broadcast %6 : vector<1x64xf32> to vector<128x64xf32>
    %8 = arith.addf %5, %7 : vector<128x64xf32>
    %cst_7 = arith.constant 0.000000e+00 : f32
    %9 = vector.broadcast %cst_7 : f32 to vector<128x64xf32>
    %10 = arith.maximumf %8, %9 : vector<128x64xf32>
    %11 = arith.truncf %10 : vector<128x64xf32> to vector<128x64xbf16>
    %c0_8 = arith.constant 0 : index
    %c0_9 = arith.constant 0 : index
    %12 = vector.load %arg5[%c0_8, %c0_9] : memref<128x64xbf16, #tpu.memory_space<vmem>>, vector<128x64xbf16>
    tpu.vector_store %arg5[%c0_8, %c0_9], %11 {strides = array<i32>} : memref<128x64xbf16, #tpu.memory_space<vmem>>, vector<128x64xbf16>,
    return
  }
  func.func @transform_0(%arg0: i32) -> (i32, i32) {
    %c0_i32 = arith.constant 0 : i32
    %c0_i32_0 = arith.constant 0 : i32
    return %arg0, %c0_i32 : i32, i32
  }
  func.func @transform_1(%arg0: i32) -> (i32, i32) {
    %c0_i32 = arith.constant 0 : i32
    %c0_i32_0 = arith.constant 0 : i32
    %c0_i32_1 = arith.constant 0 : i32
    return %c0_i32, %c0_i32_0 : i32, i32
  }
  func.func @transform_2(%arg0: i32) -> (i32, i32) {
    %c0_i32 = arith.constant 0 : i32
    %c0_i32_0 = arith.constant 0 : i32
    %c0_i32_1 = arith.constant 0 : i32
    return %c0_i32, %c0_i32_0 : i32, i32
  }
  func.func @transform_3(%arg0: i32) -> (i32, i32) {
    %c0_i32 = arith.constant 0 : i32
    %c0_i32_0 = arith.constant 0 : i32
    %c0_i32_1 = arith.constant 0 : i32
    return %c0_i32, %c0_i32_0 : i32, i32
  }
  func.func @transform_4(%arg0: i32) -> (i32, i32) {
    %c0_i32 = arith.constant 0 : i32
    %c0_i32_0 = arith.constant 0 : i32
    return %arg0, %c0_i32 : i32, i32
  }
}

module attributes {stable_mosaic.version = 11 : i64} {
  func.func @_maxpool_kernel(%arg0: i32, %arg1: memref<1x4x2x8x64xbf16, #tpu.memory_space<vmem>>, %arg2: memref<1x4x4x64xbf16, #tpu.memory_space<vmem>>) attributes {dimension_semantics = [#tpu.dimension_semantics<parallel>], iteration_bounds = array<i64: 2>, scalar_prefetch = 0 : i64, scratch_operands = 0 : i64, tpu.core_type = #tpu.core_type<tc>, window_params = [{transform_indices = @transform_0, window_bounds = array<i64: 1, 4, 2, 8, 64>}, {transform_indices = @transform_1, window_bounds = array<i64: 1, 4, 4, 64>}]} {
    %c0 = arith.constant 0 : index
    %c0_0 = arith.constant 0 : index
    %c0_1 = arith.constant 0 : index
    %c0_2 = arith.constant 0 : index
    %c0_3 = arith.constant 0 : index
    %0 = vector.load %arg1[%c0, %c0_0, %c0_1, %c0_2, %c0_3] : memref<1x4x2x8x64xbf16, #tpu.memory_space<vmem>>, vector<1x4x1x8x64xbf16>
    %1 = vector.shape_cast %0 : vector<1x4x1x8x64xbf16> to vector<4x8x64xbf16>
    %c0_4 = arith.constant 0 : index
    %c0_5 = arith.constant 0 : index
    %c1 = arith.constant 1 : index
    %c0_6 = arith.constant 0 : index
    %c0_7 = arith.constant 0 : index
    %2 = vector.load %arg1[%c0_4, %c0_5, %c1, %c0_6, %c0_7] : memref<1x4x2x8x64xbf16, #tpu.memory_space<vmem>>, vector<1x4x1x8x64xbf16>
    %3 = vector.shape_cast %2 : vector<1x4x1x8x64xbf16> to vector<4x8x64xbf16>
    %4 = arith.maximumf %1, %3 : vector<4x8x64xbf16>
    %5 = tpu.iota {dimensions = array<i32: 0>} : vector<4x8xi32>
    %6 = tpu.iota {dimensions = array<i32: 1>} : vector<4x8xi32>
    %c2_i32 = arith.constant 2 : i32
    %7 = vector.broadcast %c2_i32 : i32 to vector<4x8xi32>
    %8 = arith.muli %7, %5 : vector<4x8xi32>
    %9 = arith.cmpi eq, %6, %8 : vector<4x8xi32>
    %10 = arith.extui %9 : vector<4x8xi1> to vector<4x8xi32>
    %11 = arith.sitofp %10 : vector<4x8xi32> to vector<4x8xf32>
    %12 = arith.truncf %11 : vector<4x8xf32> to vector<4x8xbf16>
    %c2_i32_8 = arith.constant 2 : i32
    %13 = vector.broadcast %c2_i32_8 : i32 to vector<4x8xi32>
    %14 = arith.muli %13, %5 : vector<4x8xi32>
    %c1_i32 = arith.constant 1 : i32
    %15 = vector.broadcast %c1_i32 : i32 to vector<4x8xi32>
    %16 = arith.addi %14, %15 : vector<4x8xi32>
    %17 = arith.cmpi eq, %6, %16 : vector<4x8xi32>
    %18 = arith.extui %17 : vector<4x8xi1> to vector<4x8xi32>
    %19 = arith.sitofp %18 : vector<4x8xi32> to vector<4x8xf32>
    %20 = arith.truncf %19 : vector<4x8xf32> to vector<4x8xbf16>
    %21 = vector.extract_strided_slice %4 {offsets = [0, 0, 0], sizes = [1, 8, 64], strides = [1, 1, 1]} : vector<4x8x64xbf16> to vector<1x8x64xbf16>
    %22 = vector.shape_cast %21 : vector<1x8x64xbf16> to vector<8x64xbf16>
    %cst = arith.constant dense<0.000000e+00> : vector<4x64xf32>
    %23 = tpu.matmul %12, %22, %cst {dimension_numbers = #tpu.dot_dimension_numbers<[1], [0], [0], [1], [0, 0, 1, 1], [], []>} : vector<4x8xbf16>, vector<8x64xbf16>, vector<4x64xf32> -> vector<4x64xf32>
    %cst_9 = arith.constant dense<0.000000e+00> : vector<4x64xf32>
    %24 = tpu.matmul %20, %22, %cst_9 {dimension_numbers = #tpu.dot_dimension_numbers<[1], [0], [0], [1], [0, 0, 1, 1], [], []>} : vector<4x8xbf16>, vector<8x64xbf16>, vector<4x64xf32> -> vector<4x64xf32>
    %25 = arith.maximumf %23, %24 : vector<4x64xf32>
    %26 = arith.truncf %25 : vector<4x64xf32> to vector<4x64xbf16>
    %c0_10 = arith.constant 0 : index
    %c0_11 = arith.constant 0 : index
    %c0_12 = arith.constant 0 : index
    %c0_13 = arith.constant 0 : index
    %27 = vector.load %arg2[%c0_10, %c0_11, %c0_12, %c0_13] : memref<1x4x4x64xbf16, #tpu.memory_space<vmem>>, vector<1x1x4x64xbf16>
    %28 = vector.shape_cast %27 : vector<1x1x4x64xbf16> to vector<4x64xbf16>
    %29 = vector.shape_cast %26 : vector<4x64xbf16> to vector<1x1x4x64xbf16>
    tpu.vector_store %arg2[%c0_10, %c0_11, %c0_12, %c0_13], %29 {strides = array<i32>} : memref<1x4x4x64xbf16, #tpu.memory_space<vmem>>, vector<1x1x4x64xbf16>,
    %30 = vector.extract_strided_slice %4 {offsets = [1, 0, 0], sizes = [1, 8, 64], strides = [1, 1, 1]} : vector<4x8x64xbf16> to vector<1x8x64xbf16>
    %31 = vector.shape_cast %30 : vector<1x8x64xbf16> to vector<8x64xbf16>
    %cst_14 = arith.constant dense<0.000000e+00> : vector<4x64xf32>
    %32 = tpu.matmul %12, %31, %cst_14 {dimension_numbers = #tpu.dot_dimension_numbers<[1], [0], [0], [1], [0, 0, 1, 1], [], []>} : vector<4x8xbf16>, vector<8x64xbf16>, vector<4x64xf32> -> vector<4x64xf32>
    %cst_15 = arith.constant dense<0.000000e+00> : vector<4x64xf32>
    %33 = tpu.matmul %20, %31, %cst_15 {dimension_numbers = #tpu.dot_dimension_numbers<[1], [0], [0], [1], [0, 0, 1, 1], [], []>} : vector<4x8xbf16>, vector<8x64xbf16>, vector<4x64xf32> -> vector<4x64xf32>
    %34 = arith.maximumf %32, %33 : vector<4x64xf32>
    %35 = arith.truncf %34 : vector<4x64xf32> to vector<4x64xbf16>
    %c0_16 = arith.constant 0 : index
    %c1_17 = arith.constant 1 : index
    %c0_18 = arith.constant 0 : index
    %c0_19 = arith.constant 0 : index
    %36 = vector.load %arg2[%c0_16, %c1_17, %c0_18, %c0_19] : memref<1x4x4x64xbf16, #tpu.memory_space<vmem>>, vector<1x1x4x64xbf16>
    %37 = vector.shape_cast %36 : vector<1x1x4x64xbf16> to vector<4x64xbf16>
    %38 = vector.shape_cast %35 : vector<4x64xbf16> to vector<1x1x4x64xbf16>
    tpu.vector_store %arg2[%c0_16, %c1_17, %c0_18, %c0_19], %38 {strides = array<i32>} : memref<1x4x4x64xbf16, #tpu.memory_space<vmem>>, vector<1x1x4x64xbf16>,
    %39 = vector.extract_strided_slice %4 {offsets = [2, 0, 0], sizes = [1, 8, 64], strides = [1, 1, 1]} : vector<4x8x64xbf16> to vector<1x8x64xbf16>
    %40 = vector.shape_cast %39 : vector<1x8x64xbf16> to vector<8x64xbf16>
    %cst_20 = arith.constant dense<0.000000e+00> : vector<4x64xf32>
    %41 = tpu.matmul %12, %40, %cst_20 {dimension_numbers = #tpu.dot_dimension_numbers<[1], [0], [0], [1], [0, 0, 1, 1], [], []>} : vector<4x8xbf16>, vector<8x64xbf16>, vector<4x64xf32> -> vector<4x64xf32>
    %cst_21 = arith.constant dense<0.000000e+00> : vector<4x64xf32>
    %42 = tpu.matmul %20, %40, %cst_21 {dimension_numbers = #tpu.dot_dimension_numbers<[1], [0], [0], [1], [0, 0, 1, 1], [], []>} : vector<4x8xbf16>, vector<8x64xbf16>, vector<4x64xf32> -> vector<4x64xf32>
    %43 = arith.maximumf %41, %42 : vector<4x64xf32>
    %44 = arith.truncf %43 : vector<4x64xf32> to vector<4x64xbf16>
    %c0_22 = arith.constant 0 : index
    %c2 = arith.constant 2 : index
    %c0_23 = arith.constant 0 : index
    %c0_24 = arith.constant 0 : index
    %45 = vector.load %arg2[%c0_22, %c2, %c0_23, %c0_24] : memref<1x4x4x64xbf16, #tpu.memory_space<vmem>>, vector<1x1x4x64xbf16>
    %46 = vector.shape_cast %45 : vector<1x1x4x64xbf16> to vector<4x64xbf16>
    %47 = vector.shape_cast %44 : vector<4x64xbf16> to vector<1x1x4x64xbf16>
    tpu.vector_store %arg2[%c0_22, %c2, %c0_23, %c0_24], %47 {strides = array<i32>} : memref<1x4x4x64xbf16, #tpu.memory_space<vmem>>, vector<1x1x4x64xbf16>,
    %48 = vector.extract_strided_slice %4 {offsets = [3, 0, 0], sizes = [1, 8, 64], strides = [1, 1, 1]} : vector<4x8x64xbf16> to vector<1x8x64xbf16>
    %49 = vector.shape_cast %48 : vector<1x8x64xbf16> to vector<8x64xbf16>
    %cst_25 = arith.constant dense<0.000000e+00> : vector<4x64xf32>
    %50 = tpu.matmul %12, %49, %cst_25 {dimension_numbers = #tpu.dot_dimension_numbers<[1], [0], [0], [1], [0, 0, 1, 1], [], []>} : vector<4x8xbf16>, vector<8x64xbf16>, vector<4x64xf32> -> vector<4x64xf32>
    %cst_26 = arith.constant dense<0.000000e+00> : vector<4x64xf32>
    %51 = tpu.matmul %20, %49, %cst_26 {dimension_numbers = #tpu.dot_dimension_numbers<[1], [0], [0], [1], [0, 0, 1, 1], [], []>} : vector<4x8xbf16>, vector<8x64xbf16>, vector<4x64xf32> -> vector<4x64xf32>
    %52 = arith.maximumf %50, %51 : vector<4x64xf32>
    %53 = arith.truncf %52 : vector<4x64xf32> to vector<4x64xbf16>
    %c0_27 = arith.constant 0 : index
    %c3 = arith.constant 3 : index
    %c0_28 = arith.constant 0 : index
    %c0_29 = arith.constant 0 : index
    %54 = vector.load %arg2[%c0_27, %c3, %c0_28, %c0_29] : memref<1x4x4x64xbf16, #tpu.memory_space<vmem>>, vector<1x1x4x64xbf16>
    %55 = vector.shape_cast %54 : vector<1x1x4x64xbf16> to vector<4x64xbf16>
    %56 = vector.shape_cast %53 : vector<4x64xbf16> to vector<1x1x4x64xbf16>
    tpu.vector_store %arg2[%c0_27, %c3, %c0_28, %c0_29], %56 {strides = array<i32>} : memref<1x4x4x64xbf16, #tpu.memory_space<vmem>>, vector<1x1x4x64xbf16>,
    return
  }
  func.func @transform_0(%arg0: i32) -> (i32, i32, i32, i32, i32) {
    %c0_i32 = arith.constant 0 : i32
    %c0_i32_0 = arith.constant 0 : i32
    %c0_i32_1 = arith.constant 0 : i32
    %c0_i32_2 = arith.constant 0 : i32
    %c0_i32_3 = arith.constant 0 : i32
    return %arg0, %c0_i32, %c0_i32_0, %c0_i32_1, %c0_i32_2 : i32, i32, i32, i32, i32
  }
  func.func @transform_1(%arg0: i32) -> (i32, i32, i32, i32) {
    %c0_i32 = arith.constant 0 : i32
    %c0_i32_0 = arith.constant 0 : i32
    %c0_i32_1 = arith.constant 0 : i32
    %c0_i32_2 = arith.constant 0 : i32
    return %arg0, %c0_i32, %c0_i32_0, %c0_i32_1 : i32, i32, i32, i32
  }
}

module attributes {stable_mosaic.version = 11 : i64} {
  func.func @_conv_gemm_kernel(%arg0: i32, %arg1: memref<8x576xbf16, #tpu.memory_space<vmem>>, %arg2: memref<576x128xbf16, #tpu.memory_space<vmem>>, %arg3: memref<1x128xf32, #tpu.memory_space<vmem>>, %arg4: memref<1x128xf32, #tpu.memory_space<vmem>>, %arg5: memref<8x128xbf16, #tpu.memory_space<vmem>>) attributes {dimension_semantics = [#tpu.dimension_semantics<parallel>], iteration_bounds = array<i64: 1>, scalar_prefetch = 0 : i64, scratch_operands = 0 : i64, tpu.core_type = #tpu.core_type<tc>, window_params = [{transform_indices = @transform_0, window_bounds = array<i64: 8, 576>}, {pipeline_mode = #tpu.pipeline_mode<synchronous>, transform_indices = @transform_1, window_bounds = array<i64: 576, 128>}, {pipeline_mode = #tpu.pipeline_mode<synchronous>, transform_indices = @transform_2, window_bounds = array<i64: 1, 128>}, {pipeline_mode = #tpu.pipeline_mode<synchronous>, transform_indices = @transform_3, window_bounds = array<i64: 1, 128>}, {transform_indices = @transform_4, window_bounds = array<i64: 8, 128>}]} {
    %c0 = arith.constant 0 : index
    %c0_0 = arith.constant 0 : index
    %0 = vector.load %arg1[%c0, %c0_0] : memref<8x576xbf16, #tpu.memory_space<vmem>>, vector<8x576xbf16>
    %c0_1 = arith.constant 0 : index
    %c0_2 = arith.constant 0 : index
    %1 = vector.load %arg2[%c0_1, %c0_2] : memref<576x128xbf16, #tpu.memory_space<vmem>>, vector<576x128xbf16>
    %cst = arith.constant dense<0.000000e+00> : vector<8x128xf32>
    %2 = tpu.matmul %0, %1, %cst {dimension_numbers = #tpu.dot_dimension_numbers<[1], [0], [0], [1], [0, 0, 1, 1], [], []>} : vector<8x576xbf16>, vector<576x128xbf16>, vector<8x128xf32> -> vector<8x128xf32>
    %c0_3 = arith.constant 0 : index
    %c0_4 = arith.constant 0 : index
    %3 = vector.load %arg3[%c0_3, %c0_4] : memref<1x128xf32, #tpu.memory_space<vmem>>, vector<1x128xf32>
    %4 = vector.broadcast %3 : vector<1x128xf32> to vector<8x128xf32>
    %5 = arith.mulf %2, %4 : vector<8x128xf32>
    %c0_5 = arith.constant 0 : index
    %c0_6 = arith.constant 0 : index
    %6 = vector.load %arg4[%c0_5, %c0_6] : memref<1x128xf32, #tpu.memory_space<vmem>>, vector<1x128xf32>
    %7 = vector.broadcast %6 : vector<1x128xf32> to vector<8x128xf32>
    %8 = arith.addf %5, %7 : vector<8x128xf32>
    %cst_7 = arith.constant 0.000000e+00 : f32
    %9 = vector.broadcast %cst_7 : f32 to vector<8x128xf32>
    %10 = arith.maximumf %8, %9 : vector<8x128xf32>
    %11 = arith.truncf %10 : vector<8x128xf32> to vector<8x128xbf16>
    %c0_8 = arith.constant 0 : index
    %c0_9 = arith.constant 0 : index
    %12 = vector.load %arg5[%c0_8, %c0_9] : memref<8x128xbf16, #tpu.memory_space<vmem>>, vector<8x128xbf16>
    tpu.vector_store %arg5[%c0_8, %c0_9], %11 {strides = array<i32>} : memref<8x128xbf16, #tpu.memory_space<vmem>>, vector<8x128xbf16>,
    return
  }
  func.func @transform_0(%arg0: i32) -> (i32, i32) {
    %c0_i32 = arith.constant 0 : i32
    %c0_i32_0 = arith.constant 0 : i32
    return %arg0, %c0_i32 : i32, i32
  }
  func.func @transform_1(%arg0: i32) -> (i32, i32) {
    %c0_i32 = arith.constant 0 : i32
    %c0_i32_0 = arith.constant 0 : i32
    %c0_i32_1 = arith.constant 0 : i32
    return %c0_i32, %c0_i32_0 : i32, i32
  }
  func.func @transform_2(%arg0: i32) -> (i32, i32) {
    %c0_i32 = arith.constant 0 : i32
    %c0_i32_0 = arith.constant 0 : i32
    %c0_i32_1 = arith.constant 0 : i32
    return %c0_i32, %c0_i32_0 : i32, i32
  }
  func.func @transform_3(%arg0: i32) -> (i32, i32) {
    %c0_i32 = arith.constant 0 : i32
    %c0_i32_0 = arith.constant 0 : i32
    %c0_i32_1 = arith.constant 0 : i32
    return %c0_i32, %c0_i32_0 : i32, i32
  }
  func.func @transform_4(%arg0: i32) -> (i32, i32) {
    %c0_i32 = arith.constant 0 : i32
    %c0_i32_0 = arith.constant 0 : i32
    return %arg0, %c0_i32 : i32, i32
  }
}

module attributes {stable_mosaic.version = 11 : i64} {
  func.func @_conv_gemm_kernel(%arg0: i32, %arg1: memref<8x1152xbf16, #tpu.memory_space<vmem>>, %arg2: memref<1152x128xbf16, #tpu.memory_space<vmem>>, %arg3: memref<1x128xf32, #tpu.memory_space<vmem>>, %arg4: memref<1x128xf32, #tpu.memory_space<vmem>>, %arg5: memref<8x128xbf16, #tpu.memory_space<vmem>>) attributes {dimension_semantics = [#tpu.dimension_semantics<parallel>], iteration_bounds = array<i64: 1>, scalar_prefetch = 0 : i64, scratch_operands = 0 : i64, tpu.core_type = #tpu.core_type<tc>, window_params = [{transform_indices = @transform_0, window_bounds = array<i64: 8, 1152>}, {pipeline_mode = #tpu.pipeline_mode<synchronous>, transform_indices = @transform_1, window_bounds = array<i64: 1152, 128>}, {pipeline_mode = #tpu.pipeline_mode<synchronous>, transform_indices = @transform_2, window_bounds = array<i64: 1, 128>}, {pipeline_mode = #tpu.pipeline_mode<synchronous>, transform_indices = @transform_3, window_bounds = array<i64: 1, 128>}, {transform_indices = @transform_4, window_bounds = array<i64: 8, 128>}]} {
    %c0 = arith.constant 0 : index
    %c0_0 = arith.constant 0 : index
    %0 = vector.load %arg1[%c0, %c0_0] : memref<8x1152xbf16, #tpu.memory_space<vmem>>, vector<8x1152xbf16>
    %c0_1 = arith.constant 0 : index
    %c0_2 = arith.constant 0 : index
    %1 = vector.load %arg2[%c0_1, %c0_2] : memref<1152x128xbf16, #tpu.memory_space<vmem>>, vector<1152x128xbf16>
    %cst = arith.constant dense<0.000000e+00> : vector<8x128xf32>
    %2 = tpu.matmul %0, %1, %cst {dimension_numbers = #tpu.dot_dimension_numbers<[1], [0], [0], [1], [0, 0, 1, 1], [], []>} : vector<8x1152xbf16>, vector<1152x128xbf16>, vector<8x128xf32> -> vector<8x128xf32>
    %c0_3 = arith.constant 0 : index
    %c0_4 = arith.constant 0 : index
    %3 = vector.load %arg3[%c0_3, %c0_4] : memref<1x128xf32, #tpu.memory_space<vmem>>, vector<1x128xf32>
    %4 = vector.broadcast %3 : vector<1x128xf32> to vector<8x128xf32>
    %5 = arith.mulf %2, %4 : vector<8x128xf32>
    %c0_5 = arith.constant 0 : index
    %c0_6 = arith.constant 0 : index
    %6 = vector.load %arg4[%c0_5, %c0_6] : memref<1x128xf32, #tpu.memory_space<vmem>>, vector<1x128xf32>
    %7 = vector.broadcast %6 : vector<1x128xf32> to vector<8x128xf32>
    %8 = arith.addf %5, %7 : vector<8x128xf32>
    %cst_7 = arith.constant 0.000000e+00 : f32
    %9 = vector.broadcast %cst_7 : f32 to vector<8x128xf32>
    %10 = arith.maximumf %8, %9 : vector<8x128xf32>
    %11 = arith.truncf %10 : vector<8x128xf32> to vector<8x128xbf16>
    %c0_8 = arith.constant 0 : index
    %c0_9 = arith.constant 0 : index
    %12 = vector.load %arg5[%c0_8, %c0_9] : memref<8x128xbf16, #tpu.memory_space<vmem>>, vector<8x128xbf16>
    tpu.vector_store %arg5[%c0_8, %c0_9], %11 {strides = array<i32>} : memref<8x128xbf16, #tpu.memory_space<vmem>>, vector<8x128xbf16>,
    return
  }
  func.func @transform_0(%arg0: i32) -> (i32, i32) {
    %c0_i32 = arith.constant 0 : i32
    %c0_i32_0 = arith.constant 0 : i32
    return %arg0, %c0_i32 : i32, i32
  }
  func.func @transform_1(%arg0: i32) -> (i32, i32) {
    %c0_i32 = arith.constant 0 : i32
    %c0_i32_0 = arith.constant 0 : i32
    %c0_i32_1 = arith.constant 0 : i32
    return %c0_i32, %c0_i32_0 : i32, i32
  }
  func.func @transform_2(%arg0: i32) -> (i32, i32) {
    %c0_i32 = arith.constant 0 : i32
    %c0_i32_0 = arith.constant 0 : i32
    %c0_i32_1 = arith.constant 0 : i32
    return %c0_i32, %c0_i32_0 : i32, i32
  }
  func.func @transform_3(%arg0: i32) -> (i32, i32) {
    %c0_i32 = arith.constant 0 : i32
    %c0_i32_0 = arith.constant 0 : i32
    %c0_i32_1 = arith.constant 0 : i32
    return %c0_i32, %c0_i32_0 : i32, i32
  }
  func.func @transform_4(%arg0: i32) -> (i32, i32) {
    %c0_i32 = arith.constant 0 : i32
    %c0_i32_0 = arith.constant 0 : i32
    return %arg0, %c0_i32 : i32, i32
  }
}

module attributes {stable_mosaic.version = 11 : i64} {
  func.func @_pool_fc_kernel(%arg0: memref<2x512xbf16, #tpu.memory_space<vmem>>, %arg1: memref<128x128xf32, #tpu.memory_space<vmem>>, %arg2: memref<1x128xf32, #tpu.memory_space<vmem>>, %arg3: memref<128x32xf32, #tpu.memory_space<vmem>>, %arg4: memref<1x32xf32, #tpu.memory_space<vmem>>, %arg5: memref<32x10xf32, #tpu.memory_space<vmem>>, %arg6: memref<1x10xf32, #tpu.memory_space<vmem>>, %arg7: memref<2x10xf32, #tpu.memory_space<vmem>>) attributes {dimension_semantics = [], scalar_prefetch = 0 : i64, scratch_operands = 0 : i64, tpu.core_type = #tpu.core_type<tc>} {
    %c0 = arith.constant 0 : index
    %c0_0 = arith.constant 0 : index
    %0 = vector.load %arg0[%c0, %c0_0] : memref<2x512xbf16, #tpu.memory_space<vmem>>, vector<2x512xbf16>
    %1 = arith.extf %0 : vector<2x512xbf16> to vector<2x512xf32>
    %2 = vector.extract_strided_slice %1 {offsets = [0, 0], sizes = [2, 128], strides = [1, 1]} : vector<2x512xf32> to vector<2x128xf32>
    %3 = vector.extract_strided_slice %1 {offsets = [0, 128], sizes = [2, 128], strides = [1, 1]} : vector<2x512xf32> to vector<2x128xf32>
    %4 = arith.maximumf %2, %3 : vector<2x128xf32>
    %5 = vector.extract_strided_slice %1 {offsets = [0, 256], sizes = [2, 128], strides = [1, 1]} : vector<2x512xf32> to vector<2x128xf32>
    %6 = vector.extract_strided_slice %1 {offsets = [0, 384], sizes = [2, 128], strides = [1, 1]} : vector<2x512xf32> to vector<2x128xf32>
    %7 = arith.maximumf %5, %6 : vector<2x128xf32>
    %8 = arith.maximumf %4, %7 : vector<2x128xf32>
    %c0_1 = arith.constant 0 : index
    %c0_2 = arith.constant 0 : index
    %9 = vector.load %arg1[%c0_1, %c0_2] : memref<128x128xf32, #tpu.memory_space<vmem>>, vector<128x128xf32>
    %cst = arith.constant dense<0.000000e+00> : vector<2x128xf32>
    %10 = tpu.matmul %8, %9, %cst {dimension_numbers = #tpu.dot_dimension_numbers<[1], [0], [0], [1], [0, 0, 1, 1], [], []>} : vector<2x128xf32>, vector<128x128xf32>, vector<2x128xf32> -> vector<2x128xf32>
    %c0_3 = arith.constant 0 : index
    %c0_4 = arith.constant 0 : index
    %11 = vector.load %arg2[%c0_3, %c0_4] : memref<1x128xf32, #tpu.memory_space<vmem>>, vector<1x128xf32>
    %12 = vector.broadcast %11 : vector<1x128xf32> to vector<2x128xf32>
    %13 = arith.addf %10, %12 : vector<2x128xf32>
    %cst_5 = arith.constant 0.000000e+00 : f32
    %14 = vector.broadcast %cst_5 : f32 to vector<2x128xf32>
    %15 = arith.maximumf %13, %14 : vector<2x128xf32>
    %c0_6 = arith.constant 0 : index
    %c0_7 = arith.constant 0 : index
    %16 = vector.load %arg3[%c0_6, %c0_7] : memref<128x32xf32, #tpu.memory_space<vmem>>, vector<128x32xf32>
    %cst_8 = arith.constant dense<0.000000e+00> : vector<2x32xf32>
    %17 = tpu.matmul %15, %16, %cst_8 {dimension_numbers = #tpu.dot_dimension_numbers<[1], [0], [0], [1], [0, 0, 1, 1], [], []>} : vector<2x128xf32>, vector<128x32xf32>, vector<2x32xf32> -> vector<2x32xf32>
    %c0_9 = arith.constant 0 : index
    %c0_10 = arith.constant 0 : index
    %18 = vector.load %arg4[%c0_9, %c0_10] : memref<1x32xf32, #tpu.memory_space<vmem>>, vector<1x32xf32>
    %19 = vector.broadcast %18 : vector<1x32xf32> to vector<2x32xf32>
    %20 = arith.addf %17, %19 : vector<2x32xf32>
    %cst_11 = arith.constant 0.000000e+00 : f32
    %21 = vector.broadcast %cst_11 : f32 to vector<2x32xf32>
    %22 = arith.maximumf %20, %21 : vector<2x32xf32>
    %c0_12 = arith.constant 0 : index
    %c0_13 = arith.constant 0 : index
    %23 = vector.load %arg5[%c0_12, %c0_13] : memref<32x10xf32, #tpu.memory_space<vmem>>, vector<32x10xf32>
    %cst_14 = arith.constant dense<0.000000e+00> : vector<2x10xf32>
    %24 = tpu.matmul %22, %23, %cst_14 {dimension_numbers = #tpu.dot_dimension_numbers<[1], [0], [0], [1], [0, 0, 1, 1], [], []>} : vector<2x32xf32>, vector<32x10xf32>, vector<2x10xf32> -> vector<2x10xf32>
    %c0_15 = arith.constant 0 : index
    %c0_16 = arith.constant 0 : index
    %25 = vector.load %arg6[%c0_15, %c0_16] : memref<1x10xf32, #tpu.memory_space<vmem>>, vector<1x10xf32>
    %26 = vector.broadcast %25 : vector<1x10xf32> to vector<2x10xf32>
    %27 = arith.addf %24, %26 : vector<2x10xf32>
    %c0_17 = arith.constant 0 : index
    %c0_18 = arith.constant 0 : index
    %28 = vector.load %arg7[%c0_17, %c0_18] : memref<2x10xf32, #tpu.memory_space<vmem>>, vector<2x10xf32>
    tpu.vector_store %arg7[%c0_17, %c0_18], %27 {strides = array<i32>} : memref<2x10xf32, #tpu.memory_space<vmem>>, vector<2x10xf32>,
    return
  }
}

</mosaic_0001>

<bundles_post_ra>
// kernel: cnn_forward.9
= control target key start
LH: loop header
LB: loop body
LE: loop exit
PB: predicated region body
PF: predicated region fallthrough
CT: control target
= control target key end

     0   :  { %s1841_s15 = smov 0   ;;  %s1843_s16 = smov 0   ;;  %s2364_s0 = inlined_call_operand.vmem [shape: bf16[1352,27], index: 0, kind: input, shape index: {}]   ;;  %s2365_s1 = inlined_call_operand.vmem [shape: bf16[27,32], index: 1, kind: input, shape index: {}]   ;;  %s2366_s2 = inlined_call_operand.vmem [shape: f32[1,32], index: 2, kind: input, shape index: {}]   ;;  %s2367_s3 = inlined_call_operand.vmem [shape: f32[1,32], index: 3, kind: input, shape index: {}]   ;;  %s2368_s4 = inlined_call_operand.vmem [shape: bf16[1352,32], index: 4, kind: output, shape index: {}]  }
   0x1   :  { %s1845_s17 = smov 0  }
   0x2 LB: > { %s1854_s18 = sadd.s32 4294967295, %s1781_s17   ;;  %s1856_s19 = sadd.s32 1, %s1781_s17   ;;  %s1781_s17 = sphi %s1845_s17, %s2377_s17   ;;  %s1777_s16 = sphi %s1843_s16, %s2376_s16   ;;  %s1773_s15 = sphi %s1841_s15, %s2375_s15  }
   0x3   : > { %s107_s20 = ssub.s32 %s1781_s17, %s1856_s19  ;;  %s110_s21 = sadd.s32 1, %s1777_s16 }
   0x4   : > { %p108_p0 = scmp.eq.s32.totalorder %s107_s20, 0  ;;  %p120_p1 = scmp.ne.s32.totalorder %s1777_s16, %s1773_s15 }
   0x5   : > { %p121_p2 = scmp.eq.s32.totalorder %s1854_s18, 2  ;;  %p1404_p3 = scmp.ge.s32.totalorder %s1781_s17, 1 }
   0x6   : > { %s1864_s22 = scalar_select %p108_p0, %s1777_s16, %s110_s21  }
   0x7   : > { %p1866_p4 = por %p121_p2, %p120_p1  ;;  %p171_p5 = scmp.lt.s32.totalorder %s1781_s17, 4 }
   0x9   : > { %p172_p6 = pnand %p1404_p3, %p171_p5 }
   0xa   : > { %s1877_s28 = sshll.u32 (!%p172_p6), %s1854_s18, 6  ;;  %s197_s14 = sand.u32 (!%p172_p6), 1, %s1773_s15  }
   0xb   : > { %175 = sbr.rel (%p172_p6) target bundleno = 356 (0x164), region = 36  ;;  %p205_p7 = scmp.lt.s32.totalorder (!%p172_p6), %s1877_s28, 168 }
   0xc   : > { %s1405_s17 = sshll.u32 (!%p172_p6), %s197_s14, 8 }
   0xd   : > { %s1970_s15 = scalar_lea.vmem (!%p172_p6), [#allocation2], %s1405_s17  }
  0x10   : > { %v1542_v0 = vld [vmem:[%s2365_s1 + $0x8] sm:$0xf]  ;;  %v1626_v1 = vld [vmem:[%s2365_s1 + $0x8] sm:$0x30]  ;;  %vm556_vm0 = vcmask 1044480   ;;  %vm557_vm1 = vcmask 1045504  }
  0x11   : > { %v1543_v2 = vor.u32 %v1626_v1, %v1542_v0  ;;  %v1815_v3 = vmov 65535   ;;  %s206_s29 = scalar_select %p205_p7, %s1877_s28, 168  ;;  %v1625_v7 = vld [vmem:[%s2365_s1] sm:$0xff]  ;;  %vm459_vm2 = vcmask 220160   ;;  %vm996_vm3 = vcmask 257024  }
  0x12   : > { %v558_v4 = vsel %vm556_vm0, 4294967295, %v1815_v3  ;;  %v1956_v40 = vld [vmem:[%s2366_s2] ss:$0 sm:$0xff]  ;;  %s1069_s20 = ssub.s32 (%p1866_p4), 169, %s1877_s28  ;;  %s1627_s21 = sshll.u32 (%p1866_p4), %s1854_s18, 8 }
  0x13   : > { %v559_v5 = vsel %vm557_vm1, %v558_v4, 0  ;;  %s1407_s6 = sshll.u32 %s206_s29, 2  ;;  %v1961_v41 = vld [vmem:[%s2367_s3] ss:$0 sm:$0xff]  ;;  %p1070_p8 = scmp.lt.s32.totalorder (%p1866_p4), %s1069_s20, 64 }
  0x14   : > { %v561_v6 = vand.u32 %v1543_v2, %v559_v5  ;;  %s1887_s9 = scalar_lea.vmem %s2364_s0, %s1407_s6  ;;  %s2229_s26 = scalar_lea.vmem (%p1866_p4), %s2368_s4, %s1627_s21  }
  0x15   : > { %v1593_v8 = vld [vmem:[%s1887_s9] sm:$0xff]  ;;  %v1594_v12 = vld [vmem:[%s1887_s9 + $0x8] sm:$0xff]  ;;  %v1595_v16 = vld [vmem:[%s1887_s9 + $0x10] sm:$0xff] }
  0x16   : > { %569 = vmatpush.bf16.msra.mxu0 %v561_v6  ;;  %1630 = vmatpush.bf16.msra.mxu1 %v561_v6  ;;  %v1601_v9 = vld [vmem:[%s1887_s9 + $0x40] sm:$0xff]  ;;  %v1602_v13 = vld [vmem:[%s1887_s9 + $0x48] sm:$0xff]  ;;  %v1603_v17 = vld [vmem:[%s1887_s9 + $0x50] sm:$0xff] }
  0x17   : > { %1631 = vmatpush.bf16.msra.mxu2 %v561_v6  ;;  %1632 = vmatpush.bf16.msra.mxu3 %v561_v6  ;;  %v1609_v10 = vld [vmem:[%s1887_s9 + $0x80] sm:$0xff]  ;;  %v1610_v14 = vld [vmem:[%s1887_s9 + $0x88] sm:$0xff]  ;;  %v1611_v18 = vld [vmem:[%s1887_s9 + $0x90] sm:$0xff] }
  0x18   : > { %v1617_v11 = vld [vmem:[%s1887_s9 + $0xc0] sm:$0xff]  ;;  %v1618_v15 = vld [vmem:[%s1887_s9 + $0xc8] sm:$0xff]  ;;  %v1619_v19 = vld [vmem:[%s1887_s9 + $0xd0] sm:$0xff] }
  0x19   : > { %v1596_v20 = vld [vmem:[%s1887_s9 + $0x18] sm:$0xff]  ;;  %v1597_v24 = vld [vmem:[%s1887_s9 + $0x20] sm:$0xff]  ;;  %v1598_v28 = vld [vmem:[%s1887_s9 + $0x28] sm:$0xff] }
  0x1a   : > { %570 = vmatpush.bf16.msra.mxu0 %v1625_v7  ;;  %1633 = vmatpush.bf16.msra.mxu1 %v1625_v7  ;;  %v1604_v21 = vld [vmem:[%s1887_s9 + $0x58] sm:$0xff]  ;;  %v1605_v25 = vld [vmem:[%s1887_s9 + $0x60] sm:$0xff]  ;;  %v1606_v29 = vld [vmem:[%s1887_s9 + $0x68] sm:$0xff] }
  0x1b   : > { %1634 = vmatpush.bf16.msra.mxu2 %v1625_v7  ;;  %1635 = vmatpush.bf16.msra.mxu3 %v1625_v7  ;;  %v1612_v22 = vld [vmem:[%s1887_s9 + $0x98] sm:$0xff]  ;;  %v1613_v26 = vld [vmem:[%s1887_s9 + $0xa0] sm:$0xff]  ;;  %v1614_v30 = vld [vmem:[%s1887_s9 + $0xa8] sm:$0xff] }
  0x1c   : > { %v1620_v23 = vld [vmem:[%s1887_s9 + $0xd8] sm:$0xff]  ;;  %v1621_v27 = vld [vmem:[%s1887_s9 + $0xe0] sm:$0xff]  ;;  %v1622_v31 = vld [vmem:[%s1887_s9 + $0xe8] sm:$0xff] }
  0x1d   : > { %1544 = vmatmul.msk.bf16.vlgmr.msra.gmra.mxu0 %vm459_vm2, %v1593_v8  ;;  %1552 = vmatmul.msk.bf16.vlgmr.msra.gmra.mxu1 %vm459_vm2, %v1601_v9  ;;  %v1599_v32 = vld [vmem:[%s1887_s9 + $0x30] sm:$0xff]  ;;  %v1600_v36 = vld [vmem:[%s1887_s9 + $0x38] sm:$0xff] }
  0x1e   : > { %1560 = vmatmul.msk.bf16.vlgmr.msra.gmra.mxu2 %vm459_vm2, %v1609_v10  ;;  %1568 = vmatmul.msk.bf16.vlgmr.msra.gmra.mxu3 %vm459_vm2, %v1617_v11  ;;  %v1607_v33 = vld [vmem:[%s1887_s9 + $0x70] sm:$0xff]  ;;  %v1608_v37 = vld [vmem:[%s1887_s9 + $0x78] sm:$0xff] }
  0x1f   : > { %v1615_v34 = vld [vmem:[%s1887_s9 + $0xb0] sm:$0xff]  ;;  %v1616_v38 = vld [vmem:[%s1887_s9 + $0xb8] sm:$0xff] }
  0x20   : > { %v1623_v35 = vld [vmem:[%s1887_s9 + $0xf0] sm:$0xff]  ;;  %v1624_v39 = vld [vmem:[%s1887_s9 + $0xf8] sm:$0xff] }
  0x2d   : > { %1545 = vmatmul.msk.bf16.gmra.mxu0 %vm459_vm2, %v1594_v12  ;;  %1553 = vmatmul.msk.bf16.gmra.mxu1 %vm459_vm2, %v1602_v13 }
  0x2e   : > { %1561 = vmatmul.msk.bf16.gmra.mxu2 %vm459_vm2, %v1610_v14  ;;  %1569 = vmatmul.msk.bf16.gmra.mxu3 %vm459_vm2, %v1618_v15 }
  0x3d   : > { %1546 = vmatmul.msk.bf16.gmra.mxu0 %vm459_vm2, %v1595_v16  ;;  %1554 = vmatmul.msk.bf16.gmra.mxu1 %vm459_vm2, %v1603_v17 }
  0x3e   : > { %1562 = vmatmul.msk.bf16.gmra.mxu2 %vm459_vm2, %v1611_v18  ;;  %1570 = vmatmul.msk.bf16.gmra.mxu3 %vm459_vm2, %v1619_v19 }
  0x4d   : > { %1547 = vmatmul.msk.bf16.gmra.mxu0 %vm459_vm2, %v1596_v20  ;;  %1555 = vmatmul.msk.bf16.gmra.mxu1 %vm459_vm2, %v1604_v21 }
  0x4e   : > { %1563 = vmatmul.msk.bf16.gmra.mxu2 %vm459_vm2, %v1612_v22  ;;  %1571 = vmatmul.msk.bf16.gmra.mxu3 %vm459_vm2, %v1620_v23 }
  0x5d   : > { %1548 = vmatmul.msk.bf16.gmra.mxu0 %vm459_vm2, %v1597_v24  ;;  %1556 = vmatmul.msk.bf16.gmra.mxu1 %vm459_vm2, %v1605_v25 }
  0x5e   : > { %1564 = vmatmul.msk.bf16.gmra.mxu2 %vm459_vm2, %v1613_v26  ;;  %1572 = vmatmul.msk.bf16.gmra.mxu3 %vm459_vm2, %v1621_v27 }
  0x6d   : > { %1549 = vmatmul.msk.bf16.gmra.mxu0 %vm459_vm2, %v1598_v28  ;;  %1557 = vmatmul.msk.bf16.gmra.mxu1 %vm459_vm2, %v1606_v29 }
  0x6e   : > { %1565 = vmatmul.msk.bf16.gmra.mxu2 %vm459_vm2, %v1614_v30  ;;  %1573 = vmatmul.msk.bf16.gmra.mxu3 %vm459_vm2, %v1622_v31 }
  0x7d   : > { %1550 = vmatmul.msk.bf16.gmra.mxu0 %vm459_vm2, %v1599_v32  ;;  %1558 = vmatmul.msk.bf16.gmra.mxu1 %vm459_vm2, %v1607_v33 }
  0x7e   : > { %1566 = vmatmul.msk.bf16.gmra.mxu2 %vm459_vm2, %v1615_v34  ;;  %1574 = vmatmul.msk.bf16.gmra.mxu3 %vm459_vm2, %v1623_v35 }
  0x8d   : > { %1551 = vmatmul.msk.bf16.gmra.mxu0 %vm459_vm2, %v1600_v36  ;;  %1559 = vmatmul.msk.bf16.gmra.mxu1 %vm459_vm2, %v1608_v37 }
  0x8e   : > { %1567 = vmatmul.msk.bf16.gmra.mxu2 %vm459_vm2, %v1616_v38  ;;  %1575 = vmatmul.msk.bf16.gmra.mxu3 %vm459_vm2, %v1624_v39 }
  0x9a   : > { %v572_v42 = vpop.f32.mrf.mxu0  ;;  %v612_v43 = vpop.f32.mrf.mxu1 }
  0x9b   : > { %v736_v44 = vmul.f32 %v1956_v40, %v572_v42  ;;  %v752_v45 = vmul.f32 %v1956_v40, %v612_v43 }
  0x9d   : > { %v804_v46 = vadd.f32 %v1961_v41, %v736_v44  ;;  %v820_v47 = vadd.f32 %v1961_v41, %v752_v45 }
  0x9f   : > { %v868_v48 = vmax.f32 %v804_v46, 0.0  ;;  %v884_v49 = vmax.f32 %v820_v47, 0.0 }
  0xa1   : > { %v932_v50 = vpack.c.bf16 %v868_v48, %v868_v48  ;;  %v948_v51 = vpack.c.bf16 %v884_v49, %v884_v49  ;;  %v652_v52 = vpop.f32.mrf.mxu2  ;;  %v692_v53 = vpop.f32.mrf.mxu3 }
  0xa2   : > { %v768_v54 = vmul.f32 %v1956_v40, %v652_v52  ;;  %v784_v55 = vmul.f32 %v1956_v40, %v692_v53  ;;  %v574_v56 = vpop.f32.mrf.mxu0  ;;  %v614_v57 = vpop.f32.mrf.mxu1 }
  0xa3   : > { %997 = vst.msk [vmem:[%s1970_s15] sm:$0xf] %vm996_vm3, %v932_v50  ;;  %v737_v58 = vmul.f32 %v1956_v40, %v574_v56  ;;  %v753_v59 = vmul.f32 %v1956_v40, %v614_v57 }
  0xa4   : > { %1013 = vst.msk [vmem:[%s1970_s15 + $0x40] sm:$0xf] %vm996_vm3, %v948_v51  ;;  %v836_v60 = vadd.f32 %v1961_v41, %v768_v54  ;;  %v852_v61 = vadd.f32 %v1961_v41, %v784_v55 }
  0xa5   : > { %v805_v62 = vadd.f32 %v1961_v41, %v737_v58  ;;  %v821_v63 = vadd.f32 %v1961_v41, %v753_v59 }
  0xa6   : > { %v900_v0 = vmax.f32 %v836_v60, 0.0  ;;  %v916_v1 = vmax.f32 %v852_v61, 0.0 }
  0xa7   : > { %v869_v2 = vmax.f32 %v805_v62, 0.0  ;;  %v885_v3 = vmax.f32 %v821_v63, 0.0 }
  0xa8   : > { %v964_v4 = vpack.c.bf16 %v900_v0, %v900_v0  ;;  %v980_v5 = vpack.c.bf16 %v916_v1, %v916_v1 }
  0xa9   : > { %v933_v6 = vpack.c.bf16 %v869_v2, %v869_v2  ;;  %v949_v7 = vpack.c.bf16 %v885_v3, %v885_v3  ;;  %v654_v8 = vpop.f32.mrf.mxu2  ;;  %v694_v9 = vpop.f32.mrf.mxu3 }
  0xaa   : > { %1029 = vst.msk [vmem:[%s1970_s15 + $0x80] sm:$0xf] %vm996_vm3, %v964_v4  ;;  %v769_v10 = vmul.f32 %v1956_v40, %v654_v8  ;;  %v785_v11 = vmul.f32 %v1956_v40, %v694_v9  ;;  %v577_v12 = vpop.f32.mrf.mxu0  ;;  %v617_v13 = vpop.f32.mrf.mxu1 }
  0xab   : > { %1045 = vst.msk [vmem:[%s1970_s15 + $0xc0] sm:$0xf] %vm996_vm3, %v980_v5  ;;  %v738_v14 = vmul.f32 %v1956_v40, %v577_v12  ;;  %v754_v15 = vmul.f32 %v1956_v40, %v617_v13 }
  0xac   : > { %998 = vst.msk [vmem:[%s1970_s15 + $0x4] sm:$0xf] %vm996_vm3, %v933_v6  ;;  %v837_v16 = vadd.f32 %v1961_v41, %v769_v10  ;;  %v853_v17 = vadd.f32 %v1961_v41, %v785_v11 }
  0xad   : > { %1014 = vst.msk [vmem:[%s1970_s15 + $0x44] sm:$0xf] %vm996_vm3, %v949_v7  ;;  %v806_v18 = vadd.f32 %v1961_v41, %v738_v14  ;;  %v822_v19 = vadd.f32 %v1961_v41, %v754_v15 }
  0xae   : > { %v901_v20 = vmax.f32 %v837_v16, 0.0  ;;  %v917_v21 = vmax.f32 %v853_v17, 0.0 }
  0xaf   : > { %v870_v22 = vmax.f32 %v806_v18, 0.0  ;;  %v886_v23 = vmax.f32 %v822_v19, 0.0 }
  0xb0   : > { %v965_v24 = vpack.c.bf16 %v901_v20, %v901_v20  ;;  %v981_v25 = vpack.c.bf16 %v917_v21, %v917_v21 }
  0xb1   : > { %v934_v26 = vpack.c.bf16 %v870_v22, %v870_v22  ;;  %v950_v27 = vpack.c.bf16 %v886_v23, %v886_v23  ;;  %v657_v28 = vpop.f32.mrf.mxu2  ;;  %v697_v29 = vpop.f32.mrf.mxu3 }
  0xb2   : > { %1030 = vst.msk [vmem:[%s1970_s15 + $0x84] sm:$0xf] %vm996_vm3, %v965_v24  ;;  %v770_v30 = vmul.f32 %v1956_v40, %v657_v28  ;;  %v786_v31 = vmul.f32 %v1956_v40, %v697_v29  ;;  %v579_v32 = vpop.f32.mrf.mxu0  ;;  %v619_v33 = vpop.f32.mrf.mxu1 }
  0xb3   : > { %1046 = vst.msk [vmem:[%s1970_s15 + $0xc4] sm:$0xf] %vm996_vm3, %v981_v25  ;;  %v739_v34 = vmul.f32 %v1956_v40, %v579_v32  ;;  %v755_v35 = vmul.f32 %v1956_v40, %v619_v33 }
  0xb4   : > { %999 = vst.msk [vmem:[%s1970_s15 + $0x8] sm:$0xf] %vm996_vm3, %v934_v26  ;;  %v838_v36 = vadd.f32 %v1961_v41, %v770_v30  ;;  %v854_v37 = vadd.f32 %v1961_v41, %v786_v31 }
  0xb5   : > { %1015 = vst.msk [vmem:[%s1970_s15 + $0x48] sm:$0xf] %vm996_vm3, %v950_v27  ;;  %v807_v38 = vadd.f32 %v1961_v41, %v739_v34  ;;  %v823_v39 = vadd.f32 %v1961_v41, %v755_v35 }
  0xb6   : > { %v902_v42 = vmax.f32 %v838_v36, 0.0  ;;  %v918_v43 = vmax.f32 %v854_v37, 0.0 }
  0xb7   : > { %v871_v44 = vmax.f32 %v807_v38, 0.0  ;;  %v887_v45 = vmax.f32 %v823_v39, 0.0 }
  0xb8   : > { %v966_v46 = vpack.c.bf16 %v902_v42, %v902_v42  ;;  %v982_v47 = vpack.c.bf16 %v918_v43, %v918_v43 }
  0xb9   : > { %v935_v48 = vpack.c.bf16 %v871_v44, %v871_v44  ;;  %v951_v49 = vpack.c.bf16 %v887_v45, %v887_v45  ;;  %v659_v50 = vpop.f32.mrf.mxu2  ;;  %v699_v51 = vpop.f32.mrf.mxu3 }
  0xba   : > { %1031 = vst.msk [vmem:[%s1970_s15 + $0x88] sm:$0xf] %vm996_vm3, %v966_v46  ;;  %v771_v52 = vmul.f32 %v1956_v40, %v659_v50  ;;  %v787_v53 = vmul.f32 %v1956_v40, %v699_v51  ;;  %v582_v54 = vpop.f32.mrf.mxu0  ;;  %v622_v55 = vpop.f32.mrf.mxu1 }
  0xbb   : > { %1047 = vst.msk [vmem:[%s1970_s15 + $0xc8] sm:$0xf] %vm996_vm3, %v982_v47  ;;  %v740_v56 = vmul.f32 %v1956_v40, %v582_v54  ;;  %v756_v57 = vmul.f32 %v1956_v40, %v622_v55 }
  0xbc   : > { %1000 = vst.msk [vmem:[%s1970_s15 + $0xc] sm:$0xf] %vm996_vm3, %v935_v48  ;;  %v839_v58 = vadd.f32 %v1961_v41, %v771_v52  ;;  %v855_v59 = vadd.f32 %v1961_v41, %v787_v53 }
  0xbd   : > { %1016 = vst.msk [vmem:[%s1970_s15 + $0x4c] sm:$0xf] %vm996_vm3, %v951_v49  ;;  %v808_v60 = vadd.f32 %v1961_v41, %v740_v56  ;;  %v824_v61 = vadd.f32 %v1961_v41, %v756_v57 }
  0xbe   : > { %v903_v62 = vmax.f32 %v839_v58, 0.0  ;;  %v919_v63 = vmax.f32 %v855_v59, 0.0 }
  0xbf   : > { %v872_v0 = vmax.f32 %v808_v60, 0.0  ;;  %v888_v1 = vmax.f32 %v824_v61, 0.0 }
  0xc0   : > { %v967_v2 = vpack.c.bf16 %v903_v62, %v903_v62  ;;  %v983_v3 = vpack.c.bf16 %v919_v63, %v919_v63 }
  0xc1   : > { %v936_v4 = vpack.c.bf16 %v872_v0, %v872_v0  ;;  %v952_v5 = vpack.c.bf16 %v888_v1, %v888_v1  ;;  %v662_v6 = vpop.f32.mrf.mxu2  ;;  %v702_v7 = vpop.f32.mrf.mxu3 }
  0xc2   : > { %1032 = vst.msk [vmem:[%s1970_s15 + $0x8c] sm:$0xf] %vm996_vm3, %v967_v2  ;;  %v772_v8 = vmul.f32 %v1956_v40, %v662_v6  ;;  %v788_v9 = vmul.f32 %v1956_v40, %v702_v7  ;;  %v584_v10 = vpop.f32.mrf.mxu0  ;;  %v624_v11 = vpop.f32.mrf.mxu1 }
  0xc3   : > { %1048 = vst.msk [vmem:[%s1970_s15 + $0xcc] sm:$0xf] %vm996_vm3, %v983_v3  ;;  %v741_v12 = vmul.f32 %v1956_v40, %v584_v10  ;;  %v757_v13 = vmul.f32 %v1956_v40, %v624_v11 }
  0xc4   : > { %1001 = vst.msk [vmem:[%s1970_s15 + $0x10] sm:$0xf] %vm996_vm3, %v936_v4  ;;  %v840_v14 = vadd.f32 %v1961_v41, %v772_v8  ;;  %v856_v15 = vadd.f32 %v1961_v41, %v788_v9 }
  0xc5   : > { %1017 = vst.msk [vmem:[%s1970_s15 + $0x50] sm:$0xf] %vm996_vm3, %v952_v5  ;;  %v809_v16 = vadd.f32 %v1961_v41, %v741_v12  ;;  %v825_v17 = vadd.f32 %v1961_v41, %v757_v13 }
  0xc6   : > { %v904_v18 = vmax.f32 %v840_v14, 0.0  ;;  %v920_v19 = vmax.f32 %v856_v15, 0.0 }
  0xc7   : > { %v873_v20 = vmax.f32 %v809_v16, 0.0  ;;  %v889_v21 = vmax.f32 %v825_v17, 0.0 }
  0xc8   : > { %v968_v22 = vpack.c.bf16 %v904_v18, %v904_v18  ;;  %v984_v23 = vpack.c.bf16 %v920_v19, %v920_v19 }
  0xc9   : > { %v937_v24 = vpack.c.bf16 %v873_v20, %v873_v20  ;;  %v953_v25 = vpack.c.bf16 %v889_v21, %v889_v21  ;;  %v664_v26 = vpop.f32.mrf.mxu2  ;;  %v704_v27 = vpop.f32.mrf.mxu3 }
  0xca   : > { %1033 = vst.msk [vmem:[%s1970_s15 + $0x90] sm:$0xf] %vm996_vm3, %v968_v22  ;;  %v773_v28 = vmul.f32 %v1956_v40, %v664_v26  ;;  %v789_v29 = vmul.f32 %v1956_v40, %v704_v27  ;;  %v587_v30 = vpop.f32.mrf.mxu0  ;;  %v627_v31 = vpop.f32.mrf.mxu1 }
  0xcb   : > { %1049 = vst.msk [vmem:[%s1970_s15 + $0xd0] sm:$0xf] %vm996_vm3, %v984_v23  ;;  %v742_v32 = vmul.f32 %v1956_v40, %v587_v30  ;;  %v758_v33 = vmul.f32 %v1956_v40, %v627_v31 }
  0xcc   : > { %1002 = vst.msk [vmem:[%s1970_s15 + $0x14] sm:$0xf] %vm996_vm3, %v937_v24  ;;  %v841_v34 = vadd.f32 %v1961_v41, %v773_v28  ;;  %v857_v35 = vadd.f32 %v1961_v41, %v789_v29 }
  0xcd   : > { %1018 = vst.msk [vmem:[%s1970_s15 + $0x54] sm:$0xf] %vm996_vm3, %v953_v25  ;;  %v810_v36 = vadd.f32 %v1961_v41, %v742_v32  ;;  %v826_v37 = vadd.f32 %v1961_v41, %v758_v33 }
  0xce   : > { %v905_v38 = vmax.f32 %v841_v34, 0.0  ;;  %v921_v39 = vmax.f32 %v857_v35, 0.0 }
  0xcf   : > { %v874_v42 = vmax.f32 %v810_v36, 0.0  ;;  %v890_v43 = vmax.f32 %v826_v37, 0.0 }
  0xd0   : > { %v969_v44 = vpack.c.bf16 %v905_v38, %v905_v38  ;;  %v985_v45 = vpack.c.bf16 %v921_v39, %v921_v39 }
  0xd1   : > { %v938_v46 = vpack.c.bf16 %v874_v42, %v874_v42  ;;  %v954_v47 = vpack.c.bf16 %v890_v43, %v890_v43  ;;  %v667_v48 = vpop.f32.mrf.mxu2  ;;  %v707_v49 = vpop.f32.mrf.mxu3 }
  0xd2   : > { %1034 = vst.msk [vmem:[%s1970_s15 + $0x94] sm:$0xf] %vm996_vm3, %v969_v44  ;;  %v774_v50 = vmul.f32 %v1956_v40, %v667_v48  ;;  %v790_v51 = vmul.f32 %v1956_v40, %v707_v49  ;;  %v589_v52 = vpop.f32.mrf.mxu0  ;;  %v629_v53 = vpop.f32.mrf.mxu1 }
  0xd3   : > { %1050 = vst.msk [vmem:[%s1970_s15 + $0xd4] sm:$0xf] %vm996_vm3, %v985_v45  ;;  %v743_v54 = vmul.f32 %v1956_v40, %v589_v52  ;;  %v759_v55 = vmul.f32 %v1956_v40, %v629_v53 }
  0xd4   : > { %1003 = vst.msk [vmem:[%s1970_s15 + $0x18] sm:$0xf] %vm996_vm3, %v938_v46  ;;  %v842_v56 = vadd.f32 %v1961_v41, %v774_v50  ;;  %v858_v57 = vadd.f32 %v1961_v41, %v790_v51 }
  0xd5   : > { %1019 = vst.msk [vmem:[%s1970_s15 + $0x58] sm:$0xf] %vm996_vm3, %v954_v47  ;;  %v811_v58 = vadd.f32 %v1961_v41, %v743_v54  ;;  %v827_v59 = vadd.f32 %v1961_v41, %v759_v55 }
  0xd6   : > { %v906_v60 = vmax.f32 %v842_v56, 0.0  ;;  %v922_v61 = vmax.f32 %v858_v57, 0.0 }
  0xd7   : > { %v875_v62 = vmax.f32 %v811_v58, 0.0  ;;  %v891_v63 = vmax.f32 %v827_v59, 0.0 }
  0xd8   : > { %v970_v0 = vpack.c.bf16 %v906_v60, %v906_v60  ;;  %v986_v1 = vpack.c.bf16 %v922_v61, %v922_v61 }
  0xd9   : > { %v939_v2 = vpack.c.bf16 %v875_v62, %v875_v62  ;;  %v955_v3 = vpack.c.bf16 %v891_v63, %v891_v63  ;;  %v669_v4 = vpop.f32.mrf.mxu2  ;;  %v709_v5 = vpop.f32.mrf.mxu3 }
  0xda   : > { %1035 = vst.msk [vmem:[%s1970_s15 + $0x98] sm:$0xf] %vm996_vm3, %v970_v0  ;;  %v775_v6 = vmul.f32 %v1956_v40, %v669_v4  ;;  %v791_v7 = vmul.f32 %v1956_v40, %v709_v5  ;;  %v592_v8 = vpop.f32.mrf.mxu0  ;;  %v632_v9 = vpop.f32.mrf.mxu1 }
  0xdb   : > { %1051 = vst.msk [vmem:[%s1970_s15 + $0xd8] sm:$0xf] %vm996_vm3, %v986_v1  ;;  %v744_v10 = vmul.f32 %v1956_v40, %v592_v8  ;;  %v760_v11 = vmul.f32 %v1956_v40, %v632_v9 }
  0xdc   : > { %1004 = vst.msk [vmem:[%s1970_s15 + $0x1c] sm:$0xf] %vm996_vm3, %v939_v2  ;;  %v843_v12 = vadd.f32 %v1961_v41, %v775_v6  ;;  %v859_v13 = vadd.f32 %v1961_v41, %v791_v7 }
  0xdd   : > { %1020 = vst.msk [vmem:[%s1970_s15 + $0x5c] sm:$0xf] %vm996_vm3, %v955_v3  ;;  %v812_v14 = vadd.f32 %v1961_v41, %v744_v10  ;;  %v828_v15 = vadd.f32 %v1961_v41, %v760_v11 }
  0xde   : > { %v907_v16 = vmax.f32 %v843_v12, 0.0  ;;  %v923_v17 = vmax.f32 %v859_v13, 0.0 }
  0xdf   : > { %v876_v18 = vmax.f32 %v812_v14, 0.0  ;;  %v892_v19 = vmax.f32 %v828_v15, 0.0 }
  0xe0   : > { %v971_v20 = vpack.c.bf16 %v907_v16, %v907_v16  ;;  %v987_v21 = vpack.c.bf16 %v923_v17, %v923_v17 }
  0xe1   : > { %v940_v22 = vpack.c.bf16 %v876_v18, %v876_v18  ;;  %v956_v23 = vpack.c.bf16 %v892_v19, %v892_v19  ;;  %v672_v24 = vpop.f32.mrf.mxu2  ;;  %v712_v25 = vpop.f32.mrf.mxu3 }
  0xe2   : > { %1036 = vst.msk [vmem:[%s1970_s15 + $0x9c] sm:$0xf] %vm996_vm3, %v971_v20  ;;  %v776_v26 = vmul.f32 %v1956_v40, %v672_v24  ;;  %v792_v27 = vmul.f32 %v1956_v40, %v712_v25  ;;  %v594_v28 = vpop.f32.mrf.mxu0  ;;  %v634_v29 = vpop.f32.mrf.mxu1 }
  0xe3   : > { %1052 = vst.msk [vmem:[%s1970_s15 + $0xdc] sm:$0xf] %vm996_vm3, %v987_v21  ;;  %v745_v30 = vmul.f32 %v1956_v40, %v594_v28  ;;  %v761_v31 = vmul.f32 %v1956_v40, %v634_v29 }
  0xe4   : > { %1005 = vst.msk [vmem:[%s1970_s15 + $0x20] sm:$0xf] %vm996_vm3, %v940_v22  ;;  %v844_v32 = vadd.f32 %v1961_v41, %v776_v26  ;;  %v860_v33 = vadd.f32 %v1961_v41, %v792_v27 }
  0xe5   : > { %1021 = vst.msk [vmem:[%s1970_s15 + $0x60] sm:$0xf] %vm996_vm3, %v956_v23  ;;  %v813_v34 = vadd.f32 %v1961_v41, %v745_v30  ;;  %v829_v35 = vadd.f32 %v1961_v41, %v761_v31 }
  0xe6   : > { %v908_v36 = vmax.f32 %v844_v32, 0.0  ;;  %v924_v37 = vmax.f32 %v860_v33, 0.0 }
  0xe7   : > { %v877_v38 = vmax.f32 %v813_v34, 0.0  ;;  %v893_v39 = vmax.f32 %v829_v35, 0.0 }
  0xe8   : > { %v972_v42 = vpack.c.bf16 %v908_v36, %v908_v36  ;;  %v988_v43 = vpack.c.bf16 %v924_v37, %v924_v37 }
  0xe9   : > { %v941_v44 = vpack.c.bf16 %v877_v38, %v877_v38  ;;  %v957_v45 = vpack.c.bf16 %v893_v39, %v893_v39  ;;  %v674_v46 = vpop.f32.mrf.mxu2  ;;  %v714_v47 = vpop.f32.mrf.mxu3 }
  0xea   : > { %1037 = vst.msk [vmem:[%s1970_s15 + $0xa0] sm:$0xf] %vm996_vm3, %v972_v42  ;;  %v777_v48 = vmul.f32 %v1956_v40, %v674_v46  ;;  %v793_v49 = vmul.f32 %v1956_v40, %v714_v47  ;;  %v597_v50 = vpop.f32.mrf.mxu0  ;;  %v637_v51 = vpop.f32.mrf.mxu1 }
  0xeb   : > { %1053 = vst.msk [vmem:[%s1970_s15 + $0xe0] sm:$0xf] %vm996_vm3, %v988_v43  ;;  %v746_v52 = vmul.f32 %v1956_v40, %v597_v50  ;;  %v762_v53 = vmul.f32 %v1956_v40, %v637_v51 }
  0xec   : > { %1006 = vst.msk [vmem:[%s1970_s15 + $0x24] sm:$0xf] %vm996_vm3, %v941_v44  ;;  %v845_v54 = vadd.f32 %v1961_v41, %v777_v48  ;;  %v861_v55 = vadd.f32 %v1961_v41, %v793_v49 }
  0xed   : > { %1022 = vst.msk [vmem:[%s1970_s15 + $0x64] sm:$0xf] %vm996_vm3, %v957_v45  ;;  %v814_v56 = vadd.f32 %v1961_v41, %v746_v52  ;;  %v830_v57 = vadd.f32 %v1961_v41, %v762_v53 }
  0xee   : > { %v909_v58 = vmax.f32 %v845_v54, 0.0  ;;  %v925_v59 = vmax.f32 %v861_v55, 0.0 }
  0xef   : > { %v878_v60 = vmax.f32 %v814_v56, 0.0  ;;  %v894_v61 = vmax.f32 %v830_v57, 0.0 }
  0xf0   : > { %v973_v62 = vpack.c.bf16 %v909_v58, %v909_v58  ;;  %v989_v63 = vpack.c.bf16 %v925_v59, %v925_v59 }
  0xf1   : > { %v942_v0 = vpack.c.bf16 %v878_v60, %v878_v60  ;;  %v958_v1 = vpack.c.bf16 %v894_v61, %v894_v61  ;;  %v677_v2 = vpop.f32.mrf.mxu2  ;;  %v717_v3 = vpop.f32.mrf.mxu3 }
  0xf2   : > { %1038 = vst.msk [vmem:[%s1970_s15 + $0xa4] sm:$0xf] %vm996_vm3, %v973_v62  ;;  %v778_v4 = vmul.f32 %v1956_v40, %v677_v2  ;;  %v794_v5 = vmul.f32 %v1956_v40, %v717_v3  ;;  %v599_v6 = vpop.f32.mrf.mxu0  ;;  %v639_v7 = vpop.f32.mrf.mxu1 }
  0xf3   : > { %1054 = vst.msk [vmem:[%s1970_s15 + $0xe4] sm:$0xf] %vm996_vm3, %v989_v63  ;;  %v747_v8 = vmul.f32 %v1956_v40, %v599_v6  ;;  %v763_v9 = vmul.f32 %v1956_v40, %v639_v7 }
  0xf4   : > { %1007 = vst.msk [vmem:[%s1970_s15 + $0x28] sm:$0xf] %vm996_vm3, %v942_v0  ;;  %v846_v10 = vadd.f32 %v1961_v41, %v778_v4  ;;  %v862_v11 = vadd.f32 %v1961_v41, %v794_v5 }
  0xf5   : > { %1023 = vst.msk [vmem:[%s1970_s15 + $0x68] sm:$0xf] %vm996_vm3, %v958_v1  ;;  %v815_v12 = vadd.f32 %v1961_v41, %v747_v8  ;;  %v831_v13 = vadd.f32 %v1961_v41, %v763_v9 }
  0xf6   : > { %v910_v14 = vmax.f32 %v846_v10, 0.0  ;;  %v926_v15 = vmax.f32 %v862_v11, 0.0 }
  0xf7   : > { %v879_v16 = vmax.f32 %v815_v12, 0.0  ;;  %v895_v17 = vmax.f32 %v831_v13, 0.0 }
  0xf8   : > { %v974_v18 = vpack.c.bf16 %v910_v14, %v910_v14  ;;  %v990_v19 = vpack.c.bf16 %v926_v15, %v926_v15 }
  0xf9   : > { %v943_v20 = vpack.c.bf16 %v879_v16, %v879_v16  ;;  %v959_v21 = vpack.c.bf16 %v895_v17, %v895_v17  ;;  %v679_v22 = vpop.f32.mrf.mxu2  ;;  %v719_v23 = vpop.f32.mrf.mxu3 }
  0xfa   : > { %1039 = vst.msk [vmem:[%s1970_s15 + $0xa8] sm:$0xf] %vm996_vm3, %v974_v18  ;;  %v779_v24 = vmul.f32 %v1956_v40, %v679_v22  ;;  %v795_v25 = vmul.f32 %v1956_v40, %v719_v23  ;;  %v602_v26 = vpop.f32.mrf.mxu0  ;;  %v642_v27 = vpop.f32.mrf.mxu1 }
  0xfb   : > { %1055 = vst.msk [vmem:[%s1970_s15 + $0xe8] sm:$0xf] %vm996_vm3, %v990_v19  ;;  %v748_v28 = vmul.f32 %v1956_v40, %v602_v26  ;;  %v764_v29 = vmul.f32 %v1956_v40, %v642_v27 }
  0xfc   : > { %1008 = vst.msk [vmem:[%s1970_s15 + $0x2c] sm:$0xf] %vm996_vm3, %v943_v20  ;;  %v847_v30 = vadd.f32 %v1961_v41, %v779_v24  ;;  %v863_v31 = vadd.f32 %v1961_v41, %v795_v25 }
  0xfd   : > { %1024 = vst.msk [vmem:[%s1970_s15 + $0x6c] sm:$0xf] %vm996_vm3, %v959_v21  ;;  %v816_v32 = vadd.f32 %v1961_v41, %v748_v28  ;;  %v832_v33 = vadd.f32 %v1961_v41, %v764_v29 }
  0xfe   : > { %v911_v34 = vmax.f32 %v847_v30, 0.0  ;;  %v927_v35 = vmax.f32 %v863_v31, 0.0 }
  0xff   : > { %v880_v36 = vmax.f32 %v816_v32, 0.0  ;;  %v896_v37 = vmax.f32 %v832_v33, 0.0 }
 0x100   : > { %v975_v38 = vpack.c.bf16 %v911_v34, %v911_v34  ;;  %v991_v39 = vpack.c.bf16 %v927_v35, %v927_v35 }
 0x101   : > { %v944_v42 = vpack.c.bf16 %v880_v36, %v880_v36  ;;  %v960_v43 = vpack.c.bf16 %v896_v37, %v896_v37  ;;  %v682_v44 = vpop.f32.mrf.mxu2  ;;  %v722_v45 = vpop.f32.mrf.mxu3 }
 0x102   : > { %1040 = vst.msk [vmem:[%s1970_s15 + $0xac] sm:$0xf] %vm996_vm3, %v975_v38  ;;  %v780_v46 = vmul.f32 %v1956_v40, %v682_v44  ;;  %v796_v47 = vmul.f32 %v1956_v40, %v722_v45  ;;  %v604_v48 = vpop.f32.mrf.mxu0  ;;  %v644_v49 = vpop.f32.mrf.mxu1 }
 0x103   : > { %1056 = vst.msk [vmem:[%s1970_s15 + $0xec] sm:$0xf] %vm996_vm3, %v991_v39  ;;  %v749_v50 = vmul.f32 %v1956_v40, %v604_v48  ;;  %v765_v51 = vmul.f32 %v1956_v40, %v644_v49 }
 0x104   : > { %1009 = vst.msk [vmem:[%s1970_s15 + $0x30] sm:$0xf] %vm996_vm3, %v944_v42  ;;  %v848_v52 = vadd.f32 %v1961_v41, %v780_v46  ;;  %v864_v53 = vadd.f32 %v1961_v41, %v796_v47 }
 0x105   : > { %1025 = vst.msk [vmem:[%s1970_s15 + $0x70] sm:$0xf] %vm996_vm3, %v960_v43  ;;  %v817_v54 = vadd.f32 %v1961_v41, %v749_v50  ;;  %v833_v55 = vadd.f32 %v1961_v41, %v765_v51 }
 0x106   : > { %v912_v56 = vmax.f32 %v848_v52, 0.0  ;;  %v928_v57 = vmax.f32 %v864_v53, 0.0 }
 0x107   : > { %v881_v58 = vmax.f32 %v817_v54, 0.0  ;;  %v897_v59 = vmax.f32 %v833_v55, 0.0 }
 0x108   : > { %v976_v60 = vpack.c.bf16 %v912_v56, %v912_v56  ;;  %v992_v61 = vpack.c.bf16 %v928_v57, %v928_v57 }
 0x109   : > { %v945_v62 = vpack.c.bf16 %v881_v58, %v881_v58  ;;  %v961_v63 = vpack.c.bf16 %v897_v59, %v897_v59  ;;  %v684_v0 = vpop.f32.mrf.mxu2  ;;  %v724_v1 = vpop.f32.mrf.mxu3 }
 0x10a   : > { %1041 = vst.msk [vmem:[%s1970_s15 + $0xb0] sm:$0xf] %vm996_vm3, %v976_v60  ;;  %v781_v2 = vmul.f32 %v1956_v40, %v684_v0  ;;  %v797_v3 = vmul.f32 %v1956_v40, %v724_v1  ;;  %v607_v4 = vpop.f32.mrf.mxu0  ;;  %v647_v5 = vpop.f32.mrf.mxu1 }
 0x10b   : > { %1057 = vst.msk [vmem:[%s1970_s15 + $0xf0] sm:$0xf] %vm996_vm3, %v992_v61  ;;  %v750_v6 = vmul.f32 %v1956_v40, %v607_v4  ;;  %v766_v7 = vmul.f32 %v1956_v40, %v647_v5 }
 0x10c   : > { %1010 = vst.msk [vmem:[%s1970_s15 + $0x34] sm:$0xf] %vm996_vm3, %v945_v62  ;;  %v849_v8 = vadd.f32 %v1961_v41, %v781_v2  ;;  %v865_v9 = vadd.f32 %v1961_v41, %v797_v3 }
 0x10d   : > { %1026 = vst.msk [vmem:[%s1970_s15 + $0x74] sm:$0xf] %vm996_vm3, %v961_v63  ;;  %v818_v10 = vadd.f32 %v1961_v41, %v750_v6  ;;  %v834_v11 = vadd.f32 %v1961_v41, %v766_v7 }
 0x10e   : > { %v913_v12 = vmax.f32 %v849_v8, 0.0  ;;  %v929_v13 = vmax.f32 %v865_v9, 0.0 }
 0x10f   : > { %v882_v14 = vmax.f32 %v818_v10, 0.0  ;;  %v898_v15 = vmax.f32 %v834_v11, 0.0 }
 0x110   : > { %v977_v16 = vpack.c.bf16 %v913_v12, %v913_v12  ;;  %v993_v17 = vpack.c.bf16 %v929_v13, %v929_v13 }
 0x111   : > { %v946_v18 = vpack.c.bf16 %v882_v14, %v882_v14  ;;  %v962_v19 = vpack.c.bf16 %v898_v15, %v898_v15  ;;  %v687_v20 = vpop.f32.mrf.mxu2  ;;  %v727_v21 = vpop.f32.mrf.mxu3 }
 0x112   : > { %1042 = vst.msk [vmem:[%s1970_s15 + $0xb4] sm:$0xf] %vm996_vm3, %v977_v16  ;;  %v782_v22 = vmul.f32 %v1956_v40, %v687_v20  ;;  %v798_v23 = vmul.f32 %v1956_v40, %v727_v21  ;;  %v609_v24 = vpop.f32.mrf.mxu0  ;;  %v649_v25 = vpop.f32.mrf.mxu1 }
 0x113   : > { %1058 = vst.msk [vmem:[%s1970_s15 + $0xf4] sm:$0xf] %vm996_vm3, %v993_v17  ;;  %v751_v26 = vmul.f32 %v1956_v40, %v609_v24  ;;  %v767_v27 = vmul.f32 %v1956_v40, %v649_v25 }
 0x114   : > { %1011 = vst.msk [vmem:[%s1970_s15 + $0x38] sm:$0xf] %vm996_vm3, %v946_v18  ;;  %v850_v28 = vadd.f32 %v1961_v41, %v782_v22  ;;  %v866_v29 = vadd.f32 %v1961_v41, %v798_v23 }
 0x115   : > { %1027 = vst.msk [vmem:[%s1970_s15 + $0x78] sm:$0xf] %vm996_vm3, %v962_v19  ;;  %v819_v30 = vadd.f32 %v1961_v41, %v751_v26  ;;  %v835_v31 = vadd.f32 %v1961_v41, %v767_v27 }
 0x116   : > { %v914_v32 = vmax.f32 %v850_v28, 0.0  ;;  %v930_v33 = vmax.f32 %v866_v29, 0.0 }
 0x117   : > { %v883_v34 = vmax.f32 %v819_v30, 0.0  ;;  %v899_v35 = vmax.f32 %v835_v31, 0.0 }
 0x118   : > { %v978_v36 = vpack.c.bf16 %v914_v32, %v914_v32  ;;  %v994_v37 = vpack.c.bf16 %v930_v33, %v930_v33 }
 0x119   : > { %v947_v38 = vpack.c.bf16 %v883_v34, %v883_v34  ;;  %v963_v39 = vpack.c.bf16 %v899_v35, %v899_v35  ;;  %v689_v42 = vpop.f32.mrf.mxu2  ;;  %v729_v43 = vpop.f32.mrf.mxu3 }
 0x11a   : > { %1043 = vst.msk [vmem:[%s1970_s15 + $0xb8] sm:$0xf] %vm996_vm3, %v978_v36  ;;  %v783_v44 = vmul.f32 %v1956_v40, %v689_v42  ;;  %v799_v45 = vmul.f32 %v1956_v40, %v729_v43 }
 0x11b   : > { %1059 = vst.msk [vmem:[%s1970_s15 + $0xf8] sm:$0xf] %vm996_vm3, %v994_v37 }
 0x11c   : > { %1012 = vst.msk [vmem:[%s1970_s15 + $0x3c] sm:$0xf] %vm996_vm3, %v947_v38  ;;  %v851_v46 = vadd.f32 %v1961_v41, %v783_v44  ;;  %v867_v47 = vadd.f32 %v1961_v41, %v799_v45 }
 0x11d   : > { %1028 = vst.msk [vmem:[%s1970_s15 + $0x7c] sm:$0xf] %vm996_vm3, %v963_v39 }
 0x11e   : > { %v915_v48 = vmax.f32 %v851_v46, 0.0  ;;  %v931_v49 = vmax.f32 %v867_v47, 0.0 }
 0x11f   : > { %1067 = sbr.rel (!%p1866_p4) target bundleno = 356 (0x164), region = 40 }
 0x120   : > { %v979_v50 = vpack.c.bf16 %v915_v48, %v915_v48  ;;  %v995_v51 = vpack.c.bf16 %v931_v49, %v931_v49 }
 0x122   : > { %1044 = vst.msk [vmem:[%s1970_s15 + $0xbc] sm:$0xf] %vm996_vm3, %v979_v50 }
 0x123   : > { %1060 = vst.msk [vmem:[%s1970_s15 + $0xfc] sm:$0xf] %vm996_vm3, %v995_v51 }
 0x124   : > { %s2379_s20 = smov (!%p1070_p8, %s1069_s20), 64 }
 0x125   : > { %s1578_s27 = sshll.u32 %s2379_s20, 2 }
 0x126   : > { %p1581_p9 = scmp.eq.s32.totalorder %s1578_s27, 0 }
 0x127   : > { %s2235_s29 = sshrl.u32 (!%p1581_p9), %s2379_s20, 5 }
 0x128   : > { %1078 = sbr.rel (%p1581_p9) target bundleno = 356 (0x164), region = 44  ;;  %p1582_p10 = scmp.le.s32.totalorder (!%p1581_p9), %s2235_s29, 0 }
 0x12d   : > { %1357 = sbr.rel (%p1582_p10) target bundleno = 339 (0x153), region = 116  ;;  %s2370_s18 = smov (!%p1582_p10), %s2229_s26 }
 0x12e   : > { %s2371_s23 = smov (!%p1582_p10), %s1970_s15  ;;  %s2244_s28 = smov (!%p1582_p10), 0  }
 0x12f   : > { %s2246_s30 = smov (!%p1582_p10), 0  }
 0x132 LB: >> { %v1095_v40 = vld [vmem:[%s1789_s23] sm:$0xf]  ;;  %v1097_v41 = vld [vmem:[%s1789_s23 + $0x4] sm:$0xf]  ;;  %v1099_v52 = vld [vmem:[%s1789_s23 + $0x8] sm:$0xf]  ;;  %s1797_s30 = sphi %s2246_s30, %s1089_s30   ;;  %s1793_s28 = sphi %s2244_s28, %s2374_s28   ;;  %s1789_s23 = sphi %s2371_s23, %s2373_s23   ;;  %s1785_s18 = sphi %s2370_s18, %s2372_s18  }
 0x133   : >> { %1096 = vst [vmem:[%s1785_s18] sm:$0xf] %v1095_v40  ;;  %v1101_v53 = vld [vmem:[%s1789_s23 + $0xc] sm:$0xf]  ;;  %v1103_v54 = vld [vmem:[%s1789_s23 + $0x10] sm:$0xf]  ;;  %s1159_s5 = sadd.s32 1, %s1793_s28 }
 0x134   : >> { %1098 = vst [vmem:[%s1785_s18 + $0x4] sm:$0xf] %v1097_v41  ;;  %v1105_v55 = vld [vmem:[%s1789_s23 + $0x14] sm:$0xf]  ;;  %v1107_v56 = vld [vmem:[%s1789_s23 + $0x18] sm:$0xf]  ;;  %p1160_p11 = scmp.ge.s32.totalorder %s1159_s5, %s2235_s29 }
 0x135   : >> { %1100 = vst [vmem:[%s1785_s18 + $0x8] sm:$0xf] %v1099_v52  ;;  %v1109_v57 = vld [vmem:[%s1789_s23 + $0x1c] sm:$0xf]  ;;  %v1111_v58 = vld [vmem:[%s1789_s23 + $0x20] sm:$0xf] }
 0x136   : >> { %1102 = vst [vmem:[%s1785_s18 + $0xc] sm:$0xf] %v1101_v53  ;;  %v1113_v59 = vld [vmem:[%s1789_s23 + $0x24] sm:$0xf]  ;;  %v1115_v60 = vld [vmem:[%s1789_s23 + $0x28] sm:$0xf] }
 0x137   : >> { %1104 = vst [vmem:[%s1785_s18 + $0x10] sm:$0xf] %v1103_v54  ;;  %v1117_v61 = vld [vmem:[%s1789_s23 + $0x2c] sm:$0xf]  ;;  %v1119_v62 = vld [vmem:[%s1789_s23 + $0x30] sm:$0xf] }
 0x138   : >> { %1106 = vst [vmem:[%s1785_s18 + $0x14] sm:$0xf] %v1105_v55  ;;  %v1121_v63 = vld [vmem:[%s1789_s23 + $0x34] sm:$0xf]  ;;  %v1123_v0 = vld [vmem:[%s1789_s23 + $0x38] sm:$0xf] }
 0x139   : >> { %1108 = vst [vmem:[%s1785_s18 + $0x18] sm:$0xf] %v1107_v56  ;;  %v1125_v1 = vld [vmem:[%s1789_s23 + $0x3c] sm:$0xf]  ;;  %v1127_v2 = vld [vmem:[%s1789_s23 + $0x40] sm:$0xf] }
 0x13a   : >> { %1110 = vst [vmem:[%s1785_s18 + $0x1c] sm:$0xf] %v1109_v57  ;;  %v1129_v3 = vld [vmem:[%s1789_s23 + $0x44] sm:$0xf]  ;;  %s2381_s5 = smov (%p1160_p11, %s1159_s5), 0  ;;  %s1089_s30 = sadd.s32 1, %s1797_s30  }
 0x13b   : >> { %1112 = vst [vmem:[%s1785_s18 + $0x20] sm:$0xf] %v1111_v58  ;;  %v1131_v4 = vld [vmem:[%s1789_s23 + $0x48] sm:$0xf]  ;;  %v1133_v5 = vld [vmem:[%s1789_s23 + $0x4c] sm:$0xf]  ;;  %p1088_p12 = scmp.ge.s32.totalorder %s1089_s30, %s2235_s29  ;;  %s2374_s28 = smov %s2381_s5 }
 0x13c   : >> { %1114 = vst [vmem:[%s1785_s18 + $0x24] sm:$0xf] %v1113_v59  ;;  %s1583_s6 = sshll.u32 %s2381_s5, 7  ;;  %v1135_v6 = vld [vmem:[%s1789_s23 + $0x50] sm:$0xf] }
 0x13d   : >> { %1116 = vst [vmem:[%s1785_s18 + $0x28] sm:$0xf] %v1115_v60  ;;  %s2305_s7 = scalar_lea.vmem %s1970_s15, %s1583_s6 [#allocation2]   ;;  %s1165_s8 = scalar_lea.vmem %s2229_s26, %s1583_s6   ;;  %v1137_v7 = vld [vmem:[%s1789_s23 + $0x54] sm:$0xf]  ;;  %v1139_v8 = vld [vmem:[%s1789_s23 + $0x58] sm:$0xf] }
 0x13e   : >> { %1118 = vst [vmem:[%s1785_s18 + $0x2c] sm:$0xf] %v1117_v61  ;;  %v1141_v9 = vld [vmem:[%s1789_s23 + $0x5c] sm:$0xf]  ;;  %v1143_v10 = vld [vmem:[%s1789_s23 + $0x60] sm:$0xf] }
 0x13f   : >> { %1120 = vst [vmem:[%s1785_s18 + $0x30] sm:$0xf] %v1119_v62  ;;  %v1145_v11 = vld [vmem:[%s1789_s23 + $0x64] sm:$0xf]  ;;  %v1147_v12 = vld [vmem:[%s1789_s23 + $0x68] sm:$0xf] }
 0x140   : >> { %1122 = vst [vmem:[%s1785_s18 + $0x34] sm:$0xf] %v1121_v63  ;;  %v1149_v13 = vld [vmem:[%s1789_s23 + $0x6c] sm:$0xf]  ;;  %v1151_v14 = vld [vmem:[%s1789_s23 + $0x70] sm:$0xf] }
 0x141   : >> { %1124 = vst [vmem:[%s1785_s18 + $0x38] sm:$0xf] %v1123_v0  ;;  %v1153_v15 = vld [vmem:[%s1789_s23 + $0x74] sm:$0xf]  ;;  %v1155_v16 = vld [vmem:[%s1789_s23 + $0x78] sm:$0xf] }
 0x142   : >> { %1126 = vst [vmem:[%s1785_s18 + $0x3c] sm:$0xf] %v1125_v1  ;;  %v1157_v17 = vld [vmem:[%s1789_s23 + $0x7c] sm:$0xf]  ;;  %s2373_s23 = smov %s2305_s7 }
 0x143   : >> { %1128 = vst [vmem:[%s1785_s18 + $0x40] sm:$0xf] %v1127_v2 }
 0x144   : >> { %1130 = vst [vmem:[%s1785_s18 + $0x44] sm:$0xf] %v1129_v3 }
 0x145   : >> { %1132 = vst [vmem:[%s1785_s18 + $0x48] sm:$0xf] %v1131_v4 }
 0x146   : >> { %1134 = vst [vmem:[%s1785_s18 + $0x4c] sm:$0xf] %v1133_v5 }
 0x147   : >> { %1136 = vst [vmem:[%s1785_s18 + $0x50] sm:$0xf] %v1135_v6 }
 0x148   : >> { %1138 = vst [vmem:[%s1785_s18 + $0x54] sm:$0xf] %v1137_v7 }
 0x149   : >> { %1140 = vst [vmem:[%s1785_s18 + $0x58] sm:$0xf] %v1139_v8 }
 0x14a   : >> { %1142 = vst [vmem:[%s1785_s18 + $0x5c] sm:$0xf] %v1141_v9 }
 0x14b   : >> { %1144 = vst [vmem:[%s1785_s18 + $0x60] sm:$0xf] %v1143_v10 }
 0x14c   : >> { %1146 = vst [vmem:[%s1785_s18 + $0x64] sm:$0xf] %v1145_v11 }
 0x14d   : >> { %1148 = vst [vmem:[%s1785_s18 + $0x68] sm:$0xf] %v1147_v12 }
 0x14e   : >> { %1150 = vst [vmem:[%s1785_s18 + $0x6c] sm:$0xf] %v1149_v13  ;;  %1091 = sbr.rel (!%p1088_p12) target bundleno = 306 (0x132), region = 122 }
 0x14f   : >> { %1152 = vst [vmem:[%s1785_s18 + $0x70] sm:$0xf] %v1151_v14 }
 0x150   : >> { %1154 = vst [vmem:[%s1785_s18 + $0x74] sm:$0xf] %v1153_v15 }
 0x151   : >> { %1156 = vst [vmem:[%s1785_s18 + $0x78] sm:$0xf] %v1155_v16 }
 0x152   : >> { %1158 = vst [vmem:[%s1785_s18 + $0x7c] sm:$0xf] %v1157_v17  ;;  %s2372_s18 = smov %s1165_s8 }
 0x153 PF: > { %s2346_s9 = sand.u32 31, %s2379_s20   ;;  %s1628_s10 = sshll.u32 %s2235_s29, 7 }
 0x154   : > { %s1170_s11 = scalar_lea.vmem %s1970_s15, %s1628_s10 [#allocation2]   ;;  %s1172_s12 = scalar_lea.vmem %s2229_s26, %s1628_s10  }
 0x155   : > { %p1588_p13 = scmp.le.s32.totalorder %s2346_s9, 0 }
 0x156   : > { %s1799_s13 = smov (!%p1588_p13), %s1172_s12   ;;  %s1803_s14 = smov (!%p1588_p13), %s1170_s11  }
 0x157   : > { %1371 = sbr.rel (%p1588_p13) target bundleno = 356 (0x164), region = 127  ;;  %s1807_s17 = smov (!%p1588_p13), 0  }
 0x158   : > { %s1811_s21 = smov (!%p1588_p13), 0  }
 0x15c LB: >> { %v1182_v18 = vld [vmem:[%s1805_s14] sm:$0xf]  ;;  %s1184_s20 = sadd.s32 1, %s1809_s17  ;;  %s1176_s21 = sadd.s32 1, %s1813_s21   ;;  %s1813_s21 = sphi %s1811_s21, %s1176_s21   ;;  %s1809_s17 = sphi %s1807_s17, %s1808_s17   ;;  %s1805_s14 = sphi %s1803_s14, %s1189_s14   ;;  %s1801_s13 = sphi %s1799_s13, %s1190_s13  }
 0x15d   : >> { %1183 = vst [vmem:[%s1801_s13] sm:$0xf] %v1182_v18  ;;  %p1185_p0 = scmp.ge.s32.totalorder %s1184_s20, %s2346_s9  ;;  %p1175_p1 = scmp.ge.s32.totalorder %s1176_s21, %s2346_s9 }
 0x15f   : >> { %s2383_s20 = smov (%p1185_p0, %s1184_s20), 0  ;;  %1178 = sbr.rel (!%p1175_p1) target bundleno = 348 (0x15c), region = 133 }
 0x160   : >> { %s1589_s15 = sshll.u32 %s2383_s20, 2  ;;  %s1808_s17 = smov %s2383_s20  }
 0x161   : >> { %s1189_s14 = scalar_lea.vmem %s1170_s11, %s1589_s15 [#allocation2]   ;;  %s1190_s13 = scalar_lea.vmem %s1172_s12, %s1589_s15  }
 0x164 PF: > { %p11_p2 = scmp.ge.s32.totalorder %s1856_s19, 5   ;;  %s2375_s15 = smov %s1777_s16 }
 0x165   : > { %s2376_s16 = smov %s1864_s22  ;;  %s2377_s17 = smov %s1856_s19 }
 0x166   :  { %13 = sbr.rel (!%p11_p2) target bundleno = 2 (0x2), region = 144 }

// kernel: cnn_forward.10
= control target key start
LH: loop header
LB: loop body
LE: loop exit
PB: predicated region body
PF: predicated region fallthrough
CT: control target
= control target key end

     0   :  { %s3106_s15 = smov 0   ;;  %s3108_s16 = smov 0   ;;  %s3952_s0 = inlined_call_operand.vmem [shape: bf16[1152,288], index: 0, kind: input, shape index: {}]   ;;  %s3953_s1 = inlined_call_operand.vmem [shape: bf16[288,32], index: 1, kind: input, shape index: {}]   ;;  %s3954_s2 = inlined_call_operand.vmem [shape: f32[1,32], index: 2, kind: input, shape index: {}]   ;;  %s3955_s3 = inlined_call_operand.vmem [shape: f32[1,32], index: 3, kind: input, shape index: {}]   ;;  %s3956_s4 = inlined_call_operand.vmem [shape: bf16[1152,32], index: 4, kind: output, shape index: {}]  }
   0x1   :  { %s3110_s17 = smov 0  }
   0x2 LB: > { %s3119_s18 = sadd.s32 4294967295, %s3047_s17   ;;  %s3121_s19 = sadd.s32 1, %s3047_s17   ;;  %s3047_s17 = sphi %s3110_s17, %s3965_s17   ;;  %s3043_s16 = sphi %s3108_s16, %s3964_s16   ;;  %s3039_s15 = sphi %s3106_s15, %s3963_s15  }
   0x3   : > { %s107_s20 = ssub.s32 %s3047_s17, %s3121_s19  ;;  %s110_s21 = sadd.s32 1, %s3043_s16 }
   0x4   : > { %p108_p0 = scmp.eq.s32.totalorder %s107_s20, 0  ;;  %p120_p1 = scmp.ne.s32.totalorder %s3043_s16, %s3039_s15 }
   0x5   : > { %p121_p2 = scmp.eq.s32.totalorder %s3119_s18, 2  ;;  %p2256_p3 = scmp.ge.s32.totalorder %s3047_s17, 1 }
   0x6   : > { %s3129_s22 = scalar_select %p108_p0, %s3043_s16, %s110_s21  }
   0x7   : > { %p3131_p4 = por %p121_p2, %p120_p1  ;;  %p174_p5 = scmp.lt.s32.totalorder %s3047_s17, 4 }
   0x9   : > { %p175_p6 = pnand %p2256_p3, %p174_p5 }
   0xa   : > { %s3149_s30 = sshll.u32 (!%p175_p6), %s3119_s18, 6  ;;  %s202_s7 = sand.u32 (!%p175_p6), 1, %s3039_s15  }
   0xb   : > { %178 = sbr.rel (%p175_p6) target bundleno = 641 (0x281), region = 36  ;;  %p211_p7 = scmp.lt.s32.totalorder (!%p175_p6), %s3149_s30, 143 }
   0xc   : > { %s2257_s8 = sshll.u32 (!%p175_p6), %s202_s7, 8 }
   0xd   : > { %s3319_s15 = scalar_lea.vmem (!%p175_p6), [#allocation2], %s2257_s8  }
  0x10   : > { %v2868_v0 = vld [vmem:[%s3953_s1 + $0x38] sm:$0xff]  ;;  %v3146_v2 = vld [vmem:[%s3953_s1 + $0x88] sm:$0xff]  ;;  %v2867_v3 = vld [vmem:[%s3953_s1 + $0x30] sm:$0xff]  ;;  %s212_s11 = scalar_select %p211_p7, %s3149_s30, 143  ;;  %vm980_vm0 = vcmask 261120   ;;  %vm1848_vm1 = vcmask 257024  }
  0x11   : > { %v3141_v1 = vld [vmem:[%s3953_s1 + $0x78] sm:$0xff]  ;;  %1077 = vmatpush.bf16.msra.mxu0 %v2868_v0  ;;  %2882 = vmatpush.bf16.msra.mxu3 %v2868_v0  ;;  %v2875_v4 = vld [vmem:[%s3953_s1 + $0x70] sm:$0xff]  ;;  %v3163_v5 = vld [vmem:[%s3953_s1 + $0x80] sm:$0xff]  ;;  %s2879_s13 = sshll.u32 (%p3131_p4), %s3119_s18, 8 }
  0x12   : > { %1246 = vmatpush.bf16.msra.mxu1 %v3141_v1  ;;  %1421 = vmatpush.bf16.msra.mxu2 %v3146_v2  ;;  %s2900_s12 = smul.u32 12, %s212_s11  ;;  %v2866_v6 = vld [vmem:[%s3953_s1 + $0x28] sm:$0xff]  ;;  %v2865_v11 = vld [vmem:[%s3953_s1 + $0x20] sm:$0xff]  ;;  %v2864_v13 = vld [vmem:[%s3953_s1 + $0x18] sm:$0xff]  ;;  %s3817_s20 = scalar_lea.vmem (%p3131_p4), %s3956_s4, %s2879_s13  }
  0x13   : > { %v2874_v7 = vld [vmem:[%s3953_s1 + $0x68] sm:$0xff]  ;;  %v2873_v12 = vld [vmem:[%s3953_s1 + $0x60] sm:$0xff]  ;;  %v2872_v14 = vld [vmem:[%s3953_s1 + $0x58] sm:$0xff] }
  0x14   : > { %s3176_s25 = scalar_lea.vmem %s3952_s0, %s2900_s12  ;;  %v2863_v15 = vld [vmem:[%s3953_s1 + $0x10] sm:$0xff]  ;;  %v2862_v19 = vld [vmem:[%s3953_s1 + $0x8] sm:$0xff]  ;;  %v2861_v22 = vld [vmem:[%s3953_s1] sm:$0xff] }
  0x15   : > { %1078 = vmatpush.bf16.msra.mxu0 %v2867_v3  ;;  %2883 = vmatpush.bf16.msra.mxu3 %v2867_v3  ;;  %v2270_v8 = vld [vmem:[%s3176_s25 + $0x8] sm:$0xf]  ;;  %v2767_v9 = vld [vmem:[%s3176_s25 + $0x10] sm:$0xf0]  ;;  %v2282_v17 = vld [vmem:[%s3176_s25 + $0x20] sm:$0xf] }
  0x16   : > { %1247 = vmatpush.bf16.msra.mxu1 %v2875_v4  ;;  %1422 = vmatpush.bf16.msra.mxu2 %v3163_v5  ;;  %v2271_v10 = vor.u32 %v2767_v9, %v2270_v8  ;;  %v2871_v16 = vld [vmem:[%s3953_s1 + $0x50] sm:$0xff]  ;;  %v2770_v18 = vld [vmem:[%s3176_s25 + $0x28] sm:$0xf0]  ;;  %v2262_v23 = vld [vmem:[%s3176_s25] sm:$0xf] }
  0x17   : > { %v2870_v20 = vld [vmem:[%s3953_s1 + $0x48] sm:$0xff]  ;;  %v2283_v21 = vor.u32 %v2770_v18, %v2282_v17  ;;  %v2550_v25 = vld [vmem:[%s3176_s25 + $0x240] sm:$0xf]  ;;  %v2765_v28 = vld [vmem:[%s3176_s25 + $0x4] sm:$0xf] }
  0x18   : > { %v2766_v24 = vld [vmem:[%s3176_s25 + $0x8] sm:$0xf0]  ;;  %v2869_v27 = vld [vmem:[%s3953_s1 + $0x40] sm:$0xff]  ;;  %v2264_v29 = vld [vmem:[%s3176_s25 + $0xc] sm:$0xf0] }
  0x19   : > { %1079 = vmatpush.bf16.msra.mxu0 %v2866_v6  ;;  %2884 = vmatpush.bf16.msra.mxu3 %v2866_v6  ;;  %v2838_v26 = vld [vmem:[%s3176_s25 + $0x248] sm:$0xf0]  ;;  %v2263_v30 = vor.u32 %v2766_v24, %v2262_v23  ;;  %v2267_v32 = vor.u32 %v2765_v28, %v2264_v29  ;;  %v2294_v33 = vld [vmem:[%s3176_s25 + $0x38] sm:$0xf]  ;;  %v2773_v34 = vld [vmem:[%s3176_s25 + $0x40] sm:$0xf0] }
  0x1a   : > { %1248 = vmatpush.bf16.msra.mxu1 %v2874_v7  ;;  %2716 = vmatmul.msk.bf16.vlgmr.msra.gmra.mxu2 %vm980_vm0, %v2271_v10  ;;  %v2551_v31 = vor.u32 %v2838_v26, %v2550_v25  ;;  %v2295_v35 = vor.u32 %v2773_v34, %v2294_v33  ;;  %v2274_v36 = vld [vmem:[%s3176_s25 + $0x18] sm:$0xf]  ;;  %v2769_v37 = vld [vmem:[%s3176_s25 + $0x20] sm:$0xf0]  ;;  %v2768_v40 = vld [vmem:[%s3176_s25 + $0x1c] sm:$0xf] }
  0x1b   : > { %v2562_v38 = vld [vmem:[%s3176_s25 + $0x258] sm:$0xf]  ;;  %v2841_v39 = vld [vmem:[%s3176_s25 + $0x260] sm:$0xf0]  ;;  %v2276_v41 = vld [vmem:[%s3176_s25 + $0x24] sm:$0xf0]  ;;  %v2275_v42 = vor.u32 %v2769_v37, %v2274_v36 }
  0x1c   : > { %v2563_v43 = vor.u32 %v2841_v39, %v2562_v38  ;;  %v2279_v44 = vor.u32 %v2768_v40, %v2276_v41  ;;  %v2306_v45 = vld [vmem:[%s3176_s25 + $0x50] sm:$0xf]  ;;  %v2776_v46 = vld [vmem:[%s3176_s25 + $0x58] sm:$0xf0]  ;;  %v2771_v52 = vld [vmem:[%s3176_s25 + $0x34] sm:$0xf] }
  0x1d   : > { %1080 = vmatpush.bf16.msra.mxu0 %v2865_v11  ;;  %2885 = vmatpush.bf16.msra.mxu3 %v2865_v11  ;;  %v2307_v47 = vor.u32 %v2776_v46, %v2306_v45  ;;  %v2286_v48 = vld [vmem:[%s3176_s25 + $0x30] sm:$0xf]  ;;  %v2772_v49 = vld [vmem:[%s3176_s25 + $0x38] sm:$0xf0]  ;;  %v2288_v53 = vld [vmem:[%s3176_s25 + $0x3c] sm:$0xf0] }
  0x1e   : > { %1249 = vmatpush.bf16.msra.mxu1 %v2873_v12  ;;  %v2574_v50 = vld [vmem:[%s3176_s25 + $0x270] sm:$0xf]  ;;  %v2844_v51 = vld [vmem:[%s3176_s25 + $0x278] sm:$0xf0]  ;;  %v2287_v54 = vor.u32 %v2772_v49, %v2286_v48  ;;  %v2291_v56 = vor.u32 %v2771_v52, %v2288_v53  ;;  %v2318_v57 = vld [vmem:[%s3176_s25 + $0x68] sm:$0xf] }
  0x1f   : > { %v2575_v55 = vor.u32 %v2844_v51, %v2574_v50  ;;  %v2779_v58 = vld [vmem:[%s3176_s25 + $0x70] sm:$0xf0]  ;;  %v2298_v60 = vld [vmem:[%s3176_s25 + $0x48] sm:$0xf]  ;;  %v2774_v0 = vld [vmem:[%s3176_s25 + $0x4c] sm:$0xf] }
  0x20   : > { %v2319_v59 = vor.u32 %v2779_v58, %v2318_v57  ;;  %v2775_v61 = vld [vmem:[%s3176_s25 + $0x50] sm:$0xf0]  ;;  %v2586_v62 = vld [vmem:[%s3176_s25 + $0x288] sm:$0xf]  ;;  %v2782_v6 = vld [vmem:[%s3176_s25 + $0x88] sm:$0xf0] }
  0x21   : > { %1081 = vmatpush.bf16.msra.mxu0 %v2864_v13  ;;  %2886 = vmatpush.bf16.msra.mxu3 %v2864_v13  ;;  %v2847_v63 = vld [vmem:[%s3176_s25 + $0x290] sm:$0xf0]  ;;  %v2310_v8 = vld [vmem:[%s3176_s25 + $0x60] sm:$0xf]  ;;  %v2778_v9 = vld [vmem:[%s3176_s25 + $0x68] sm:$0xf0] }
  0x22   : > { %1250 = vmatpush.bf16.msra.mxu1 %v2872_v14  ;;  %v2587_v3 = vor.u32 %v2847_v63, %v2586_v62  ;;  %v2598_v10 = vld [vmem:[%s3176_s25 + $0x2a0] sm:$0xf]  ;;  %v2850_v11 = vld [vmem:[%s3176_s25 + $0x2a8] sm:$0xf0]  ;;  %v2312_v13 = vld [vmem:[%s3176_s25 + $0x6c] sm:$0xf0] }
  0x23   : > { %v2342_v17 = vld [vmem:[%s3176_s25 + $0x98] sm:$0xf]  ;;  %v2785_v18 = vld [vmem:[%s3176_s25 + $0xa0] sm:$0xf0]  ;;  %v2780_v24 = vld [vmem:[%s3176_s25 + $0x7c] sm:$0xf] }
  0x24   : > { %v2853_v23 = vld [vmem:[%s3176_s25 + $0x2c0] sm:$0xf0]  ;;  %v2324_v25 = vld [vmem:[%s3176_s25 + $0x84] sm:$0xf0]  ;;  %v2354_v29 = vld [vmem:[%s3176_s25 + $0xb0] sm:$0xf] }
  0x25   : > { %1082 = vmatpush.bf16.msra.mxu0 %v2863_v15  ;;  %2887 = vmatpush.bf16.msra.mxu3 %v2863_v15  ;;  %v2599_v15 = vor.u32 %v2850_v11, %v2598_v10  ;;  %v2327_v28 = vor.u32 %v2780_v24, %v2324_v25  ;;  %v2784_v33 = vld [vmem:[%s3176_s25 + $0x98] sm:$0xf0]  ;;  %v2622_v34 = vld [vmem:[%s3176_s25 + $0x2d0] sm:$0xf]  ;;  %v2783_v36 = vld [vmem:[%s3176_s25 + $0x94] sm:$0xf] }
  0x26   : > { %1251 = vmatpush.bf16.msra.mxu1 %v2871_v16  ;;  %v2336_v37 = vld [vmem:[%s3176_s25 + $0x9c] sm:$0xf0]  ;;  %v2366_v41 = vld [vmem:[%s3176_s25 + $0xc8] sm:$0xf]  ;;  %v2787_v45 = vld [vmem:[%s3176_s25 + $0xb0] sm:$0xf0] }
  0x27   : > { %v2339_v40 = vor.u32 %v2783_v36, %v2336_v37  ;;  %v2634_v46 = vld [vmem:[%s3176_s25 + $0x2e8] sm:$0xf]  ;;  %v2786_v48 = vld [vmem:[%s3176_s25 + $0xac] sm:$0xf]  ;;  %v2348_v49 = vld [vmem:[%s3176_s25 + $0xb4] sm:$0xf0] }
  0x28   : > { %v2351_v53 = vor.u32 %v2786_v48, %v2348_v49  ;;  %v2358_v58 = vld [vmem:[%s3176_s25 + $0xc0] sm:$0xf]  ;;  %v2789_v62 = vld [vmem:[%s3176_s25 + $0xc4] sm:$0xf]  ;;  %v2360_v63 = vld [vmem:[%s3176_s25 + $0xcc] sm:$0xf0] }
  0x29   : > { %1083 = vmatpush.bf16.msra.mxu0 %v2862_v19  ;;  %2888 = vmatpush.bf16.msra.mxu3 %v2862_v19  ;;  %v2343_v19 = vor.u32 %v2785_v18, %v2342_v17  ;;  %v2793_v24 = vld [vmem:[%s3176_s25 + $0xe0] sm:$0xf0]  ;;  %v2840_v25 = vld [vmem:[%s3176_s25 + $0x25c] sm:$0xf] }
  0x2a   : > { %1252 = vmatpush.bf16.msra.mxu1 %v2870_v20  ;;  %2717 = vmatmul.msk.bf16.gmra.mxu2 %vm980_vm0, %v2283_v21  ;;  %v2781_v21 = vld [vmem:[%s3176_s25 + $0x80] sm:$0xf0] }
  0x2d   : > { %1084 = vmatpush.bf16.msra.mxu0 %v2861_v22  ;;  %2889 = vmatpush.bf16.msra.mxu3 %v2861_v22  ;;  %v2610_v22 = vld [vmem:[%s3176_s25 + $0x2b8] sm:$0xf] }
  0x2e   : > { %1253 = vmatpush.bf16.msra.mxu1 %v2869_v27 }
  0x30   : > { %1085 = vmatmul.bf16.vlgmr.msra.gmra.mxu0 %v2263_v30  ;;  %1205 = vmatmul.bf16.vlgmr.msra.gmra.mxu3 %v2551_v31  ;;  %v2788_v30 = vld [vmem:[%s3176_s25 + $0xb8] sm:$0xf0] }
  0x31   : > { %2890 = vmatpush.bf16.msrb.mxu3 %v3141_v1  ;;  %1254 = vmatmul.bf16.vlgmr.msra.gmra.mxu1 %v2267_v32  ;;  %v2300_v1 = vld [vmem:[%s3176_s25 + $0x54] sm:$0xf0]  ;;  %v2355_v31 = vor.u32 %v2788_v30, %v2354_v29  ;;  %v2334_v32 = vld [vmem:[%s3176_s25 + $0x90] sm:$0xf] }
  0x32   : > { %v2335_v38 = vor.u32 %v2784_v33, %v2334_v32 }
  0x35   : > { %2891 = vmatpush.bf16.msrb.mxu3 %v2875_v4  ;;  %v2303_v4 = vor.u32 %v2774_v0, %v2300_v1 }
  0x39   : > { %2892 = vmatpush.bf16.msrb.mxu3 %v2874_v7 }
  0x3a   : > { %2718 = vmatmul.msk.bf16.gmra.mxu2 %vm980_vm0, %v2295_v35  ;;  %v2856_v35 = vld [vmem:[%s3176_s25 + $0x2d8] sm:$0xf0] }
  0x3b   : > { %v2623_v39 = vor.u32 %v2856_v35, %v2622_v34 }
  0x3d   : > { %2893 = vmatpush.bf16.msrb.mxu3 %v2873_v12  ;;  %v2777_v12 = vld [vmem:[%s3176_s25 + $0x64] sm:$0xf] }
  0x40   : > { %1090 = vmatmul.bf16.gmra.mxu0 %v2275_v42  ;;  %1210 = vmatmul.bf16.gmra.mxu3 %v2563_v43  ;;  %v2791_v42 = vld [vmem:[%s3176_s25 + $0xd0] sm:$0xf0] }
  0x41   : > { %2894 = vmatpush.bf16.msrb.mxu3 %v2872_v14  ;;  %1259 = vmatmul.bf16.gmra.mxu1 %v2279_v44  ;;  %v2311_v14 = vor.u32 %v2778_v9, %v2310_v8  ;;  %v2367_v43 = vor.u32 %v2791_v42, %v2366_v41  ;;  %v2346_v44 = vld [vmem:[%s3176_s25 + $0xa8] sm:$0xf]  ;;  %v3303_v9 = vld [vmem:[%s3955_s3] ss:$0 sm:$0xff] }
  0x42   : > { %v2347_v50 = vor.u32 %v2787_v45, %v2346_v44  ;;  %v2402_v44 = vld [vmem:[%s3176_s25 + $0x110] sm:$0xf]  ;;  %v2800_v45 = vld [vmem:[%s3176_s25 + $0x118] sm:$0xf0] }
  0x45   : > { %2895 = vmatpush.bf16.msrb.mxu3 %v2871_v16  ;;  %v2315_v16 = vor.u32 %v2777_v12, %v2312_v13  ;;  %v2390_v12 = vld [vmem:[%s3176_s25 + $0xf8] sm:$0xf]  ;;  %v2797_v13 = vld [vmem:[%s3176_s25 + $0x100] sm:$0xf0] }
  0x46   : > { %v2391_v18 = vor.u32 %v2797_v13, %v2390_v12 }
  0x49   : > { %2896 = vmatpush.bf16.msrb.mxu3 %v2870_v20  ;;  %v2322_v20 = vld [vmem:[%s3176_s25 + $0x78] sm:$0xf] }
  0x4a   : > { %2719 = vmatmul.msk.bf16.gmra.mxu2 %vm980_vm0, %v2307_v47  ;;  %v2323_v26 = vor.u32 %v2781_v21, %v2322_v20  ;;  %v2859_v47 = vld [vmem:[%s3176_s25 + $0x2f0] sm:$0xf0]  ;;  %v2370_v21 = vld [vmem:[%s3176_s25 + $0xd8] sm:$0xf] }
  0x4b   : > { %v2635_v51 = vor.u32 %v2859_v47, %v2634_v46 }
  0x4d   : > { %2897 = vmatpush.bf16.msrb.mxu3 %v2869_v27  ;;  %v2611_v27 = vor.u32 %v2853_v23, %v2610_v22 }
  0x50   : > { %1095 = vmatmul.bf16.gmra.mxu0 %v2287_v54  ;;  %1215 = vmatmul.bf16.gmra.mxu3 %v2575_v55  ;;  %v2378_v54 = vld [vmem:[%s3176_s25 + $0xe0] sm:$0xf]  ;;  %v2794_v55 = vld [vmem:[%s3176_s25 + $0xe8] sm:$0xf0] }
  0x51   : > { %2898 = vmatpush.bf16.msra.mxu3 %v3146_v2  ;;  %1264 = vmatmul.bf16.gmra.mxu1 %v2291_v56  ;;  %v2299_v2 = vor.u32 %v2775_v61, %v2298_v60  ;;  %v2379_v57 = vor.u32 %v2794_v55, %v2378_v54  ;;  %v2837_v60 = vld [vmem:[%s3176_s25 + $0x244] sm:$0xf]  ;;  %v2552_v61 = vld [vmem:[%s3176_s25 + $0x24c] sm:$0xf0] }
  0x52   : > { %v2555_v1 = vor.u32 %v2837_v60, %v2552_v61  ;;  %v2384_v60 = vld [vmem:[%s3176_s25 + $0xfc] sm:$0xf0] }
  0x55   : > { %2899 = vmatpush.bf16.msra.mxu3 %v3163_v5  ;;  %v2330_v5 = vld [vmem:[%s3176_s25 + $0x80] sm:$0xf] }
  0x56   : > { %v2331_v7 = vor.u32 %v2782_v6, %v2330_v5 }
  0x5a   : > { %2720 = vmatmul.msk.bf16.gmra.mxu2 %vm980_vm0, %v2319_v59  ;;  %v2790_v59 = vld [vmem:[%s3176_s25 + $0xc8] sm:$0xf0] }
  0x5b   : > { %v2359_v0 = vor.u32 %v2790_v59, %v2358_v58  ;;  %v2576_v58 = vld [vmem:[%s3176_s25 + $0x27c] sm:$0xf0]  ;;  %v2795_v59 = vld [vmem:[%s3176_s25 + $0xf4] sm:$0xf] }
  0x60   : > { %1100 = vmatmul.bf16.gmra.mxu0 %v2299_v2  ;;  %1220 = vmatmul.bf16.gmra.mxu3 %v2587_v3 }
  0x61   : > { %1269 = vmatmul.bf16.gmra.mxu1 %v2303_v4  ;;  %v2363_v4 = vor.u32 %v2789_v62, %v2360_v63 }
  0x6a   : > { %2721 = vmatmul.msk.bf16.gmra.mxu2 %vm980_vm0, %v2331_v7  ;;  %v3298_v7 = vld [vmem:[%s3954_s2] ss:$0 sm:$0xff] }
  0x70   : > { %1105 = vmatmul.bf16.gmra.mxu0 %v2311_v14  ;;  %1225 = vmatmul.bf16.gmra.mxu3 %v2599_v15 }
  0x71   : > { %1274 = vmatmul.bf16.gmra.mxu1 %v2315_v16 }
  0x7a   : > { %2722 = vmatmul.msk.bf16.gmra.mxu2 %vm980_vm0, %v2343_v19 }
  0x80   : > { %1110 = vmatmul.bf16.gmra.mxu0 %v2323_v26  ;;  %1230 = vmatmul.bf16.gmra.mxu3 %v2611_v27  ;;  %v2564_v26 = vld [vmem:[%s3176_s25 + $0x264] sm:$0xf0]  ;;  %v2792_v27 = vld [vmem:[%s3176_s25 + $0xdc] sm:$0xf] }
  0x81   : > { %1279 = vmatmul.bf16.gmra.mxu1 %v2327_v28  ;;  %v2372_v28 = vld [vmem:[%s3176_s25 + $0xe4] sm:$0xf0]  ;;  %v2567_v32 = vor.u32 %v2840_v25, %v2564_v26 }
  0x82   : > { %v2375_v36 = vor.u32 %v2792_v27, %v2372_v28  ;;  %v2799_v27 = vld [vmem:[%s3176_s25 + $0x110] sm:$0xf0]  ;;  %v2846_v28 = vld [vmem:[%s3176_s25 + $0x28c] sm:$0xf] }
  0x8a   : > { %2723 = vmatmul.msk.bf16.gmra.mxu2 %vm980_vm0, %v2355_v31  ;;  %v2371_v31 = vor.u32 %v2793_v24, %v2370_v21  ;;  %v2394_v24 = vld [vmem:[%s3176_s25 + $0x108] sm:$0xf] }
  0x90   : > { %1115 = vmatmul.bf16.gmra.mxu0 %v2335_v38  ;;  %1235 = vmatmul.bf16.gmra.mxu3 %v2623_v39 }
  0x91   : > { %1284 = vmatmul.bf16.gmra.mxu1 %v2339_v40 }
  0x9a   : > { %2724 = vmatmul.msk.bf16.gmra.mxu2 %vm980_vm0, %v2367_v43 }
  0x9d   : > { %v1424_v52 = vpop.f32.mrf.mxu2 }
  0xa0   : > { %1120 = vmatmul.bf16.gmra.mxu0 %v2347_v50  ;;  %1240 = vmatmul.bf16.gmra.mxu3 %v2635_v51  ;;  %v2403_v50 = vor.u32 %v2800_v45, %v2402_v44 }
  0xa1   : > { %1289 = vmatmul.bf16.gmra.mxu1 %v2351_v53  ;;  %v2382_v53 = vld [vmem:[%s3176_s25 + $0xf0] sm:$0xf] }
  0xa5   : > { %v1426_v56 = vpop.f32.mrf.mxu2 }
  0xaa   : > { %2725 = vmatmul.msk.bf16.gmra.mxu2 %vm980_vm0, %v2379_v57  ;;  %v2843_v57 = vld [vmem:[%s3176_s25 + $0x274] sm:$0xf] }
  0xad   : > { %v1429_v2 = vpop.f32.mrf.mxu2  ;;  %v1086_v3 = vpop.f32.mrf.mxu0 }
  0xae   : > { %v1255_v5 = vpop.f32.mrf.mxu1 }
  0xaf   : > { %v1256_v6 = vadd.f32 %v1255_v5, %v1086_v3 }
  0xb0   : > { %1125 = vmatmul.bf16.gmra.mxu0 %v2359_v0  ;;  %1374 = vmatmul.bf16.vlgmr.msrb.gmra.mxu3 %v2555_v1  ;;  %v2579_v0 = vor.u32 %v2843_v57, %v2576_v58  ;;  %v2406_v58 = vld [vmem:[%s3176_s25 + $0x120] sm:$0xf] }
  0xb1   : > { %v1425_v8 = vadd.f32 %v1424_v52, %v1256_v6  ;;  %1294 = vmatmul.bf16.gmra.mxu1 %v2363_v4  ;;  %v2387_v4 = vor.u32 %v2795_v59, %v2384_v60 }
  0xb3   : > { %v1588_v10 = vmul.f32 %v3298_v7, %v1425_v8  ;;  %v3307_v11 = vpop.f32.mrf.mxu3 }
  0xb5   : > { %v1656_v14 = vadd.f32 %v3303_v9, %v1588_v10  ;;  %v1431_v15 = vpop.f32.mrf.mxu2  ;;  %v1088_v16 = vpop.f32.mrf.mxu0 }
  0xb6   : > { %v1257_v17 = vpop.f32.mrf.mxu1 }
  0xb7   : > { %v1720_v19 = vmax.f32 %v1656_v14, 0.0  ;;  %v1258_v20 = vadd.f32 %v1257_v17, %v1088_v16  ;;  %v2803_v16 = vld [vmem:[%s3176_s25 + $0x130] sm:$0xf0] }
  0xb9   : > { %v1784_v22 = vpack.c.bf16 %v1720_v19, %v1720_v19  ;;  %v1427_v23 = vadd.f32 %v1426_v56, %v1258_v20  ;;  %v2796_v56 = vld [vmem:[%s3176_s25 + $0xf8] sm:$0xf0] }
  0xba   : > { %2726 = vmatmul.msk.bf16.gmra.mxu2 %vm980_vm0, %v2391_v18  ;;  %v2383_v63 = vor.u32 %v2796_v56, %v2382_v53 }
  0xbb   : > { %1849 = vst.msk [vmem:[%s3319_s15] sm:$0xf] %vm1848_vm1, %v1784_v22  ;;  %v1589_v29 = vmul.f32 %v3298_v7, %v1427_v23  ;;  %v3324_v30 = vpop.f32.mrf.mxu3 }
  0xbd   : > { %v1657_v33 = vadd.f32 %v3303_v9, %v1589_v29  ;;  %v1434_v34 = vpop.f32.mrf.mxu2  ;;  %v1091_v35 = vpop.f32.mrf.mxu0  ;;  %v2588_v29 = vld [vmem:[%s3176_s25 + $0x294] sm:$0xf0] }
  0xbe   : > { %v1260_v37 = vpop.f32.mrf.mxu1 }
  0xbf   : > { %v1721_v38 = vmax.f32 %v1657_v33, 0.0  ;;  %v1261_v39 = vadd.f32 %v1260_v37, %v1091_v35  ;;  %v2395_v35 = vor.u32 %v2799_v27, %v2394_v24 }
  0xc0   : > { %1130 = vmatmul.bf16.gmra.mxu0 %v2371_v31  ;;  %1379 = vmatmul.bf16.gmra.mxu3 %v2567_v32  ;;  %v2798_v31 = vld [vmem:[%s3176_s25 + $0x10c] sm:$0xf]  ;;  %v2396_v32 = vld [vmem:[%s3176_s25 + $0x114] sm:$0xf0] }
  0xc1   : > { %v1785_v40 = vpack.c.bf16 %v1721_v38, %v1721_v38  ;;  %v1430_v41 = vadd.f32 %v1429_v2, %v1261_v39  ;;  %1299 = vmatmul.bf16.gmra.mxu1 %v2375_v36  ;;  %v2591_v36 = vor.u32 %v2846_v28, %v2588_v29 }
  0xc3   : > { %1850 = vst.msk [vmem:[%s3319_s15 + $0x4] sm:$0xf] %vm1848_vm1, %v1785_v40  ;;  %v1590_v42 = vmul.f32 %v3298_v7, %v1430_v41  ;;  %v3330_v43 = vpop.f32.mrf.mxu3  ;;  %v2399_v40 = vor.u32 %v2798_v31, %v2396_v32  ;;  %v2418_v32 = vld [vmem:[%s3176_s25 + $0x138] sm:$0xf] }
  0xc5   : > { %v1658_v46 = vadd.f32 %v3303_v9, %v1590_v42  ;;  %v1436_v47 = vpop.f32.mrf.mxu2  ;;  %v1093_v48 = vpop.f32.mrf.mxu0 }
  0xc6   : > { %v1262_v49 = vpop.f32.mrf.mxu1 }
  0xc7   : > { %v1722_v51 = vmax.f32 %v1658_v46, 0.0  ;;  %v1263_v52 = vadd.f32 %v1262_v49, %v1093_v48  ;;  %v2426_v49 = vld [vmem:[%s3176_s25 + $0x140] sm:$0xf] }
  0xc9   : > { %v1786_v54 = vpack.c.bf16 %v1722_v51, %v1722_v51  ;;  %v1432_v55 = vadd.f32 %v1431_v15, %v1263_v52  ;;  %v2414_v15 = vld [vmem:[%s3176_s25 + $0x128] sm:$0xf] }
  0xca   : > { %2727 = vmatmul.msk.bf16.gmra.mxu2 %vm980_vm0, %v2403_v50  ;;  %v2415_v21 = vor.u32 %v2803_v16, %v2414_v15  ;;  %v2806_v50 = vld [vmem:[%s3176_s25 + $0x148] sm:$0xf0] }
  0xcb   : > { %1851 = vst.msk [vmem:[%s3319_s15 + $0x8] sm:$0xf] %vm1848_vm1, %v1786_v54  ;;  %v1591_v61 = vmul.f32 %v3298_v7, %v1432_v55  ;;  %v3345_v62 = vpop.f32.mrf.mxu3  ;;  %v2427_v55 = vor.u32 %v2806_v50, %v2426_v49 }
  0xcd   : > { %v1659_v1 = vadd.f32 %v3303_v9, %v1591_v61  ;;  %v1439_v2 = vpop.f32.mrf.mxu2  ;;  %v1096_v3 = vpop.f32.mrf.mxu0  ;;  %v2802_v61 = vld [vmem:[%s3176_s25 + $0x128] sm:$0xf0] }
  0xce   : > { %v1265_v5 = vpop.f32.mrf.mxu1 }
  0xcf   : > { %v1723_v6 = vmax.f32 %v1659_v1, 0.0  ;;  %v1266_v8 = vadd.f32 %v1265_v5, %v1096_v3  ;;  %v2801_v1 = vld [vmem:[%s3176_s25 + $0x124] sm:$0xf]  ;;  %v2407_v5 = vor.u32 %v2802_v61, %v2406_v58  ;;  %v2450_v58 = vld [vmem:[%s3176_s25 + $0x170] sm:$0xf] }
  0xd0   : > { %1135 = vmatmul.bf16.gmra.mxu0 %v2383_v63  ;;  %1384 = vmatmul.bf16.gmra.mxu3 %v2579_v0  ;;  %v2849_v63 = vld [vmem:[%s3176_s25 + $0x2a4] sm:$0xf]  ;;  %v2600_v0 = vld [vmem:[%s3176_s25 + $0x2ac] sm:$0xf0] }
  0xd1   : > { %v1787_v10 = vpack.c.bf16 %v1723_v6, %v1723_v6  ;;  %v1435_v12 = vadd.f32 %v1434_v34, %v1266_v8  ;;  %1304 = vmatmul.bf16.gmra.mxu1 %v2387_v4  ;;  %v2603_v6 = vor.u32 %v2849_v63, %v2600_v0 }
  0xd3   : > { %1852 = vst.msk [vmem:[%s3319_s15 + $0xc] sm:$0xf] %vm1848_vm1, %v1787_v10  ;;  %v1592_v13 = vmul.f32 %v3298_v7, %v1435_v12  ;;  %v3351_v14 = vpop.f32.mrf.mxu3 }
  0xd5   : > { %v1660_v17 = vadd.f32 %v3303_v9, %v1592_v13  ;;  %v1441_v18 = vpop.f32.mrf.mxu2  ;;  %v1098_v19 = vpop.f32.mrf.mxu0 }
  0xd6   : > { %v1267_v20 = vpop.f32.mrf.mxu1 }
  0xd7   : > { %v1724_v22 = vmax.f32 %v1660_v17, 0.0  ;;  %v1268_v23 = vadd.f32 %v1267_v20, %v1098_v19 }
  0xd9   : > { %v1788_v25 = vpack.c.bf16 %v1724_v22, %v1724_v22  ;;  %v1437_v26 = vadd.f32 %v1436_v47, %v1268_v23  ;;  %v2438_v22 = vld [vmem:[%s3176_s25 + $0x158] sm:$0xf]  ;;  %v2809_v23 = vld [vmem:[%s3176_s25 + $0x160] sm:$0xf0] }
  0xda   : > { %2728 = vmatmul.msk.bf16.gmra.mxu2 %vm980_vm0, %v2415_v21  ;;  %v2439_v28 = vor.u32 %v2809_v23, %v2438_v22 }
  0xdb   : > { %1853 = vst.msk [vmem:[%s3319_s15 + $0x10] sm:$0xf] %vm1848_vm1, %v1788_v25  ;;  %v1593_v33 = vmul.f32 %v3298_v7, %v1437_v26  ;;  %v3366_v34 = vpop.f32.mrf.mxu3 }
  0xdd   : > { %v1661_v37 = vadd.f32 %v3303_v9, %v1593_v33  ;;  %v1444_v38 = vpop.f32.mrf.mxu2  ;;  %v1101_v39 = vpop.f32.mrf.mxu0 }
  0xde   : > { %v1270_v41 = vpop.f32.mrf.mxu1 }
  0xdf   : > { %v1725_v42 = vmax.f32 %v1661_v37, 0.0  ;;  %v1271_v44 = vadd.f32 %v1270_v41, %v1101_v39  ;;  %v2852_v37 = vld [vmem:[%s3176_s25 + $0x2bc] sm:$0xf] }
  0xe0   : > { %1140 = vmatmul.bf16.gmra.mxu0 %v2395_v35  ;;  %1389 = vmatmul.bf16.gmra.mxu3 %v2591_v36  ;;  %v2805_v36 = vld [vmem:[%s3176_s25 + $0x140] sm:$0xf0]  ;;  %v2804_v39 = vld [vmem:[%s3176_s25 + $0x13c] sm:$0xf] }
  0xe1   : > { %v1789_v45 = vpack.c.bf16 %v1725_v42, %v1725_v42  ;;  %v1440_v46 = vadd.f32 %v1439_v2, %v1271_v44  ;;  %1309 = vmatmul.bf16.gmra.mxu1 %v2399_v40  ;;  %v2408_v2 = vld [vmem:[%s3176_s25 + $0x12c] sm:$0xf0]  ;;  %v2420_v40 = vld [vmem:[%s3176_s25 + $0x144] sm:$0xf0]  ;;  %v2419_v44 = vor.u32 %v2805_v36, %v2418_v32  ;;  %v2815_v36 = vld [vmem:[%s3176_s25 + $0x190] sm:$0xf0] }
  0xe2   : > { %v2411_v13 = vor.u32 %v2801_v1, %v2408_v2  ;;  %v2423_v50 = vor.u32 %v2804_v39, %v2420_v40 }
  0xe3   : > { %1854 = vst.msk [vmem:[%s3319_s15 + $0x14] sm:$0xf] %vm1848_vm1, %v1789_v45  ;;  %v1594_v47 = vmul.f32 %v3298_v7, %v1440_v46  ;;  %v3372_v48 = vpop.f32.mrf.mxu3 }
  0xe5   : > { %v1662_v51 = vadd.f32 %v3303_v9, %v1594_v47  ;;  %v1446_v52 = vpop.f32.mrf.mxu2  ;;  %v1103_v53 = vpop.f32.mrf.mxu0 }
  0xe6   : > { %v1272_v54 = vpop.f32.mrf.mxu1 }
  0xe7   : > { %v1726_v56 = vmax.f32 %v1662_v51, 0.0  ;;  %v1273_v57 = vadd.f32 %v1272_v54, %v1103_v53 }
  0xe9   : > { %v1790_v59 = vpack.c.bf16 %v1726_v56, %v1726_v56  ;;  %v1442_v60 = vadd.f32 %v1441_v18, %v1273_v57 }
  0xea   : > { %2729 = vmatmul.msk.bf16.gmra.mxu2 %vm980_vm0, %v2427_v55 }
  0xeb   : > { %1855 = vst.msk [vmem:[%s3319_s15 + $0x18] sm:$0xf] %vm1848_vm1, %v1790_v59  ;;  %v1595_v3 = vmul.f32 %v3298_v7, %v1442_v60  ;;  %v3387_v4 = vpop.f32.mrf.mxu3  ;;  %v2812_v59 = vld [vmem:[%s3176_s25 + $0x178] sm:$0xf0] }
  0xec   : > { %v2451_v1 = vor.u32 %v2812_v59, %v2450_v58 }
  0xed   : > { %v1663_v8 = vadd.f32 %v3303_v9, %v1595_v3  ;;  %v1449_v10 = vpop.f32.mrf.mxu2  ;;  %v1106_v12 = vpop.f32.mrf.mxu0 }
  0xee   : > { %v1275_v15 = vpop.f32.mrf.mxu1 }
  0xef   : > { %v1727_v16 = vmax.f32 %v1663_v8, 0.0  ;;  %v1276_v17 = vadd.f32 %v1275_v15, %v1106_v12  ;;  %v2855_v12 = vld [vmem:[%s3176_s25 + $0x2d4] sm:$0xf] }
  0xf0   : > { %1145 = vmatmul.bf16.gmra.mxu0 %v2407_v5  ;;  %1394 = vmatmul.bf16.gmra.mxu3 %v2603_v6  ;;  %v2430_v5 = vld [vmem:[%s3176_s25 + $0x150] sm:$0xf]  ;;  %v2807_v15 = vld [vmem:[%s3176_s25 + $0x154] sm:$0xf] }
  0xf1   : > { %v1791_v18 = vpack.c.bf16 %v1727_v16, %v1727_v16  ;;  %v1445_v19 = vadd.f32 %v1444_v38, %v1276_v17  ;;  %1314 = vmatmul.bf16.gmra.mxu1 %v2411_v13  ;;  %v2612_v38 = vld [vmem:[%s3176_s25 + $0x2c4] sm:$0xf0]  ;;  %v2624_v13 = vld [vmem:[%s3176_s25 + $0x2dc] sm:$0xf0] }
  0xf2   : > { %v2615_v45 = vor.u32 %v2852_v37, %v2612_v38  ;;  %v2432_v16 = vld [vmem:[%s3176_s25 + $0x15c] sm:$0xf0] }
  0xf3   : > { %1856 = vst.msk [vmem:[%s3319_s15 + $0x1c] sm:$0xf] %vm1848_vm1, %v1791_v18  ;;  %v1596_v20 = vmul.f32 %v3298_v7, %v1445_v19  ;;  %v3393_v21 = vpop.f32.mrf.mxu3 }
  0xf5   : > { %v1664_v24 = vadd.f32 %v3303_v9, %v1596_v20  ;;  %v1451_v25 = vpop.f32.mrf.mxu2  ;;  %v1108_v26 = vpop.f32.mrf.mxu0  ;;  %v2627_v20 = vor.u32 %v2855_v12, %v2624_v13  ;;  %v2474_v12 = vld [vmem:[%s3176_s25 + $0x1a0] sm:$0xf]  ;;  %v2818_v13 = vld [vmem:[%s3176_s25 + $0x1a8] sm:$0xf0] }
  0xf6   : > { %v1277_v27 = vpop.f32.mrf.mxu1 }
  0xf7   : > { %v1728_v29 = vmax.f32 %v1664_v24, 0.0  ;;  %v1278_v31 = vadd.f32 %v1277_v27, %v1108_v26 }
  0xf9   : > { %v1792_v33 = vpack.c.bf16 %v1728_v29, %v1728_v29  ;;  %v1447_v35 = vadd.f32 %v1446_v52, %v1278_v31 }
  0xfa   : > { %2730 = vmatmul.msk.bf16.gmra.mxu2 %vm980_vm0, %v2439_v28 }
  0xfb   : > { %1857 = vst.msk [vmem:[%s3319_s15 + $0x20] sm:$0xf] %vm1848_vm1, %v1792_v33  ;;  %v1597_v41 = vmul.f32 %v3298_v7, %v1447_v35  ;;  %v3408_v42 = vpop.f32.mrf.mxu3  ;;  %v2462_v35 = vld [vmem:[%s3176_s25 + $0x188] sm:$0xf] }
  0xfd   : > { %v1665_v46 = vadd.f32 %v3303_v9, %v1597_v41  ;;  %v1454_v47 = vpop.f32.mrf.mxu2  ;;  %v1111_v49 = vpop.f32.mrf.mxu0  ;;  %v2463_v41 = vor.u32 %v2815_v36, %v2462_v35 }
  0xfe   : > { %v1280_v51 = vpop.f32.mrf.mxu1 }
  0xff   : > { %v1729_v52 = vmax.f32 %v1665_v46, 0.0  ;;  %v1281_v53 = vadd.f32 %v1280_v51, %v1111_v49  ;;  %v2442_v46 = vld [vmem:[%s3176_s25 + $0x168] sm:$0xf]  ;;  %v2858_v51 = vld [vmem:[%s3176_s25 + $0x2ec] sm:$0xf] }
 0x100   : > { %1150 = vmatmul.bf16.gmra.mxu0 %v2419_v44  ;;  %1399 = vmatmul.bf16.gmra.mxu3 %v2615_v45 }
 0x101   : > { %v1793_v54 = vpack.c.bf16 %v1729_v52, %v1729_v52  ;;  %v1450_v55 = vadd.f32 %v1449_v10, %v1281_v53  ;;  %1319 = vmatmul.bf16.gmra.mxu1 %v2423_v50  ;;  %v2808_v10 = vld [vmem:[%s3176_s25 + $0x158] sm:$0xf0]  ;;  %v2811_v50 = vld [vmem:[%s3176_s25 + $0x170] sm:$0xf0]  ;;  %v2636_v52 = vld [vmem:[%s3176_s25 + $0x2f4] sm:$0xf0] }
 0x102   : > { %v2431_v19 = vor.u32 %v2808_v10, %v2430_v5  ;;  %v2810_v53 = vld [vmem:[%s3176_s25 + $0x16c] sm:$0xf]  ;;  %v2443_v58 = vor.u32 %v2811_v50, %v2442_v46  ;;  %v2639_v59 = vor.u32 %v2858_v51, %v2636_v52 }
 0x103   : > { %1858 = vst.msk [vmem:[%s3319_s15 + $0x24] sm:$0xf] %vm1848_vm1, %v1793_v54  ;;  %v1598_v56 = vmul.f32 %v3298_v7, %v1450_v55  ;;  %v3414_v57 = vpop.f32.mrf.mxu3  ;;  %v2444_v54 = vld [vmem:[%s3176_s25 + $0x174] sm:$0xf0] }
 0x105   : > { %v1666_v60 = vadd.f32 %v3303_v9, %v1598_v56  ;;  %v1456_v61 = vpop.f32.mrf.mxu2  ;;  %v1113_v63 = vpop.f32.mrf.mxu0 }
 0x106   : > { %v1282_v0 = vpop.f32.mrf.mxu1 }
 0x107   : > { %v1730_v2 = vmax.f32 %v1666_v60, 0.0  ;;  %v1283_v3 = vadd.f32 %v1282_v0, %v1113_v63  ;;  %v2447_v0 = vor.u32 %v2810_v53, %v2444_v54  ;;  %v2486_v53 = vld [vmem:[%s3176_s25 + $0x1b8] sm:$0xf]  ;;  %v2821_v54 = vld [vmem:[%s3176_s25 + $0x1c0] sm:$0xf0] }
 0x109   : > { %v1794_v6 = vpack.c.bf16 %v1730_v2, %v1730_v2  ;;  %v1452_v8 = vadd.f32 %v1451_v25, %v1283_v3  ;;  %v2435_v25 = vor.u32 %v2807_v15, %v2432_v16 }
 0x10a   : > { %2731 = vmatmul.msk.bf16.gmra.mxu2 %vm980_vm0, %v2451_v1 }
 0x10b   : > { %1859 = vst.msk [vmem:[%s3319_s15 + $0x28] sm:$0xf] %vm1848_vm1, %v1794_v6  ;;  %v1599_v17 = vmul.f32 %v3298_v7, %v1452_v8  ;;  %v3429_v18 = vpop.f32.mrf.mxu3 }
 0x10d   : > { %v1667_v22 = vadd.f32 %v3303_v9, %v1599_v17  ;;  %v1459_v23 = vpop.f32.mrf.mxu2  ;;  %v1116_v24 = vpop.f32.mrf.mxu0 }
 0x10e   : > { %v1285_v26 = vpop.f32.mrf.mxu1 }
 0x10f   : > { %v1731_v27 = vmax.f32 %v1667_v22, 0.0  ;;  %v1286_v28 = vadd.f32 %v1285_v26, %v1116_v24  ;;  %v2454_v24 = vld [vmem:[%s3176_s25 + $0x180] sm:$0xf] }
 0x110   : > { %1155 = vmatmul.bf16.gmra.mxu0 %v2431_v19  ;;  %1404 = vmatmul.bf16.gmra.mxu3 %v2627_v20  ;;  %v2475_v20 = vor.u32 %v2818_v13, %v2474_v12  ;;  %v2816_v12 = vld [vmem:[%s3176_s25 + $0x19c] sm:$0xf]  ;;  %v2468_v13 = vld [vmem:[%s3176_s25 + $0x1a4] sm:$0xf0] }
 0x111   : > { %v1795_v29 = vpack.c.bf16 %v1731_v27, %v1731_v27  ;;  %v1455_v31 = vadd.f32 %v1454_v47, %v1286_v28  ;;  %1324 = vmatmul.bf16.gmra.mxu1 %v2435_v25  ;;  %v2814_v27 = vld [vmem:[%s3176_s25 + $0x188] sm:$0xf0]  ;;  %v2582_v28 = vld [vmem:[%s3176_s25 + $0x278] sm:$0xf] }
 0x113   : > { %1860 = vst.msk [vmem:[%s3319_s15 + $0x2c] sm:$0xf] %vm1848_vm1, %v1795_v29  ;;  %v1600_v32 = vmul.f32 %v3298_v7, %v1455_v31  ;;  %v3435_v33 = vpop.f32.mrf.mxu3  ;;  %v2845_v29 = vld [vmem:[%s3176_s25 + $0x280] sm:$0xf0] }
 0x114   : > { %v2813_v31 = vld [vmem:[%s3176_s25 + $0x184] sm:$0xf] }
 0x115   : > { %v1668_v37 = vadd.f32 %v3303_v9, %v1600_v32  ;;  %v1461_v38 = vpop.f32.mrf.mxu2  ;;  %v1118_v39 = vpop.f32.mrf.mxu0  ;;  %v2456_v32 = vld [vmem:[%s3176_s25 + $0x18c] sm:$0xf0] }
 0x116   : > { %v1287_v40 = vpop.f32.mrf.mxu1 }
 0x117   : > { %v1732_v44 = vmax.f32 %v1668_v37, 0.0  ;;  %v1288_v45 = vadd.f32 %v1287_v40, %v1118_v39  ;;  %v2455_v37 = vor.u32 %v2814_v27, %v2454_v24  ;;  %v2583_v39 = vor.u32 %v2845_v29, %v2582_v28 }
 0x118   : > { %v2471_v24 = vor.u32 %v2816_v12, %v2468_v13 }
 0x119   : > { %v1796_v47 = vpack.c.bf16 %v1732_v44, %v1732_v44  ;;  %v1457_v49 = vadd.f32 %v1456_v61, %v1288_v45  ;;  %v2459_v44 = vor.u32 %v2813_v31, %v2456_v32 }
 0x11a   : > { %2732 = vmatmul.msk.bf16.gmra.mxu2 %vm980_vm0, %v2463_v41 }
 0x11b   : > { %1861 = vst.msk [vmem:[%s3319_s15 + $0x30] sm:$0xf] %vm1848_vm1, %v1796_v47  ;;  %v1601_v55 = vmul.f32 %v3298_v7, %v1457_v49  ;;  %v3450_v56 = vpop.f32.mrf.mxu3 }
 0x11d   : > { %v1669_v60 = vadd.f32 %v3303_v9, %v1601_v55  ;;  %v1464_v61 = vpop.f32.mrf.mxu2  ;;  %v1121_v63 = vpop.f32.mrf.mxu0 }
 0x11e   : > { %v1290_v1 = vpop.f32.mrf.mxu1 }
 0x11f   : > { %v1733_v2 = vmax.f32 %v1669_v60, 0.0  ;;  %v1291_v3 = vadd.f32 %v1290_v1, %v1121_v63  ;;  %v2466_v1 = vld [vmem:[%s3176_s25 + $0x198] sm:$0xf] }
 0x120   : > { %1160 = vmatmul.bf16.gmra.mxu0 %v2443_v58  ;;  %1409 = vmatmul.bf16.gmra.mxu3 %v2639_v59 }
 0x121   : > { %v1797_v5 = vpack.c.bf16 %v1733_v2, %v1733_v2  ;;  %v1460_v6 = vadd.f32 %v1459_v23, %v1291_v3  ;;  %1329 = vmatmul.bf16.gmra.mxu1 %v2447_v0 }
 0x123   : > { %1862 = vst.msk [vmem:[%s3319_s15 + $0x34] sm:$0xf] %vm1848_vm1, %v1797_v5  ;;  %v1602_v8 = vmul.f32 %v3298_v7, %v1460_v6  ;;  %v3456_v10 = vpop.f32.mrf.mxu3  ;;  %v2817_v5 = vld [vmem:[%s3176_s25 + $0x1a0] sm:$0xf0]  ;;  %v2594_v6 = vld [vmem:[%s3176_s25 + $0x290] sm:$0xf] }
 0x125   : > { %v1670_v15 = vadd.f32 %v3303_v9, %v1602_v8  ;;  %v1466_v16 = vpop.f32.mrf.mxu2  ;;  %v1123_v17 = vpop.f32.mrf.mxu0  ;;  %v2848_v8 = vld [vmem:[%s3176_s25 + $0x298] sm:$0xf0] }
 0x126   : > { %v1292_v19 = vpop.f32.mrf.mxu1 }
 0x127   : > { %v1734_v22 = vmax.f32 %v1670_v15, 0.0  ;;  %v1293_v23 = vadd.f32 %v1292_v19, %v1123_v17  ;;  %v2467_v19 = vor.u32 %v2817_v5, %v2466_v1 }
 0x129   : > { %v1798_v25 = vpack.c.bf16 %v1734_v22, %v1734_v22  ;;  %v1462_v26 = vadd.f32 %v1461_v38, %v1293_v23 }
 0x12a   : > { %2733 = vmatmul.msk.bf16.gmra.mxu2 %vm980_vm0, %v2475_v20  ;;  %v2595_v20 = vor.u32 %v2848_v8, %v2594_v6 }
 0x12b   : > { %1863 = vst.msk [vmem:[%s3319_s15 + $0x38] sm:$0xf] %vm1848_vm1, %v1798_v25  ;;  %v1603_v35 = vmul.f32 %v3298_v7, %v1462_v26  ;;  %v3471_v36 = vpop.f32.mrf.mxu3 }
 0x12d   : > { %v1671_v40 = vadd.f32 %v3303_v9, %v1603_v35  ;;  %v1469_v38 = vpop.f32.mrf.mxu2  ;;  %v1126_v41 = vpop.f32.mrf.mxu0  ;;  %v2498_v35 = vld [vmem:[%s3176_s25 + $0x1d0] sm:$0xf] }
 0x12e   : > { %v1295_v45 = vpop.f32.mrf.mxu1 }
 0x12f   : > { %v1735_v46 = vmax.f32 %v1671_v40, 0.0  ;;  %v1296_v47 = vadd.f32 %v1295_v45, %v1126_v41 }
 0x130   : > { %1165 = vmatmul.bf16.gmra.mxu0 %v2455_v37  ;;  %2742 = vmatmul.msk.bf16.vlgmr.msra.gmra.mxu3 %vm980_vm0, %v2583_v39  ;;  %v2824_v37 = vld [vmem:[%s3176_s25 + $0x1d8] sm:$0xf0] }
 0x131   : > { %v1799_v49 = vpack.c.bf16 %v1735_v46, %v1735_v46  ;;  %v1465_v50 = vadd.f32 %v1464_v61, %v1296_v47  ;;  %1334 = vmatmul.bf16.gmra.mxu1 %v2459_v44  ;;  %v2487_v61 = vor.u32 %v2821_v54, %v2486_v53  ;;  %v2499_v44 = vor.u32 %v2824_v37, %v2498_v35  ;;  %v2478_v47 = vld [vmem:[%s3176_s25 + $0x1b0] sm:$0xf]  ;;  %v2606_v53 = vld [vmem:[%s3176_s25 + $0x2a8] sm:$0xf]  ;;  %v2851_v54 = vld [vmem:[%s3176_s25 + $0x2b0] sm:$0xf0] }
 0x132   : > { %v2823_v37 = vld [vmem:[%s3176_s25 + $0x1d0] sm:$0xf0] }
 0x133   : > { %1864 = vst.msk [vmem:[%s3319_s15 + $0x3c] sm:$0xf] %vm1848_vm1, %v1799_v49  ;;  %v1604_v51 = vmul.f32 %v3298_v7, %v1465_v50  ;;  %v3478_v52 = vpop.f32.mrf.mxu3 }
 0x135   : > { %v1672_v55 = vadd.f32 %v3303_v9, %v1604_v51  ;;  %v1471_v58 = vpop.f32.mrf.mxu2  ;;  %v1128_v59 = vpop.f32.mrf.mxu0  ;;  %v2820_v51 = vld [vmem:[%s3176_s25 + $0x1b8] sm:$0xf0] }
 0x136   : > { %v1297_v60 = vpop.f32.mrf.mxu1 }
 0x137   : > { %v1736_v63 = vmax.f32 %v1672_v55, 0.0  ;;  %v1298_v0 = vadd.f32 %v1297_v60, %v1128_v59  ;;  %v2819_v55 = vld [vmem:[%s3176_s25 + $0x1b4] sm:$0xf]  ;;  %v2480_v59 = vld [vmem:[%s3176_s25 + $0x1bc] sm:$0xf0] }
 0x139   : > { %v1800_v2 = vpack.c.bf16 %v1736_v63, %v1736_v63  ;;  %v1467_v3 = vadd.f32 %v1466_v16, %v1298_v0  ;;  %v2479_v63 = vor.u32 %v2820_v51, %v2478_v47  ;;  %v2607_v0 = vor.u32 %v2851_v54, %v2606_v53 }
 0x13a   : > { %2734 = vmatmul.msk.bf16.gmra.mxu2 %vm980_vm0, %v2487_v61 }
 0x13b   : > { %1865 = vst.msk [vmem:[%s3319_s15 + $0x40] sm:$0xf] %vm1848_vm1, %v1800_v2  ;;  %v1605_v15 = vmul.f32 %v3298_v7, %v1467_v3  ;;  %v3493_v17 = vpop.f32.mrf.mxu3  ;;  %v2483_v3 = vor.u32 %v2819_v55, %v2480_v59 }
 0x13d   : > { %v1673_v22 = vadd.f32 %v3303_v9, %v1605_v15  ;;  %v1474_v16 = vpop.f32.mrf.mxu2  ;;  %v1131_v23 = vpop.f32.mrf.mxu0 }
 0x13e   : > { %v1300_v25 = vpop.f32.mrf.mxu1 }
 0x13f   : > { %v1737_v26 = vmax.f32 %v1673_v22, 0.0  ;;  %v1301_v27 = vadd.f32 %v1300_v25, %v1131_v23  ;;  %v2827_v22 = vld [vmem:[%s3176_s25 + $0x1f0] sm:$0xf0] }
 0x140   : > { %1170 = vmatmul.bf16.gmra.mxu0 %v2467_v19  ;;  %2743 = vmatmul.msk.bf16.gmra.mxu3 %vm980_vm0, %v2595_v20  ;;  %v2510_v20 = vld [vmem:[%s3176_s25 + $0x1e8] sm:$0xf] }
 0x141   : > { %v1801_v28 = vpack.c.bf16 %v1737_v26, %v1737_v26  ;;  %v1470_v29 = vadd.f32 %v1469_v38, %v1301_v27  ;;  %1339 = vmatmul.bf16.gmra.mxu1 %v2471_v24  ;;  %v2511_v26 = vor.u32 %v2827_v22, %v2510_v20  ;;  %v2502_v20 = vld [vmem:[%s3176_s25 + $0x1e0] sm:$0xf] }
 0x143   : > { %1866 = vst.msk [vmem:[%s3319_s15 + $0x44] sm:$0xf] %vm1848_vm1, %v1801_v28  ;;  %v1606_v31 = vmul.f32 %v3298_v7, %v1470_v29  ;;  %v3500_v32 = vpop.f32.mrf.mxu3  ;;  %v2490_v29 = vld [vmem:[%s3176_s25 + $0x1c8] sm:$0xf] }
 0x144   : > { %v2491_v47 = vor.u32 %v2823_v37, %v2490_v29 }
 0x145   : > { %v1674_v39 = vadd.f32 %v3303_v9, %v1606_v31  ;;  %v1476_v40 = vpop.f32.mrf.mxu2  ;;  %v1133_v41 = vpop.f32.mrf.mxu0 }
 0x146   : > { %v1302_v38 = vpop.f32.mrf.mxu1 }
 0x147   : > { %v1738_v45 = vmax.f32 %v1674_v39, 0.0  ;;  %v1303_v46 = vadd.f32 %v1302_v38, %v1133_v41  ;;  %v2618_v39 = vld [vmem:[%s3176_s25 + $0x2c0] sm:$0xf]  ;;  %v2854_v41 = vld [vmem:[%s3176_s25 + $0x2c8] sm:$0xf0] }
 0x148   : > { %v2822_v38 = vld [vmem:[%s3176_s25 + $0x1cc] sm:$0xf] }
 0x149   : > { %v1802_v49 = vpack.c.bf16 %v1738_v45, %v1738_v45  ;;  %v1472_v50 = vadd.f32 %v1471_v58, %v1303_v46 }
 0x14a   : > { %2735 = vmatmul.msk.bf16.gmra.mxu2 %vm980_vm0, %v2499_v44  ;;  %v2492_v44 = vld [vmem:[%s3176_s25 + $0x1d4] sm:$0xf0] }
 0x14b   : > { %1867 = vst.msk [vmem:[%s3319_s15 + $0x48] sm:$0xf] %vm1848_vm1, %v1802_v49  ;;  %v1607_v60 = vmul.f32 %v3298_v7, %v1472_v50  ;;  %v3515_v61 = vpop.f32.mrf.mxu3  ;;  %v2619_v49 = vor.u32 %v2854_v41, %v2618_v39  ;;  %v2495_v53 = vor.u32 %v2822_v38, %v2492_v44 }
 0x14d   : > { %v1675_v1 = vadd.f32 %v3303_v9, %v1607_v60  ;;  %v1479_v58 = vpop.f32.mrf.mxu2  ;;  %v1136_v2 = vpop.f32.mrf.mxu0 }
 0x14e   : > { %v1305_v5 = vpop.f32.mrf.mxu1 }
 0x14f   : > { %v1739_v6 = vmax.f32 %v1675_v1, 0.0  ;;  %v1306_v8 = vadd.f32 %v1305_v5, %v1136_v2  ;;  %v2522_v2 = vld [vmem:[%s3176_s25 + $0x200] sm:$0xf] }
 0x150   : > { %1175 = vmatmul.bf16.gmra.mxu0 %v2479_v63  ;;  %2744 = vmatmul.msk.bf16.gmra.mxu3 %vm980_vm0, %v2607_v0 }
 0x151   : > { %v1803_v12 = vpack.c.bf16 %v1739_v6, %v1739_v6  ;;  %v1475_v13 = vadd.f32 %v1474_v16, %v1306_v8  ;;  %1344 = vmatmul.bf16.gmra.mxu1 %v2483_v3  ;;  %v2830_v3 = vld [vmem:[%s3176_s25 + $0x208] sm:$0xf0] }
 0x153   : > { %1868 = vst.msk [vmem:[%s3319_s15 + $0x4c] sm:$0xf] %vm1848_vm1, %v1803_v12  ;;  %v1608_v15 = vmul.f32 %v3298_v7, %v1475_v13  ;;  %v3522_v19 = vpop.f32.mrf.mxu3  ;;  %v2523_v12 = vor.u32 %v2830_v3, %v2522_v2 }
 0x155   : > { %v1676_v23 = vadd.f32 %v3303_v9, %v1608_v15  ;;  %v1481_v24 = vpop.f32.mrf.mxu2  ;;  %v1138_v25 = vpop.f32.mrf.mxu0 }
 0x156   : > { %v1307_v16 = vpop.f32.mrf.mxu1 }
 0x157   : > { %v1740_v27 = vmax.f32 %v1676_v23, 0.0  ;;  %v1308_v28 = vadd.f32 %v1307_v16, %v1138_v25  ;;  %v2826_v25 = vld [vmem:[%s3176_s25 + $0x1e8] sm:$0xf0]  ;;  %v2630_v16 = vld [vmem:[%s3176_s25 + $0x2d8] sm:$0xf] }
 0x159   : > { %v1804_v31 = vpack.c.bf16 %v1740_v27, %v1740_v27  ;;  %v1477_v35 = vadd.f32 %v1476_v40, %v1308_v28  ;;  %v2825_v27 = vld [vmem:[%s3176_s25 + $0x1e4] sm:$0xf]  ;;  %v2504_v28 = vld [vmem:[%s3176_s25 + $0x1ec] sm:$0xf0] }
 0x15a   : > { %2736 = vmatmul.msk.bf16.gmra.mxu2 %vm980_vm0, %v2511_v26  ;;  %v2857_v26 = vld [vmem:[%s3176_s25 + $0x2e0] sm:$0xf0]  ;;  %v2507_v38 = vor.u32 %v2825_v27, %v2504_v28 }
 0x15b   : > { %1869 = vst.msk [vmem:[%s3319_s15 + $0x50] sm:$0xf] %vm1848_vm1, %v1804_v31  ;;  %v1609_v45 = vmul.f32 %v3298_v7, %v1477_v35  ;;  %v3537_v46 = vpop.f32.mrf.mxu3  ;;  %v2503_v35 = vor.u32 %v2826_v25, %v2502_v20  ;;  %v2631_v37 = vor.u32 %v2857_v26, %v2630_v16  ;;  %v2828_v20 = vld [vmem:[%s3176_s25 + $0x1fc] sm:$0xf] }
 0x15d   : > { %v1677_v50 = vadd.f32 %v3303_v9, %v1609_v45  ;;  %v1484_v40 = vpop.f32.mrf.mxu2  ;;  %v1141_v51 = vpop.f32.mrf.mxu0 }
 0x15e   : > { %v1310_v54 = vpop.f32.mrf.mxu1 }
 0x15f   : > { %v1741_v55 = vmax.f32 %v1677_v50, 0.0  ;;  %v1311_v59 = vadd.f32 %v1310_v54, %v1141_v51  ;;  %v2534_v54 = vld [vmem:[%s3176_s25 + $0x218] sm:$0xf] }
 0x160   : > { %1180 = vmatmul.bf16.gmra.mxu0 %v2491_v47  ;;  %2745 = vmatmul.msk.bf16.gmra.mxu3 %vm980_vm0, %v2619_v49 }
 0x161   : > { %v1805_v60 = vpack.c.bf16 %v1741_v55, %v1741_v55  ;;  %v1480_v63 = vadd.f32 %v1479_v58, %v1311_v59  ;;  %1349 = vmatmul.bf16.gmra.mxu1 %v2495_v53  ;;  %v2833_v55 = vld [vmem:[%s3176_s25 + $0x220] sm:$0xf0] }
 0x163   : > { %1870 = vst.msk [vmem:[%s3319_s15 + $0x54] sm:$0xf] %vm1848_vm1, %v1805_v60  ;;  %v1610_v0 = vmul.f32 %v3298_v7, %v1480_v63  ;;  %v3544_v1 = vpop.f32.mrf.mxu3 }
 0x165   : > { %v1678_v5 = vadd.f32 %v3303_v9, %v1610_v0  ;;  %v1486_v6 = vpop.f32.mrf.mxu2  ;;  %v1143_v8 = vpop.f32.mrf.mxu0  ;;  %v2535_v0 = vor.u32 %v2833_v55, %v2534_v54 }
 0x166   : > { %v1312_v58 = vpop.f32.mrf.mxu1 }
 0x167   : > { %v1742_v13 = vmax.f32 %v1678_v5, 0.0  ;;  %v1313_v15 = vadd.f32 %v1312_v58, %v1143_v8  ;;  %v2514_v5 = vld [vmem:[%s3176_s25 + $0x1f8] sm:$0xf] }
 0x169   : > { %v1806_v22 = vpack.c.bf16 %v1742_v13, %v1742_v13  ;;  %v1482_v23 = vadd.f32 %v1481_v24, %v1313_v15  ;;  %v2642_v13 = vld [vmem:[%s3176_s25 + $0x2f0] sm:$0xf]  ;;  %v2860_v15 = vld [vmem:[%s3176_s25 + $0x2f8] sm:$0xf0] }
 0x16a   : > { %2737 = vmatmul.msk.bf16.gmra.mxu2 %vm980_vm0, %v2523_v12  ;;  %v2829_v12 = vld [vmem:[%s3176_s25 + $0x200] sm:$0xf0]  ;;  %v2643_v26 = vor.u32 %v2860_v15, %v2642_v13 }
 0x16b   : > { %1871 = vst.msk [vmem:[%s3319_s15 + $0x58] sm:$0xf] %vm1848_vm1, %v1806_v22  ;;  %v1611_v29 = vmul.f32 %v3298_v7, %v1482_v23  ;;  %v3559_v31 = vpop.f32.mrf.mxu3  ;;  %v2516_v22 = vld [vmem:[%s3176_s25 + $0x204] sm:$0xf0]  ;;  %v2515_v16 = vor.u32 %v2829_v12, %v2514_v5  ;;  %v2528_v5 = vld [vmem:[%s3176_s25 + $0x21c] sm:$0xf0] }
 0x16d   : > { %v1679_v39 = vadd.f32 %v3303_v9, %v1611_v29  ;;  %v1489_v24 = vpop.f32.mrf.mxu2  ;;  %v1146_v41 = vpop.f32.mrf.mxu0  ;;  %v2519_v29 = vor.u32 %v2828_v20, %v2516_v22 }
 0x16e   : > { %v1315_v44 = vpop.f32.mrf.mxu1 }
 0x16f   : > { %v1743_v45 = vmax.f32 %v1679_v39, 0.0  ;;  %v1316_v47 = vadd.f32 %v1315_v44, %v1146_v41 }
 0x170   : > { %1185 = vmatmul.bf16.gmra.mxu0 %v2503_v35  ;;  %2746 = vmatmul.msk.bf16.gmra.mxu3 %vm980_vm0, %v2631_v37 }
 0x171   : > { %v1807_v49 = vpack.c.bf16 %v1743_v45, %v1743_v45  ;;  %v1485_v50 = vadd.f32 %v1484_v40, %v1316_v47  ;;  %1354 = vmatmul.bf16.gmra.mxu1 %v2507_v38  ;;  %v2546_v47 = vld [vmem:[%s3176_s25 + $0x230] sm:$0xf] }
 0x173   : > { %1872 = vst.msk [vmem:[%s3319_s15 + $0x5c] sm:$0xf] %vm1848_vm1, %v1807_v49  ;;  %v1612_v51 = vmul.f32 %v3298_v7, %v1485_v50  ;;  %v3566_v53 = vpop.f32.mrf.mxu3  ;;  %v2836_v49 = vld [vmem:[%s3176_s25 + $0x238] sm:$0xf0] }
 0x175   : > { %v1680_v59 = vadd.f32 %v3303_v9, %v1612_v51  ;;  %v1491_v60 = vpop.f32.mrf.mxu2  ;;  %v1148_v63 = vpop.f32.mrf.mxu0 }
 0x176   : > { %v1317_v40 = vpop.f32.mrf.mxu1 }
 0x177   : > { %v1744_v2 = vmax.f32 %v1680_v59, 0.0  ;;  %v1318_v3 = vadd.f32 %v1317_v40, %v1148_v63 }
 0x179   : > { %v1808_v8 = vpack.c.bf16 %v1744_v2, %v1744_v2  ;;  %v1487_v58 = vadd.f32 %v1486_v6, %v1318_v3  ;;  %v2526_v2 = vld [vmem:[%s3176_s25 + $0x210] sm:$0xf]  ;;  %v2832_v3 = vld [vmem:[%s3176_s25 + $0x218] sm:$0xf0] }
 0x17a   : > { %2738 = vmatmul.msk.bf16.gmra.mxu2 %vm980_vm0, %v2535_v0  ;;  %v2527_v12 = vor.u32 %v2832_v3, %v2526_v2 }
 0x17b   : > { %1873 = vst.msk [vmem:[%s3319_s15 + $0x60] sm:$0xf] %vm1848_vm1, %v1808_v8  ;;  %v1613_v23 = vmul.f32 %v3298_v7, %v1487_v58  ;;  %v3581_v25 = vpop.f32.mrf.mxu3 }
 0x17d   : > { %v1681_v27 = vadd.f32 %v3303_v9, %v1613_v23  ;;  %v1494_v6 = vpop.f32.mrf.mxu2  ;;  %v1151_v28 = vpop.f32.mrf.mxu0 }
 0x17e   : > { %v1320_v35 = vpop.f32.mrf.mxu1 }
 0x17f   : > { %v1745_v37 = vmax.f32 %v1681_v27, 0.0  ;;  %v1321_v39 = vadd.f32 %v1320_v35, %v1151_v28 }
 0x180   : > { %1190 = vmatmul.bf16.gmra.mxu0 %v2515_v16  ;;  %2747 = vmatmul.msk.bf16.gmra.mxu3 %vm980_vm0, %v2643_v26 }
 0x181   : > { %v1809_v41 = vpack.c.bf16 %v1745_v37, %v1745_v37  ;;  %v1490_v38 = vadd.f32 %v1489_v24, %v1321_v39  ;;  %1359 = vmatmul.bf16.gmra.mxu1 %v2519_v29  ;;  %v2547_v24 = vor.u32 %v2836_v49, %v2546_v47  ;;  %v2558_v37 = vld [vmem:[%s3176_s25 + $0x248] sm:$0xf]  ;;  %v2839_v39 = vld [vmem:[%s3176_s25 + $0x250] sm:$0xf0] }
 0x183   : > { %1874 = vst.msk [vmem:[%s3319_s15 + $0x64] sm:$0xf] %vm1848_vm1, %v1809_v41  ;;  %v1614_v44 = vmul.f32 %v3298_v7, %v1490_v38  ;;  %v3588_v45 = vpop.f32.mrf.mxu3  ;;  %v2831_v7 = vld [vmem:[%s3176_s25 + $0x214] sm:$0xf] }
 0x184   : > { %v2531_v22 = vor.u32 %v2831_v7, %v2528_v5 }
 0x185   : > { %v1682_v50 = vadd.f32 %v3303_v9, %v1614_v44  ;;  %v1496_v51 = vpop.f32.mrf.mxu2  ;;  %v1153_v54 = vpop.f32.mrf.mxu0  ;;  %v3603_v9 = vld [vmem:[%s3954_s2] ss:$0 sm:$0xff] }
 0x186   : > { %v1322_v55 = vpop.f32.mrf.mxu1 }
 0x187   : > { %v1746_v59 = vmax.f32 %v1682_v50, 0.0  ;;  %v1323_v63 = vadd.f32 %v1322_v55, %v1153_v54 }
 0x189   : > { %v1810_v40 = vpack.c.bf16 %v1746_v59, %v1746_v59  ;;  %v1492_v0 = vadd.f32 %v1491_v60, %v1323_v63  ;;  %v3611_v60 = vld [vmem:[%s3955_s3] ss:$0 sm:$0xff]  ;;  %v2835_v59 = vld [vmem:[%s3176_s25 + $0x230] sm:$0xf0]  ;;  %v2834_v63 = vld [vmem:[%s3176_s25 + $0x22c] sm:$0xf] }
 0x18a   : > { %2739 = vmatmul.msk.bf16.gmra.mxu2 %vm980_vm0, %v2547_v24  ;;  %v2538_v24 = vld [vmem:[%s3176_s25 + $0x228] sm:$0xf] }
 0x18b   : > { %1875 = vst.msk [vmem:[%s3319_s15 + $0x68] sm:$0xf] %vm1848_vm1, %v1810_v40  ;;  %v1615_v8 = vmul.f32 %v3603_v9, %v1492_v0  ;;  %v3606_v58 = vpop.f32.mrf.mxu3  ;;  %v2540_v40 = vld [vmem:[%s3176_s25 + $0x234] sm:$0xf0]  ;;  %v2539_v3 = vor.u32 %v2835_v59, %v2538_v24 }
 0x18d   : > { %v1683_v13 = vadd.f32 %v3611_v60, %v1615_v8  ;;  %v1499_v15 = vpop.f32.mrf.mxu2  ;;  %v1156_v20 = vpop.f32.mrf.mxu0  ;;  %v2543_v8 = vor.u32 %v2834_v63, %v2540_v40 }
 0x18e   : > { %v1325_v23 = vpop.f32.mrf.mxu1 }
 0x18f   : > { %v1747_v16 = vmax.f32 %v1683_v13, 0.0  ;;  %v1326_v26 = vadd.f32 %v1325_v23, %v1156_v20 }
 0x190   : > { %1195 = vmatmul.bf16.gmra.mxu0 %v2527_v12 }
 0x191   : > { %v1811_v27 = vpack.c.bf16 %v1747_v16, %v1747_v16  ;;  %v1495_v28 = vadd.f32 %v1494_v6, %v1326_v26  ;;  %1364 = vmatmul.bf16.gmra.mxu1 %v2531_v22  ;;  %v2559_v6 = vor.u32 %v2839_v39, %v2558_v37 }
 0x193   : > { %1876 = vst.msk [vmem:[%s3319_s15 + $0x6c] sm:$0xf] %vm1848_vm1, %v1811_v27  ;;  %v1616_v29 = vmul.f32 %v3603_v9, %v1495_v28  ;;  %v3617_v35 = vpop.f32.mrf.mxu3  ;;  %v2570_v27 = vld [vmem:[%s3176_s25 + $0x260] sm:$0xf]  ;;  %v2842_v28 = vld [vmem:[%s3176_s25 + $0x268] sm:$0xf0] }
 0x194   : > { %s1921_s25 = ssub.s32 (%p3131_p4), 144, %s3149_s30 }
 0x195   : > { %v1684_v41 = vadd.f32 %v3611_v60, %v1616_v29  ;;  %v1501_v38 = vpop.f32.mrf.mxu2  ;;  %v1158_v44 = vpop.f32.mrf.mxu0  ;;  %p1922_p8 = scmp.lt.s32.totalorder (%p3131_p4), %s1921_s25, 64 }
 0x196   : > { %v1327_v47 = vpop.f32.mrf.mxu1 }
 0x197   : > { %v1748_v49 = vmax.f32 %v1684_v41, 0.0  ;;  %v1328_v50 = vadd.f32 %v1327_v47, %v1158_v44  ;;  %v2571_v44 = vor.u32 %v2842_v28, %v2570_v27 }
 0x199   : > { %v1812_v54 = vpack.c.bf16 %v1748_v49, %v1748_v49  ;;  %v1497_v55 = vadd.f32 %v1496_v51, %v1328_v50 }
 0x19a   : > { %2740 = vmatmul.msk.bf16.gmra.mxu2 %vm980_vm0, %v2559_v6 }
 0x19b   : > { %1877 = vst.msk [vmem:[%s3319_s15 + $0x70] sm:$0xf] %vm1848_vm1, %v1812_v54  ;;  %v1617_v0 = vmul.f32 %v3603_v9, %v1497_v55  ;;  %v3630_v2 = vpop.f32.mrf.mxu3 }
 0x19d   : > { %v1685_v7 = vadd.f32 %v3611_v60, %v1617_v0  ;;  %v1504_v5 = vpop.f32.mrf.mxu2  ;;  %v1161_v51 = vpop.f32.mrf.mxu0 }
 0x19e   : > { %v1330_v12 = vpop.f32.mrf.mxu1 }
 0x19f   : > { %v1749_v13 = vmax.f32 %v1685_v7, 0.0  ;;  %v1331_v20 = vadd.f32 %v1330_v12, %v1161_v51 }
 0x1a0   : > { %1200 = vmatmul.bf16.gmra.mxu0 %v2539_v3 }
 0x1a1   : > { %v1813_v22 = vpack.c.bf16 %v1749_v13, %v1749_v13  ;;  %v1500_v23 = vadd.f32 %v1499_v15, %v1331_v20  ;;  %1369 = vmatmul.bf16.gmra.mxu1 %v2543_v8 }
 0x1a3   : > { %1878 = vst.msk [vmem:[%s3319_s15 + $0x74] sm:$0xf] %vm1848_vm1, %v1813_v22  ;;  %v1618_v16 = vmul.f32 %v3603_v9, %v1500_v23  ;;  %v3636_v26 = vpop.f32.mrf.mxu3 }
 0x1a5   : > { %v1686_v29 = vadd.f32 %v3611_v60, %v1618_v16  ;;  %v1506_v37 = vpop.f32.mrf.mxu2  ;;  %v1163_v39 = vpop.f32.mrf.mxu0 }
 0x1a6   : > { %v1332_v41 = vpop.f32.mrf.mxu1 }
 0x1a7   : > { %v1750_v47 = vmax.f32 %v1686_v29, 0.0  ;;  %v1333_v6 = vadd.f32 %v1332_v41, %v1163_v39  ;;  %v1388_v29 = vadd.f32 %v3537_v46, %v3366_v34 }
 0x1a9   : > { %v1814_v15 = vpack.c.bf16 %v1750_v47, %v1750_v47  ;;  %v1502_v49 = vadd.f32 %v1501_v38, %v1333_v6  ;;  %v1386_v38 = vadd.f32 %v3522_v19, %v3351_v14 }
 0x1aa   : > { %2741 = vmatmul.msk.bf16.gmra.mxu2 %vm980_vm0, %v2571_v44 }
 0x1ab   : > { %1879 = vst.msk [vmem:[%s3319_s15 + $0x78] sm:$0xf] %vm1848_vm1, %v1814_v15  ;;  %v1619_v50 = vmul.f32 %v3603_v9, %v1502_v49  ;;  %v3645_v54 = vpop.f32.mrf.mxu3 }
 0x1ad   : > { %v1687_v55 = vadd.f32 %v3611_v60, %v1619_v50  ;;  %v1509_v24 = vpop.f32.mrf.mxu2  ;;  %v1166_v59 = vpop.f32.mrf.mxu0 }
 0x1ae   : > { %v1335_v63 = vpop.f32.mrf.mxu1 }
 0x1af   : > { %v1751_v40 = vmax.f32 %v1687_v55, 0.0  ;;  %v1336_v0 = vadd.f32 %v1335_v63, %v1166_v59 }
 0x1b1   : > { %v1815_v3 = vpack.c.bf16 %v1751_v40, %v1751_v40  ;;  %v1505_v7 = vadd.f32 %v1504_v5, %v1336_v0  ;;  %v1391_v0 = vadd.f32 %v3544_v1, %v3372_v48 }
 0x1b3   : > { %1880 = vst.msk [vmem:[%s3319_s15 + $0x7c] sm:$0xf] %vm1848_vm1, %v1815_v3  ;;  %v1620_v51 = vmul.f32 %v3603_v9, %v1505_v7  ;;  %v1554_v8 = vpop.f32.mrf.mxu3 }
 0x1b4   : > { %v1555_v12 = vadd.f32 %v1554_v8, %v1386_v38 }
 0x1b5   : > { %v1688_v13 = vadd.f32 %v3611_v60, %v1620_v51  ;;  %v1511_v20 = vpop.f32.mrf.mxu2  ;;  %v1168_v22 = vpop.f32.mrf.mxu0 }
 0x1b6   : > { %v1640_v23 = vmul.f32 %v3603_v9, %v1555_v12  ;;  %v1337_v16 = vpop.f32.mrf.mxu1 }
 0x1b7   : > { %v1752_v27 = vmax.f32 %v1688_v13, 0.0  ;;  %v1338_v5 = vadd.f32 %v1337_v16, %v1168_v22 }
 0x1b8   : > { %v1708_v28 = vadd.f32 %v3611_v60, %v1640_v23 }
 0x1b9   : > { %v1816_v14 = vpack.c.bf16 %v1752_v27, %v1752_v27  ;;  %v1507_v19 = vadd.f32 %v1506_v37, %v1338_v5 }
 0x1ba   : > { %v1772_v39 = vmax.f32 %v1708_v28, 0.0  ;;  %v1393_v28 = vadd.f32 %v3559_v31, %v3387_v4 }
 0x1bb   : > { %1881 = vst.msk [vmem:[%s3319_s15 + $0x80] sm:$0xf] %vm1848_vm1, %v1816_v14  ;;  %v1621_v41 = vmul.f32 %v3603_v9, %v1507_v19  ;;  %v1556_v44 = vpop.f32.mrf.mxu3 }
 0x1bc   : > { %v1836_v47 = vpack.c.bf16 %v1772_v39, %v1772_v39  ;;  %v1557_v6 = vadd.f32 %v1556_v44, %v1388_v29 }
 0x1bd   : > { %v1689_v15 = vadd.f32 %v3611_v60, %v1621_v41  ;;  %v1514_v49 = vpop.f32.mrf.mxu2  ;;  %v1171_v50 = vpop.f32.mrf.mxu0 }
 0x1be   : > { %1901 = vst.msk [vmem:[%s3319_s15 + $0xd0] sm:$0xf] %vm1848_vm1, %v1836_v47  ;;  %v1641_v37 = vmul.f32 %v3603_v9, %v1557_v6  ;;  %v1340_v55 = vpop.f32.mrf.mxu1 }
 0x1bf   : > { %v1753_v34 = vmax.f32 %v1689_v15, 0.0  ;;  %v1341_v46 = vadd.f32 %v1340_v55, %v1171_v50 }
 0x1c0   : > { %v1709_v59 = vadd.f32 %v3611_v60, %v1641_v37 }
 0x1c1   : > { %v1817_v63 = vpack.c.bf16 %v1753_v34, %v1753_v34  ;;  %v1510_v40 = vadd.f32 %v1509_v24, %v1341_v46  ;;  %v1396_v34 = vadd.f32 %v3566_v53, %v3393_v21 }
 0x1c2   : > { %v1773_v3 = vmax.f32 %v1709_v59, 0.0 }
 0x1c3   : > { %1882 = vst.msk [vmem:[%s3319_s15 + $0x84] sm:$0xf] %vm1848_vm1, %v1817_v63  ;;  %v1622_v7 = vmul.f32 %v3603_v9, %v1510_v40  ;;  %v1559_v38 = vpop.f32.mrf.mxu3 }
 0x1c4   : > { %v1837_v51 = vpack.c.bf16 %v1773_v3, %v1773_v3  ;;  %v1560_v8 = vadd.f32 %v1559_v38, %v1391_v0 }
 0x1c5   : > { %v1690_v12 = vadd.f32 %v3611_v60, %v1622_v7  ;;  %v1516_v13 = vpop.f32.mrf.mxu2  ;;  %v1173_v22 = vpop.f32.mrf.mxu0 }
 0x1c6   : > { %1902 = vst.msk [vmem:[%s3319_s15 + $0xd4] sm:$0xf] %vm1848_vm1, %v1837_v51  ;;  %v1642_v24 = vmul.f32 %v3603_v9, %v1560_v8  ;;  %v1342_v23 = vpop.f32.mrf.mxu1 }
 0x1c7   : > { %v1754_v48 = vmax.f32 %v1690_v12, 0.0  ;;  %v1343_v1 = vadd.f32 %v1342_v23, %v1173_v22 }
 0x1c8   : > { %v1710_v16 = vadd.f32 %v3611_v60, %v1642_v24  ;;  %v1398_v24 = vadd.f32 %v3581_v25, %v3408_v42 }
 0x1c9   : > { %v1818_v27 = vpack.c.bf16 %v1754_v48, %v1754_v48  ;;  %v1512_v5 = vadd.f32 %v1511_v20, %v1343_v1 }
 0x1ca   : > { %v1774_v14 = vmax.f32 %v1710_v16, 0.0 }
 0x1cb   : > { %1883 = vst.msk [vmem:[%s3319_s15 + $0x88] sm:$0xf] %vm1848_vm1, %v1818_v27  ;;  %v1623_v19 = vmul.f32 %v3603_v9, %v1512_v5  ;;  %v1561_v29 = vpop.f32.mrf.mxu3 }
 0x1cc   : > { %v1838_v39 = vpack.c.bf16 %v1774_v14, %v1774_v14  ;;  %v1562_v41 = vadd.f32 %v1561_v29, %v1393_v28 }
 0x1cd   : > { %v1691_v44 = vadd.f32 %v3611_v60, %v1623_v19  ;;  %v1519_v47 = vpop.f32.mrf.mxu2  ;;  %v1176_v6 = vpop.f32.mrf.mxu0 }
 0x1ce   : > { %1903 = vst.msk [vmem:[%s3319_s15 + $0xd8] sm:$0xf] %vm1848_vm1, %v1838_v39  ;;  %v1643_v20 = vmul.f32 %v3603_v9, %v1562_v41  ;;  %v1345_v15 = vpop.f32.mrf.mxu1 }
 0x1cf   : > { %v1755_v4 = vmax.f32 %v1691_v44, 0.0  ;;  %v1346_v31 = vadd.f32 %v1345_v15, %v1176_v6  ;;  %v1401_v44 = vadd.f32 %v3588_v45, %v3414_v57 }
 0x1d0   : > { %v1711_v50 = vadd.f32 %v3611_v60, %v1643_v20 }
 0x1d1   : > { %v1819_v37 = vpack.c.bf16 %v1755_v4, %v1755_v4  ;;  %v1515_v55 = vadd.f32 %v1514_v49, %v1346_v31 }
 0x1d2   : > { %v1775_v46 = vmax.f32 %v1711_v50, 0.0 }
 0x1d3   : > { %1884 = vst.msk [vmem:[%s3319_s15 + $0x8c] sm:$0xf] %vm1848_vm1, %v1819_v37  ;;  %v1624_v59 = vmul.f32 %v3603_v9, %v1515_v55  ;;  %v1564_v63 = vpop.f32.mrf.mxu3 }
 0x1d4   : > { %v1839_v40 = vpack.c.bf16 %v1775_v46, %v1775_v46  ;;  %v1565_v0 = vadd.f32 %v1564_v63, %v1396_v34 }
 0x1d5   : > { %v1692_v3 = vadd.f32 %v3611_v60, %v1624_v59  ;;  %v1521_v7 = vpop.f32.mrf.mxu2  ;;  %v1178_v38 = vpop.f32.mrf.mxu0 }
 0x1d6   : > { %1904 = vst.msk [vmem:[%s3319_s15 + $0xdc] sm:$0xf] %vm1848_vm1, %v1839_v40  ;;  %v1644_v49 = vmul.f32 %v3603_v9, %v1565_v0  ;;  %v1347_v51 = vpop.f32.mrf.mxu1  ;;  %v1403_v40 = vadd.f32 %v3606_v58, %v3429_v18 }
 0x1d7   : > { %v1756_v21 = vmax.f32 %v1692_v3, 0.0  ;;  %v1348_v53 = vadd.f32 %v1347_v51, %v1178_v38 }
 0x1d8   : > { %v1712_v8 = vadd.f32 %v3611_v60, %v1644_v49 }
 0x1d9   : > { %v1820_v12 = vpack.c.bf16 %v1756_v21, %v1756_v21  ;;  %v1517_v22 = vadd.f32 %v1516_v13, %v1348_v53 }
 0x1da   : > { %v1776_v23 = vmax.f32 %v1712_v8, 0.0 }
 0x1db   : > { %1885 = vst.msk [vmem:[%s3319_s15 + $0x90] sm:$0xf] %vm1848_vm1, %v1820_v12  ;;  %v1625_v48 = vmul.f32 %v3603_v9, %v1517_v22  ;;  %v1566_v1 = vpop.f32.mrf.mxu3 }
 0x1dc   : > { %v1840_v16 = vpack.c.bf16 %v1776_v23, %v1776_v23  ;;  %v1567_v27 = vadd.f32 %v1566_v1, %v1398_v24 }
 0x1dd   : > { %v1693_v5 = vadd.f32 %v3611_v60, %v1625_v48  ;;  %v1524_v28 = vpop.f32.mrf.mxu2  ;;  %v1181_v14 = vpop.f32.mrf.mxu0  ;;  %v1406_v48 = vadd.f32 %v3617_v35, %v3435_v33 }
 0x1de   : > { %1905 = vst.msk [vmem:[%s3319_s15 + $0xe0] sm:$0xf] %vm1848_vm1, %v1840_v16  ;;  %v1645_v13 = vmul.f32 %v3603_v9, %v1567_v27  ;;  %v1350_v19 = vpop.f32.mrf.mxu1 }
 0x1df   : > { %v1757_v42 = vmax.f32 %v1693_v5, 0.0  ;;  %v1351_v25 = vadd.f32 %v1350_v19, %v1181_v14 }
 0x1e0   : > { %v1713_v29 = vadd.f32 %v3611_v60, %v1645_v13 }
 0x1e1   : > { %v1821_v39 = vpack.c.bf16 %v1757_v42, %v1757_v42  ;;  %v1520_v41 = vadd.f32 %v1519_v47, %v1351_v25 }
 0x1e2   : > { %v1777_v6 = vmax.f32 %v1713_v29, 0.0 }
 0x1e3   : > { %1886 = vst.msk [vmem:[%s3319_s15 + $0x94] sm:$0xf] %vm1848_vm1, %v1821_v39  ;;  %v1626_v20 = vmul.f32 %v3603_v9, %v1520_v41  ;;  %v1569_v15 = vpop.f32.mrf.mxu3 }
 0x1e4   : > { %v1841_v4 = vpack.c.bf16 %v1777_v6, %v1777_v6  ;;  %v1570_v31 = vadd.f32 %v1569_v15, %v1401_v44  ;;  %v1408_v44 = vadd.f32 %v3630_v2, %v3450_v56 }
 0x1e5   : > { %v1694_v50 = vadd.f32 %v3611_v60, %v1626_v20  ;;  %v1526_v37 = vpop.f32.mrf.mxu2  ;;  %v1183_v55 = vpop.f32.mrf.mxu0 }
 0x1e6   : > { %1906 = vst.msk [vmem:[%s3319_s15 + $0xe4] sm:$0xf] %vm1848_vm1, %v1841_v4  ;;  %v1646_v47 = vmul.f32 %v3603_v9, %v1570_v31  ;;  %v1352_v34 = vpop.f32.mrf.mxu1 }
 0x1e7   : > { %v1758_v57 = vmax.f32 %v1694_v50, 0.0  ;;  %v1353_v45 = vadd.f32 %v1352_v34, %v1183_v55 }
 0x1e8   : > { %v1714_v46 = vadd.f32 %v3611_v60, %v1646_v47 }
 0x1e9   : > { %v1822_v59 = vpack.c.bf16 %v1758_v57, %v1758_v57  ;;  %v1522_v63 = vadd.f32 %v1521_v7, %v1353_v45 }
 0x1ea   : > { %v1778_v0 = vmax.f32 %v1714_v46, 0.0 }
 0x1eb   : > { %1887 = vst.msk [vmem:[%s3319_s15 + $0x98] sm:$0xf] %vm1848_vm1, %v1822_v59  ;;  %v1627_v3 = vmul.f32 %v3603_v9, %v1522_v63  ;;  %v1571_v38 = vpop.f32.mrf.mxu3  ;;  %v1411_v59 = vadd.f32 %v3636_v26, %v3456_v10 }
 0x1ec   : > { %v1842_v49 = vpack.c.bf16 %v1778_v0, %v1778_v0  ;;  %v1572_v51 = vadd.f32 %v1571_v38, %v1403_v40 }
 0x1ed   : > { %v1695_v21 = vadd.f32 %v3611_v60, %v1627_v3  ;;  %v1529_v53 = vpop.f32.mrf.mxu2  ;;  %v1186_v8 = vpop.f32.mrf.mxu0 }
 0x1ee   : > { %1907 = vst.msk [vmem:[%s3319_s15 + $0xe8] sm:$0xf] %vm1848_vm1, %v1842_v49  ;;  %v1647_v7 = vmul.f32 %v3603_v9, %v1572_v51  ;;  %v1355_v12 = vpop.f32.mrf.mxu1 }
 0x1ef   : > { %v1759_v18 = vmax.f32 %v1695_v21, 0.0  ;;  %v1356_v58 = vadd.f32 %v1355_v12, %v1186_v8 }
 0x1f0   : > { %v1715_v22 = vadd.f32 %v3611_v60, %v1647_v7 }
 0x1f1   : > { %v1823_v24 = vpack.c.bf16 %v1759_v18, %v1759_v18  ;;  %v1525_v23 = vadd.f32 %v1524_v28, %v1356_v58  ;;  %v1413_v58 = vadd.f32 %v3645_v54, %v3471_v36 }
 0x1f2   : > { %v1779_v1 = vmax.f32 %v1715_v22, 0.0 }
 0x1f3   : > { %1888 = vst.msk [vmem:[%s3319_s15 + $0x9c] sm:$0xf] %vm1848_vm1, %v1823_v24  ;;  %v1628_v16 = vmul.f32 %v3603_v9, %v1525_v23  ;;  %v1574_v27 = vpop.f32.mrf.mxu3 }
 0x1f4   : > { %v1843_v5 = vpack.c.bf16 %v1779_v1, %v1779_v1  ;;  %v1575_v14 = vadd.f32 %v1574_v27, %v1406_v48 }
 0x1f5   : > { %v1696_v13 = vadd.f32 %v3611_v60, %v1628_v16  ;;  %v1531_v19 = vpop.f32.mrf.mxu2  ;;  %v1188_v42 = vpop.f32.mrf.mxu0 }
 0x1f6   : > { %1908 = vst.msk [vmem:[%s3319_s15 + $0xec] sm:$0xf] %vm1848_vm1, %v1843_v5  ;;  %v1648_v28 = vmul.f32 %v3603_v9, %v1575_v14  ;;  %v1357_v25 = vpop.f32.mrf.mxu1 }
 0x1f7   : > { %v1760_v33 = vmax.f32 %v1696_v13, 0.0  ;;  %v1358_v35 = vadd.f32 %v1357_v25, %v1188_v42 }
 0x1f8   : > { %v1716_v29 = vadd.f32 %v3611_v60, %v1648_v28 }
 0x1f9   : > { %v1824_v39 = vpack.c.bf16 %v1760_v33, %v1760_v33  ;;  %v1527_v41 = vadd.f32 %v1526_v37, %v1358_v35 }
 0x1fa   : > { %v1780_v6 = vmax.f32 %v1716_v29, 0.0 }
 0x1fb   : > { %1889 = vst.msk [vmem:[%s3319_s15 + $0xa0] sm:$0xf] %vm1848_vm1, %v1824_v39  ;;  %v1629_v20 = vmul.f32 %v3603_v9, %v1527_v41  ;;  %v1576_v15 = vpop.f32.mrf.mxu3 }
 0x1fc   : > { %v1844_v4 = vpack.c.bf16 %v1780_v6, %v1780_v6  ;;  %v1577_v31 = vadd.f32 %v1576_v15, %v1408_v44 }
 0x1fd   : > { %v1697_v50 = vadd.f32 %v3611_v60, %v1629_v20  ;;  %v1534_v55 = vpop.f32.mrf.mxu2  ;;  %v1191_v47 = vpop.f32.mrf.mxu0 }
 0x1fe   : > { %1909 = vst.msk [vmem:[%s3319_s15 + $0xf0] sm:$0xf] %vm1848_vm1, %v1844_v4  ;;  %v1649_v37 = vmul.f32 %v3603_v9, %v1577_v31  ;;  %v1360_v34 = vpop.f32.mrf.mxu1 }
 0x1ff   : > { %v1761_v56 = vmax.f32 %v1697_v50, 0.0  ;;  %v1361_v2 = vadd.f32 %v1360_v34, %v1191_v47  ;;  %v1376_v50 = vadd.f32 %v3478_v52, %v3307_v11  ;;  %v1378_v11 = vadd.f32 %v3493_v17, %v3324_v30 }
 0x200   : > { %v1717_v57 = vadd.f32 %v3611_v60, %v1649_v37 }
 0x201   : > { %v1825_v45 = vpack.c.bf16 %v1761_v56, %v1761_v56  ;;  %v1530_v46 = vadd.f32 %v1529_v53, %v1361_v2 }
 0x202   : > { %v1781_v63 = vmax.f32 %v1717_v57, 0.0 }
 0x203   : > { %1890 = vst.msk [vmem:[%s3319_s15 + $0xa4] sm:$0xf] %vm1848_vm1, %v1825_v45  ;;  %v1630_v40 = vmul.f32 %v3603_v9, %v1530_v46  ;;  %v1579_v0 = vpop.f32.mrf.mxu3 }
 0x204   : > { %v1845_v3 = vpack.c.bf16 %v1781_v63, %v1781_v63  ;;  %v1580_v38 = vadd.f32 %v1579_v0, %v1411_v59 }
 0x205   : > { %v1698_v49 = vadd.f32 %v3611_v60, %v1630_v40  ;;  %v1536_v51 = vpop.f32.mrf.mxu2  ;;  %v1193_v21 = vpop.f32.mrf.mxu0 }
 0x206   : > { %1910 = vst.msk [vmem:[%s3319_s15 + $0xf4] sm:$0xf] %vm1848_vm1, %v1845_v3  ;;  %v1650_v53 = vmul.f32 %v3603_v9, %v1580_v38  ;;  %v1362_v8 = vpop.f32.mrf.mxu1 }
 0x207   : > { %v1762_v10 = vmax.f32 %v1698_v49, 0.0  ;;  %v1363_v26 = vadd.f32 %v1362_v8, %v1193_v21 }
 0x208   : > { %v1718_v7 = vadd.f32 %v3611_v60, %v1650_v53 }
 0x209   : > { %v1826_v12 = vpack.c.bf16 %v1762_v10, %v1762_v10  ;;  %v1532_v18 = vadd.f32 %v1531_v19, %v1363_v26 }
 0x20a   : > { %v1782_v22 = vmax.f32 %v1718_v7, 0.0 }
 0x20b   : > { %1891 = vst.msk [vmem:[%s3319_s15 + $0xa8] sm:$0xf] %vm1848_vm1, %v1826_v12  ;;  %v1631_v24 = vmul.f32 %v3603_v9, %v1532_v18  ;;  %v1581_v23 = vpop.f32.mrf.mxu3  ;;  %v1381_v12 = vadd.f32 %v3500_v32, %v3330_v43  ;;  %v1383_v43 = vadd.f32 %v3515_v61, %v3345_v62 }
 0x20c   : > { %v1846_v48 = vpack.c.bf16 %v1782_v22, %v1782_v22  ;;  %v1582_v1 = vadd.f32 %v1581_v23, %v1413_v58 }
 0x20d   : > { %v1699_v16 = vadd.f32 %v3611_v60, %v1631_v24  ;;  %v1539_v27 = vpop.f32.mrf.mxu2  ;;  %v1196_v5 = vpop.f32.mrf.mxu0 }
 0x20e   : > { %1911 = vst.msk [vmem:[%s3319_s15 + $0xf8] sm:$0xf] %vm1848_vm1, %v1846_v48  ;;  %v1651_v14 = vmul.f32 %v3603_v9, %v1582_v1  ;;  %v1365_v13 = vpop.f32.mrf.mxu1 }
 0x20f   : > { %v1763_v36 = vmax.f32 %v1699_v16, 0.0  ;;  %v1366_v54 = vadd.f32 %v1365_v13, %v1196_v5 }
 0x210   : > { %v1719_v19 = vadd.f32 %v3611_v60, %v1651_v14 }
 0x211   : > { %v1827_v42 = vpack.c.bf16 %v1763_v36, %v1763_v36  ;;  %v1535_v28 = vadd.f32 %v1534_v55, %v1366_v54 }
 0x212   : > { %v1783_v25 = vmax.f32 %v1719_v19, 0.0 }
 0x213   : > { %1892 = vst.msk [vmem:[%s3319_s15 + $0xac] sm:$0xf] %vm1848_vm1, %v1827_v42  ;;  %v1632_v33 = vmul.f32 %v3603_v9, %v1535_v28 }
 0x214   : > { %v1847_v35 = vpack.c.bf16 %v1783_v25, %v1783_v25 }
 0x215   : > { %v1700_v29 = vadd.f32 %v3611_v60, %v1632_v33  ;;  %v1541_v39 = vpop.f32.mrf.mxu2  ;;  %v1198_v41 = vpop.f32.mrf.mxu0 }
 0x216   : > { %1912 = vst.msk [vmem:[%s3319_s15 + $0xfc] sm:$0xf] %vm1848_vm1, %v1847_v35  ;;  %v1367_v44 = vpop.f32.mrf.mxu1 }
 0x217   : > { %v1764_v6 = vmax.f32 %v1700_v29, 0.0  ;;  %v1368_v20 = vadd.f32 %v1367_v44, %v1198_v41 }
 0x219   : > { %v1828_v15 = vpack.c.bf16 %v1764_v6, %v1764_v6  ;;  %v1537_v4 = vadd.f32 %v1536_v51, %v1368_v20 }
 0x21b   : > { %1893 = vst.msk [vmem:[%s3319_s15 + $0xb0] sm:$0xf] %vm1848_vm1, %v1828_v15  ;;  %v1633_v31 = vmul.f32 %v3603_v9, %v1537_v4 }
 0x21d   : > { %v1701_v55 = vadd.f32 %v3611_v60, %v1633_v31  ;;  %v1544_v47 = vpop.f32.mrf.mxu2  ;;  %v1201_v37 = vpop.f32.mrf.mxu0 }
 0x21e   : > { %v1545_v34 = vadd.f32 %v1544_v47, %v1376_v50  ;;  %v1370_v56 = vpop.f32.mrf.mxu1 }
 0x21f   : > { %v1765_v2 = vmax.f32 %v1701_v55, 0.0  ;;  %v1371_v57 = vadd.f32 %v1370_v56, %v1201_v37 }
 0x220   : > { %v1636_v45 = vmul.f32 %v3603_v9, %v1545_v34 }
 0x221   : > { %v1829_v46 = vpack.c.bf16 %v1765_v2, %v1765_v2  ;;  %v1540_v59 = vadd.f32 %v1539_v27, %v1371_v57 }
 0x222   : > { %v1704_v63 = vadd.f32 %v3611_v60, %v1636_v45 }
 0x223   : > { %1894 = vst.msk [vmem:[%s3319_s15 + $0xb4] sm:$0xf] %vm1848_vm1, %v1829_v46  ;;  %v1634_v40 = vmul.f32 %v3603_v9, %v1540_v59 }
 0x224   : > { %v1768_v52 = vmax.f32 %v1704_v63, 0.0 }
 0x225   : > { %v1702_v0 = vadd.f32 %v3611_v60, %v1634_v40  ;;  %v1546_v3 = vpop.f32.mrf.mxu2  ;;  %v1203_v38 = vpop.f32.mrf.mxu0 }
 0x226   : > { %v1832_v49 = vpack.c.bf16 %v1768_v52, %v1768_v52  ;;  %v1547_v51 = vadd.f32 %v1546_v3, %v1378_v11  ;;  %v1372_v21 = vpop.f32.mrf.mxu1 }
 0x227   : > { %v1766_v53 = vmax.f32 %v1702_v0, 0.0  ;;  %v1373_v8 = vadd.f32 %v1372_v21, %v1203_v38 }
 0x228   : > { %1897 = vst.msk [vmem:[%s3319_s15 + $0xc0] sm:$0xf] %vm1848_vm1, %v1832_v49  ;;  %v1637_v10 = vmul.f32 %v3603_v9, %v1547_v51 }
 0x229   : > { %v1830_v26 = vpack.c.bf16 %v1766_v53, %v1766_v53  ;;  %v1542_v7 = vadd.f32 %v1541_v39, %v1373_v8 }
 0x22a   : > { %v1705_v30 = vadd.f32 %v3611_v60, %v1637_v10 }
 0x22b   : > { %1895 = vst.msk [vmem:[%s3319_s15 + $0xb8] sm:$0xf] %vm1848_vm1, %v1830_v26  ;;  %v1635_v17 = vmul.f32 %v3603_v9, %v1542_v7 }
 0x22c   : > { %v1769_v18 = vmax.f32 %v1705_v30, 0.0 }
 0x22d   : > { %v1703_v58 = vadd.f32 %v3611_v60, %v1635_v17  ;;  %v1549_v22 = vpop.f32.mrf.mxu2 }
 0x22e   : > { %v1833_v24 = vpack.c.bf16 %v1769_v18, %v1769_v18  ;;  %v1550_v23 = vadd.f32 %v1549_v22, %v1381_v12 }
 0x22f   : > { %v1767_v48 = vmax.f32 %v1703_v58, 0.0 }
 0x230   : > { %1898 = vst.msk [vmem:[%s3319_s15 + $0xc4] sm:$0xf] %vm1848_vm1, %v1833_v24  ;;  %v1638_v1 = vmul.f32 %v3603_v9, %v1550_v23 }
 0x231   : > { %v1831_v16 = vpack.c.bf16 %v1767_v48, %v1767_v48 }
 0x232   : > { %v1706_v27 = vadd.f32 %v3611_v60, %v1638_v1 }
 0x233   : > { %1896 = vst.msk [vmem:[%s3319_s15 + $0xbc] sm:$0xf] %vm1848_vm1, %v1831_v16 }
 0x234   : > { %v1770_v32 = vmax.f32 %v1706_v27, 0.0 }
 0x235   : > { %v1551_v5 = vpop.f32.mrf.mxu2 }
 0x236   : > { %v1834_v14 = vpack.c.bf16 %v1770_v32, %v1770_v32  ;;  %v1552_v13 = vadd.f32 %v1551_v5, %v1383_v43 }
 0x238   : > { %1899 = vst.msk [vmem:[%s3319_s15 + $0xc8] sm:$0xf] %vm1848_vm1, %v1834_v14  ;;  %v1639_v36 = vmul.f32 %v3603_v9, %v1552_v13 }
 0x23a   : > { %v1707_v54 = vadd.f32 %v3611_v60, %v1639_v36 }
 0x23c   : > { %v1771_v19 = vmax.f32 %v1707_v54, 0.0  ;;  %1919 = sbr.rel (!%p3131_p4) target bundleno = 641 (0x281), region = 40 }
 0x23e   : > { %v1835_v42 = vpack.c.bf16 %v1771_v19, %v1771_v19 }
 0x240   : > { %1900 = vst.msk [vmem:[%s3319_s15 + $0xcc] sm:$0xf] %vm1848_vm1, %v1835_v42 }
 0x241   : > { %s3967_s25 = smov (!%p1922_p8, %s1921_s25), 64 }
 0x242   : > { %s2750_s21 = sshll.u32 %s3967_s25, 2 }
 0x243   : > { %p2753_p9 = scmp.eq.s32.totalorder %s2750_s21, 0 }
 0x244   : > { %s3823_s24 = sshrl.u32 (!%p2753_p9), %s3967_s25, 5 }
 0x245   : > { %1930 = sbr.rel (%p2753_p9) target bundleno = 641 (0x281), region = 44  ;;  %p2754_p10 = scmp.le.s32.totalorder (!%p2753_p9), %s3823_s24, 0 }
 0x24a   : > { %2209 = sbr.rel (%p2754_p10) target bundleno = 624 (0x270), region = 116  ;;  %s3958_s18 = smov (!%p2754_p10), %s3817_s20 }
 0x24b   : > { %s3959_s23 = smov (!%p2754_p10), %s3319_s15  ;;  %s3832_s30 = smov (!%p2754_p10), 0  }
 0x24c   : > { %s3834_s26 = smov (!%p2754_p10), 0  }
 0x24f LB: >> { %v1947_v62 = vld [vmem:[%s3055_s23] sm:$0xf]  ;;  %v1949_v61 = vld [vmem:[%s3055_s23 + $0x4] sm:$0xf]  ;;  %v1951_v9 = vld [vmem:[%s3055_s23 + $0x8] sm:$0xf]  ;;  %s3063_s26 = sphi %s3834_s26, %s1941_s26   ;;  %s3059_s30 = sphi %s3832_s30, %s3962_s30   ;;  %s3055_s23 = sphi %s3959_s23, %s3961_s23   ;;  %s3051_s18 = sphi %s3958_s18, %s3960_s18  }
 0x250   : >> { %1948 = vst [vmem:[%s3051_s18] sm:$0xf] %v1947_v62  ;;  %v1953_v60 = vld [vmem:[%s3055_s23 + $0xc] sm:$0xf]  ;;  %v1955_v28 = vld [vmem:[%s3055_s23 + $0x10] sm:$0xf]  ;;  %s2011_s27 = sadd.s32 1, %s3059_s30 }
 0x251   : >> { %1950 = vst [vmem:[%s3051_s18 + $0x4] sm:$0xf] %v1949_v61  ;;  %v1957_v25 = vld [vmem:[%s3055_s23 + $0x14] sm:$0xf]  ;;  %v1959_v33 = vld [vmem:[%s3055_s23 + $0x18] sm:$0xf]  ;;  %p2012_p11 = scmp.ge.s32.totalorder %s2011_s27, %s3823_s24 }
 0x252   : >> { %1952 = vst [vmem:[%s3051_s18 + $0x8] sm:$0xf] %v1951_v9  ;;  %v1961_v35 = vld [vmem:[%s3055_s23 + $0x1c] sm:$0xf]  ;;  %v1963_v29 = vld [vmem:[%s3055_s23 + $0x20] sm:$0xf] }
 0x253   : >> { %1954 = vst [vmem:[%s3051_s18 + $0xc] sm:$0xf] %v1953_v60  ;;  %v1965_v39 = vld [vmem:[%s3055_s23 + $0x24] sm:$0xf]  ;;  %v1967_v41 = vld [vmem:[%s3055_s23 + $0x28] sm:$0xf] }
 0x254   : >> { %1956 = vst [vmem:[%s3051_s18 + $0x10] sm:$0xf] %v1955_v28  ;;  %v1969_v44 = vld [vmem:[%s3055_s23 + $0x2c] sm:$0xf]  ;;  %v1971_v6 = vld [vmem:[%s3055_s23 + $0x30] sm:$0xf] }
 0x255   : >> { %1958 = vst [vmem:[%s3051_s18 + $0x14] sm:$0xf] %v1957_v25  ;;  %v1973_v20 = vld [vmem:[%s3055_s23 + $0x34] sm:$0xf]  ;;  %v1975_v15 = vld [vmem:[%s3055_s23 + $0x38] sm:$0xf] }
 0x256   : >> { %1960 = vst [vmem:[%s3051_s18 + $0x18] sm:$0xf] %v1959_v33  ;;  %v1977_v4 = vld [vmem:[%s3055_s23 + $0x3c] sm:$0xf]  ;;  %v1979_v31 = vld [vmem:[%s3055_s23 + $0x40] sm:$0xf] }
 0x257   : >> { %1962 = vst [vmem:[%s3051_s18 + $0x1c] sm:$0xf] %v1961_v35  ;;  %v1981_v50 = vld [vmem:[%s3055_s23 + $0x44] sm:$0xf]  ;;  %s3969_s27 = smov (%p2012_p11, %s2011_s27), 0  ;;  %s1941_s26 = sadd.s32 1, %s3063_s26  }
 0x258   : >> { %1964 = vst [vmem:[%s3051_s18 + $0x20] sm:$0xf] %v1963_v29  ;;  %v1983_v55 = vld [vmem:[%s3055_s23 + $0x48] sm:$0xf]  ;;  %v1985_v47 = vld [vmem:[%s3055_s23 + $0x4c] sm:$0xf]  ;;  %p1940_p12 = scmp.ge.s32.totalorder %s1941_s26, %s3823_s24  ;;  %s3962_s30 = smov %s3969_s27 }
 0x259   : >> { %1966 = vst [vmem:[%s3051_s18 + $0x24] sm:$0xf] %v1965_v39  ;;  %s2755_s28 = sshll.u32 %s3969_s27, 7  ;;  %v1987_v37 = vld [vmem:[%s3055_s23 + $0x50] sm:$0xf] }
 0x25a   : >> { %1968 = vst [vmem:[%s3051_s18 + $0x28] sm:$0xf] %v1967_v41  ;;  %s3893_s29 = scalar_lea.vmem %s3319_s15, %s2755_s28 [#allocation2]   ;;  %s2017_s5 = scalar_lea.vmem %s3817_s20, %s2755_s28   ;;  %v1989_v34 = vld [vmem:[%s3055_s23 + $0x54] sm:$0xf]  ;;  %v1991_v56 = vld [vmem:[%s3055_s23 + $0x58] sm:$0xf] }
 0x25b   : >> { %1970 = vst [vmem:[%s3051_s18 + $0x2c] sm:$0xf] %v1969_v44  ;;  %v1993_v2 = vld [vmem:[%s3055_s23 + $0x5c] sm:$0xf]  ;;  %v1995_v57 = vld [vmem:[%s3055_s23 + $0x60] sm:$0xf] }
 0x25c   : >> { %1972 = vst [vmem:[%s3051_s18 + $0x30] sm:$0xf] %v1971_v6  ;;  %v1997_v45 = vld [vmem:[%s3055_s23 + $0x64] sm:$0xf]  ;;  %v1999_v46 = vld [vmem:[%s3055_s23 + $0x68] sm:$0xf] }
 0x25d   : >> { %1974 = vst [vmem:[%s3051_s18 + $0x34] sm:$0xf] %v1973_v20  ;;  %v2001_v59 = vld [vmem:[%s3055_s23 + $0x6c] sm:$0xf]  ;;  %v2003_v63 = vld [vmem:[%s3055_s23 + $0x70] sm:$0xf] }
 0x25e   : >> { %1976 = vst [vmem:[%s3051_s18 + $0x38] sm:$0xf] %v1975_v15  ;;  %v2005_v40 = vld [vmem:[%s3055_s23 + $0x74] sm:$0xf]  ;;  %v2007_v11 = vld [vmem:[%s3055_s23 + $0x78] sm:$0xf] }
 0x25f   : >> { %1978 = vst [vmem:[%s3051_s18 + $0x3c] sm:$0xf] %v1977_v4  ;;  %v2009_v52 = vld [vmem:[%s3055_s23 + $0x7c] sm:$0xf]  ;;  %s3961_s23 = smov %s3893_s29 }
 0x260   : >> { %1980 = vst [vmem:[%s3051_s18 + $0x40] sm:$0xf] %v1979_v31 }
 0x261   : >> { %1982 = vst [vmem:[%s3051_s18 + $0x44] sm:$0xf] %v1981_v50 }
 0x262   : >> { %1984 = vst [vmem:[%s3051_s18 + $0x48] sm:$0xf] %v1983_v55 }
 0x263   : >> { %1986 = vst [vmem:[%s3051_s18 + $0x4c] sm:$0xf] %v1985_v47 }
 0x264   : >> { %1988 = vst [vmem:[%s3051_s18 + $0x50] sm:$0xf] %v1987_v37 }
 0x265   : >> { %1990 = vst [vmem:[%s3051_s18 + $0x54] sm:$0xf] %v1989_v34 }
 0x266   : >> { %1992 = vst [vmem:[%s3051_s18 + $0x58] sm:$0xf] %v1991_v56 }
 0x267   : >> { %1994 = vst [vmem:[%s3051_s18 + $0x5c] sm:$0xf] %v1993_v2 }
 0x268   : >> { %1996 = vst [vmem:[%s3051_s18 + $0x60] sm:$0xf] %v1995_v57 }
 0x269   : >> { %1998 = vst [vmem:[%s3051_s18 + $0x64] sm:$0xf] %v1997_v45 }
 0x26a   : >> { %2000 = vst [vmem:[%s3051_s18 + $0x68] sm:$0xf] %v1999_v46 }
 0x26b   : >> { %2002 = vst [vmem:[%s3051_s18 + $0x6c] sm:$0xf] %v2001_v59  ;;  %1943 = sbr.rel (!%p1940_p12) target bundleno = 591 (0x24f), region = 122 }
 0x26c   : >> { %2004 = vst [vmem:[%s3051_s18 + $0x70] sm:$0xf] %v2003_v63 }
 0x26d   : >> { %2006 = vst [vmem:[%s3051_s18 + $0x74] sm:$0xf] %v2005_v40 }
 0x26e   : >> { %2008 = vst [vmem:[%s3051_s18 + $0x78] sm:$0xf] %v2007_v11 }
 0x26f   : >> { %2010 = vst [vmem:[%s3051_s18 + $0x7c] sm:$0xf] %v2009_v52  ;;  %s3960_s18 = smov %s2017_s5 }
 0x270 PF: > { %s3934_s6 = sand.u32 31, %s3967_s25   ;;  %s2880_s7 = sshll.u32 %s3823_s24, 7 }
 0x271   : > { %s2022_s8 = scalar_lea.vmem %s3319_s15, %s2880_s7 [#allocation2]   ;;  %s2024_s9 = scalar_lea.vmem %s3817_s20, %s2880_s7  }
 0x272   : > { %p2760_p13 = scmp.le.s32.totalorder %s3934_s6, 0 }
 0x273   : > { %s3065_s10 = smov (!%p2760_p13), %s2024_s9   ;;  %s3069_s11 = smov (!%p2760_p13), %s2022_s8  }
 0x274   : > { %2223 = sbr.rel (%p2760_p13) target bundleno = 641 (0x281), region = 127  ;;  %s3073_s12 = smov (!%p2760_p13), 0  }
 0x275   : > { %s3077_s13 = smov (!%p2760_p13), 0  }
 0x279 LB: >> { %v2034_v0 = vld [vmem:[%s3071_s11] sm:$0xf]  ;;  %s2036_s25 = sadd.s32 1, %s3075_s12  ;;  %s2028_s13 = sadd.s32 1, %s3079_s13   ;;  %s3079_s13 = sphi %s3077_s13, %s2028_s13   ;;  %s3075_s12 = sphi %s3073_s12, %s3074_s12   ;;  %s3071_s11 = sphi %s3069_s11, %s2041_s11   ;;  %s3067_s10 = sphi %s3065_s10, %s2042_s10  }
 0x27a   : >> { %2035 = vst [vmem:[%s3067_s10] sm:$0xf] %v2034_v0  ;;  %p2037_p0 = scmp.ge.s32.totalorder %s2036_s25, %s3934_s6  ;;  %p2027_p1 = scmp.ge.s32.totalorder %s2028_s13, %s3934_s6 }
 0x27c   : >> { %s3971_s25 = smov (%p2037_p0, %s2036_s25), 0  ;;  %2030 = sbr.rel (!%p2027_p1) target bundleno = 633 (0x279), region = 133 }
 0x27d   : >> { %s2761_s15 = sshll.u32 %s3971_s25, 2  ;;  %s3074_s12 = smov %s3971_s25  }
 0x27e   : >> { %s2041_s11 = scalar_lea.vmem %s2022_s8, %s2761_s15 [#allocation2]   ;;  %s2042_s10 = scalar_lea.vmem %s2024_s9, %s2761_s15  }
 0x281 PF: > { %p11_p2 = scmp.ge.s32.totalorder %s3121_s19, 5   ;;  %s3963_s15 = smov %s3043_s16 }
 0x282   : > { %s3964_s16 = smov %s3129_s22  ;;  %s3965_s17 = smov %s3121_s19 }
 0x283   :  { %13 = sbr.rel (!%p11_p2) target bundleno = 2 (0x2), region = 144 }

// kernel: cnn_forward.11
= control target key start
LH: loop header
LB: loop body
LE: loop exit
PB: predicated region body
PF: predicated region fallthrough
CT: control target
= control target key end

     0   :  { %s1230_s6 = smov 0   ;;  %s1435_s0 = inlined_call_operand.vmem [shape: bf16[2,12,2,24,32], index: 0, kind: input, shape index: {}]   ;;  %s1436_s1 = inlined_call_operand.vmem [shape: bf16[2,12,12,32], index: 1, kind: output, shape index: {}]  }
   0x1 LB: > { %s986_s7 = sadd.s32 4294967295, %s1217_s6   ;;  %p990_p0 = scmp.ge.s32.totalorder %s1217_s6, 1  ;;  %s1217_s6 = sphi %s1230_s6, %s11_s6  }
   0x2   : > { %p87_p1 = scmp.lt.s32.totalorder %s1217_s6, 3 }
   0x4   : > { %p88_p2 = pnand %p990_p0, %p87_p1 }
   0x5   : > { %p107_p3 = scmp.lt.s32.totalorder (!%p88_p2), %s986_s7, 1 }
   0x6   : > { %91 = sbr.rel (%p88_p2) target bundleno = 261 (0x105), region = 24 }
   0xb   : > { %v335_v0 = vlaneseq  ;;  %s1438_s7 = smov (!%p107_p3, %s986_s7), 1  ;;  %vm371_vm1 = vcmask 1043456   ;;  %v1219_v9 = vmov 0.0   ;;  %vm367_vm4 = vcmask 195584  }
   0xc   : > { %s1200_s8 = smul.u32 288, %s1438_s7  ;;  %vm410_vm6 = vcmask 257024   ;;  %vm412_vm7 = vcmask 254976  }
   0xd   : > { %v336_v1 = vshrl.u32 %v335_v0, 7  ;;  %v1240_v2 = vand.u32 127, %v335_v0  ;;  %s1201_s12 = smul.u32 96, %s1438_s7 }
   0xe   : > { %s1246_s11 = scalar_lea.vmem %s1435_s0, %s1200_s8 }
   0xf   : > { %v337_v3 = vadd.s32 8, %v336_v1  ;;  %v340_v4 = vmul.u32 2, %v336_v1  ;;  %v120_v5 = vld [vmem:[%s1246_s11 + $0x8] sm:$0xff]   ;;  %v1188_v6 = vld [vmem:[%s1246_s11 + $0x10] sm:$0xff]   ;;  %v123_v7 = vld [vmem:[%s1246_s11 + $0x20] sm:$0xff]   ;;  %s1382_s15 = scalar_lea.vmem %s1436_s1, %s1201_s12 }
  0x10   : > { %v1132_v12 = vunpack.c.h.bf16 %v1188_v6  ;;  %v193_v13 = vunpack.c.l.bf16 %v120_v5  ;;  %v1189_v14 = vld [vmem:[%s1246_s11 + $0x28] sm:$0xff]   ;;  %v196_v15 = vunpack.c.l.bf16 %v123_v7  ;;  %v1082_v16 = vld [vmem:[%s1246_s11] sm:$0xff]   ;;  %v1131_v17 = vunpack.c.l.bf16 %v1188_v6  ;;  %v1177_v18 = vld [vmem:[%s1246_s11 + $0x18] sm:$0xff]  }
  0x11   : > { %vm342_vm0 = vcmp.eq.s32.totalorder %v1240_v2, %v340_v4  ;;  %v341_v8 = vmul.u32 2, %v337_v3  ;;  %v349_v11 = vadd.s32 1, %v340_v4  ;;  %v1136_v19 = vunpack.c.h.bf16 %v1189_v14  ;;  %v129_v45 = vld [vmem:[%s1246_s11 + $0x50] sm:$0xff]   ;;  %v1191_v46 = vld [vmem:[%s1246_s11 + $0x58] sm:$0xff]   ;;  %v1190_v50 = vld [vmem:[%s1246_s11 + $0x40] sm:$0xff]  }
  0x12   : > { %v1029_v10 = vsel %vm342_vm0, 1.0, %v1219_v9  ;;  %v1083_v20 = vunpack.c.l.bf16 %v1082_v16  ;;  %v1084_v21 = vunpack.c.h.bf16 %v1082_v16  ;;  %v227_v22 = vunpack.c.h.bf16 %v120_v5  ;;  %v126_v55 = vld [vmem:[%s1246_s11 + $0x38] sm:$0xff]   ;;  %v1179_v56 = vld [vmem:[%s1246_s11 + $0x48] sm:$0xff]   ;;  %v1178_v61 = vld [vmem:[%s1246_s11 + $0x30] sm:$0xff]  }
  0x13   : > { %v265_v23 = vmax.f32 %v193_v13, %v1132_v12  ;;  %v1087_v24 = vunpack.c.l.bf16 %v1177_v18  ;;  %v1088_v25 = vunpack.c.h.bf16 %v1177_v18  ;;  %v1135_v26 = vunpack.c.l.bf16 %v1189_v14  ;;  %v1273_v6 = vld [vmem:[%s1246_s11 + $0x80] sm:$0xff]   ;;  %v1279_v16 = vld [vmem:[%s1246_s11 + $0x70] sm:$0xff]  }
  0x14   : > { %v268_v27 = vmax.f32 %v196_v15, %v1136_v19  ;;  %v263_v28 = vmax.f32 %v1083_v20, %v227_v22  ;;  %v264_v29 = vmax.f32 %v1084_v21, %v1131_v17  ;;  %v230_v30 = vunpack.c.h.bf16 %v123_v7  ;;  %v1276_v7 = vld [vmem:[%s1246_s11 + $0x88] sm:$0xff]  }
  0x15   : > { %v301_v31 = vpack.c.bf16 %v265_v23, %v265_v23  ;;  %v267_v32 = vmax.f32 %v1088_v25, %v1135_v26  ;;  %vm343_vm2 = vcmp.eq.s32.totalorder %v1240_v2, %v341_v8  ;;  %v350_v33 = vadd.s32 1, %v341_v8  ;;  %v132_v25 = vld [vmem:[%s1246_s11 + $0x68] sm:$0xff]  }
  0x16   : > { %v304_v34 = vpack.c.bf16 %v268_v27, %v268_v27  ;;  %v299_v35 = vpack.c.bf16 %v263_v28, %v263_v28  ;;  %v300_v36 = vpack.c.bf16 %v264_v29, %v264_v29  ;;  %v266_v37 = vmax.f32 %v1087_v24, %v230_v30 }
  0x17   : > { %v363_v38 = vunpack.c.l.b16 %v301_v31  ;;  %v303_v39 = vpack.c.bf16 %v267_v32, %v267_v32  ;;  %v1030_v40 = vsel %vm343_vm2, 1.0, %v1219_v9  ;;  %vm351_vm3 = vcmp.eq.s32.totalorder %v1240_v2, %v349_v11 }
  0x18   : > { %v419_v41 = vunpack.c.l.b16 %v304_v34  ;;  %v361_v42 = vunpack.c.l.b16 %v299_v35  ;;  %v362_v43 = vunpack.c.l.b16 %v300_v36  ;;  %v302_v44 = vpack.c.bf16 %v266_v37, %v266_v37  ;;  %v1181_v34 = vld [vmem:[%s1246_s11 + $0x78] sm:$0xff]  }
  0x19   : > { %v365_v47 = vpack.c.b16 %v363_v38, %v363_v38  ;;  %v418_v48 = vunpack.c.l.b16 %v303_v39  ;;  %v1259_v49 = vpack.c.bf16 %v1030_v40, %v1029_v10  ;;  %vm352_vm5 = vcmp.eq.s32.totalorder %v1240_v2, %v350_v33 }
  0x1a   : > { %v421_v51 = vpack.c.b16 %v419_v41, %v419_v41  ;;  %v364_v52 = vpack.c.b16 %v362_v43, %v361_v42  ;;  %v417_v53 = vunpack.c.l.b16 %v302_v44  ;;  %v1031_v54 = vsel %vm351_vm3, 1.0, %v1219_v9  ;;  %v1180_v43 = vld [vmem:[%s1246_s11 + $0x60] sm:$0xff]  }
  0x1b   : > { %v373_v57 = vsel %vm371_vm1, %v365_v47, 0  ;;  %v1032_v58 = vsel %vm352_vm5, 1.0, %v1219_v9  ;;  %v1144_v59 = vunpack.c.h.bf16 %v1191_v46  ;;  %v202_v60 = vunpack.c.l.bf16 %v129_v45 }
  0x1c   : > { %381 = vmatpush.bf16.msra.mxu0 %v373_v57  ;;  %398 = vmatpush.bf16.msra.mxu1 %v373_v57  ;;  %v424_v62 = vsel %vm371_vm1, %v421_v51, 0  ;;  %v420_v63 = vpack.c.b16 %v418_v48, %v417_v53  ;;  %v1270_v0 = vpack.c.bf16 %v1032_v58, %v1031_v54  ;;  %v1140_v1 = vunpack.c.h.bf16 %v1190_v50  ;;  %v1299_v53 = vld [vmem:[%s1246_s11 + $0xb8] sm:$0xff]   ;;  %v141_v58 = vld [vmem:[%s1246_s11 + $0xb0] sm:$0xff]  }
  0x1d   : > { %432 = vmatpush.bf16.msra.mxu2 %v424_v62  ;;  %446 = vmatpush.bf16.msra.mxu3 %v424_v62  ;;  %v274_v2 = vmax.f32 %v202_v60, %v1144_v59  ;;  %v199_v3 = vunpack.c.l.bf16 %v126_v55  ;;  %v1095_v4 = vunpack.c.l.bf16 %v1179_v56  ;;  %v1096_v5 = vunpack.c.h.bf16 %v1179_v56 }
  0x1e   : > { %v1143_v8 = vunpack.c.l.bf16 %v1191_v46  ;;  %v236_v9 = vunpack.c.h.bf16 %v129_v45  ;;  %v1091_v10 = vunpack.c.l.bf16 %v1178_v61  ;;  %v1092_v11 = vunpack.c.h.bf16 %v1178_v61 }
  0x1f   : > { %v310_v12 = vpack.c.bf16 %v274_v2, %v274_v2  ;;  %v271_v13 = vmax.f32 %v199_v3, %v1140_v1  ;;  %v1139_v14 = vunpack.c.l.bf16 %v1190_v50  ;;  %v233_v15 = vunpack.c.h.bf16 %v126_v55  ;;  %v1308_v1 = vld [vmem:[%s1246_s11 + $0xa0] sm:$0xff]  }
  0x20   : > { %382 = vmatpush.bf16.msra.mxu0 %v364_v52  ;;  %399 = vmatpush.bf16.msra.mxu1 %v364_v52  ;;  %v272_v17 = vmax.f32 %v1095_v4, %v236_v9  ;;  %v273_v18 = vmax.f32 %v1096_v5, %v1143_v8  ;;  %v1152_v19 = vunpack.c.h.bf16 %v1276_v7  ;;  %v208_v20 = vunpack.c.l.bf16 %v1273_v6 }
  0x21   : > { %433 = vmatpush.bf16.msra.mxu2 %v420_v63  ;;  %447 = vmatpush.bf16.msra.mxu3 %v420_v63  ;;  %v513_v21 = vunpack.c.l.b16 %v310_v12  ;;  %v307_v22 = vpack.c.bf16 %v271_v13, %v271_v13  ;;  %v269_v23 = vmax.f32 %v1091_v10, %v233_v15  ;;  %v270_v24 = vmax.f32 %v1092_v11, %v1139_v14  ;;  %v1305_v63 = vld [vmem:[%s1246_s11 + $0x98] sm:$0xff]   ;;  %v1183_v10 = vld [vmem:[%s1246_s11 + $0xa8] sm:$0xff]  }
  0x22   : > { %v308_v26 = vpack.c.bf16 %v272_v17, %v272_v17  ;;  %v309_v27 = vpack.c.bf16 %v273_v18, %v273_v18  ;;  %v280_v28 = vmax.f32 %v208_v20, %v1152_v19  ;;  %v1148_v29 = vunpack.c.h.bf16 %v1279_v16 }
  0x23   : > { %1033 = vmatmul.msk.bf16.vlgmr.msra.gmra.mxu0 %vm367_vm4, %v1259_v49  ;;  %1034 = vmatmul.msk.bf16.vlgmr.msra.gmra.mxu1 %vm367_vm4, %v1270_v0  ;;  %v515_v30 = vpack.c.b16 %v513_v21, %v513_v21  ;;  %v466_v31 = vunpack.c.l.b16 %v307_v22  ;;  %v305_v32 = vpack.c.bf16 %v269_v23, %v269_v23  ;;  %v306_v33 = vpack.c.bf16 %v270_v24, %v270_v24  ;;  %v1182_v23 = vld [vmem:[%s1246_s11 + $0x90] sm:$0xff]  }
  0x24   : > { %1035 = vmatmul.msk.bf16.vlgmr.msra.gmra.mxu2 %vm367_vm4, %v1259_v49  ;;  %1036 = vmatmul.msk.bf16.vlgmr.msra.gmra.mxu3 %vm367_vm4, %v1270_v0  ;;  %v511_v35 = vunpack.c.l.b16 %v308_v26  ;;  %v512_v36 = vunpack.c.l.b16 %v309_v27  ;;  %v316_v37 = vpack.c.bf16 %v280_v28, %v280_v28  ;;  %v205_v38 = vunpack.c.l.bf16 %v132_v25 }
  0x25   : > { %v518_v39 = vsel %vm371_vm1, %v515_v30, 0  ;;  %v468_v40 = vpack.c.b16 %v466_v31, %v466_v31  ;;  %v464_v41 = vunpack.c.l.b16 %v305_v32  ;;  %v465_v42 = vunpack.c.l.b16 %v306_v33 }
  0x26   : > { %526 = vmatpush.bf16.msrb.mxu2 %v518_v39  ;;  %540 = vmatpush.bf16.msrb.mxu3 %v518_v39  ;;  %v514_v44 = vpack.c.b16 %v512_v36, %v511_v35  ;;  %v607_v45 = vunpack.c.l.b16 %v316_v37  ;;  %v277_v46 = vmax.f32 %v205_v38, %v1148_v29  ;;  %v1103_v47 = vunpack.c.l.bf16 %v1181_v34  ;;  %v147_v36 = vld [vmem:[%s1246_s11 + $0xe0] sm:$0xff]   ;;  %v1197_v37 = vld [vmem:[%s1246_s11 + $0xe8] sm:$0xff]  }
  0x27   : > { %v471_v48 = vsel %vm371_vm1, %v468_v40, 0  ;;  %v467_v50 = vpack.c.b16 %v465_v42, %v464_v41  ;;  %v1104_v51 = vunpack.c.h.bf16 %v1181_v34  ;;  %v1151_v52 = vunpack.c.l.bf16 %v1276_v7  ;;  %v1196_v42 = vld [vmem:[%s1246_s11 + $0xd0] sm:$0xff]  }
  0x28   : > { %479 = vmatpush.bf16.msrb.mxu0 %v471_v48  ;;  %493 = vmatpush.bf16.msrb.mxu1 %v471_v48  ;;  %v609_v54 = vpack.c.b16 %v607_v45, %v607_v45  ;;  %v313_v55 = vpack.c.bf16 %v277_v46, %v277_v46  ;;  %v242_v56 = vunpack.c.h.bf16 %v1273_v6  ;;  %v1099_v57 = vunpack.c.l.bf16 %v1180_v43 }
  0x29   : > { %v279_v59 = vmax.f32 %v1104_v51, %v1151_v52  ;;  %v1100_v60 = vunpack.c.h.bf16 %v1180_v43  ;;  %v1147_v61 = vunpack.c.l.bf16 %v1279_v16  ;;  %v239_v62 = vunpack.c.h.bf16 %v132_v25 }
  0x2a   : > { %527 = vmatpush.bf16.msrb.mxu2 %v514_v44  ;;  %541 = vmatpush.bf16.msrb.mxu3 %v514_v44  ;;  %v612_v2 = vsel %vm371_vm1, %v609_v54, 0  ;;  %v560_v3 = vunpack.c.l.b16 %v313_v55  ;;  %v278_v4 = vmax.f32 %v1103_v47, %v242_v56  ;;  %v1160_v5 = vunpack.c.h.bf16 %v1299_v53  ;;  %v144_v47 = vld [vmem:[%s1246_s11 + $0xc8] sm:$0xff]  }
  0x2b   : > { %v315_v6 = vpack.c.bf16 %v279_v59, %v279_v59  ;;  %v275_v7 = vmax.f32 %v1099_v57, %v239_v62  ;;  %v276_v8 = vmax.f32 %v1100_v60, %v1147_v61  ;;  %v214_v9 = vunpack.c.l.bf16 %v141_v58 }
  0x2c   : > { %480 = vmatpush.bf16.msrb.mxu0 %v467_v50  ;;  %494 = vmatpush.bf16.msrb.mxu1 %v467_v50  ;;  %v562_v11 = vpack.c.b16 %v560_v3, %v560_v3  ;;  %v314_v12 = vpack.c.bf16 %v278_v4, %v278_v4  ;;  %v1156_v13 = vunpack.c.h.bf16 %v1308_v1  ;;  %v211_v14 = vunpack.c.l.bf16 %v1305_v63  ;;  %v1184_v3 = vld [vmem:[%s1246_s11 + $0xc0] sm:$0xff]  }
  0x2d   : > { %v606_v15 = vunpack.c.l.b16 %v315_v6  ;;  %v311_v16 = vpack.c.bf16 %v275_v7, %v275_v7  ;;  %v312_v17 = vpack.c.bf16 %v276_v8, %v276_v8  ;;  %v286_v18 = vmax.f32 %v214_v9, %v1160_v5 }
  0x2e   : > { %620 = vmatpush.bf16.msra.mxu2 %v612_v2  ;;  %634 = vmatpush.bf16.msra.mxu3 %v612_v2  ;;  %v565_v19 = vsel %vm371_vm1, %v562_v11, 0  ;;  %v605_v20 = vunpack.c.l.b16 %v314_v12  ;;  %v283_v21 = vmax.f32 %v211_v14, %v1156_v13  ;;  %v1111_v22 = vunpack.c.l.bf16 %v1183_v10 }
  0x2f   : > { %v558_v24 = vunpack.c.l.b16 %v311_v16  ;;  %v559_v25 = vunpack.c.l.b16 %v312_v17  ;;  %v322_v26 = vpack.c.bf16 %v286_v18, %v286_v18  ;;  %v1112_v27 = vunpack.c.h.bf16 %v1183_v10 }
  0x30   : > { %573 = vmatpush.bf16.msra.mxu0 %v565_v19  ;;  %587 = vmatpush.bf16.msra.mxu1 %v565_v19  ;;  %v608_v28 = vpack.c.b16 %v606_v15, %v605_v20  ;;  %v319_v29 = vpack.c.bf16 %v283_v21, %v283_v21  ;;  %v1159_v30 = vunpack.c.l.bf16 %v1299_v53  ;;  %v248_v31 = vunpack.c.h.bf16 %v141_v58  ;;  %v1185_v53 = vld [vmem:[%s1246_s11 + $0xd8] sm:$0xff]  }
  0x31   : > { %v561_v32 = vpack.c.b16 %v559_v25, %v558_v24  ;;  %v701_v33 = vunpack.c.l.b16 %v322_v26  ;;  %v1107_v34 = vunpack.c.l.bf16 %v1182_v23  ;;  %v1108_v35 = vunpack.c.h.bf16 %v1182_v23 }
  0x32   : > { %621 = vmatpush.bf16.msra.mxu2 %v608_v28  ;;  %635 = vmatpush.bf16.msra.mxu3 %v608_v28  ;;  %v654_v38 = vunpack.c.l.b16 %v319_v29  ;;  %v284_v39 = vmax.f32 %v1111_v22, %v248_v31  ;;  %v285_v40 = vmax.f32 %v1112_v27, %v1159_v30  ;;  %v1155_v41 = vunpack.c.l.bf16 %v1308_v1 }
  0x33   : > { %1039 = vmatmul.msk.bf16.vlgmr.msrb.gmra.mxu0 %vm367_vm4, %v1259_v49  ;;  %1040 = vmatmul.msk.bf16.vlgmr.msrb.gmra.mxu1 %vm367_vm4, %v1270_v0  ;;  %v703_v43 = vpack.c.b16 %v701_v33, %v701_v33  ;;  %v245_v44 = vunpack.c.h.bf16 %v1305_v63  ;;  %v1168_v45 = vunpack.c.h.bf16 %v1197_v37  ;;  %v220_v46 = vunpack.c.l.bf16 %v147_v36  ;;  %v153_v33 = vld [vmem:[%s1246_s11 + $0x110] sm:$0xff]  }
  0x34   : > { %1043 = vmatmul.msk.bf16.vlgmr.msrb.gmra.mxu2 %vm367_vm4, %v1259_v49  ;;  %1044 = vmatmul.msk.bf16.vlgmr.msrb.gmra.mxu3 %vm367_vm4, %v1270_v0  ;;  %v656_v48 = vpack.c.b16 %v654_v38, %v654_v38  ;;  %v320_v50 = vpack.c.bf16 %v284_v39, %v284_v39  ;;  %v321_v51 = vpack.c.bf16 %v285_v40, %v285_v40  ;;  %v1164_v52 = vunpack.c.h.bf16 %v1196_v42  ;;  %v1198_v39 = vld [vmem:[%s1246_s11 + $0x100] sm:$0xff]  }
  0x35   : > { %574 = vmatpush.bf16.msra.mxu0 %v561_v32  ;;  %588 = vmatpush.bf16.msra.mxu1 %v561_v32  ;;  %v706_v54 = vsel %vm371_vm1, %v703_v43, 0  ;;  %v281_v55 = vmax.f32 %v1107_v34, %v245_v44  ;;  %v282_v56 = vmax.f32 %v1108_v35, %v1155_v41  ;;  %v292_v57 = vmax.f32 %v220_v46, %v1168_v45  ;;  %v1199_v34 = vld [vmem:[%s1246_s11 + $0x118] sm:$0xff]   ;;  %v1187_v46 = vld [vmem:[%s1246_s11 + $0x108] sm:$0xff]  }
  0x36   : > { %714 = vmatpush.bf16.msrb.mxu2 %v706_v54  ;;  %728 = vmatpush.bf16.msrb.mxu3 %v706_v54  ;;  %v659_v58 = vsel %vm371_vm1, %v656_v48, 0  ;;  %v699_v59 = vunpack.c.l.b16 %v320_v50  ;;  %v700_v60 = vunpack.c.l.b16 %v321_v51  ;;  %v217_v61 = vunpack.c.l.bf16 %v144_v47  ;;  %v150_v35 = vld [vmem:[%s1246_s11 + $0xf8] sm:$0xff]   ;;  %v1186_v50 = vld [vmem:[%s1246_s11 + $0xf0] sm:$0xff]  }
  0x37   : > { %v317_v62 = vpack.c.bf16 %v281_v55, %v281_v55  ;;  %v318_v63 = vpack.c.bf16 %v282_v56, %v282_v56  ;;  %v328_v1 = vpack.c.bf16 %v292_v57, %v292_v57  ;;  %v1119_v2 = vunpack.c.l.bf16 %v1185_v53 }
  0x38   : > { %v702_v4 = vpack.c.b16 %v700_v60, %v699_v59  ;;  %v289_v5 = vmax.f32 %v217_v61, %v1164_v52  ;;  %v1120_v6 = vunpack.c.h.bf16 %v1185_v53  ;;  %v1167_v7 = vunpack.c.l.bf16 %v1197_v37 }
  0x39   : > { %667 = vmatpush.bf16.msrb.mxu0 %v659_v58  ;;  %681 = vmatpush.bf16.msrb.mxu1 %v659_v58  ;;  %v652_v8 = vunpack.c.l.b16 %v317_v62  ;;  %v653_v9 = vunpack.c.l.b16 %v318_v63  ;;  %v795_v10 = vunpack.c.l.b16 %v328_v1  ;;  %v254_v11 = vunpack.c.h.bf16 %v147_v36 }
  0x3a   : > { %715 = vmatpush.bf16.msrb.mxu2 %v702_v4  ;;  %729 = vmatpush.bf16.msrb.mxu3 %v702_v4  ;;  %v325_v12 = vpack.c.bf16 %v289_v5, %v289_v5  ;;  %v291_v13 = vmax.f32 %v1120_v6, %v1167_v7  ;;  %v1115_v14 = vunpack.c.l.bf16 %v1184_v3  ;;  %v1116_v15 = vunpack.c.h.bf16 %v1184_v3 }
  0x3b   : > { %v655_v16 = vpack.c.b16 %v653_v9, %v652_v8  ;;  %v290_v17 = vmax.f32 %v1119_v2, %v254_v11  ;;  %v1163_v18 = vunpack.c.l.bf16 %v1196_v42  ;;  %v251_v21 = vunpack.c.h.bf16 %v144_v47 }
  0x3c   : > { %v748_v19 = vunpack.c.l.b16 %v325_v12  ;;  %v327_v20 = vpack.c.bf16 %v291_v13, %v291_v13  ;;  %v797_v22 = vpack.c.b16 %v795_v10, %v795_v10  ;;  %v1176_v37 = vunpack.c.h.bf16 %v1199_v34 }
  0x3d   : > { %668 = vmatpush.bf16.msrb.mxu0 %v655_v16  ;;  %682 = vmatpush.bf16.msrb.mxu1 %v655_v16  ;;  %v326_v23 = vpack.c.bf16 %v290_v17, %v290_v17  ;;  %v288_v24 = vmax.f32 %v1116_v15, %v1163_v18  ;;  %v287_v25 = vmax.f32 %v1115_v14, %v251_v21  ;;  %v226_v38 = vunpack.c.l.bf16 %v153_v33 }
  0x3e   : > { %v750_v26 = vpack.c.b16 %v748_v19, %v748_v19  ;;  %v794_v28 = vunpack.c.l.b16 %v327_v20  ;;  %v800_v31 = vsel %vm371_vm1, %v797_v22, 0  ;;  %v223_v40 = vunpack.c.l.bf16 %v150_v35 }
  0x3f   : > { %v793_v27 = vunpack.c.l.b16 %v326_v23  ;;  %v324_v29 = vpack.c.bf16 %v288_v24, %v288_v24  ;;  %v323_v30 = vpack.c.bf16 %v287_v25, %v287_v25  ;;  %v1172_v43 = vunpack.c.h.bf16 %v1198_v39 }
  0x40   : > { %v753_v41 = vsel %vm371_vm1, %v750_v26, 0  ;;  %v298_v45 = vmax.f32 %v226_v38, %v1176_v37  ;;  %v1175_v47 = vunpack.c.l.bf16 %v1199_v34  ;;  %v260_v48 = vunpack.c.h.bf16 %v153_v33 }
  0x41   : > { %v747_v32 = vunpack.c.l.b16 %v324_v29  ;;  %v746_v36 = vunpack.c.l.b16 %v323_v30  ;;  %v796_v42 = vpack.c.b16 %v794_v28, %v793_v27  ;;  %v295_v51 = vmax.f32 %v223_v40, %v1172_v43 }
  0x42   : > { %v1127_v52 = vunpack.c.l.bf16 %v1187_v46  ;;  %v1128_v53 = vunpack.c.h.bf16 %v1187_v46  ;;  %v1123_v54 = vunpack.c.l.bf16 %v1186_v50  ;;  %v334_v55 = vpack.c.bf16 %v298_v45, %v298_v45 }
  0x43   : > { %1047 = vmatmul.msk.bf16.vlgmr.msra.gmra.mxu0 %vm367_vm4, %v1259_v49  ;;  %1048 = vmatmul.msk.bf16.vlgmr.msra.gmra.mxu1 %vm367_vm4, %v1270_v0  ;;  %v749_v44 = vpack.c.b16 %v747_v32, %v746_v36  ;;  %v1124_v56 = vunpack.c.h.bf16 %v1186_v50  ;;  %v1171_v57 = vunpack.c.l.bf16 %v1198_v39  ;;  %v257_v58 = vunpack.c.h.bf16 %v150_v35 }
  0x44   : > { %1051 = vmatmul.msk.bf16.vlgmr.msra.gmra.mxu2 %vm367_vm4, %v1259_v49  ;;  %1052 = vmatmul.msk.bf16.vlgmr.msra.gmra.mxu3 %vm367_vm4, %v1270_v0  ;;  %v331_v59 = vpack.c.bf16 %v295_v51, %v295_v51  ;;  %v296_v60 = vmax.f32 %v1127_v52, %v260_v48  ;;  %v297_v61 = vmax.f32 %v1128_v53, %v1175_v47  ;;  %v889_v62 = vunpack.c.l.b16 %v334_v55 }
  0x45   : > { %808 = vmatpush.bf16.msra.mxu2 %v800_v31  ;;  %822 = vmatpush.bf16.msra.mxu3 %v800_v31  ;;  %v293_v63 = vmax.f32 %v1123_v54, %v257_v58  ;;  %v294_v1 = vmax.f32 %v1124_v56, %v1171_v57 }
  0x46   : > { %761 = vmatpush.bf16.msra.mxu0 %v753_v41  ;;  %775 = vmatpush.bf16.msra.mxu1 %v753_v41  ;;  %v842_v2 = vunpack.c.l.b16 %v331_v59  ;;  %v332_v3 = vpack.c.bf16 %v296_v60, %v296_v60  ;;  %v333_v4 = vpack.c.bf16 %v297_v61, %v297_v61  ;;  %v891_v5 = vpack.c.b16 %v889_v62, %v889_v62 }
  0x47   : > { %v329_v6 = vpack.c.bf16 %v293_v63, %v293_v63  ;;  %v330_v7 = vpack.c.bf16 %v294_v1, %v294_v1 }
  0x48   : > { %v844_v8 = vpack.c.b16 %v842_v2, %v842_v2  ;;  %v887_v9 = vunpack.c.l.b16 %v332_v3  ;;  %v888_v10 = vunpack.c.l.b16 %v333_v4  ;;  %v894_v11 = vsel %vm371_vm1, %v891_v5, 0 }
  0x49   : > { %809 = vmatpush.bf16.msra.mxu2 %v796_v42  ;;  %823 = vmatpush.bf16.msra.mxu3 %v796_v42  ;;  %v840_v12 = vunpack.c.l.b16 %v329_v6  ;;  %v841_v13 = vunpack.c.l.b16 %v330_v7 }
  0x4a   : > { %762 = vmatpush.bf16.msra.mxu0 %v749_v44  ;;  %776 = vmatpush.bf16.msra.mxu1 %v749_v44  ;;  %v847_v14 = vsel %vm371_vm1, %v844_v8, 0  ;;  %v890_v15 = vpack.c.b16 %v888_v10, %v887_v9 }
  0x4b   : > { %v843_v16 = vpack.c.b16 %v841_v13, %v840_v12 }
  0x53   : > { %1055 = vmatmul.msk.bf16.vlgmr.msrb.gmra.mxu0 %vm367_vm4, %v1259_v49  ;;  %1056 = vmatmul.msk.bf16.vlgmr.msrb.gmra.mxu1 %vm367_vm4, %v1270_v0 }
  0x54   : > { %1059 = vmatmul.msk.bf16.vlgmr.msrb.gmra.mxu2 %vm367_vm4, %v1259_v49  ;;  %1060 = vmatmul.msk.bf16.vlgmr.msrb.gmra.mxu3 %vm367_vm4, %v1270_v0 }
  0x55   : > { %902 = vmatpush.bf16.msrb.mxu2 %v894_v11  ;;  %916 = vmatpush.bf16.msrb.mxu3 %v894_v11 }
  0x56   : > { %855 = vmatpush.bf16.msrb.mxu0 %v847_v14  ;;  %869 = vmatpush.bf16.msrb.mxu1 %v847_v14 }
  0x59   : > { %903 = vmatpush.bf16.msrb.mxu2 %v890_v15  ;;  %917 = vmatpush.bf16.msrb.mxu3 %v890_v15 }
  0x5a   : > { %856 = vmatpush.bf16.msrb.mxu0 %v843_v16  ;;  %870 = vmatpush.bf16.msrb.mxu1 %v843_v16 }
  0x63   : > { %1063 = vmatmul.msk.bf16.vlgmr.msra.gmra.mxu0 %vm367_vm4, %v1259_v49  ;;  %1064 = vmatmul.msk.bf16.vlgmr.msra.gmra.mxu1 %vm367_vm4, %v1270_v0 }
  0x64   : > { %1067 = vmatmul.msk.bf16.vlgmr.msra.gmra.mxu2 %vm367_vm4, %v1259_v49  ;;  %1068 = vmatmul.msk.bf16.vlgmr.msra.gmra.mxu3 %vm367_vm4, %v1270_v0 }
  0x73   : > { %1071 = vmatmul.msk.bf16.vlgmr.msrb.gmra.mxu0 %vm367_vm4, %v1259_v49  ;;  %1072 = vmatmul.msk.bf16.vlgmr.msrb.gmra.mxu1 %vm367_vm4, %v1270_v0 }
  0x74   : > { %1075 = vmatmul.msk.bf16.vlgmr.msrb.gmra.mxu2 %vm367_vm4, %v1259_v49  ;;  %1076 = vmatmul.msk.bf16.vlgmr.msrb.gmra.mxu3 %vm367_vm4, %v1270_v0 }
  0xa0   : > { %v384_v17 = vpop.f32.mrf.mxu0  ;;  %v401_v18 = vpop.f32.mrf.mxu1 }
  0xa1   : > { %v406_v19 = vmax.f32 %v384_v17, %v401_v18 }
  0xa3   : > { %v408_v20 = vpack.c.bf16 %v406_v19, %v406_v19 }
  0xa5   : > { %411 = vst.msk [vmem:[%s1382_s15] sm:$0xf] %vm410_vm6, %v408_v20 }
  0xa7   : > { %v435_v49 = vpop.f32.mrf.mxu2  ;;  %v449_v21 = vpop.f32.mrf.mxu3 }
  0xa8   : > { %v454_v22 = vmax.f32 %v435_v49, %v449_v21  ;;  %v386_v0 = vpop.f32.mrf.mxu0  ;;  %v403_v23 = vpop.f32.mrf.mxu1 }
  0xa9   : > { %v407_v24 = vmax.f32 %v386_v0, %v403_v23 }
  0xaa   : > { %v456_v25 = vpack.c.bf16 %v454_v22, %v454_v22 }
  0xab   : > { %v409_v26 = vpack.c.bf16 %v407_v24, %v407_v24 }
  0xac   : > { %1037 = vst.msk [vmem:[%s1382_s15 + $0x8] sm:$0xf] %vm410_vm6, %v456_v25 }
  0xad   : > { %413 = vst.msk [vmem:[%s1382_s15 + $0x4] sm:$0x3] %vm412_vm7, %v409_v26 }
  0xaf   : > { %v437_v27 = vpop.f32.mrf.mxu2  ;;  %v451_v28 = vpop.f32.mrf.mxu3 }
  0xb0   : > { %v455_v29 = vmax.f32 %v437_v27, %v451_v28  ;;  %v482_v30 = vpop.f32.mrf.mxu0  ;;  %v496_v31 = vpop.f32.mrf.mxu1 }
  0xb1   : > { %v501_v32 = vmax.f32 %v482_v30, %v496_v31 }
  0xb2   : > { %v457_v33 = vpack.c.bf16 %v455_v29, %v455_v29 }
  0xb3   : > { %v503_v34 = vpack.c.bf16 %v501_v32, %v501_v32 }
  0xb4   : > { %1038 = vst.msk [vmem:[%s1382_s15 + $0xc] sm:$0x3] %vm412_vm7, %v457_v33 }
  0xb5   : > { %1041 = vst.msk [vmem:[%s1382_s15 + $0x10] sm:$0xf] %vm410_vm6, %v503_v34 }
  0xb7   : > { %v529_v35 = vpop.f32.mrf.mxu2  ;;  %v543_v36 = vpop.f32.mrf.mxu3 }
  0xb8   : > { %v548_v37 = vmax.f32 %v529_v35, %v543_v36  ;;  %v484_v38 = vpop.f32.mrf.mxu0  ;;  %v498_v39 = vpop.f32.mrf.mxu1 }
  0xb9   : > { %v502_v40 = vmax.f32 %v484_v38, %v498_v39 }
  0xba   : > { %v550_v41 = vpack.c.bf16 %v548_v37, %v548_v37 }
  0xbb   : > { %v504_v42 = vpack.c.bf16 %v502_v40, %v502_v40 }
  0xbc   : > { %1045 = vst.msk [vmem:[%s1382_s15 + $0x18] sm:$0xf] %vm410_vm6, %v550_v41 }
  0xbd   : > { %1042 = vst.msk [vmem:[%s1382_s15 + $0x14] sm:$0x3] %vm412_vm7, %v504_v42 }
  0xbf   : > { %v531_v43 = vpop.f32.mrf.mxu2  ;;  %v545_v44 = vpop.f32.mrf.mxu3 }
  0xc0   : > { %v549_v45 = vmax.f32 %v531_v43, %v545_v44  ;;  %v576_v46 = vpop.f32.mrf.mxu0  ;;  %v590_v47 = vpop.f32.mrf.mxu1 }
  0xc1   : > { %v595_v48 = vmax.f32 %v576_v46, %v590_v47 }
  0xc2   : > { %v551_v50 = vpack.c.bf16 %v549_v45, %v549_v45 }
  0xc3   : > { %v597_v51 = vpack.c.bf16 %v595_v48, %v595_v48 }
  0xc4   : > { %1046 = vst.msk [vmem:[%s1382_s15 + $0x1c] sm:$0x3] %vm412_vm7, %v551_v50 }
  0xc5   : > { %1049 = vst.msk [vmem:[%s1382_s15 + $0x20] sm:$0xf] %vm410_vm6, %v597_v51 }
  0xc7   : > { %v623_v52 = vpop.f32.mrf.mxu2  ;;  %v637_v53 = vpop.f32.mrf.mxu3 }
  0xc8   : > { %v642_v54 = vmax.f32 %v623_v52, %v637_v53  ;;  %v578_v55 = vpop.f32.mrf.mxu0  ;;  %v592_v56 = vpop.f32.mrf.mxu1 }
  0xc9   : > { %v596_v57 = vmax.f32 %v578_v55, %v592_v56 }
  0xca   : > { %v644_v58 = vpack.c.bf16 %v642_v54, %v642_v54 }
  0xcb   : > { %v598_v59 = vpack.c.bf16 %v596_v57, %v596_v57 }
  0xcc   : > { %1053 = vst.msk [vmem:[%s1382_s15 + $0x28] sm:$0xf] %vm410_vm6, %v644_v58 }
  0xcd   : > { %1050 = vst.msk [vmem:[%s1382_s15 + $0x24] sm:$0x3] %vm412_vm7, %v598_v59 }
  0xcf   : > { %v625_v60 = vpop.f32.mrf.mxu2  ;;  %v639_v61 = vpop.f32.mrf.mxu3 }
  0xd0   : > { %v643_v62 = vmax.f32 %v625_v60, %v639_v61  ;;  %v670_v63 = vpop.f32.mrf.mxu0  ;;  %v684_v1 = vpop.f32.mrf.mxu1 }
  0xd1   : > { %v689_v2 = vmax.f32 %v670_v63, %v684_v1 }
  0xd2   : > { %v645_v3 = vpack.c.bf16 %v643_v62, %v643_v62 }
  0xd3   : > { %v691_v4 = vpack.c.bf16 %v689_v2, %v689_v2 }
  0xd4   : > { %1054 = vst.msk [vmem:[%s1382_s15 + $0x2c] sm:$0x3] %vm412_vm7, %v645_v3 }
  0xd5   : > { %1057 = vst.msk [vmem:[%s1382_s15 + $0x30] sm:$0xf] %vm410_vm6, %v691_v4 }
  0xd7   : > { %v717_v5 = vpop.f32.mrf.mxu2  ;;  %v731_v6 = vpop.f32.mrf.mxu3 }
  0xd8   : > { %v736_v7 = vmax.f32 %v717_v5, %v731_v6  ;;  %v672_v8 = vpop.f32.mrf.mxu0  ;;  %v686_v9 = vpop.f32.mrf.mxu1 }
  0xd9   : > { %v690_v10 = vmax.f32 %v672_v8, %v686_v9 }
  0xda   : > { %v738_v11 = vpack.c.bf16 %v736_v7, %v736_v7 }
  0xdb   : > { %v692_v12 = vpack.c.bf16 %v690_v10, %v690_v10 }
  0xdc   : > { %1061 = vst.msk [vmem:[%s1382_s15 + $0x38] sm:$0xf] %vm410_vm6, %v738_v11 }
  0xdd   : > { %1058 = vst.msk [vmem:[%s1382_s15 + $0x34] sm:$0x3] %vm412_vm7, %v692_v12 }
  0xdf   : > { %v719_v13 = vpop.f32.mrf.mxu2  ;;  %v733_v14 = vpop.f32.mrf.mxu3 }
  0xe0   : > { %v737_v15 = vmax.f32 %v719_v13, %v733_v14  ;;  %v764_v16 = vpop.f32.mrf.mxu0  ;;  %v778_v17 = vpop.f32.mrf.mxu1 }
  0xe1   : > { %v783_v18 = vmax.f32 %v764_v16, %v778_v17 }
  0xe2   : > { %v739_v19 = vpack.c.bf16 %v737_v15, %v737_v15 }
  0xe3   : > { %v785_v20 = vpack.c.bf16 %v783_v18, %v783_v18 }
  0xe4   : > { %1062 = vst.msk [vmem:[%s1382_s15 + $0x3c] sm:$0x3] %vm412_vm7, %v739_v19 }
  0xe5   : > { %1065 = vst.msk [vmem:[%s1382_s15 + $0x40] sm:$0xf] %vm410_vm6, %v785_v20 }
  0xe7   : > { %v811_v49 = vpop.f32.mrf.mxu2  ;;  %v825_v21 = vpop.f32.mrf.mxu3 }
  0xe8   : > { %v830_v22 = vmax.f32 %v811_v49, %v825_v21  ;;  %v766_v0 = vpop.f32.mrf.mxu0  ;;  %v780_v23 = vpop.f32.mrf.mxu1 }
  0xe9   : > { %v784_v24 = vmax.f32 %v766_v0, %v780_v23 }
  0xea   : > { %v832_v25 = vpack.c.bf16 %v830_v22, %v830_v22 }
  0xeb   : > { %v786_v26 = vpack.c.bf16 %v784_v24, %v784_v24 }
  0xec   : > { %1069 = vst.msk [vmem:[%s1382_s15 + $0x48] sm:$0xf] %vm410_vm6, %v832_v25 }
  0xed   : > { %1066 = vst.msk [vmem:[%s1382_s15 + $0x44] sm:$0x3] %vm412_vm7, %v786_v26 }
  0xef   : > { %v813_v27 = vpop.f32.mrf.mxu2  ;;  %v827_v28 = vpop.f32.mrf.mxu3 }
  0xf0   : > { %v831_v29 = vmax.f32 %v813_v27, %v827_v28  ;;  %v858_v30 = vpop.f32.mrf.mxu0  ;;  %v872_v31 = vpop.f32.mrf.mxu1 }
  0xf1   : > { %v877_v32 = vmax.f32 %v858_v30, %v872_v31 }
  0xf2   : > { %v833_v33 = vpack.c.bf16 %v831_v29, %v831_v29 }
  0xf3   : > { %v879_v34 = vpack.c.bf16 %v877_v32, %v877_v32 }
  0xf4   : > { %1070 = vst.msk [vmem:[%s1382_s15 + $0x4c] sm:$0x3] %vm412_vm7, %v833_v33 }
  0xf5   : > { %1073 = vst.msk [vmem:[%s1382_s15 + $0x50] sm:$0xf] %vm410_vm6, %v879_v34 }
  0xf7   : > { %v905_v35 = vpop.f32.mrf.mxu2  ;;  %v919_v36 = vpop.f32.mrf.mxu3 }
  0xf8   : > { %v924_v37 = vmax.f32 %v905_v35, %v919_v36  ;;  %v860_v38 = vpop.f32.mrf.mxu0  ;;  %v874_v39 = vpop.f32.mrf.mxu1 }
  0xf9   : > { %v878_v40 = vmax.f32 %v860_v38, %v874_v39 }
  0xfa   : > { %v926_v41 = vpack.c.bf16 %v924_v37, %v924_v37 }
  0xfb   : > { %v880_v42 = vpack.c.bf16 %v878_v40, %v878_v40 }
  0xfc   : > { %1077 = vst.msk [vmem:[%s1382_s15 + $0x58] sm:$0xf] %vm410_vm6, %v926_v41 }
  0xfd   : > { %1074 = vst.msk [vmem:[%s1382_s15 + $0x54] sm:$0x3] %vm412_vm7, %v880_v42 }
  0xff   : > { %v907_v43 = vpop.f32.mrf.mxu2  ;;  %v921_v44 = vpop.f32.mrf.mxu3 }
 0x100   : > { %v925_v45 = vmax.f32 %v907_v43, %v921_v44 }
 0x102   : > { %v927_v46 = vpack.c.bf16 %v925_v45, %v925_v45 }
 0x104   : > { %1078 = vst.msk [vmem:[%s1382_s15 + $0x5c] sm:$0x3] %vm412_vm7, %v927_v46 }
 0x105 PF: > { %s11_s6 = sadd.s32 1, %s1217_s6  }
 0x106   : > { %p8_p4 = scmp.ge.s32.totalorder %s11_s6, 4  }
 0x108   :  { %10 = sbr.rel (!%p8_p4) target bundleno = 1 (0x1), region = 66 }

// kernel: cnn_forward.12
= control target key start
LH: loop header
LB: loop body
LE: loop exit
PB: predicated region body
PF: predicated region fallthrough
CT: control target
= control target key end

     0   :  { %vm402_vm0 = vcmask 261120   ;;  %vm769_vm1 = vcmask 519168   ;;  %s1613_s1 = inlined_call_operand.vmem [shape: bf16[288,64], index: 1, kind: input, shape index: {}]   ;;  %s1614_s0 = inlined_call_operand.vmem [shape: bf16[200,288], index: 0, kind: input, shape index: {}]   ;;  %s1615_s2 = inlined_call_operand.vmem [shape: f32[1,64], index: 2, kind: input, shape index: {}]   ;;  %s1616_s3 = inlined_call_operand.vmem [shape: f32[1,64], index: 3, kind: input, shape index: {}]   ;;  %s1617_s4 = inlined_call_operand.vmem [shape: bf16[200,64], index: 4, kind: output, shape index: {}]  }
   0x1   :  { %v1071_v0 = vld [vmem:[%s1613_s1 + $0x38] sm:$0xff]  ;;  %v1138_v2 = vld [vmem:[%s1613_s1 + $0x88] sm:$0xff]  ;;  %v1070_v3 = vld [vmem:[%s1613_s1 + $0x30] sm:$0xff] }
   0x2   :  { %v1133_v1 = vld [vmem:[%s1613_s1 + $0x78] sm:$0xff]  ;;  %442 = vmatpush.bf16.msra.mxu0 %v1071_v0  ;;  %1082 = vmatpush.bf16.msra.mxu3 %v1071_v0  ;;  %v1146_v4 = vld [vmem:[%s1613_s1 + $0x70] sm:$0xff]  ;;  %v1153_v5 = vld [vmem:[%s1613_s1 + $0x80] sm:$0xff] }
   0x3   :  { %515 = vmatpush.bf16.msra.mxu1 %v1133_v1  ;;  %594 = vmatpush.bf16.msra.mxu2 %v1138_v2  ;;  %v809_v6 = vld [vmem:[%s1614_s0 + $0x8] sm:$0xf]  ;;  %v1030_v7 = vld [vmem:[%s1614_s0 + $0x10] sm:$0xf0]  ;;  %v1068_v11 = vld [vmem:[%s1613_s1 + $0x20] sm:$0xff] }
   0x4   :  { %v810_v8 = vor.u32 %v1030_v7, %v809_v6  ;;  %v1069_v9 = vld [vmem:[%s1613_s1 + $0x28] sm:$0xff]  ;;  %v1076_v12 = vld [vmem:[%s1613_s1 + $0x60] sm:$0xff]  ;;  %v1067_v13 = vld [vmem:[%s1613_s1 + $0x18] sm:$0xff] }
   0x5   :  { %v1077_v10 = vld [vmem:[%s1613_s1 + $0x68] sm:$0xff]  ;;  %v1075_v14 = vld [vmem:[%s1613_s1 + $0x58] sm:$0xff]  ;;  %v1066_v15 = vld [vmem:[%s1613_s1 + $0x10] sm:$0xff] }
   0x6   :  { %443 = vmatpush.bf16.msra.mxu0 %v1070_v3  ;;  %1083 = vmatpush.bf16.msra.mxu3 %v1070_v3  ;;  %v1074_v16 = vld [vmem:[%s1613_s1 + $0x50] sm:$0xff]  ;;  %v821_v17 = vld [vmem:[%s1614_s0 + $0x20] sm:$0xf]  ;;  %v1033_v18 = vld [vmem:[%s1614_s0 + $0x28] sm:$0xf0] }
   0x7   :  { %516 = vmatpush.bf16.msra.mxu1 %v1146_v4  ;;  %595 = vmatpush.bf16.msra.mxu2 %v1153_v5  ;;  %v822_v19 = vor.u32 %v1033_v18, %v821_v17  ;;  %v1065_v20 = vld [vmem:[%s1613_s1 + $0x8] sm:$0xff]  ;;  %v1064_v22 = vld [vmem:[%s1613_s1] sm:$0xff]  ;;  %v921_v26 = vld [vmem:[%s1614_s0 + $0xf0] sm:$0xf] }
   0x8   :  { %v1073_v21 = vld [vmem:[%s1613_s1 + $0x48] sm:$0xff]  ;;  %v1072_v23 = vld [vmem:[%s1613_s1 + $0x40] sm:$0xff]  ;;  %v1059_v27 = vld [vmem:[%s1614_s0 + $0xf8] sm:$0xf0] }
   0x9   :  { %v801_v24 = vld [vmem:[%s1614_s0] sm:$0xf]  ;;  %v1029_v25 = vld [vmem:[%s1614_s0 + $0x8] sm:$0xf0]  ;;  %v1028_v28 = vld [vmem:[%s1614_s0 + $0x4] sm:$0xf]  ;;  %v922_v31 = vor.u32 %v1059_v27, %v921_v26 }
   0xa   :  { %1015 = vmatmul.msk.bf16.vlgmr.msra.gmra.mxu2 %vm402_vm0, %v810_v8  ;;  %444 = vmatpush.bf16.msra.mxu0 %v1069_v9  ;;  %v803_v29 = vld [vmem:[%s1614_s0 + $0xc] sm:$0xf0]  ;;  %v802_v30 = vor.u32 %v1029_v25, %v801_v24  ;;  %v833_v33 = vld [vmem:[%s1614_s0 + $0x38] sm:$0xf]  ;;  %v1036_v34 = vld [vmem:[%s1614_s0 + $0x40] sm:$0xf0] }
   0xb   :  { %1084 = vmatpush.bf16.msra.mxu3 %v1069_v9  ;;  %517 = vmatpush.bf16.msra.mxu1 %v1077_v10  ;;  %v806_v32 = vor.u32 %v1028_v28, %v803_v29  ;;  %v834_v35 = vor.u32 %v1036_v34, %v833_v33  ;;  %v813_v36 = vld [vmem:[%s1614_s0 + $0x18] sm:$0xf]  ;;  %v1032_v37 = vld [vmem:[%s1614_s0 + $0x20] sm:$0xf0]  ;;  %v933_v38 = vld [vmem:[%s1614_s0 + $0x108] sm:$0xf] }
   0xc   :  { %v1062_v39 = vld [vmem:[%s1614_s0 + $0x110] sm:$0xf0]  ;;  %v1031_v40 = vld [vmem:[%s1614_s0 + $0x1c] sm:$0xf]  ;;  %v815_v41 = vld [vmem:[%s1614_s0 + $0x24] sm:$0xf0]  ;;  %v814_v42 = vor.u32 %v1032_v37, %v813_v36 }
   0xd   :  { %v934_v43 = vor.u32 %v1062_v39, %v933_v38  ;;  %v818_v44 = vor.u32 %v1031_v40, %v815_v41  ;;  %v845_v45 = vld [vmem:[%s1614_s0 + $0x50] sm:$0xf]  ;;  %v1039_v46 = vld [vmem:[%s1614_s0 + $0x58] sm:$0xf0]  ;;  %v66_v48 = vld [vmem:[%s1614_s0 + $0x120] sm:$0xff] }
   0xe   :  { %445 = vmatpush.bf16.msra.mxu0 %v1068_v11  ;;  %v846_v47 = vor.u32 %v1039_v46, %v845_v45  ;;  %v825_v49 = vld [vmem:[%s1614_s0 + $0x30] sm:$0xf]  ;;  %v1035_v50 = vld [vmem:[%s1614_s0 + $0x38] sm:$0xf0]  ;;  %v226_v51 = vunpack.c.l.b16 %v66_v48  ;;  %v1034_v52 = vld [vmem:[%s1614_s0 + $0x34] sm:$0xf] }
   0xf   :  { %1085 = vmatpush.bf16.msra.mxu3 %v1068_v11  ;;  %518 = vmatpush.bf16.msra.mxu1 %v1076_v12  ;;  %v827_v53 = vld [vmem:[%s1614_s0 + $0x3c] sm:$0xf0]  ;;  %v826_v54 = vor.u32 %v1035_v50, %v825_v49  ;;  %v857_v57 = vld [vmem:[%s1614_s0 + $0x68] sm:$0xf]  ;;  %v1042_v58 = vld [vmem:[%s1614_s0 + $0x70] sm:$0xf0] }
  0x10   :  { %v265_v55 = vpack.c.b16 %v226_v51, %v226_v51  ;;  %v830_v56 = vor.u32 %v1034_v52, %v827_v53  ;;  %v858_v59 = vor.u32 %v1042_v58, %v857_v57  ;;  %v837_v60 = vld [vmem:[%s1614_s0 + $0x48] sm:$0xf]  ;;  %v1038_v61 = vld [vmem:[%s1614_s0 + $0x50] sm:$0xf0]  ;;  %v1037_v62 = vld [vmem:[%s1614_s0 + $0x4c] sm:$0xf] }
  0x11   :  { %v839_v63 = vld [vmem:[%s1614_s0 + $0x54] sm:$0xf0]  ;;  %v1058_v0 = vld [vmem:[%s1614_s0 + $0xf4] sm:$0xf]  ;;  %v1045_v6 = vld [vmem:[%s1614_s0 + $0x88] sm:$0xf0] }
  0x12   :  { %446 = vmatpush.bf16.msra.mxu0 %v1067_v13  ;;  %v842_v3 = vor.u32 %v1037_v62, %v839_v63  ;;  %v849_v8 = vld [vmem:[%s1614_s0 + $0x60] sm:$0xf]  ;;  %v1041_v9 = vld [vmem:[%s1614_s0 + $0x68] sm:$0xf0]  ;;  %v851_v11 = vld [vmem:[%s1614_s0 + $0x6c] sm:$0xf0] }
  0x13   :  { %1086 = vmatpush.bf16.msra.mxu3 %v1067_v13  ;;  %519 = vmatpush.bf16.msra.mxu1 %v1075_v14  ;;  %v935_v13 = vld [vmem:[%s1614_s0 + $0x114] sm:$0xf0]  ;;  %v1048_v18 = vld [vmem:[%s1614_s0 + $0xa0] sm:$0xf0]  ;;  %v863_v24 = vld [vmem:[%s1614_s0 + $0x84] sm:$0xf0] }
  0x14   :  { %v881_v17 = vld [vmem:[%s1614_s0 + $0x98] sm:$0xf]  ;;  %v893_v28 = vld [vmem:[%s1614_s0 + $0xb0] sm:$0xf]  ;;  %v1051_v29 = vld [vmem:[%s1614_s0 + $0xb8] sm:$0xf0] }
  0x15   :  { %v1046_v33 = vld [vmem:[%s1614_s0 + $0x94] sm:$0xf]  ;;  %v875_v34 = vld [vmem:[%s1614_s0 + $0x9c] sm:$0xf0]  ;;  %v1063_v36 = vld [vmem:[%s1614_s0 + $0x118] sm:$0xf0] }
  0x16   :  { %447 = vmatpush.bf16.msra.mxu0 %v1066_v15  ;;  %v878_v38 = vor.u32 %v1046_v33, %v875_v34  ;;  %v905_v40 = vld [vmem:[%s1614_s0 + $0xc8] sm:$0xf]  ;;  %v1054_v41 = vld [vmem:[%s1614_s0 + $0xd0] sm:$0xf0]  ;;  %v917_v53 = vld [vmem:[%s1614_s0 + $0xe0] sm:$0xf] }
  0x17   :  { %1087 = vmatpush.bf16.msra.mxu3 %v1066_v15  ;;  %520 = vmatpush.bf16.msra.mxu1 %v1074_v16  ;;  %v1050_v45 = vld [vmem:[%s1614_s0 + $0xb0] sm:$0xf0]  ;;  %v897_v57 = vld [vmem:[%s1614_s0 + $0xc0] sm:$0xf]  ;;  %v1053_v58 = vld [vmem:[%s1614_s0 + $0xc8] sm:$0xf0] }
  0x18   :  { %v898_v62 = vor.u32 %v1053_v58, %v897_v57 }
  0x1a   :  { %1016 = vmatmul.msk.bf16.gmra.mxu2 %vm402_vm0, %v822_v19  ;;  %448 = vmatpush.bf16.msra.mxu0 %v1065_v20  ;;  %v882_v19 = vor.u32 %v1048_v18, %v881_v17 }
  0x1b   :  { %1088 = vmatpush.bf16.msra.mxu3 %v1065_v20  ;;  %521 = vmatpush.bf16.msra.mxu1 %v1073_v21  ;;  %v861_v20 = vld [vmem:[%s1614_s0 + $0x78] sm:$0xf] }
  0x1e   :  { %449 = vmatpush.bf16.msra.mxu0 %v1064_v22 }
  0x1f   :  { %1089 = vmatpush.bf16.msra.mxu3 %v1064_v22  ;;  %522 = vmatpush.bf16.msra.mxu1 %v1072_v23  ;;  %v227_v22 = vunpack.c.h.b16 %v66_v48  ;;  %v887_v48 = vld [vmem:[%s1614_s0 + $0xb4] sm:$0xf0] }
  0x21   :  { %450 = vmatmul.bf16.vlgmr.msra.gmra.mxu0 %v802_v30  ;;  %v266_v27 = vpack.c.b16 %v227_v22, %v227_v22  ;;  %v894_v30 = vor.u32 %v1051_v29, %v893_v28  ;;  %v911_v22 = vld [vmem:[%s1614_s0 + $0xe4] sm:$0xf0] }
  0x22   :  { %500 = vmatmul.bf16.vlgmr.msra.gmra.mxu3 %v922_v31  ;;  %523 = vmatmul.bf16.vlgmr.msra.gmra.mxu1 %v806_v32  ;;  %v873_v31 = vld [vmem:[%s1614_s0 + $0x90] sm:$0xf]  ;;  %v1047_v32 = vld [vmem:[%s1614_s0 + $0x98] sm:$0xf0] }
  0x23   :  { %1090 = vmatpush.bf16.msrb.mxu3 %v1133_v1  ;;  %v923_v1 = vld [vmem:[%s1614_s0 + $0xfc] sm:$0xf0]  ;;  %v874_v37 = vor.u32 %v1047_v32, %v873_v31 }
  0x27   :  { %1091 = vmatpush.bf16.msrb.mxu3 %v1146_v4  ;;  %v926_v4 = vor.u32 %v1058_v0, %v923_v1 }
  0x2a   :  { %1017 = vmatmul.msk.bf16.gmra.mxu2 %vm402_vm0, %v834_v35  ;;  %v941_v35 = vld [vmem:[%s1614_s0 + $0x110] sm:$0xf] }
  0x2b   :  { %1092 = vmatpush.bf16.msrb.mxu3 %v1077_v10  ;;  %v1040_v10 = vld [vmem:[%s1614_s0 + $0x64] sm:$0xf]  ;;  %v942_v39 = vor.u32 %v1063_v36, %v941_v35 }
  0x2c   :  { %v854_v15 = vor.u32 %v1040_v10, %v851_v11 }
  0x2f   :  { %1093 = vmatpush.bf16.msrb.mxu3 %v1076_v12  ;;  %v1061_v12 = vld [vmem:[%s1614_s0 + $0x10c] sm:$0xf] }
  0x31   :  { %455 = vmatmul.bf16.gmra.mxu0 %v814_v42  ;;  %v906_v42 = vor.u32 %v1054_v41, %v905_v40 }
  0x32   :  { %505 = vmatmul.bf16.gmra.mxu3 %v934_v43  ;;  %528 = vmatmul.bf16.gmra.mxu1 %v818_v44  ;;  %v67_v43 = vld [vmem:[%s1614_s0 + $0x128] sm:$0xf] }
  0x33   :  { %1094 = vmatpush.bf16.msrb.mxu3 %v1075_v14  ;;  %v850_v14 = vor.u32 %v1041_v9, %v849_v8  ;;  %v885_v44 = vld [vmem:[%s1614_s0 + $0xa8] sm:$0xf]  ;;  %v228_v46 = vunpack.c.l.b16 %v67_v43 }
  0x34   :  { %v886_v50 = vor.u32 %v1050_v45, %v885_v44 }
  0x35   :  { %v267_v52 = vpack.c.b16 %v228_v46, %v228_v46 }
  0x37   :  { %1095 = vmatpush.bf16.msrb.mxu3 %v1074_v16  ;;  %v938_v16 = vor.u32 %v1061_v12, %v935_v13 }
  0x3a   :  { %1018 = vmatmul.msk.bf16.gmra.mxu2 %vm402_vm0, %v846_v47  ;;  %v1049_v47 = vld [vmem:[%s1614_s0 + $0xac] sm:$0xf] }
  0x3b   :  { %1096 = vmatpush.bf16.msrb.mxu3 %v1073_v21  ;;  %v1044_v21 = vld [vmem:[%s1614_s0 + $0x80] sm:$0xf0]  ;;  %v890_v51 = vor.u32 %v1049_v47, %v887_v48 }
  0x3c   :  { %v862_v25 = vor.u32 %v1044_v21, %v861_v20  ;;  %v1056_v20 = vld [vmem:[%s1614_s0 + $0xe0] sm:$0xf0]  ;;  %v1055_v21 = vld [vmem:[%s1614_s0 + $0xdc] sm:$0xf] }
  0x3d   :  { %v914_v29 = vor.u32 %v1055_v21, %v911_v22 }
  0x3f   :  { %1097 = vmatpush.bf16.msrb.mxu3 %v1072_v23  ;;  %v1043_v23 = vld [vmem:[%s1614_s0 + $0x7c] sm:$0xf] }
  0x40   :  { %v866_v26 = vor.u32 %v1043_v23, %v863_v24 }
  0x41   :  { %460 = vmatmul.bf16.gmra.mxu0 %v826_v54  ;;  %v1057_v54 = vld [vmem:[%s1614_s0 + $0xe8] sm:$0xf0] }
  0x42   :  { %510 = vmatmul.bf16.gmra.mxu3 %v265_v55  ;;  %533 = vmatmul.bf16.gmra.mxu1 %v830_v56  ;;  %v918_v56 = vor.u32 %v1057_v54, %v917_v53 }
  0x43   :  { %1098 = vmatpush.bf16.msra.mxu3 %v1138_v2  ;;  %v838_v2 = vor.u32 %v1038_v61, %v837_v60  ;;  %v899_v60 = vld [vmem:[%s1614_s0 + $0xcc] sm:$0xf0] }
  0x47   :  { %1099 = vmatpush.bf16.msra.mxu3 %v1153_v5  ;;  %v869_v5 = vld [vmem:[%s1614_s0 + $0x80] sm:$0xf] }
  0x48   :  { %v870_v7 = vor.u32 %v1045_v6, %v869_v5  ;;  %v1421_v5 = vld [vmem:[%s1616_s3] ss:$0 sm:$0xff]  ;;  %v929_v6 = vld [vmem:[%s1614_s0 + $0xf8] sm:$0xf] }
  0x4a   :  { %1019 = vmatmul.msk.bf16.gmra.mxu2 %vm402_vm0, %v858_v59  ;;  %v1052_v59 = vld [vmem:[%s1614_s0 + $0xc4] sm:$0xf] }
  0x4b   :  { %v902_v0 = vor.u32 %v1052_v59, %v899_v60 }
  0x51   :  { %465 = vmatmul.bf16.gmra.mxu0 %v838_v2 }
  0x52   :  { %538 = vmatmul.bf16.gmra.mxu1 %v842_v3  ;;  %573 = vmatmul.bf16.vlgmr.msrb.gmra.mxu3 %v926_v4  ;;  %v1416_v3 = vld [vmem:[%s1615_s2] ss:$0 sm:$0xff] }
  0x5a   :  { %1020 = vmatmul.msk.bf16.gmra.mxu2 %vm402_vm0, %v870_v7  ;;  %v1060_v7 = vld [vmem:[%s1614_s0 + $0x100] sm:$0xf0] }
  0x5b   :  { %v930_v13 = vor.u32 %v1060_v7, %v929_v6 }
  0x61   :  { %470 = vmatmul.bf16.gmra.mxu0 %v850_v14 }
  0x62   :  { %543 = vmatmul.bf16.gmra.mxu1 %v854_v15  ;;  %578 = vmatmul.bf16.gmra.mxu3 %v938_v16 }
  0x6a   :  { %1021 = vmatmul.msk.bf16.gmra.mxu2 %vm402_vm0, %v882_v19  ;;  %v909_v19 = vld [vmem:[%s1614_s0 + $0xd8] sm:$0xf] }
  0x71   :  { %475 = vmatmul.bf16.gmra.mxu0 %v862_v25 }
  0x72   :  { %548 = vmatmul.bf16.gmra.mxu1 %v866_v26  ;;  %583 = vmatmul.bf16.gmra.mxu3 %v266_v27  ;;  %v910_v26 = vor.u32 %v1056_v20, %v909_v19 }
  0x7a   :  { %1022 = vmatmul.msk.bf16.gmra.mxu2 %vm402_vm0, %v894_v30 }
  0x81   :  { %480 = vmatmul.bf16.gmra.mxu0 %v874_v37 }
  0x82   :  { %553 = vmatmul.bf16.gmra.mxu1 %v878_v38  ;;  %1026 = vmatmul.msk.bf16.vlgmr.msra.gmra.mxu3 %vm402_vm0, %v942_v39 }
  0x8a   :  { %1023 = vmatmul.msk.bf16.gmra.mxu2 %vm402_vm0, %v906_v42 }
  0x8d   :  { %v597_v49 = vpop.f32.mrf.mxu2 }
  0x91   :  { %485 = vmatmul.bf16.gmra.mxu0 %v886_v50 }
  0x92   :  { %558 = vmatmul.bf16.gmra.mxu1 %v890_v51  ;;  %1027 = vmatmul.msk.bf16.gmra.mxu3 %vm402_vm0, %v267_v52 }
  0x95   :  { %v599_v55 = vpop.f32.mrf.mxu2 }
  0x9a   :  { %1024 = vmatmul.msk.bf16.gmra.mxu2 %vm402_vm0, %v918_v56 }
  0x9d   :  { %v602_v61 = vpop.f32.mrf.mxu2 }
  0x9e   :  { %v451_v63 = vpop.f32.mrf.mxu0 }
  0x9f   :  { %v524_v1 = vpop.f32.mrf.mxu1 }
  0xa0   :  { %v525_v2 = vadd.f32 %v524_v1, %v451_v63 }
  0xa1   :  { %490 = vmatmul.bf16.gmra.mxu0 %v898_v62 }
  0xa2   :  { %v598_v4 = vadd.f32 %v597_v49, %v525_v2  ;;  %563 = vmatmul.bf16.gmra.mxu1 %v902_v0 }
  0xa4   :  { %v665_v8 = vmul.f32 %v1416_v3, %v598_v4 }
  0xa5   :  { %v1430_v9 = vpop.f32.mrf.mxu3  ;;  %v604_v10 = vpop.f32.mrf.mxu2 }
  0xa6   :  { %v694_v11 = vadd.f32 %v1421_v5, %v665_v8  ;;  %v453_v12 = vpop.f32.mrf.mxu0 }
  0xa7   :  { %v526_v14 = vpop.f32.mrf.mxu1 }
  0xa8   :  { %v719_v15 = vmax.f32 %v694_v11, 0.0  ;;  %v527_v16 = vadd.f32 %v526_v14, %v453_v12 }
  0xaa   :  { %v744_v17 = vpack.c.bf16 %v719_v15, %v719_v15  ;;  %v600_v18 = vadd.f32 %v599_v55, %v527_v16  ;;  %1025 = vmatmul.msk.bf16.gmra.mxu2 %vm402_vm0, %v930_v13 }
  0xac   :  { %770 = vst.msk [vmem:[%s1617_s4] sm:$0xf] %vm769_vm1, %v744_v17  ;;  %v666_v23 = vmul.f32 %v1416_v3, %v600_v18 }
  0xad   :  { %v1451_v24 = vpop.f32.mrf.mxu3  ;;  %v607_v25 = vpop.f32.mrf.mxu2 }
  0xae   :  { %v695_v27 = vadd.f32 %v1421_v5, %v666_v23  ;;  %v456_v28 = vpop.f32.mrf.mxu0 }
  0xaf   :  { %v529_v30 = vpop.f32.mrf.mxu1 }
  0xb0   :  { %v720_v31 = vmax.f32 %v695_v27, 0.0  ;;  %v530_v32 = vadd.f32 %v529_v30, %v456_v28 }
  0xb1   :  { %495 = vmatmul.bf16.gmra.mxu0 %v910_v26 }
  0xb2   :  { %v745_v33 = vpack.c.bf16 %v720_v31, %v720_v31  ;;  %v603_v34 = vadd.f32 %v602_v61, %v530_v32  ;;  %568 = vmatmul.bf16.gmra.mxu1 %v914_v29 }
  0xb4   :  { %771 = vst.msk [vmem:[%s1617_s4 + $0x4] sm:$0xf] %vm769_vm1, %v745_v33  ;;  %v667_v35 = vmul.f32 %v1416_v3, %v603_v34 }
  0xb5   :  { %v1459_v36 = vpop.f32.mrf.mxu3  ;;  %v609_v37 = vpop.f32.mrf.mxu2 }
  0xb6   :  { %v696_v38 = vadd.f32 %v1421_v5, %v667_v35  ;;  %v458_v39 = vpop.f32.mrf.mxu0 }
  0xb7   :  { %v531_v40 = vpop.f32.mrf.mxu1 }
  0xb8   :  { %v721_v41 = vmax.f32 %v696_v38, 0.0  ;;  %v532_v42 = vadd.f32 %v531_v40, %v458_v39 }
  0xba   :  { %v746_v43 = vpack.c.bf16 %v721_v41, %v721_v41  ;;  %v605_v44 = vadd.f32 %v604_v10, %v532_v42 }
  0xbc   :  { %772 = vst.msk [vmem:[%s1617_s4 + $0x8] sm:$0xf] %vm769_vm1, %v746_v43  ;;  %v668_v45 = vmul.f32 %v1416_v3, %v605_v44 }
  0xbd   :  { %v1467_v46 = vpop.f32.mrf.mxu3  ;;  %v612_v47 = vpop.f32.mrf.mxu2 }
  0xbe   :  { %v697_v48 = vadd.f32 %v1421_v5, %v668_v45  ;;  %v461_v49 = vpop.f32.mrf.mxu0 }
  0xbf   :  { %v534_v50 = vpop.f32.mrf.mxu1 }
  0xc0   :  { %v722_v51 = vmax.f32 %v697_v48, 0.0  ;;  %v535_v52 = vadd.f32 %v534_v50, %v461_v49 }
  0xc2   :  { %v747_v53 = vpack.c.bf16 %v722_v51, %v722_v51  ;;  %v608_v54 = vadd.f32 %v607_v25, %v535_v52 }
  0xc4   :  { %773 = vst.msk [vmem:[%s1617_s4 + $0xc] sm:$0xf] %vm769_vm1, %v747_v53  ;;  %v669_v55 = vmul.f32 %v1416_v3, %v608_v54 }
  0xc5   :  { %v1475_v56 = vpop.f32.mrf.mxu3  ;;  %v614_v57 = vpop.f32.mrf.mxu2 }
  0xc6   :  { %v698_v58 = vadd.f32 %v1421_v5, %v669_v55  ;;  %v463_v59 = vpop.f32.mrf.mxu0 }
  0xc7   :  { %v536_v60 = vpop.f32.mrf.mxu1 }
  0xc8   :  { %v723_v61 = vmax.f32 %v698_v58, 0.0  ;;  %v537_v62 = vadd.f32 %v536_v60, %v463_v59 }
  0xca   :  { %v748_v63 = vpack.c.bf16 %v723_v61, %v723_v61  ;;  %v610_v0 = vadd.f32 %v609_v37, %v537_v62 }
  0xcc   :  { %774 = vst.msk [vmem:[%s1617_s4 + $0x10] sm:$0xf] %vm769_vm1, %v748_v63  ;;  %v670_v1 = vmul.f32 %v1416_v3, %v610_v0 }
  0xcd   :  { %v513_v2 = vpop.f32.mrf.mxu3  ;;  %v617_v4 = vpop.f32.mrf.mxu2 }
  0xce   :  { %v699_v6 = vadd.f32 %v1421_v5, %v670_v1  ;;  %v466_v7 = vpop.f32.mrf.mxu0 }
  0xcf   :  { %v539_v8 = vpop.f32.mrf.mxu1 }
  0xd0   :  { %v724_v10 = vmax.f32 %v699_v6, 0.0  ;;  %v540_v11 = vadd.f32 %v539_v8, %v466_v7 }
  0xd2   :  { %v749_v12 = vpack.c.bf16 %v724_v10, %v724_v10  ;;  %v613_v13 = vadd.f32 %v612_v47, %v540_v11 }
  0xd4   :  { %775 = vst.msk [vmem:[%s1617_s4 + $0x14] sm:$0xf] %vm769_vm1, %v749_v12  ;;  %v671_v14 = vmul.f32 %v1416_v3, %v613_v13 }
  0xd5   :  { %v574_v15 = vpop.f32.mrf.mxu3  ;;  %v619_v16 = vpop.f32.mrf.mxu2 }
  0xd6   :  { %v700_v17 = vadd.f32 %v1421_v5, %v671_v14  ;;  %v1491_v18 = vadd.f32 %v574_v15, %v1430_v9  ;;  %v468_v19 = vpop.f32.mrf.mxu0 }
  0xd7   :  { %v541_v20 = vpop.f32.mrf.mxu1 }
  0xd8   :  { %v725_v21 = vmax.f32 %v700_v17, 0.0  ;;  %v542_v22 = vadd.f32 %v541_v20, %v468_v19 }
  0xda   :  { %v750_v23 = vpack.c.bf16 %v725_v21, %v725_v21  ;;  %v615_v25 = vadd.f32 %v614_v57, %v542_v22 }
  0xdc   :  { %776 = vst.msk [vmem:[%s1617_s4 + $0x18] sm:$0xf] %vm769_vm1, %v750_v23  ;;  %v672_v26 = vmul.f32 %v1416_v3, %v615_v25 }
  0xdd   :  { %v576_v27 = vpop.f32.mrf.mxu3  ;;  %v622_v28 = vpop.f32.mrf.mxu2 }
  0xde   :  { %v701_v29 = vadd.f32 %v1421_v5, %v672_v26  ;;  %v1500_v9 = vadd.f32 %v576_v27, %v1451_v24  ;;  %v471_v30 = vpop.f32.mrf.mxu0 }
  0xdf   :  { %v544_v31 = vpop.f32.mrf.mxu1 }
  0xe0   :  { %v726_v32 = vmax.f32 %v701_v29, 0.0  ;;  %v545_v33 = vadd.f32 %v544_v31, %v471_v30 }
  0xe2   :  { %v751_v34 = vpack.c.bf16 %v726_v32, %v726_v32  ;;  %v618_v35 = vadd.f32 %v617_v4, %v545_v33 }
  0xe4   :  { %777 = vst.msk [vmem:[%s1617_s4 + $0x1c] sm:$0xf] %vm769_vm1, %v751_v34  ;;  %v673_v37 = vmul.f32 %v1416_v3, %v618_v35 }
  0xe5   :  { %v579_v38 = vpop.f32.mrf.mxu3  ;;  %v624_v39 = vpop.f32.mrf.mxu2 }
  0xe6   :  { %v702_v40 = vadd.f32 %v1421_v5, %v673_v37  ;;  %v473_v41 = vpop.f32.mrf.mxu0  ;;  %v580_v17 = vadd.f32 %v579_v38, %v1459_v36 }
  0xe7   :  { %v546_v24 = vpop.f32.mrf.mxu1 }
  0xe8   :  { %v727_v42 = vmax.f32 %v702_v40, 0.0  ;;  %v547_v43 = vadd.f32 %v546_v24, %v473_v41 }
  0xea   :  { %v752_v44 = vpack.c.bf16 %v727_v42, %v727_v42  ;;  %v620_v45 = vadd.f32 %v619_v16, %v547_v43 }
  0xec   :  { %778 = vst.msk [vmem:[%s1617_s4 + $0x20] sm:$0xf] %vm769_vm1, %v752_v44  ;;  %v674_v47 = vmul.f32 %v1416_v3, %v620_v45 }
  0xed   :  { %v581_v48 = vpop.f32.mrf.mxu3  ;;  %v627_v49 = vpop.f32.mrf.mxu2 }
  0xee   :  { %v703_v50 = vadd.f32 %v1421_v5, %v674_v47  ;;  %v476_v51 = vpop.f32.mrf.mxu0  ;;  %v582_v32 = vadd.f32 %v581_v48, %v1467_v46 }
  0xef   :  { %v549_v52 = vpop.f32.mrf.mxu1 }
  0xf0   :  { %v728_v53 = vmax.f32 %v703_v50, 0.0  ;;  %v550_v54 = vadd.f32 %v549_v52, %v476_v51 }
  0xf2   :  { %v753_v55 = vpack.c.bf16 %v728_v53, %v728_v53  ;;  %v623_v57 = vadd.f32 %v622_v28, %v550_v54 }
  0xf4   :  { %779 = vst.msk [vmem:[%s1617_s4 + $0x24] sm:$0xf] %vm769_vm1, %v753_v55  ;;  %v675_v58 = vmul.f32 %v1416_v3, %v623_v57 }
  0xf5   :  { %v584_v59 = vpop.f32.mrf.mxu3  ;;  %v629_v60 = vpop.f32.mrf.mxu2 }
  0xf6   :  { %v704_v61 = vadd.f32 %v1421_v5, %v675_v58  ;;  %v478_v62 = vpop.f32.mrf.mxu0  ;;  %v585_v48 = vadd.f32 %v584_v59, %v1475_v56 }
  0xf7   :  { %v551_v63 = vpop.f32.mrf.mxu1 }
  0xf8   :  { %v729_v0 = vmax.f32 %v704_v61, 0.0  ;;  %v552_v1 = vadd.f32 %v551_v63, %v478_v62 }
  0xfa   :  { %v754_v2 = vpack.c.bf16 %v729_v0, %v729_v0  ;;  %v625_v4 = vadd.f32 %v624_v39, %v552_v1 }
  0xfc   :  { %780 = vst.msk [vmem:[%s1617_s4 + $0x28] sm:$0xf] %vm769_vm1, %v754_v2  ;;  %v676_v6 = vmul.f32 %v1416_v3, %v625_v4 }
  0xfd   :  { %v586_v7 = vpop.f32.mrf.mxu3  ;;  %v632_v8 = vpop.f32.mrf.mxu2 }
  0xfe   :  { %v705_v10 = vadd.f32 %v1421_v5, %v676_v6  ;;  %v481_v11 = vpop.f32.mrf.mxu0 }
  0xff   :  { %v554_v12 = vpop.f32.mrf.mxu1 }
 0x100   :  { %v730_v13 = vmax.f32 %v705_v10, 0.0  ;;  %v555_v14 = vadd.f32 %v554_v12, %v481_v11 }
 0x102   :  { %v755_v15 = vpack.c.bf16 %v730_v13, %v730_v13  ;;  %v628_v16 = vadd.f32 %v627_v49, %v555_v14 }
 0x104   :  { %781 = vst.msk [vmem:[%s1617_s4 + $0x2c] sm:$0xf] %vm769_vm1, %v755_v15  ;;  %v677_v19 = vmul.f32 %v1416_v3, %v628_v16 }
 0x105   :  { %v634_v20 = vpop.f32.mrf.mxu2  ;;  %v652_v21 = vpop.f32.mrf.mxu3 }
 0x106   :  { %v706_v22 = vadd.f32 %v1421_v5, %v677_v19  ;;  %v653_v23 = vadd.f32 %v652_v21, %v580_v17  ;;  %v483_v25 = vpop.f32.mrf.mxu0 }
 0x107   :  { %v556_v26 = vpop.f32.mrf.mxu1 }
 0x108   :  { %v731_v27 = vmax.f32 %v706_v22, 0.0  ;;  %v687_v28 = vmul.f32 %v1416_v3, %v653_v23  ;;  %v557_v29 = vadd.f32 %v556_v26, %v483_v25 }
 0x10a   :  { %v756_v30 = vpack.c.bf16 %v731_v27, %v731_v27  ;;  %v716_v36 = vadd.f32 %v1421_v5, %v687_v28  ;;  %v630_v31 = vadd.f32 %v629_v60, %v557_v29 }
 0x10c   :  { %782 = vst.msk [vmem:[%s1617_s4 + $0x30] sm:$0xf] %vm769_vm1, %v756_v30  ;;  %v741_v33 = vmax.f32 %v716_v36, 0.0  ;;  %v678_v34 = vmul.f32 %v1416_v3, %v630_v31 }
 0x10d   :  { %v637_v35 = vpop.f32.mrf.mxu2  ;;  %v654_v37 = vpop.f32.mrf.mxu3 }
 0x10e   :  { %v766_v38 = vpack.c.bf16 %v741_v33, %v741_v33  ;;  %v707_v39 = vadd.f32 %v1421_v5, %v678_v34  ;;  %v655_v40 = vadd.f32 %v654_v37, %v582_v32  ;;  %v486_v41 = vpop.f32.mrf.mxu0 }
 0x10f   :  { %v559_v24 = vpop.f32.mrf.mxu1 }
 0x110   :  { %792 = vst.msk [vmem:[%s1617_s4 + $0x58] sm:$0xf] %vm769_vm1, %v766_v38  ;;  %v732_v46 = vmax.f32 %v707_v39, 0.0  ;;  %v688_v42 = vmul.f32 %v1416_v3, %v655_v40  ;;  %v560_v43 = vadd.f32 %v559_v24, %v486_v41 }
 0x112   :  { %v757_v44 = vpack.c.bf16 %v732_v46, %v732_v46  ;;  %v717_v45 = vadd.f32 %v1421_v5, %v688_v42  ;;  %v633_v47 = vadd.f32 %v632_v8, %v560_v43 }
 0x114   :  { %783 = vst.msk [vmem:[%s1617_s4 + $0x34] sm:$0xf] %vm769_vm1, %v757_v44  ;;  %v742_v49 = vmax.f32 %v717_v45, 0.0  ;;  %v679_v50 = vmul.f32 %v1416_v3, %v633_v47 }
 0x115   :  { %v639_v51 = vpop.f32.mrf.mxu2  ;;  %v657_v52 = vpop.f32.mrf.mxu3 }
 0x116   :  { %v767_v53 = vpack.c.bf16 %v742_v49, %v742_v49  ;;  %v708_v54 = vadd.f32 %v1421_v5, %v679_v50  ;;  %v658_v55 = vadd.f32 %v657_v52, %v585_v48  ;;  %v488_v57 = vpop.f32.mrf.mxu0 }
 0x117   :  { %v561_v58 = vpop.f32.mrf.mxu1 }
 0x118   :  { %793 = vst.msk [vmem:[%s1617_s4 + $0x5c] sm:$0xf] %vm769_vm1, %v767_v53  ;;  %v733_v56 = vmax.f32 %v708_v54, 0.0  ;;  %v689_v59 = vmul.f32 %v1416_v3, %v658_v55  ;;  %v562_v60 = vadd.f32 %v561_v58, %v488_v57 }
 0x11a   :  { %v758_v61 = vpack.c.bf16 %v733_v56, %v733_v56  ;;  %v718_v62 = vadd.f32 %v1421_v5, %v689_v59  ;;  %v635_v63 = vadd.f32 %v634_v20, %v562_v60 }
 0x11c   :  { %784 = vst.msk [vmem:[%s1617_s4 + $0x38] sm:$0xf] %vm769_vm1, %v758_v61  ;;  %v743_v0 = vmax.f32 %v718_v62, 0.0  ;;  %v680_v1 = vmul.f32 %v1416_v3, %v635_v63 }
 0x11d   :  { %v642_v2 = vpop.f32.mrf.mxu2  ;;  %v659_v4 = vpop.f32.mrf.mxu3 }
 0x11e   :  { %v768_v6 = vpack.c.bf16 %v743_v0, %v743_v0  ;;  %v709_v7 = vadd.f32 %v1421_v5, %v680_v1  ;;  %v491_v8 = vpop.f32.mrf.mxu0 }
 0x11f   :  { %v564_v10 = vpop.f32.mrf.mxu1 }
 0x120   :  { %794 = vst.msk [vmem:[%s1617_s4 + $0x60] sm:$0xf] %vm769_vm1, %v768_v6  ;;  %v734_v11 = vmax.f32 %v709_v7, 0.0  ;;  %v565_v12 = vadd.f32 %v564_v10, %v491_v8 }
 0x122   :  { %v759_v13 = vpack.c.bf16 %v734_v11, %v734_v11  ;;  %v638_v14 = vadd.f32 %v637_v35, %v565_v12 }
 0x124   :  { %785 = vst.msk [vmem:[%s1617_s4 + $0x3c] sm:$0xf] %vm769_vm1, %v759_v13  ;;  %v681_v15 = vmul.f32 %v1416_v3, %v638_v14 }
 0x125   :  { %v644_v16 = vpop.f32.mrf.mxu2 }
 0x126   :  { %v710_v17 = vadd.f32 %v1421_v5, %v681_v15  ;;  %v493_v19 = vpop.f32.mrf.mxu0 }
 0x127   :  { %v566_v20 = vpop.f32.mrf.mxu1 }
 0x128   :  { %v735_v21 = vmax.f32 %v710_v17, 0.0  ;;  %v567_v22 = vadd.f32 %v566_v20, %v493_v19 }
 0x12a   :  { %v760_v23 = vpack.c.bf16 %v735_v21, %v735_v21  ;;  %v640_v25 = vadd.f32 %v639_v51, %v567_v22 }
 0x12c   :  { %786 = vst.msk [vmem:[%s1617_s4 + $0x40] sm:$0xf] %vm769_vm1, %v760_v23  ;;  %v682_v26 = vmul.f32 %v1416_v3, %v640_v25 }
 0x12d   :  { %v647_v27 = vpop.f32.mrf.mxu2 }
 0x12e   :  { %v711_v28 = vadd.f32 %v1421_v5, %v682_v26  ;;  %v648_v29 = vadd.f32 %v647_v27, %v1491_v18  ;;  %v496_v30 = vpop.f32.mrf.mxu0 }
 0x12f   :  { %v569_v36 = vpop.f32.mrf.mxu1 }
 0x130   :  { %v736_v31 = vmax.f32 %v711_v28, 0.0  ;;  %v685_v32 = vmul.f32 %v1416_v3, %v648_v29  ;;  %v570_v33 = vadd.f32 %v569_v36, %v496_v30 }
 0x132   :  { %v761_v34 = vpack.c.bf16 %v736_v31, %v736_v31  ;;  %v714_v35 = vadd.f32 %v1421_v5, %v685_v32  ;;  %v643_v37 = vadd.f32 %v642_v2, %v570_v33 }
 0x134   :  { %787 = vst.msk [vmem:[%s1617_s4 + $0x44] sm:$0xf] %vm769_vm1, %v761_v34  ;;  %v739_v38 = vmax.f32 %v714_v35, 0.0  ;;  %v683_v39 = vmul.f32 %v1416_v3, %v643_v37 }
 0x135   :  { %v649_v40 = vpop.f32.mrf.mxu2 }
 0x136   :  { %v764_v18 = vpack.c.bf16 %v739_v38, %v739_v38  ;;  %v712_v41 = vadd.f32 %v1421_v5, %v683_v39  ;;  %v650_v24 = vadd.f32 %v649_v40, %v1500_v9  ;;  %v498_v46 = vpop.f32.mrf.mxu0 }
 0x137   :  { %v571_v42 = vpop.f32.mrf.mxu1 }
 0x138   :  { %790 = vst.msk [vmem:[%s1617_s4 + $0x50] sm:$0xf] %vm769_vm1, %v764_v18  ;;  %v737_v43 = vmax.f32 %v712_v41, 0.0  ;;  %v686_v44 = vmul.f32 %v1416_v3, %v650_v24  ;;  %v572_v45 = vadd.f32 %v571_v42, %v498_v46 }
 0x13a   :  { %v762_v47 = vpack.c.bf16 %v737_v43, %v737_v43  ;;  %v715_v48 = vadd.f32 %v1421_v5, %v686_v44  ;;  %v645_v49 = vadd.f32 %v644_v16, %v572_v45 }
 0x13c   :  { %788 = vst.msk [vmem:[%s1617_s4 + $0x48] sm:$0xf] %vm769_vm1, %v762_v47  ;;  %v740_v9 = vmax.f32 %v715_v48, 0.0  ;;  %v684_v50 = vmul.f32 %v1416_v3, %v645_v49 }
 0x13e   :  { %v765_v51 = vpack.c.bf16 %v740_v9, %v740_v9  ;;  %v713_v52 = vadd.f32 %v1421_v5, %v684_v50 }
 0x140   :  { %791 = vst.msk [vmem:[%s1617_s4 + $0x54] sm:$0xf] %vm769_vm1, %v765_v51  ;;  %v738_v53 = vmax.f32 %v713_v52, 0.0 }
 0x142   :  { %v763_v54 = vpack.c.bf16 %v738_v53, %v738_v53 }
 0x144   :  { %789 = vst.msk [vmem:[%s1617_s4 + $0x4c] sm:$0xf] %vm769_vm1, %v763_v54 }

// kernel: cnn_forward.14
= control target key start
LH: loop header
LB: loop body
LE: loop exit
PB: predicated region body
PF: predicated region fallthrough
CT: control target
= control target key end

     0   :  { %s429_s6 = smov 0   ;;  %s466_s0 = inlined_call_operand.vmem [shape: bf16[2,4,2,8,64], index: 0, kind: input, shape index: {}]   ;;  %s467_s1 = inlined_call_operand.vmem [shape: bf16[2,4,4,64], index: 1, kind: output, shape index: {}]  }
   0x1 LB: > { %s352_s7 = sadd.s32 4294967295, %s416_s6   ;;  %p356_p0 = scmp.ge.s32.totalorder %s416_s6, 1  ;;  %s416_s6 = sphi %s429_s6, %s11_s6  }
   0x2   : > { %p87_p1 = scmp.lt.s32.totalorder %s416_s6, 3 }
   0x4   : > { %p88_p2 = pnand %p356_p0, %p87_p1 }
   0x5   : > { %p107_p3 = scmp.lt.s32.totalorder (!%p88_p2), %s352_s7, 1 }
   0x6   : > { %91 = sbr.rel (%p88_p2) target bundleno = 182 (0xb6), region = 24 }
   0xb   : > { %v143_v0 = vlaneseq  ;;  %s469_s7 = smov (!%p107_p3, %s352_s7), 1  ;;  %vm161_vm2 = vcmask 1043456   ;;  %v418_v17 = vmov 0.0   ;;  %vm157_vm3 = vcmask 64512  }
   0xc   : > { %s380_s8 = sshll.u32 %s469_s7, 5  ;;  %s381_s12 = sshll.u32 %s469_s7, 3  ;;  %vm196_vm4 = vcmask 517120  }
   0xd   : > { %v144_v1 = vshrl.u32 %v143_v0, 7  ;;  %v146_v2 = vand.u32 127, %v143_v0  ;;  %s111_s11 = scalar_lea.vmem %s466_s0, %s380_s8  ;;  %s116_s15 = scalar_lea.vmem %s467_s1, %s381_s12 }
   0xe   : > { %v383_v4 = vld [vmem:[%s111_s11] sm:$0xff]   ;;  %v398_v5 = vld [vmem:[%s111_s11 + $0x8] sm:$0xff]   ;;  %v400_v7 = vld [vmem:[%s111_s11 + $0x18] sm:$0xff]  }
   0xf   : > { %v147_v3 = vmul.u32 2, %v144_v1  ;;  %v384_v8 = vunpack.c.l.bf16 %v383_v4  ;;  %v385_v9 = vunpack.c.h.bf16 %v383_v4  ;;  %v388_v10 = vunpack.c.l.bf16 %v398_v5  ;;  %v399_v12 = vld [vmem:[%s111_s11 + $0x10] sm:$0xff]  }
  0x10   : > { %v389_v11 = vunpack.c.h.bf16 %v398_v5  ;;  %v396_v13 = vunpack.c.l.bf16 %v400_v7  ;;  %v397_v14 = vunpack.c.h.bf16 %v400_v7  ;;  %v392_v21 = vunpack.c.l.bf16 %v399_v12 }
  0x11   : > { %vm148_vm0 = vcmp.eq.s32.totalorder %v146_v2, %v147_v3  ;;  %v152_v6 = vadd.s32 1, %v147_v3  ;;  %v135_v15 = vmax.f32 %v384_v8, %v385_v9  ;;  %v393_v22 = vunpack.c.h.bf16 %v399_v12 }
  0x12   : > { %v136_v16 = vmax.f32 %v388_v10, %v389_v11  ;;  %v365_v18 = vsel %vm148_vm0, 1.0, %v418_v17  ;;  %v138_v20 = vmax.f32 %v396_v13, %v397_v14 }
  0x13   : > { %vm153_vm1 = vcmp.eq.s32.totalorder %v146_v2, %v152_v6  ;;  %v139_v23 = vpack.c.bf16 %v135_v15, %v135_v15  ;;  %v137_v26 = vmax.f32 %v392_v21, %v393_v22  ;;  %v151_v29 = vpack.c.bf16 %v365_v18, %v365_v18 }
  0x14   : > { %v366_v19 = vsel %vm153_vm1, 1.0, %v418_v17  ;;  %v140_v24 = vpack.c.bf16 %v136_v16, %v136_v16  ;;  %v142_v25 = vpack.c.bf16 %v138_v20, %v138_v20 }
  0x15   : > { %v163_v27 = vsel %vm161_vm2, %v139_v23, 0  ;;  %v156_v30 = vpack.c.bf16 %v366_v19, %v366_v19  ;;  %v141_v32 = vpack.c.bf16 %v137_v26, %v137_v26 }
  0x16   : > { %v199_v28 = vsel %vm161_vm2, %v140_v24, 0  ;;  %172 = vmatpush.bf16.msra.mxu0 %v163_v27  ;;  %188 = vmatpush.bf16.msra.mxu1 %v163_v27  ;;  %v265_v31 = vsel %vm161_vm2, %v142_v25, 0 }
  0x17   : > { %208 = vmatpush.bf16.msra.mxu2 %v199_v28  ;;  %221 = vmatpush.bf16.msra.mxu3 %v199_v28  ;;  %v232_v33 = vsel %vm161_vm2, %v141_v32, 0 }
  0x19   : > { %367 = vmatmul.msk.bf16.vlgmr.msra.gmra.mxu0 %vm157_vm3, %v151_v29  ;;  %368 = vmatmul.msk.bf16.vlgmr.msra.gmra.mxu1 %vm157_vm3, %v156_v30 }
  0x1a   : > { %369 = vmatmul.msk.bf16.vlgmr.msra.gmra.mxu2 %vm157_vm3, %v151_v29  ;;  %370 = vmatmul.msk.bf16.vlgmr.msra.gmra.mxu3 %vm157_vm3, %v156_v30 }
  0x1b   : > { %274 = vmatpush.bf16.msrb.mxu2 %v265_v31  ;;  %287 = vmatpush.bf16.msrb.mxu3 %v265_v31 }
  0x1c   : > { %241 = vmatpush.bf16.msrb.mxu0 %v232_v33  ;;  %254 = vmatpush.bf16.msrb.mxu1 %v232_v33 }
  0x29   : > { %372 = vmatmul.msk.bf16.vlgmr.msrb.gmra.mxu0 %vm157_vm3, %v151_v29  ;;  %373 = vmatmul.msk.bf16.vlgmr.msrb.gmra.mxu1 %vm157_vm3, %v156_v30 }
  0x2a   : > { %375 = vmatmul.msk.bf16.vlgmr.msrb.gmra.mxu2 %vm157_vm3, %v151_v29  ;;  %376 = vmatmul.msk.bf16.vlgmr.msrb.gmra.mxu3 %vm157_vm3, %v156_v30 }
  0x96   : > { %v174_v34 = vpop.f32.mrf.mxu0  ;;  %v190_v35 = vpop.f32.mrf.mxu1 }
  0x97   : > { %v194_v36 = vmax.f32 %v174_v34, %v190_v35 }
  0x99   : > { %v195_v37 = vpack.c.bf16 %v194_v36, %v194_v36 }
  0x9b   : > { %197 = vst.msk [vmem:[%s116_s15] sm:$0x3] %vm196_vm4, %v195_v37 }
  0x9d   : > { %v210_v38 = vpop.f32.mrf.mxu2  ;;  %v223_v39 = vpop.f32.mrf.mxu3 }
  0x9e   : > { %v227_v40 = vmax.f32 %v210_v38, %v223_v39  ;;  %v176_v41 = vpop.f32.mrf.mxu0  ;;  %v192_v42 = vpop.f32.mrf.mxu1 }
  0xa0   : > { %v228_v43 = vpack.c.bf16 %v227_v40, %v227_v40 }
  0xa2   : > { %371 = vst.msk [vmem:[%s116_s15 + $0x2] sm:$0x3] %vm196_vm4, %v228_v43 }
  0xa5   : > { %v212_v44 = vpop.f32.mrf.mxu2  ;;  %v225_v45 = vpop.f32.mrf.mxu3 }
  0xa6   : > { %v243_v46 = vpop.f32.mrf.mxu0  ;;  %v256_v47 = vpop.f32.mrf.mxu1 }
  0xa7   : > { %v260_v48 = vmax.f32 %v243_v46, %v256_v47 }
  0xa9   : > { %v261_v49 = vpack.c.bf16 %v260_v48, %v260_v48 }
  0xab   : > { %374 = vst.msk [vmem:[%s116_s15 + $0x4] sm:$0x3] %vm196_vm4, %v261_v49 }
  0xad   : > { %v276_v50 = vpop.f32.mrf.mxu2  ;;  %v289_v51 = vpop.f32.mrf.mxu3 }
  0xae   : > { %v293_v52 = vmax.f32 %v276_v50, %v289_v51  ;;  %v245_v53 = vpop.f32.mrf.mxu0  ;;  %v258_v54 = vpop.f32.mrf.mxu1 }
  0xb0   : > { %v294_v55 = vpack.c.bf16 %v293_v52, %v293_v52 }
  0xb2   : > { %377 = vst.msk [vmem:[%s116_s15 + $0x6] sm:$0x3] %vm196_vm4, %v294_v55 }
  0xb5   : > { %v278_v56 = vpop.f32.mrf.mxu2  ;;  %v291_v57 = vpop.f32.mrf.mxu3 }
  0xb6 PF: > { %s11_s6 = sadd.s32 1, %s416_s6  }
  0xb7   : > { %p8_p4 = scmp.ge.s32.totalorder %s11_s6, 4  }
  0xb9   :  { %10 = sbr.rel (!%p8_p4) target bundleno = 1 (0x1), region = 58 }

// kernel: cnn_forward.13
= control target key start
LH: loop header
LB: loop body
LE: loop exit
PB: predicated region body
PF: predicated region fallthrough
CT: control target
= control target key end

     0   :  { %vm554_vm0 = vcmask 523264   ;;  %vm896_vm1 = vcmask 519168   ;;  %s1854_s1 = inlined_call_operand.vmem [shape: bf16[576,64], index: 1, kind: input, shape index: {}]   ;;  %s1855_s0 = inlined_call_operand.vmem [shape: bf16[128,576], index: 0, kind: input, shape index: {}]   ;;  %s1856_s2 = inlined_call_operand.vmem [shape: f32[1,64], index: 2, kind: input, shape index: {}]   ;;  %s1857_s3 = inlined_call_operand.vmem [shape: f32[1,64], index: 3, kind: input, shape index: {}]   ;;  %s1858_s4 = inlined_call_operand.vmem [shape: bf16[128,64], index: 4, kind: output, shape index: {}]  }
   0x1   :  { %v1276_v0 = vld [vmem:[%s1854_s1 + $0x38] sm:$0xff]  ;;  %v1275_v1 = vld [vmem:[%s1854_s1 + $0x30] sm:$0xff]  ;;  %v1274_v2 = vld [vmem:[%s1854_s1 + $0x28] sm:$0xff] }
   0x2   :  { %1305 = vmatpush.bf16.msra.mxu1 %v1276_v0  ;;  %1306 = vmatpush.bf16.msra.mxu2 %v1276_v0  ;;  %v1273_v3 = vld [vmem:[%s1854_s1 + $0x20] sm:$0xff]  ;;  %v1272_v4 = vld [vmem:[%s1854_s1 + $0x18] sm:$0xff]  ;;  %v1271_v5 = vld [vmem:[%s1854_s1 + $0x10] sm:$0xff] }
   0x3   :  { %1307 = vmatpush.bf16.msra.mxu3 %v1276_v0  ;;  %579 = vmatpush.bf16.msra.mxu0 %v1276_v0  ;;  %v1270_v6 = vld [vmem:[%s1854_s1 + $0x8] sm:$0xff]  ;;  %v1269_v7 = vld [vmem:[%s1854_s1] sm:$0xff]  ;;  %v959_v8 = vld [vmem:[%s1855_s0 + $0x50] sm:$0xf] }
   0x4   :  { %v1241_v9 = vld [vmem:[%s1855_s0 + $0x60] sm:$0xf0]  ;;  %v999_v10 = vld [vmem:[%s1855_s0 + $0xa0] sm:$0xf]  ;;  %v1251_v11 = vld [vmem:[%s1855_s0 + $0xb0] sm:$0xf0] }
   0x5   :  { %v1039_v12 = vld [vmem:[%s1855_s0 + $0xf0] sm:$0xf]  ;;  %v1261_v13 = vld [vmem:[%s1855_s0 + $0x100] sm:$0xf0]  ;;  %v919_v14 = vld [vmem:[%s1855_s0] sm:$0xf]  ;;  %v960_v18 = vor.u32 %v1241_v9, %v959_v8  ;;  %v1000_v19 = vor.u32 %v1251_v11, %v999_v10 }
   0x6   :  { %1308 = vmatpush.bf16.msra.mxu1 %v1275_v1  ;;  %1309 = vmatpush.bf16.msra.mxu2 %v1275_v1  ;;  %v1231_v15 = vld [vmem:[%s1855_s0 + $0x10] sm:$0xf0]  ;;  %v1292_v16 = vld [vmem:[%s1854_s1 + $0xb8] sm:$0xff]  ;;  %v1040_v20 = vor.u32 %v1261_v13, %v1039_v12  ;;  %v1290_v28 = vld [vmem:[%s1854_s1 + $0xa8] sm:$0xff] }
   0x7   :  { %1310 = vmatpush.bf16.msra.mxu3 %v1275_v1  ;;  %580 = vmatpush.bf16.msra.mxu0 %v1275_v1  ;;  %v1284_v17 = vld [vmem:[%s1854_s1 + $0x78] sm:$0xff]  ;;  %v920_v21 = vor.u32 %v1231_v15, %v919_v14  ;;  %v1291_v24 = vld [vmem:[%s1854_s1 + $0xb0] sm:$0xff]  ;;  %v1282_v29 = vld [vmem:[%s1854_s1 + $0x68] sm:$0xff] }
   0x8   :  { %v1300_v22 = vld [vmem:[%s1854_s1 + $0xf8] sm:$0xff]  ;;  %v1283_v25 = vld [vmem:[%s1854_s1 + $0x70] sm:$0xff]  ;;  %v1298_v30 = vld [vmem:[%s1854_s1 + $0xe8] sm:$0xff] }
   0x9   :  { %v1304_v23 = vld [vmem:[%s1854_s1 + $0x118] sm:$0xff]  ;;  %v1299_v26 = vld [vmem:[%s1854_s1 + $0xf0] sm:$0xff]  ;;  %v1302_v31 = vld [vmem:[%s1854_s1 + $0x108] sm:$0xff] }
   0xa   :  { %1311 = vmatpush.bf16.msra.mxu1 %v1274_v2  ;;  %1312 = vmatpush.bf16.msra.mxu2 %v1274_v2  ;;  %v1303_v27 = vld [vmem:[%s1854_s1 + $0x110] sm:$0xff]  ;;  %v1289_v32 = vld [vmem:[%s1854_s1 + $0xa0] sm:$0xff]  ;;  %v979_v35 = vld [vmem:[%s1855_s0 + $0x78] sm:$0xf] }
   0xb   :  { %1313 = vmatpush.bf16.msra.mxu3 %v1274_v2  ;;  %581 = vmatpush.bf16.msra.mxu0 %v1274_v2  ;;  %v1281_v33 = vld [vmem:[%s1854_s1 + $0x60] sm:$0xff]  ;;  %v1246_v36 = vld [vmem:[%s1855_s0 + $0x88] sm:$0xf0]  ;;  %v1019_v37 = vld [vmem:[%s1855_s0 + $0xc8] sm:$0xf] }
   0xc   :  { %v1297_v34 = vld [vmem:[%s1854_s1 + $0xe0] sm:$0xff]  ;;  %v1256_v38 = vld [vmem:[%s1855_s0 + $0xd8] sm:$0xf0]  ;;  %v1059_v39 = vld [vmem:[%s1855_s0 + $0x118] sm:$0xf]  ;;  %v980_v46 = vor.u32 %v1246_v36, %v979_v35 }
   0xd   :  { %v1266_v40 = vld [vmem:[%s1855_s0 + $0x128] sm:$0xf0]  ;;  %v939_v41 = vld [vmem:[%s1855_s0 + $0x28] sm:$0xf]  ;;  %v1236_v42 = vld [vmem:[%s1855_s0 + $0x38] sm:$0xf0]  ;;  %v1020_v47 = vor.u32 %v1256_v38, %v1019_v37 }
   0xe   :  { %1314 = vmatpush.bf16.msra.mxu1 %v1273_v3  ;;  %1315 = vmatpush.bf16.msra.mxu2 %v1273_v3  ;;  %v1301_v43 = vld [vmem:[%s1854_s1 + $0x100] sm:$0xff]  ;;  %v1288_v44 = vld [vmem:[%s1854_s1 + $0x98] sm:$0xff]  ;;  %v1060_v48 = vor.u32 %v1266_v40, %v1059_v39  ;;  %v940_v49 = vor.u32 %v1236_v42, %v939_v41  ;;  %v1287_v51 = vld [vmem:[%s1854_s1 + $0x90] sm:$0xff] }
   0xf   :  { %1316 = vmatpush.bf16.msra.mxu3 %v1273_v3  ;;  %582 = vmatpush.bf16.msra.mxu0 %v1273_v3  ;;  %v1280_v45 = vld [vmem:[%s1854_s1 + $0x58] sm:$0xff]  ;;  %v1279_v52 = vld [vmem:[%s1854_s1 + $0x50] sm:$0xff]  ;;  %v1286_v54 = vld [vmem:[%s1854_s1 + $0x88] sm:$0xff] }
  0x10   :  { %v1296_v50 = vld [vmem:[%s1854_s1 + $0xd8] sm:$0xff]  ;;  %v1295_v53 = vld [vmem:[%s1854_s1 + $0xd0] sm:$0xff]  ;;  %v1278_v55 = vld [vmem:[%s1854_s1 + $0x48] sm:$0xff] }
  0x11   :  { %v1294_v56 = vld [vmem:[%s1854_s1 + $0xc8] sm:$0xff]  ;;  %v1285_v57 = vld [vmem:[%s1854_s1 + $0x80] sm:$0xff]  ;;  %v921_v61 = vld [vmem:[%s1855_s0 + $0x14] sm:$0xf0] }
  0x12   :  { %1317 = vmatpush.bf16.msra.mxu1 %v1272_v4  ;;  %1318 = vmatpush.bf16.msra.mxu2 %v1272_v4  ;;  %v1277_v58 = vld [vmem:[%s1854_s1 + $0x40] sm:$0xff]  ;;  %v927_v62 = vld [vmem:[%s1855_s0 + $0x8] sm:$0xf]  ;;  %v1232_v63 = vld [vmem:[%s1855_s0 + $0x18] sm:$0xf0] }
  0x13   :  { %1319 = vmatpush.bf16.msra.mxu3 %v1272_v4  ;;  %583 = vmatpush.bf16.msra.mxu0 %v1272_v4  ;;  %v1293_v59 = vld [vmem:[%s1854_s1 + $0xc0] sm:$0xff]  ;;  %v1230_v0 = vld [vmem:[%s1855_s0 + $0xc] sm:$0xf]  ;;  %v935_v2 = vld [vmem:[%s1855_s0 + $0x10] sm:$0xf] }
  0x14   :  { %v1229_v60 = vld [vmem:[%s1855_s0 + $0x4] sm:$0xf]  ;;  %v929_v1 = vld [vmem:[%s1855_s0 + $0x1c] sm:$0xf0]  ;;  %v1234_v8 = vld [vmem:[%s1855_s0 + $0x2c] sm:$0xf] }
  0x15   :  { %v1233_v3 = vld [vmem:[%s1855_s0 + $0x20] sm:$0xf0]  ;;  %v924_v4 = vor.u32 %v1229_v60, %v921_v61  ;;  %v941_v9 = vld [vmem:[%s1855_s0 + $0x3c] sm:$0xf0]  ;;  %v947_v10 = vld [vmem:[%s1855_s0 + $0x30] sm:$0xf] }
  0x16   :  { %1320 = vmatpush.bf16.msra.mxu1 %v1271_v5  ;;  %1321 = vmatpush.bf16.msra.mxu2 %v1271_v5  ;;  %v1237_v11 = vld [vmem:[%s1855_s0 + $0x40] sm:$0xf0]  ;;  %v1235_v12 = vld [vmem:[%s1855_s0 + $0x34] sm:$0xf]  ;;  %v949_v13 = vld [vmem:[%s1855_s0 + $0x44] sm:$0xf0] }
  0x17   :  { %1322 = vmatpush.bf16.msra.mxu3 %v1271_v5  ;;  %584 = vmatpush.bf16.msra.mxu0 %v1271_v5  ;;  %v928_v5 = vor.u32 %v1232_v63, %v927_v62  ;;  %v955_v14 = vld [vmem:[%s1855_s0 + $0x38] sm:$0xf]  ;;  %v1238_v15 = vld [vmem:[%s1855_s0 + $0x48] sm:$0xf0]  ;;  %v1247_v35 = vld [vmem:[%s1855_s0 + $0x90] sm:$0xf0] }
  0x18   :  { %v1245_v36 = vld [vmem:[%s1855_s0 + $0x84] sm:$0xf]  ;;  %v989_v37 = vld [vmem:[%s1855_s0 + $0x94] sm:$0xf0]  ;;  %v995_v38 = vld [vmem:[%s1855_s0 + $0x88] sm:$0xf] }
  0x19   :  { %v1248_v39 = vld [vmem:[%s1855_s0 + $0x98] sm:$0xf0]  ;;  %v992_v42 = vor.u32 %v1245_v36, %v989_v37  ;;  %v1255_v60 = vld [vmem:[%s1855_s0 + $0xd4] sm:$0xf]  ;;  %v1029_v61 = vld [vmem:[%s1855_s0 + $0xe4] sm:$0xf0] }
  0x1a   :  { %1323 = vmatpush.bf16.msra.mxu1 %v1270_v6  ;;  %1324 = vmatpush.bf16.msra.mxu2 %v1270_v6  ;;  %v1035_v62 = vld [vmem:[%s1855_s0 + $0xd8] sm:$0xf]  ;;  %v1258_v63 = vld [vmem:[%s1855_s0 + $0xe8] sm:$0xf0] }
  0x1b   :  { %1325 = vmatpush.bf16.msra.mxu3 %v1270_v6  ;;  %585 = vmatpush.bf16.msra.mxu0 %v1270_v6  ;;  %v932_v6 = vor.u32 %v1230_v0, %v929_v1 }
  0x1e   :  { %1326 = vmatpush.bf16.msra.mxu1 %v1269_v7  ;;  %1327 = vmatpush.bf16.msra.mxu2 %v1269_v7 }
  0x1f   :  { %1328 = vmatpush.bf16.msra.mxu3 %v1269_v7  ;;  %586 = vmatpush.bf16.msra.mxu0 %v1269_v7  ;;  %v936_v7 = vor.u32 %v1233_v3, %v935_v2  ;;  %v1032_v2 = vor.u32 %v1255_v60, %v1029_v61  ;;  %v1036_v3 = vor.u32 %v1258_v63, %v1035_v62 }
  0x21   :  { %597 = vmatmul.bf16.vlgmr.msra.gmra.mxu1 %v960_v18  ;;  %607 = vmatmul.bf16.vlgmr.msra.gmra.mxu2 %v1000_v19  ;;  %v952_v18 = vor.u32 %v1235_v12, %v949_v13  ;;  %v956_v19 = vor.u32 %v1238_v15, %v955_v14 }
  0x22   :  { %677 = vmatpush.bf16.msrb.mxu2 %v1292_v16  ;;  %628 = vmatpush.bf16.msrb.mxu1 %v1284_v17  ;;  %v944_v16 = vor.u32 %v1234_v8, %v941_v9  ;;  %v948_v17 = vor.u32 %v1237_v11, %v947_v10  ;;  %v1260_v8 = vld [vmem:[%s1855_s0 + $0xfc] sm:$0xf]  ;;  %v1049_v9 = vld [vmem:[%s1855_s0 + $0x10c] sm:$0xf0]  ;;  %v1055_v10 = vld [vmem:[%s1855_s0 + $0x100] sm:$0xf] }
  0x23   :  { %617 = vmatmul.bf16.vlgmr.msra.gmra.mxu3 %v1040_v20  ;;  %587 = vmatmul.bf16.vlgmr.msra.gmra.mxu0 %v920_v21  ;;  %v1239_v20 = vld [vmem:[%s1855_s0 + $0x54] sm:$0xf]  ;;  %v961_v21 = vld [vmem:[%s1855_s0 + $0x64] sm:$0xf0]  ;;  %v1052_v15 = vor.u32 %v1260_v8, %v1049_v9 }
  0x24   :  { %726 = vmatpush.bf16.msrb.mxu3 %v1300_v22  ;;  %779 = vmatpush.bf16.msrb.mxu0 %v1304_v23  ;;  %v967_v22 = vld [vmem:[%s1855_s0 + $0x58] sm:$0xf]  ;;  %v1242_v23 = vld [vmem:[%s1855_s0 + $0x68] sm:$0xf0]  ;;  %v1263_v11 = vld [vmem:[%s1855_s0 + $0x110] sm:$0xf0] }
  0x26   :  { %678 = vmatpush.bf16.msrb.mxu2 %v1291_v24  ;;  %629 = vmatpush.bf16.msrb.mxu1 %v1283_v25  ;;  %v1240_v24 = vld [vmem:[%s1855_s0 + $0x5c] sm:$0xf]  ;;  %v969_v25 = vld [vmem:[%s1855_s0 + $0x6c] sm:$0xf0] }
  0x28   :  { %727 = vmatpush.bf16.msrb.mxu3 %v1299_v26  ;;  %780 = vmatpush.bf16.msrb.mxu0 %v1303_v27  ;;  %v975_v26 = vld [vmem:[%s1855_s0 + $0x60] sm:$0xf]  ;;  %v1243_v27 = vld [vmem:[%s1855_s0 + $0x70] sm:$0xf0] }
  0x2a   :  { %679 = vmatpush.bf16.msrb.mxu2 %v1290_v28  ;;  %630 = vmatpush.bf16.msrb.mxu1 %v1282_v29  ;;  %v964_v28 = vor.u32 %v1239_v20, %v961_v21  ;;  %v968_v29 = vor.u32 %v1242_v23, %v967_v22  ;;  %v1264_v22 = vld [vmem:[%s1855_s0 + $0x11c] sm:$0xf]  ;;  %v1061_v23 = vld [vmem:[%s1855_s0 + $0x12c] sm:$0xf0] }
  0x2c   :  { %728 = vmatpush.bf16.msrb.mxu3 %v1298_v30  ;;  %781 = vmatpush.bf16.msrb.mxu0 %v1302_v31  ;;  %v972_v30 = vor.u32 %v1240_v24, %v969_v25  ;;  %v976_v31 = vor.u32 %v1243_v27, %v975_v26  ;;  %v1067_v24 = vld [vmem:[%s1855_s0 + $0x120] sm:$0xf]  ;;  %v1267_v25 = vld [vmem:[%s1855_s0 + $0x130] sm:$0xf0]  ;;  %v1265_v26 = vld [vmem:[%s1855_s0 + $0x124] sm:$0xf] }
  0x2d   :  { %v1069_v27 = vld [vmem:[%s1855_s0 + $0x134] sm:$0xf0] }
  0x2e   :  { %680 = vmatpush.bf16.msrb.mxu2 %v1289_v32  ;;  %631 = vmatpush.bf16.msrb.mxu1 %v1281_v33  ;;  %v1244_v32 = vld [vmem:[%s1855_s0 + $0x7c] sm:$0xf]  ;;  %v981_v33 = vld [vmem:[%s1855_s0 + $0x8c] sm:$0xf0] }
  0x2f   :  { %v984_v40 = vor.u32 %v1244_v32, %v981_v33  ;;  %v1064_v32 = vor.u32 %v1264_v22, %v1061_v23  ;;  %v1068_v33 = vor.u32 %v1267_v25, %v1067_v24 }
  0x30   :  { %729 = vmatpush.bf16.msrb.mxu3 %v1297_v34  ;;  %782 = vmatpush.bf16.msrb.mxu0 %v1301_v43  ;;  %v987_v34 = vld [vmem:[%s1855_s0 + $0x80] sm:$0xf]  ;;  %v996_v43 = vor.u32 %v1248_v39, %v995_v38 }
  0x31   :  { %602 = vmatmul.bf16.gmra.mxu1 %v980_v46  ;;  %612 = vmatmul.bf16.gmra.mxu2 %v1020_v47  ;;  %v988_v41 = vor.u32 %v1247_v35, %v987_v34  ;;  %v1007_v46 = vld [vmem:[%s1855_s0 + $0xa8] sm:$0xf]  ;;  %v1252_v47 = vld [vmem:[%s1855_s0 + $0xb8] sm:$0xf0]  ;;  %v1072_v35 = vor.u32 %v1265_v26, %v1069_v27 }
  0x32   :  { %681 = vmatpush.bf16.msrb.mxu2 %v1288_v44  ;;  %632 = vmatpush.bf16.msrb.mxu1 %v1280_v45  ;;  %v1249_v44 = vld [vmem:[%s1855_s0 + $0xa4] sm:$0xf]  ;;  %v1001_v45 = vld [vmem:[%s1855_s0 + $0xb4] sm:$0xf0] }
  0x33   :  { %622 = vmatmul.bf16.gmra.mxu3 %v1060_v48  ;;  %592 = vmatmul.bf16.gmra.mxu0 %v940_v49  ;;  %v1250_v48 = vld [vmem:[%s1855_s0 + $0xac] sm:$0xf]  ;;  %v1009_v49 = vld [vmem:[%s1855_s0 + $0xbc] sm:$0xf0] }
  0x34   :  { %730 = vmatpush.bf16.msrb.mxu3 %v1296_v50  ;;  %v1015_v50 = vld [vmem:[%s1855_s0 + $0xb0] sm:$0xf] }
  0x36   :  { %682 = vmatpush.bf16.msrb.mxu2 %v1287_v51  ;;  %633 = vmatpush.bf16.msrb.mxu1 %v1279_v52  ;;  %v1253_v51 = vld [vmem:[%s1855_s0 + $0xc0] sm:$0xf0]  ;;  %v1004_v52 = vor.u32 %v1249_v44, %v1001_v45 }
  0x38   :  { %731 = vmatpush.bf16.msrb.mxu3 %v1295_v53  ;;  %v1008_v53 = vor.u32 %v1252_v47, %v1007_v46 }
  0x3a   :  { %683 = vmatpush.bf16.msrb.mxu2 %v1286_v54  ;;  %634 = vmatpush.bf16.msrb.mxu1 %v1278_v55  ;;  %v1012_v54 = vor.u32 %v1250_v48, %v1009_v49  ;;  %v1016_v55 = vor.u32 %v1253_v51, %v1015_v50 }
  0x3c   :  { %732 = vmatpush.bf16.msrb.mxu3 %v1294_v56  ;;  %v1254_v56 = vld [vmem:[%s1855_s0 + $0xcc] sm:$0xf] }
  0x3e   :  { %684 = vmatpush.bf16.msrb.mxu2 %v1285_v57  ;;  %635 = vmatpush.bf16.msrb.mxu1 %v1277_v58  ;;  %v1021_v57 = vld [vmem:[%s1855_s0 + $0xdc] sm:$0xf0]  ;;  %v1027_v58 = vld [vmem:[%s1855_s0 + $0xd0] sm:$0xf] }
  0x3f   :  { %v1024_v0 = vor.u32 %v1254_v56, %v1021_v57 }
  0x40   :  { %733 = vmatpush.bf16.msrb.mxu3 %v1293_v59  ;;  %v1257_v59 = vld [vmem:[%s1855_s0 + $0xe0] sm:$0xf0] }
  0x41   :  { %636 = vmatmul.bf16.vlgmr.msrb.gmra.mxu1 %v924_v4  ;;  %685 = vmatmul.bf16.vlgmr.msrb.gmra.mxu2 %v928_v5  ;;  %v1028_v1 = vor.u32 %v1257_v59, %v1027_v58  ;;  %v1259_v4 = vld [vmem:[%s1855_s0 + $0xf4] sm:$0xf]  ;;  %v1041_v5 = vld [vmem:[%s1855_s0 + $0x104] sm:$0xf0] }
  0x42   :  { %v1044_v12 = vor.u32 %v1259_v4, %v1041_v5 }
  0x43   :  { %734 = vmatmul.bf16.vlgmr.msrb.gmra.mxu3 %v932_v6  ;;  %1221 = vmatmul.msk.bf16.vlgmr.msrb.gmra.mxu0 %vm554_vm0, %v936_v7  ;;  %v1047_v6 = vld [vmem:[%s1855_s0 + $0xf8] sm:$0xf]  ;;  %v1262_v7 = vld [vmem:[%s1855_s0 + $0x108] sm:$0xf0] }
  0x44   :  { %v1048_v13 = vor.u32 %v1262_v7, %v1047_v6 }
  0x51   :  { %641 = vmatmul.bf16.gmra.mxu1 %v944_v16  ;;  %690 = vmatmul.bf16.gmra.mxu2 %v948_v17  ;;  %v1056_v16 = vor.u32 %v1263_v11, %v1055_v10 }
  0x53   :  { %739 = vmatmul.bf16.gmra.mxu3 %v952_v18  ;;  %1222 = vmatmul.msk.bf16.gmra.mxu0 %vm554_vm0, %v956_v19 }
  0x61   :  { %646 = vmatmul.bf16.gmra.mxu1 %v964_v28  ;;  %695 = vmatmul.bf16.gmra.mxu2 %v968_v29  ;;  %v1075_v28 = vld [vmem:[%s1855_s0 + $0x128] sm:$0xf]  ;;  %v1268_v29 = vld [vmem:[%s1855_s0 + $0x138] sm:$0xf0] }
  0x62   :  { %v1076_v36 = vor.u32 %v1268_v29, %v1075_v28 }
  0x63   :  { %744 = vmatmul.bf16.gmra.mxu3 %v972_v30  ;;  %1223 = vmatmul.msk.bf16.gmra.mxu0 %vm554_vm0, %v976_v31 }
  0x71   :  { %651 = vmatmul.bf16.gmra.mxu1 %v984_v40  ;;  %700 = vmatmul.bf16.gmra.mxu2 %v988_v41 }
  0x73   :  { %749 = vmatmul.bf16.gmra.mxu3 %v992_v42  ;;  %1224 = vmatmul.msk.bf16.gmra.mxu0 %vm554_vm0, %v996_v43 }
  0x81   :  { %656 = vmatmul.bf16.gmra.mxu1 %v1004_v52  ;;  %705 = vmatmul.bf16.gmra.mxu2 %v1008_v53  ;;  %v1739_v52 = vld [vmem:[%s1856_s2] ss:$0 sm:$0xff] }
  0x83   :  { %754 = vmatmul.bf16.gmra.mxu3 %v1012_v54  ;;  %1225 = vmatmul.msk.bf16.gmra.mxu0 %vm554_vm0, %v1016_v55  ;;  %v1744_v55 = vld [vmem:[%s1857_s3] ss:$0 sm:$0xff] }
  0x91   :  { %661 = vmatmul.bf16.gmra.mxu1 %v1024_v0  ;;  %710 = vmatmul.bf16.gmra.mxu2 %v1028_v1 }
  0x93   :  { %759 = vmatmul.bf16.gmra.mxu3 %v1032_v2  ;;  %1226 = vmatmul.msk.bf16.gmra.mxu0 %vm554_vm0, %v1036_v3 }
  0x9e   :  { %v1686_v14 = vpop.f32.mrf.mxu1 }
  0xa0   :  { %v588_v17 = vpop.f32.mrf.mxu0 }
  0xa1   :  { %666 = vmatmul.bf16.gmra.mxu1 %v1044_v12  ;;  %715 = vmatmul.bf16.gmra.mxu2 %v1048_v13 }
  0xa3   :  { %764 = vmatmul.bf16.gmra.mxu3 %v1052_v15  ;;  %1227 = vmatmul.msk.bf16.gmra.mxu0 %vm554_vm0, %v1056_v16 }
  0xa4   :  { %v1689_v18 = vpop.f32.mrf.mxu2 }
  0xa6   :  { %v1691_v19 = vpop.f32.mrf.mxu3  ;;  %v1693_v20 = vpop.f32.mrf.mxu1 }
  0xa8   :  { %v590_v21 = vpop.f32.mrf.mxu0 }
  0xac   :  { %v1719_v30 = vpop.f32.mrf.mxu2 }
  0xae   :  { %v1721_v31 = vpop.f32.mrf.mxu3  ;;  %v1723_v34 = vpop.f32.mrf.mxu1 }
  0xb0   :  { %v593_v37 = vpop.f32.mrf.mxu0 }
  0xb1   :  { %671 = vmatmul.bf16.gmra.mxu1 %v1064_v32  ;;  %720 = vmatmul.bf16.gmra.mxu2 %v1068_v33 }
  0xb3   :  { %769 = vmatmul.bf16.gmra.mxu3 %v1072_v35  ;;  %1228 = vmatmul.msk.bf16.gmra.mxu0 %vm554_vm0, %v1076_v36 }
  0xb4   :  { %v1726_v38 = vpop.f32.mrf.mxu2 }
  0xb6   :  { %v1728_v39 = vpop.f32.mrf.mxu3  ;;  %v1730_v40 = vpop.f32.mrf.mxu1 }
  0xb8   :  { %v595_v41 = vpop.f32.mrf.mxu0 }
  0xbc   :  { %v1732_v42 = vpop.f32.mrf.mxu2 }
  0xbe   :  { %v1734_v43 = vpop.f32.mrf.mxu3  ;;  %v637_v44 = vpop.f32.mrf.mxu1 }
  0xbf   :  { %v638_v46 = vadd.f32 %v637_v44, %v588_v17 }
  0xc0   :  { %v784_v45 = vpop.f32.mrf.mxu0 }
  0xc4   :  { %v686_v47 = vpop.f32.mrf.mxu2 }
  0xc5   :  { %v687_v48 = vadd.f32 %v686_v47, %v638_v46 }
  0xc6   :  { %v735_v49 = vpop.f32.mrf.mxu3  ;;  %v639_v50 = vpop.f32.mrf.mxu1 }
  0xc7   :  { %v736_v51 = vadd.f32 %v735_v49, %v687_v48  ;;  %v640_v57 = vadd.f32 %v639_v50, %v590_v21 }
  0xc8   :  { %v786_v53 = vpop.f32.mrf.mxu0 }
  0xc9   :  { %v785_v54 = vadd.f32 %v784_v45, %v736_v51 }
  0xcb   :  { %v828_v56 = vmul.f32 %v1739_v52, %v785_v54 }
  0xcc   :  { %v688_v58 = vpop.f32.mrf.mxu2 }
  0xcd   :  { %v848_v59 = vadd.f32 %v1744_v55, %v828_v56  ;;  %v689_v60 = vadd.f32 %v688_v58, %v640_v57 }
  0xce   :  { %v737_v61 = vpop.f32.mrf.mxu3  ;;  %v642_v62 = vpop.f32.mrf.mxu1 }
  0xcf   :  { %v864_v63 = vmax.f32 %v848_v59, 0.0  ;;  %v738_v0 = vadd.f32 %v737_v61, %v689_v60  ;;  %v643_v5 = vadd.f32 %v642_v62, %v593_v37 }
  0xd0   :  { %v789_v1 = vpop.f32.mrf.mxu0 }
  0xd1   :  { %v880_v2 = vpack.c.bf16 %v864_v63, %v864_v63  ;;  %v787_v3 = vadd.f32 %v786_v53, %v738_v0 }
  0xd3   :  { %897 = vst.msk [vmem:[%s1858_s4] sm:$0xf] %vm896_vm1, %v880_v2  ;;  %v829_v4 = vmul.f32 %v1739_v52, %v787_v3 }
  0xd4   :  { %v691_v6 = vpop.f32.mrf.mxu2 }
  0xd5   :  { %v849_v7 = vadd.f32 %v1744_v55, %v829_v4  ;;  %v692_v8 = vadd.f32 %v691_v6, %v643_v5 }
  0xd6   :  { %v740_v9 = vpop.f32.mrf.mxu3  ;;  %v644_v10 = vpop.f32.mrf.mxu1 }
  0xd7   :  { %v865_v11 = vmax.f32 %v849_v7, 0.0  ;;  %v741_v12 = vadd.f32 %v740_v9, %v692_v8  ;;  %v645_v21 = vadd.f32 %v644_v10, %v595_v41 }
  0xd8   :  { %v791_v13 = vpop.f32.mrf.mxu0 }
  0xd9   :  { %v881_v15 = vpack.c.bf16 %v865_v11, %v865_v11  ;;  %v790_v16 = vadd.f32 %v789_v1, %v741_v12 }
  0xdb   :  { %898 = vst.msk [vmem:[%s1858_s4 + $0x4] sm:$0xf] %vm896_vm1, %v881_v15  ;;  %v830_v17 = vmul.f32 %v1739_v52, %v790_v16 }
  0xdc   :  { %v693_v22 = vpop.f32.mrf.mxu2 }
  0xdd   :  { %v850_v23 = vadd.f32 %v1744_v55, %v830_v17  ;;  %v694_v24 = vadd.f32 %v693_v22, %v645_v21 }
  0xde   :  { %v742_v25 = vpop.f32.mrf.mxu3  ;;  %v647_v26 = vpop.f32.mrf.mxu1 }
  0xdf   :  { %v866_v27 = vmax.f32 %v850_v23, 0.0  ;;  %v743_v28 = vadd.f32 %v742_v25, %v694_v24  ;;  %v648_v36 = vadd.f32 %v647_v26, %v1686_v14 }
  0xe0   :  { %v794_v29 = vpop.f32.mrf.mxu0 }
  0xe1   :  { %v882_v32 = vpack.c.bf16 %v866_v27, %v866_v27  ;;  %v792_v33 = vadd.f32 %v791_v13, %v743_v28 }
  0xe3   :  { %899 = vst.msk [vmem:[%s1858_s4 + $0x8] sm:$0xf] %vm896_vm1, %v882_v32  ;;  %v831_v35 = vmul.f32 %v1739_v52, %v792_v33 }
  0xe4   :  { %v696_v37 = vpop.f32.mrf.mxu2 }
  0xe5   :  { %v851_v41 = vadd.f32 %v1744_v55, %v831_v35  ;;  %v697_v44 = vadd.f32 %v696_v37, %v648_v36 }
  0xe6   :  { %v745_v45 = vpop.f32.mrf.mxu3  ;;  %v649_v46 = vpop.f32.mrf.mxu1 }
  0xe7   :  { %v867_v47 = vmax.f32 %v851_v41, 0.0  ;;  %v746_v48 = vadd.f32 %v745_v45, %v697_v44  ;;  %v650_v14 = vadd.f32 %v649_v46, %v1693_v20 }
  0xe8   :  { %v796_v49 = vpop.f32.mrf.mxu0 }
  0xe9   :  { %v883_v50 = vpack.c.bf16 %v867_v47, %v867_v47  ;;  %v795_v51 = vadd.f32 %v794_v29, %v746_v48 }
  0xeb   :  { %900 = vst.msk [vmem:[%s1858_s4 + $0xc] sm:$0xf] %vm896_vm1, %v883_v50  ;;  %v832_v53 = vmul.f32 %v1739_v52, %v795_v51 }
  0xec   :  { %v698_v54 = vpop.f32.mrf.mxu2 }
  0xed   :  { %v852_v56 = vadd.f32 %v1744_v55, %v832_v53  ;;  %v699_v57 = vadd.f32 %v698_v54, %v650_v14 }
  0xee   :  { %v747_v58 = vpop.f32.mrf.mxu3  ;;  %v652_v59 = vpop.f32.mrf.mxu1 }
  0xef   :  { %v868_v60 = vmax.f32 %v852_v56, 0.0  ;;  %v748_v61 = vadd.f32 %v747_v58, %v699_v57  ;;  %v653_v20 = vadd.f32 %v652_v59, %v1723_v34 }
  0xf0   :  { %v799_v62 = vpop.f32.mrf.mxu0 }
  0xf1   :  { %v884_v63 = vpack.c.bf16 %v868_v60, %v868_v60  ;;  %v797_v0 = vadd.f32 %v796_v49, %v748_v61 }
  0xf3   :  { %901 = vst.msk [vmem:[%s1858_s4 + $0x10] sm:$0xf] %vm896_vm1, %v884_v63  ;;  %v833_v1 = vmul.f32 %v1739_v52, %v797_v0 }
  0xf4   :  { %v701_v2 = vpop.f32.mrf.mxu2 }
  0xf5   :  { %v853_v3 = vadd.f32 %v1744_v55, %v833_v1  ;;  %v702_v4 = vadd.f32 %v701_v2, %v653_v20 }
  0xf6   :  { %v750_v5 = vpop.f32.mrf.mxu3  ;;  %v654_v6 = vpop.f32.mrf.mxu1 }
  0xf7   :  { %v869_v7 = vmax.f32 %v853_v3, 0.0  ;;  %v751_v8 = vadd.f32 %v750_v5, %v702_v4  ;;  %v655_v34 = vadd.f32 %v654_v6, %v1730_v40 }
  0xf8   :  { %v801_v9 = vpop.f32.mrf.mxu0 }
  0xf9   :  { %v885_v10 = vpack.c.bf16 %v869_v7, %v869_v7  ;;  %v800_v11 = vadd.f32 %v799_v62, %v751_v8 }
  0xfb   :  { %902 = vst.msk [vmem:[%s1858_s4 + $0x14] sm:$0xf] %vm896_vm1, %v885_v10  ;;  %v834_v12 = vmul.f32 %v1739_v52, %v800_v11 }
  0xfc   :  { %v703_v13 = vpop.f32.mrf.mxu2 }
  0xfd   :  { %v854_v15 = vadd.f32 %v1744_v55, %v834_v12  ;;  %v704_v16 = vadd.f32 %v703_v13, %v655_v34 }
  0xfe   :  { %v752_v17 = vpop.f32.mrf.mxu3  ;;  %v657_v21 = vpop.f32.mrf.mxu1 }
  0xff   :  { %v870_v22 = vmax.f32 %v854_v15, 0.0  ;;  %v753_v23 = vadd.f32 %v752_v17, %v704_v16  ;;  %v658_v40 = vadd.f32 %v657_v21, %v1689_v18 }
 0x100   :  { %v804_v24 = vpop.f32.mrf.mxu0 }
 0x101   :  { %v886_v25 = vpack.c.bf16 %v870_v22, %v870_v22  ;;  %v802_v26 = vadd.f32 %v801_v9, %v753_v23 }
 0x103   :  { %903 = vst.msk [vmem:[%s1858_s4 + $0x18] sm:$0xf] %vm896_vm1, %v886_v25  ;;  %v835_v27 = vmul.f32 %v1739_v52, %v802_v26 }
 0x104   :  { %v706_v28 = vpop.f32.mrf.mxu2 }
 0x105   :  { %v855_v29 = vadd.f32 %v1744_v55, %v835_v27  ;;  %v707_v32 = vadd.f32 %v706_v28, %v658_v40 }
 0x106   :  { %v755_v33 = vpop.f32.mrf.mxu3  ;;  %v659_v35 = vpop.f32.mrf.mxu1 }
 0x107   :  { %v871_v36 = vmax.f32 %v855_v29, 0.0  ;;  %v756_v37 = vadd.f32 %v755_v33, %v707_v32  ;;  %v660_v18 = vadd.f32 %v659_v35, %v1719_v30 }
 0x108   :  { %v806_v41 = vpop.f32.mrf.mxu0 }
 0x109   :  { %v887_v44 = vpack.c.bf16 %v871_v36, %v871_v36  ;;  %v805_v45 = vadd.f32 %v804_v24, %v756_v37 }
 0x10b   :  { %904 = vst.msk [vmem:[%s1858_s4 + $0x1c] sm:$0xf] %vm896_vm1, %v887_v44  ;;  %v836_v46 = vmul.f32 %v1739_v52, %v805_v45 }
 0x10c   :  { %v708_v47 = vpop.f32.mrf.mxu2 }
 0x10d   :  { %v856_v48 = vadd.f32 %v1744_v55, %v836_v46  ;;  %v709_v49 = vadd.f32 %v708_v47, %v660_v18 }
 0x10e   :  { %v757_v50 = vpop.f32.mrf.mxu3  ;;  %v662_v51 = vpop.f32.mrf.mxu1 }
 0x10f   :  { %v872_v53 = vmax.f32 %v856_v48, 0.0  ;;  %v758_v14 = vadd.f32 %v757_v50, %v709_v49  ;;  %v663_v30 = vadd.f32 %v662_v51, %v1726_v38 }
 0x110   :  { %v809_v54 = vpop.f32.mrf.mxu0 }
 0x111   :  { %v888_v56 = vpack.c.bf16 %v872_v53, %v872_v53  ;;  %v807_v57 = vadd.f32 %v806_v41, %v758_v14 }
 0x113   :  { %905 = vst.msk [vmem:[%s1858_s4 + $0x20] sm:$0xf] %vm896_vm1, %v888_v56  ;;  %v837_v58 = vmul.f32 %v1739_v52, %v807_v57 }
 0x114   :  { %v711_v59 = vpop.f32.mrf.mxu2 }
 0x115   :  { %v857_v60 = vadd.f32 %v1744_v55, %v837_v58  ;;  %v712_v61 = vadd.f32 %v711_v59, %v663_v30 }
 0x116   :  { %v760_v62 = vpop.f32.mrf.mxu3  ;;  %v664_v63 = vpop.f32.mrf.mxu1 }
 0x117   :  { %v873_v0 = vmax.f32 %v857_v60, 0.0  ;;  %v761_v1 = vadd.f32 %v760_v62, %v712_v61  ;;  %v665_v38 = vadd.f32 %v664_v63, %v1732_v42 }
 0x118   :  { %v811_v20 = vpop.f32.mrf.mxu0 }
 0x119   :  { %v889_v2 = vpack.c.bf16 %v873_v0, %v873_v0  ;;  %v810_v3 = vadd.f32 %v809_v54, %v761_v1 }
 0x11b   :  { %906 = vst.msk [vmem:[%s1858_s4 + $0x24] sm:$0xf] %vm896_vm1, %v889_v2  ;;  %v838_v4 = vmul.f32 %v1739_v52, %v810_v3 }
 0x11c   :  { %v713_v5 = vpop.f32.mrf.mxu2 }
 0x11d   :  { %v858_v6 = vadd.f32 %v1744_v55, %v838_v4  ;;  %v714_v7 = vadd.f32 %v713_v5, %v665_v38 }
 0x11e   :  { %v762_v8 = vpop.f32.mrf.mxu3  ;;  %v667_v9 = vpop.f32.mrf.mxu1 }
 0x11f   :  { %v874_v10 = vmax.f32 %v858_v6, 0.0  ;;  %v763_v11 = vadd.f32 %v762_v8, %v714_v7  ;;  %v668_v42 = vadd.f32 %v667_v9, %v1691_v19 }
 0x120   :  { %v814_v13 = vpop.f32.mrf.mxu0 }
 0x121   :  { %v890_v12 = vpack.c.bf16 %v874_v10, %v874_v10  ;;  %v812_v34 = vadd.f32 %v811_v20, %v763_v11 }
 0x123   :  { %907 = vst.msk [vmem:[%s1858_s4 + $0x28] sm:$0xf] %vm896_vm1, %v890_v12  ;;  %v839_v15 = vmul.f32 %v1739_v52, %v812_v34 }
 0x124   :  { %v716_v16 = vpop.f32.mrf.mxu2 }
 0x125   :  { %v859_v17 = vadd.f32 %v1744_v55, %v839_v15  ;;  %v717_v21 = vadd.f32 %v716_v16, %v668_v42 }
 0x126   :  { %v765_v22 = vpop.f32.mrf.mxu3  ;;  %v669_v23 = vpop.f32.mrf.mxu1 }
 0x127   :  { %v875_v24 = vmax.f32 %v859_v17, 0.0  ;;  %v766_v25 = vadd.f32 %v765_v22, %v717_v21  ;;  %v670_v28 = vadd.f32 %v669_v23, %v1721_v31 }
 0x128   :  { %v816_v19 = vpop.f32.mrf.mxu0 }
 0x129   :  { %v891_v26 = vpack.c.bf16 %v875_v24, %v875_v24  ;;  %v815_v27 = vadd.f32 %v814_v13, %v766_v25 }
 0x12b   :  { %908 = vst.msk [vmem:[%s1858_s4 + $0x2c] sm:$0xf] %vm896_vm1, %v891_v26  ;;  %v840_v40 = vmul.f32 %v1739_v52, %v815_v27 }
 0x12c   :  { %v718_v29 = vpop.f32.mrf.mxu2 }
 0x12d   :  { %v860_v32 = vadd.f32 %v1744_v55, %v840_v40  ;;  %v719_v33 = vadd.f32 %v718_v29, %v670_v28 }
 0x12e   :  { %v767_v35 = vpop.f32.mrf.mxu3  ;;  %v672_v36 = vpop.f32.mrf.mxu1 }
 0x12f   :  { %v876_v37 = vmax.f32 %v860_v32, 0.0  ;;  %v768_v41 = vadd.f32 %v767_v35, %v719_v33  ;;  %v673_v31 = vadd.f32 %v672_v36, %v1728_v39 }
 0x130   :  { %v819_v50 = vpop.f32.mrf.mxu0 }
 0x131   :  { %v892_v44 = vpack.c.bf16 %v876_v37, %v876_v37  ;;  %v817_v45 = vadd.f32 %v816_v19, %v768_v41 }
 0x133   :  { %909 = vst.msk [vmem:[%s1858_s4 + $0x30] sm:$0xf] %vm896_vm1, %v892_v44  ;;  %v841_v46 = vmul.f32 %v1739_v52, %v817_v45 }
 0x134   :  { %v721_v18 = vpop.f32.mrf.mxu2 }
 0x135   :  { %v861_v47 = vadd.f32 %v1744_v55, %v841_v46  ;;  %v722_v48 = vadd.f32 %v721_v18, %v673_v31 }
 0x136   :  { %v770_v49 = vpop.f32.mrf.mxu3  ;;  %v674_v14 = vpop.f32.mrf.mxu1 }
 0x137   :  { %v877_v51 = vmax.f32 %v861_v47, 0.0  ;;  %v771_v53 = vadd.f32 %v770_v49, %v722_v48  ;;  %v675_v39 = vadd.f32 %v674_v14, %v1734_v43 }
 0x138   :  { %v821_v63 = vpop.f32.mrf.mxu0 }
 0x139   :  { %v893_v54 = vpack.c.bf16 %v877_v51, %v877_v51  ;;  %v820_v56 = vadd.f32 %v819_v50, %v771_v53 }
 0x13b   :  { %910 = vst.msk [vmem:[%s1858_s4 + $0x34] sm:$0xf] %vm896_vm1, %v893_v54  ;;  %v842_v57 = vmul.f32 %v1739_v52, %v820_v56 }
 0x13c   :  { %v723_v58 = vpop.f32.mrf.mxu2 }
 0x13d   :  { %v862_v30 = vadd.f32 %v1744_v55, %v842_v57  ;;  %v724_v59 = vadd.f32 %v723_v58, %v675_v39 }
 0x13e   :  { %v772_v60 = vpop.f32.mrf.mxu3 }
 0x13f   :  { %v878_v61 = vmax.f32 %v862_v30, 0.0  ;;  %v773_v62 = vadd.f32 %v772_v60, %v724_v59 }
 0x141   :  { %v894_v0 = vpack.c.bf16 %v878_v61, %v878_v61  ;;  %v822_v1 = vadd.f32 %v821_v63, %v773_v62 }
 0x143   :  { %911 = vst.msk [vmem:[%s1858_s4 + $0x38] sm:$0xf] %vm896_vm1, %v894_v0  ;;  %v843_v20 = vmul.f32 %v1739_v52, %v822_v1 }
 0x145   :  { %v863_v2 = vadd.f32 %v1744_v55, %v843_v20 }
 0x147   :  { %v879_v43 = vmax.f32 %v863_v2, 0.0 }
 0x149   :  { %v895_v3 = vpack.c.bf16 %v879_v43, %v879_v43 }
 0x14b   :  { %912 = vst.msk [vmem:[%s1858_s4 + $0x3c] sm:$0xf] %vm896_vm1, %v895_v3 }

// kernel: cnn_forward.15
= control target key start
LH: loop header
LB: loop body
LE: loop exit
PB: predicated region body
PF: predicated region fallthrough
CT: control target
= control target key end

     0   :  { %vm326_vm0 = vcmask 523264   ;;  %s746_s1 = inlined_call_operand.vmem [shape: bf16[576,128], index: 1, kind: input, shape index: {}]   ;;  %s747_s0 = inlined_call_operand.vmem [shape: bf16[8,576], index: 0, kind: input, shape index: {}]   ;;  %s748_s2 = inlined_call_operand.vmem [shape: f32[1,128], index: 2, kind: input, shape index: {}]   ;;  %s749_s3 = inlined_call_operand.vmem [shape: f32[1,128], index: 3, kind: input, shape index: {}]   ;;  %s750_s4 = inlined_call_operand.vmem [shape: bf16[8,128], index: 4, kind: output, shape index: {}]  }
   0x1   :  { %v564_v0 = vld [vmem:[%s746_s1 + $0x38] sm:$0xff]  ;;  %v563_v4 = vld [vmem:[%s746_s1 + $0x30] sm:$0xff]  ;;  %v562_v8 = vld [vmem:[%s746_s1 + $0x28] sm:$0xff] }
   0x2   :  { %v572_v1 = vld [vmem:[%s746_s1 + $0x78] sm:$0xff]  ;;  %330 = vmatpush.bf16.msra.mxu0 %v564_v0  ;;  %v571_v5 = vld [vmem:[%s746_s1 + $0x70] sm:$0xff]  ;;  %v570_v9 = vld [vmem:[%s746_s1 + $0x68] sm:$0xff] }
   0x3   :  { %v580_v2 = vld [vmem:[%s746_s1 + $0xb8] sm:$0xff]  ;;  %343 = vmatpush.bf16.msra.mxu1 %v572_v1  ;;  %v579_v6 = vld [vmem:[%s746_s1 + $0xb0] sm:$0xff]  ;;  %v578_v10 = vld [vmem:[%s746_s1 + $0xa8] sm:$0xff] }
   0x4   :  { %v588_v3 = vld [vmem:[%s746_s1 + $0xf8] sm:$0xff]  ;;  %356 = vmatpush.bf16.msra.mxu2 %v580_v2  ;;  %v587_v7 = vld [vmem:[%s746_s1 + $0xf0] sm:$0xff]  ;;  %v586_v11 = vld [vmem:[%s746_s1 + $0xe8] sm:$0xff] }
   0x5   :  { %369 = vmatpush.bf16.msra.mxu3 %v588_v3  ;;  %v561_v12 = vld [vmem:[%s746_s1 + $0x20] sm:$0xff]  ;;  %v560_v16 = vld [vmem:[%s746_s1 + $0x18] sm:$0xff]  ;;  %v559_v20 = vld [vmem:[%s746_s1 + $0x10] sm:$0xff] }
   0x6   :  { %331 = vmatpush.bf16.msra.mxu0 %v563_v4  ;;  %v569_v13 = vld [vmem:[%s746_s1 + $0x60] sm:$0xff]  ;;  %v568_v17 = vld [vmem:[%s746_s1 + $0x58] sm:$0xff]  ;;  %v567_v21 = vld [vmem:[%s746_s1 + $0x50] sm:$0xff] }
   0x7   :  { %344 = vmatpush.bf16.msra.mxu1 %v571_v5  ;;  %v577_v14 = vld [vmem:[%s746_s1 + $0xa0] sm:$0xff]  ;;  %v576_v18 = vld [vmem:[%s746_s1 + $0x98] sm:$0xff]  ;;  %v575_v22 = vld [vmem:[%s746_s1 + $0x90] sm:$0xff] }
   0x8   :  { %357 = vmatpush.bf16.msra.mxu2 %v579_v6  ;;  %v585_v15 = vld [vmem:[%s746_s1 + $0xe0] sm:$0xff]  ;;  %v584_v19 = vld [vmem:[%s746_s1 + $0xd8] sm:$0xff]  ;;  %v583_v23 = vld [vmem:[%s746_s1 + $0xd0] sm:$0xff] }
   0x9   :  { %370 = vmatpush.bf16.msra.mxu3 %v587_v7  ;;  %v558_v24 = vld [vmem:[%s746_s1 + $0x8] sm:$0xff]  ;;  %v18_v26 = vld [vmem:[%s747_s0] sm:$0xff]  ;;  %v592_v38 = vld [vmem:[%s746_s1 + $0x118] sm:$0xff] }
   0xa   :  { %332 = vmatpush.bf16.msra.mxu0 %v562_v8  ;;  %v566_v25 = vld [vmem:[%s746_s1 + $0x48] sm:$0xff]  ;;  %v96_v30 = vunpack.c.l.b16 %v18_v26  ;;  %v97_v31 = vunpack.c.h.b16 %v18_v26  ;;  %v557_v32 = vld [vmem:[%s746_s1] sm:$0xff]  ;;  %v591_v43 = vld [vmem:[%s746_s1 + $0x110] sm:$0xff] }
   0xb   :  { %345 = vmatpush.bf16.msra.mxu1 %v570_v9  ;;  %v574_v27 = vld [vmem:[%s746_s1 + $0x88] sm:$0xff]  ;;  %v565_v33 = vld [vmem:[%s746_s1 + $0x40] sm:$0xff]  ;;  %v20_v45 = vld [vmem:[%s747_s0 + $0x10] sm:$0xf] }
   0xc   :  { %358 = vmatpush.bf16.msra.mxu2 %v578_v10  ;;  %v582_v28 = vld [vmem:[%s746_s1 + $0xc8] sm:$0xff]  ;;  %v573_v36 = vld [vmem:[%s746_s1 + $0x80] sm:$0xff]  ;;  %v101_v39 = vpack.c.b16 %v96_v30, %v96_v30  ;;  %v102_v40 = vpack.c.b16 %v97_v31, %v97_v31  ;;  %v100_v47 = vunpack.c.l.b16 %v20_v45 }
   0xd   :  { %371 = vmatpush.bf16.msra.mxu3 %v586_v11  ;;  %v19_v29 = vld [vmem:[%s747_s0 + $0x8] sm:$0xff]  ;;  %v581_v37 = vld [vmem:[%s746_s1 + $0xc0] sm:$0xff] }
   0xe   :  { %333 = vmatpush.bf16.msra.mxu0 %v561_v12  ;;  %v98_v34 = vunpack.c.l.b16 %v19_v29  ;;  %v99_v35 = vunpack.c.h.b16 %v19_v29  ;;  %v590_v44 = vld [vmem:[%s746_s1 + $0x108] sm:$0xff]  ;;  %v589_v46 = vld [vmem:[%s746_s1 + $0x100] sm:$0xff]  ;;  %v105_v48 = vpack.c.b16 %v100_v47, %v100_v47 }
   0xf   :  { %346 = vmatpush.bf16.msra.mxu1 %v569_v13  ;;  %v593_v60 = vld [vmem:[%s748_s2] ss:$0 sm:$0xff] }
  0x10   :  { %359 = vmatpush.bf16.msra.mxu2 %v577_v14  ;;  %v103_v41 = vpack.c.b16 %v98_v34, %v98_v34  ;;  %v104_v42 = vpack.c.b16 %v99_v35, %v99_v35  ;;  %v594_v63 = vld [vmem:[%s749_s3] ss:$0 sm:$0xff] }
  0x11   :  { %372 = vmatpush.bf16.msra.mxu3 %v585_v15 }
  0x12   :  { %334 = vmatpush.bf16.msra.mxu0 %v560_v16 }
  0x13   :  { %347 = vmatpush.bf16.msra.mxu1 %v568_v17 }
  0x14   :  { %360 = vmatpush.bf16.msra.mxu2 %v576_v18 }
  0x15   :  { %373 = vmatpush.bf16.msra.mxu3 %v584_v19 }
  0x16   :  { %335 = vmatpush.bf16.msra.mxu0 %v559_v20 }
  0x17   :  { %348 = vmatpush.bf16.msra.mxu1 %v567_v21 }
  0x18   :  { %361 = vmatpush.bf16.msra.mxu2 %v575_v22 }
  0x19   :  { %374 = vmatpush.bf16.msra.mxu3 %v583_v23 }
  0x1a   :  { %336 = vmatpush.bf16.msra.mxu0 %v558_v24 }
  0x1b   :  { %349 = vmatpush.bf16.msra.mxu1 %v566_v25 }
  0x1c   :  { %362 = vmatpush.bf16.msra.mxu2 %v574_v27 }
  0x1d   :  { %375 = vmatpush.bf16.msra.mxu3 %v582_v28 }
  0x1e   :  { %337 = vmatpush.bf16.msra.mxu0 %v557_v32 }
  0x1f   :  { %350 = vmatpush.bf16.msra.mxu1 %v565_v33 }
  0x20   :  { %363 = vmatpush.bf16.msra.mxu2 %v573_v36 }
  0x21   :  { %376 = vmatpush.bf16.msra.mxu3 %v581_v37  ;;  %338 = vmatmul.bf16.vlgmr.msra.gmra.mxu0 %v101_v39 }
  0x22   :  { %386 = vmatpush.bf16.msrb.mxu0 %v592_v38  ;;  %351 = vmatmul.bf16.vlgmr.msra.gmra.mxu1 %v102_v40 }
  0x23   :  { %364 = vmatmul.bf16.vlgmr.msra.gmra.mxu2 %v103_v41 }
  0x24   :  { %377 = vmatmul.bf16.vlgmr.msra.gmra.mxu3 %v104_v42 }
  0x26   :  { %387 = vmatpush.bf16.msrb.mxu0 %v591_v43 }
  0x2a   :  { %388 = vmatpush.bf16.msrb.mxu0 %v590_v44 }
  0x2e   :  { %389 = vmatpush.bf16.msrb.mxu0 %v589_v46 }
  0x31   :  { %556 = vmatmul.msk.bf16.vlgmr.msrb.gmra.mxu0 %vm326_vm0, %v105_v48 }
  0x9e   :  { %v339_v49 = vpop.f32.mrf.mxu0 }
  0x9f   :  { %v352_v50 = vpop.f32.mrf.mxu1 }
  0xa0   :  { %v353_v55 = vadd.f32 %v352_v50, %v339_v49 }
  0xa6   :  { %v365_v51 = vpop.f32.mrf.mxu2  ;;  %v341_v53 = vpop.f32.mrf.mxu0 }
  0xa7   :  { %v378_v52 = vpop.f32.mrf.mxu3  ;;  %v354_v54 = vpop.f32.mrf.mxu1  ;;  %v366_v56 = vadd.f32 %v365_v51, %v353_v55 }
  0xa9   :  { %v379_v57 = vadd.f32 %v378_v52, %v366_v56 }
  0xae   :  { %v367_v58 = vpop.f32.mrf.mxu2  ;;  %v391_v61 = vpop.f32.mrf.mxu0 }
  0xaf   :  { %v380_v59 = vpop.f32.mrf.mxu3  ;;  %v392_v62 = vadd.f32 %v391_v61, %v379_v57 }
  0xb1   :  { %v399_v0 = vmul.f32 %v593_v60, %v392_v62 }
  0xb3   :  { %v404_v1 = vadd.f32 %v594_v63, %v399_v0 }
  0xb5   :  { %v405_v2 = vmax.f32 %v404_v1, 0.0 }
  0xb6   :  { %v393_v3 = vpop.f32.mrf.mxu0 }
  0xb7   :  { %v406_v4 = vpack.c.bf16 %v405_v2, %v405_v2 }
  0xb9   :  { %407 = vst [vmem:[%s750_s4] sm:$0xf] %v406_v4 }

// kernel: cnn_forward.16
= control target key start
LH: loop header
LB: loop body
LE: loop exit
PB: predicated region body
PF: predicated region fallthrough
CT: control target
= control target key end

     0   :  { %s1391_s1 = inlined_call_operand.vmem [shape: bf16[1152,128], index: 1, kind: input, shape index: {}]   ;;  %s1392_s0 = inlined_call_operand.vmem [shape: bf16[8,1152], index: 0, kind: input, shape index: {}]   ;;  %s1393_s2 = inlined_call_operand.vmem [shape: f32[1,128], index: 2, kind: input, shape index: {}]   ;;  %s1394_s3 = inlined_call_operand.vmem [shape: f32[1,128], index: 3, kind: input, shape index: {}]   ;;  %s1395_s4 = inlined_call_operand.vmem [shape: bf16[8,128], index: 4, kind: output, shape index: {}]  }
   0x1   :  { %v1059_v0 = vld [vmem:[%s1391_s1 + $0x38] sm:$0xff]  ;;  %v1058_v4 = vld [vmem:[%s1391_s1 + $0x30] sm:$0xff]  ;;  %v1057_v8 = vld [vmem:[%s1391_s1 + $0x28] sm:$0xff] }
   0x2   :  { %v1075_v1 = vld [vmem:[%s1391_s1 + $0xb8] sm:$0xff]  ;;  %630 = vmatpush.bf16.msra.mxu0 %v1059_v0  ;;  %v1074_v5 = vld [vmem:[%s1391_s1 + $0xb0] sm:$0xff]  ;;  %v1073_v9 = vld [vmem:[%s1391_s1 + $0xa8] sm:$0xff] }
   0x3   :  { %v1083_v2 = vld [vmem:[%s1391_s1 + $0xf8] sm:$0xff]  ;;  %656 = vmatpush.bf16.msra.mxu2 %v1075_v1  ;;  %v1082_v6 = vld [vmem:[%s1391_s1 + $0xf0] sm:$0xff]  ;;  %v1081_v10 = vld [vmem:[%s1391_s1 + $0xe8] sm:$0xff] }
   0x4   :  { %v1067_v3 = vld [vmem:[%s1391_s1 + $0x78] sm:$0xff]  ;;  %669 = vmatpush.bf16.msra.mxu3 %v1083_v2  ;;  %v1066_v7 = vld [vmem:[%s1391_s1 + $0x70] sm:$0xff]  ;;  %v1065_v11 = vld [vmem:[%s1391_s1 + $0x68] sm:$0xff] }
   0x5   :  { %643 = vmatpush.bf16.msra.mxu1 %v1067_v3  ;;  %v1056_v12 = vld [vmem:[%s1391_s1 + $0x20] sm:$0xff]  ;;  %v1055_v16 = vld [vmem:[%s1391_s1 + $0x18] sm:$0xff]  ;;  %v1054_v20 = vld [vmem:[%s1391_s1 + $0x10] sm:$0xff] }
   0x6   :  { %631 = vmatpush.bf16.msra.mxu0 %v1058_v4  ;;  %v1072_v13 = vld [vmem:[%s1391_s1 + $0xa0] sm:$0xff]  ;;  %v1071_v17 = vld [vmem:[%s1391_s1 + $0x98] sm:$0xff]  ;;  %v1070_v21 = vld [vmem:[%s1391_s1 + $0x90] sm:$0xff] }
   0x7   :  { %657 = vmatpush.bf16.msra.mxu2 %v1074_v5  ;;  %v1080_v14 = vld [vmem:[%s1391_s1 + $0xe0] sm:$0xff]  ;;  %v1079_v18 = vld [vmem:[%s1391_s1 + $0xd8] sm:$0xff]  ;;  %v1078_v22 = vld [vmem:[%s1391_s1 + $0xd0] sm:$0xff] }
   0x8   :  { %670 = vmatpush.bf16.msra.mxu3 %v1082_v6  ;;  %v1064_v15 = vld [vmem:[%s1391_s1 + $0x60] sm:$0xff]  ;;  %v1063_v19 = vld [vmem:[%s1391_s1 + $0x58] sm:$0xff]  ;;  %v1062_v23 = vld [vmem:[%s1391_s1 + $0x50] sm:$0xff] }
   0x9   :  { %644 = vmatpush.bf16.msra.mxu1 %v1066_v7  ;;  %v1053_v24 = vld [vmem:[%s1391_s1 + $0x8] sm:$0xff]  ;;  %v17_v29 = vld [vmem:[%s1392_s0] sm:$0xff]  ;;  %v1091_v34 = vld [vmem:[%s1391_s1 + $0x138] sm:$0xff] }
   0xa   :  { %632 = vmatpush.bf16.msra.mxu0 %v1057_v8  ;;  %v1069_v25 = vld [vmem:[%s1391_s1 + $0x88] sm:$0xff]  ;;  %v1052_v30 = vld [vmem:[%s1391_s1] sm:$0xff]  ;;  %v171_v33 = vunpack.c.l.b16 %v17_v29  ;;  %v1107_v35 = vld [vmem:[%s1391_s1 + $0x1b8] sm:$0xff]  ;;  %v172_v39 = vunpack.c.h.b16 %v17_v29 }
   0xb   :  { %658 = vmatpush.bf16.msra.mxu2 %v1073_v9  ;;  %v1077_v26 = vld [vmem:[%s1391_s1 + $0xc8] sm:$0xff]  ;;  %v1068_v31 = vld [vmem:[%s1391_s1 + $0x80] sm:$0xff]  ;;  %v1115_v40 = vld [vmem:[%s1391_s1 + $0x1f8] sm:$0xff] }
   0xc   :  { %671 = vmatpush.bf16.msra.mxu3 %v1081_v10  ;;  %v1061_v27 = vld [vmem:[%s1391_s1 + $0x48] sm:$0xff]  ;;  %v1076_v36 = vld [vmem:[%s1391_s1 + $0xc0] sm:$0xff]  ;;  %v1099_v41 = vld [vmem:[%s1391_s1 + $0x178] sm:$0xff]  ;;  %v180_v43 = vpack.c.b16 %v171_v33, %v171_v33  ;;  %v181_v47 = vpack.c.b16 %v172_v39, %v172_v39 }
   0xd   :  { %645 = vmatpush.bf16.msra.mxu1 %v1065_v11  ;;  %v18_v28 = vld [vmem:[%s1392_s0 + $0x8] sm:$0xff]  ;;  %v1060_v37 = vld [vmem:[%s1391_s1 + $0x40] sm:$0xff]  ;;  %v1090_v44 = vld [vmem:[%s1391_s1 + $0x130] sm:$0xff] }
   0xe   :  { %633 = vmatpush.bf16.msra.mxu0 %v1056_v12  ;;  %v173_v32 = vunpack.c.l.b16 %v18_v28  ;;  %v174_v38 = vunpack.c.h.b16 %v18_v28  ;;  %v1106_v45 = vld [vmem:[%s1391_s1 + $0x1b0] sm:$0xff]  ;;  %v1089_v50 = vld [vmem:[%s1391_s1 + $0x128] sm:$0xff]  ;;  %v1088_v54 = vld [vmem:[%s1391_s1 + $0x120] sm:$0xff] }
   0xf   :  { %659 = vmatpush.bf16.msra.mxu2 %v1072_v13  ;;  %v1114_v48 = vld [vmem:[%s1391_s1 + $0x1f0] sm:$0xff]  ;;  %v1105_v51 = vld [vmem:[%s1391_s1 + $0x1a8] sm:$0xff]  ;;  %v1104_v55 = vld [vmem:[%s1391_s1 + $0x1a0] sm:$0xff] }
  0x10   :  { %672 = vmatpush.bf16.msra.mxu3 %v1080_v14  ;;  %v182_v42 = vpack.c.b16 %v173_v32, %v173_v32  ;;  %v183_v46 = vpack.c.b16 %v174_v38, %v174_v38  ;;  %v1098_v49 = vld [vmem:[%s1391_s1 + $0x170] sm:$0xff]  ;;  %v1113_v52 = vld [vmem:[%s1391_s1 + $0x1e8] sm:$0xff]  ;;  %v1112_v56 = vld [vmem:[%s1391_s1 + $0x1e0] sm:$0xff] }
  0x11   :  { %646 = vmatpush.bf16.msra.mxu1 %v1064_v15  ;;  %v1097_v53 = vld [vmem:[%s1391_s1 + $0x168] sm:$0xff]  ;;  %v1096_v57 = vld [vmem:[%s1391_s1 + $0x160] sm:$0xff]  ;;  %v1087_v58 = vld [vmem:[%s1391_s1 + $0x118] sm:$0xff] }
  0x12   :  { %634 = vmatpush.bf16.msra.mxu0 %v1055_v16  ;;  %v1103_v59 = vld [vmem:[%s1391_s1 + $0x198] sm:$0xff]  ;;  %v1086_v62 = vld [vmem:[%s1391_s1 + $0x110] sm:$0xff]  ;;  %v1085_v2 = vld [vmem:[%s1391_s1 + $0x108] sm:$0xff] }
  0x13   :  { %660 = vmatpush.bf16.msra.mxu2 %v1071_v17  ;;  %v1111_v60 = vld [vmem:[%s1391_s1 + $0x1d8] sm:$0xff]  ;;  %v1102_v63 = vld [vmem:[%s1391_s1 + $0x190] sm:$0xff]  ;;  %v1101_v3 = vld [vmem:[%s1391_s1 + $0x188] sm:$0xff] }
  0x14   :  { %673 = vmatpush.bf16.msra.mxu3 %v1079_v18  ;;  %v1095_v61 = vld [vmem:[%s1391_s1 + $0x158] sm:$0xff]  ;;  %v1110_v0 = vld [vmem:[%s1391_s1 + $0x1d0] sm:$0xff]  ;;  %v1109_v6 = vld [vmem:[%s1391_s1 + $0x1c8] sm:$0xff] }
  0x15   :  { %647 = vmatpush.bf16.msra.mxu1 %v1063_v19  ;;  %v1094_v1 = vld [vmem:[%s1391_s1 + $0x150] sm:$0xff]  ;;  %v20_v4 = vld [vmem:[%s1392_s0 + $0x18] sm:$0xff]  ;;  %v1093_v7 = vld [vmem:[%s1391_s1 + $0x148] sm:$0xff] }
  0x16   :  { %635 = vmatpush.bf16.msra.mxu0 %v1054_v20  ;;  %v19_v5 = vld [vmem:[%s1392_s0 + $0x10] sm:$0xff]  ;;  %v177_v8 = vunpack.c.l.b16 %v20_v4  ;;  %v1084_v10 = vld [vmem:[%s1391_s1 + $0x100] sm:$0xff]  ;;  %v1123_v12 = vld [vmem:[%s1391_s1 + $0x238] sm:$0xff]  ;;  %v178_v13 = vunpack.c.h.b16 %v20_v4 }
  0x17   :  { %661 = vmatpush.bf16.msra.mxu2 %v1070_v21  ;;  %v175_v9 = vunpack.c.l.b16 %v19_v5  ;;  %v1100_v11 = vld [vmem:[%s1391_s1 + $0x180] sm:$0xff]  ;;  %v176_v16 = vunpack.c.h.b16 %v19_v5  ;;  %v1122_v19 = vld [vmem:[%s1391_s1 + $0x230] sm:$0xff] }
  0x18   :  { %674 = vmatpush.bf16.msra.mxu3 %v1078_v22  ;;  %v1108_v14 = vld [vmem:[%s1391_s1 + $0x1c0] sm:$0xff]  ;;  %v186_v17 = vpack.c.b16 %v177_v8, %v177_v8  ;;  %v187_v20 = vpack.c.b16 %v178_v13, %v178_v13  ;;  %v1121_v22 = vld [vmem:[%s1391_s1 + $0x228] sm:$0xff] }
  0x19   :  { %648 = vmatpush.bf16.msra.mxu1 %v1062_v23  ;;  %v1092_v15 = vld [vmem:[%s1391_s1 + $0x140] sm:$0xff]  ;;  %v184_v18 = vpack.c.b16 %v175_v9, %v175_v9  ;;  %v185_v21 = vpack.c.b16 %v176_v16, %v176_v16 }
  0x1a   :  { %636 = vmatpush.bf16.msra.mxu0 %v1053_v24  ;;  %v1120_v23 = vld [vmem:[%s1391_s1 + $0x220] sm:$0xff]  ;;  %v1119_v24 = vld [vmem:[%s1391_s1 + $0x218] sm:$0xff] }
  0x1b   :  { %662 = vmatpush.bf16.msra.mxu2 %v1069_v25  ;;  %v1118_v25 = vld [vmem:[%s1391_s1 + $0x210] sm:$0xff]  ;;  %v1116_v29 = vld [vmem:[%s1391_s1 + $0x200] sm:$0xff] }
  0x1c   :  { %675 = vmatpush.bf16.msra.mxu3 %v1077_v26  ;;  %v1117_v26 = vld [vmem:[%s1391_s1 + $0x208] sm:$0xff] }
  0x1d   :  { %649 = vmatpush.bf16.msra.mxu1 %v1061_v27  ;;  %v21_v27 = vld [vmem:[%s1392_s0 + $0x20] sm:$0xf] }
  0x1e   :  { %637 = vmatpush.bf16.msra.mxu0 %v1052_v30  ;;  %v179_v28 = vunpack.c.l.b16 %v21_v27 }
  0x1f   :  { %663 = vmatpush.bf16.msra.mxu2 %v1068_v31 }
  0x20   :  { %676 = vmatpush.bf16.msra.mxu3 %v1076_v36  ;;  %v188_v30 = vpack.c.b16 %v179_v28, %v179_v28 }
  0x21   :  { %650 = vmatpush.bf16.msra.mxu1 %v1060_v37  ;;  %638 = vmatmul.bf16.vlgmr.msra.gmra.mxu0 %v180_v43 }
  0x22   :  { %682 = vmatpush.bf16.msrb.mxu0 %v1091_v34  ;;  %664 = vmatmul.bf16.vlgmr.msra.gmra.mxu2 %v182_v42 }
  0x23   :  { %708 = vmatpush.bf16.msrb.mxu2 %v1107_v35  ;;  %677 = vmatmul.bf16.vlgmr.msra.gmra.mxu3 %v183_v46 }
  0x24   :  { %721 = vmatpush.bf16.msrb.mxu3 %v1115_v40  ;;  %651 = vmatmul.bf16.vlgmr.msra.gmra.mxu1 %v181_v47 }
  0x25   :  { %695 = vmatpush.bf16.msrb.mxu1 %v1099_v41 }
  0x26   :  { %683 = vmatpush.bf16.msrb.mxu0 %v1090_v44 }
  0x27   :  { %709 = vmatpush.bf16.msrb.mxu2 %v1106_v45 }
  0x28   :  { %722 = vmatpush.bf16.msrb.mxu3 %v1114_v48 }
  0x29   :  { %696 = vmatpush.bf16.msrb.mxu1 %v1098_v49 }
  0x2a   :  { %684 = vmatpush.bf16.msrb.mxu0 %v1089_v50 }
  0x2b   :  { %710 = vmatpush.bf16.msrb.mxu2 %v1105_v51 }
  0x2c   :  { %723 = vmatpush.bf16.msrb.mxu3 %v1113_v52 }
  0x2d   :  { %697 = vmatpush.bf16.msrb.mxu1 %v1097_v53 }
  0x2e   :  { %685 = vmatpush.bf16.msrb.mxu0 %v1088_v54  ;;  %v1124_v54 = vld [vmem:[%s1393_s2] ss:$0 sm:$0xff] }
  0x2f   :  { %711 = vmatpush.bf16.msrb.mxu2 %v1104_v55 }
  0x30   :  { %724 = vmatpush.bf16.msrb.mxu3 %v1112_v56 }
  0x31   :  { %698 = vmatpush.bf16.msrb.mxu1 %v1096_v57  ;;  %v1125_v57 = vld [vmem:[%s1394_s3] ss:$0 sm:$0xff] }
  0x32   :  { %686 = vmatpush.bf16.msrb.mxu0 %v1087_v58 }
  0x33   :  { %712 = vmatpush.bf16.msrb.mxu2 %v1103_v59 }
  0x34   :  { %725 = vmatpush.bf16.msrb.mxu3 %v1111_v60 }
  0x35   :  { %699 = vmatpush.bf16.msrb.mxu1 %v1095_v61 }
  0x36   :  { %687 = vmatpush.bf16.msrb.mxu0 %v1086_v62 }
  0x37   :  { %713 = vmatpush.bf16.msrb.mxu2 %v1102_v63 }
  0x38   :  { %726 = vmatpush.bf16.msrb.mxu3 %v1110_v0 }
  0x39   :  { %700 = vmatpush.bf16.msrb.mxu1 %v1094_v1 }
  0x3a   :  { %688 = vmatpush.bf16.msrb.mxu0 %v1085_v2 }
  0x3b   :  { %714 = vmatpush.bf16.msrb.mxu2 %v1101_v3 }
  0x3c   :  { %727 = vmatpush.bf16.msrb.mxu3 %v1109_v6 }
  0x3d   :  { %701 = vmatpush.bf16.msrb.mxu1 %v1093_v7 }
  0x3e   :  { %689 = vmatpush.bf16.msrb.mxu0 %v1084_v10 }
  0x3f   :  { %715 = vmatpush.bf16.msrb.mxu2 %v1100_v11 }
  0x40   :  { %728 = vmatpush.bf16.msrb.mxu3 %v1108_v14 }
  0x41   :  { %702 = vmatpush.bf16.msrb.mxu1 %v1092_v15  ;;  %690 = vmatmul.bf16.vlgmr.msrb.gmra.mxu0 %v184_v18 }
  0x42   :  { %734 = vmatpush.bf16.msra.mxu0 %v1123_v12  ;;  %716 = vmatmul.bf16.vlgmr.msrb.gmra.mxu2 %v186_v17 }
  0x43   :  { %729 = vmatmul.bf16.vlgmr.msrb.gmra.mxu3 %v187_v20 }
  0x44   :  { %703 = vmatmul.bf16.vlgmr.msrb.gmra.mxu1 %v185_v21 }
  0x46   :  { %735 = vmatpush.bf16.msra.mxu0 %v1122_v19 }
  0x4a   :  { %736 = vmatpush.bf16.msra.mxu0 %v1121_v22 }
  0x4e   :  { %737 = vmatpush.bf16.msra.mxu0 %v1120_v23 }
  0x52   :  { %738 = vmatpush.bf16.msra.mxu0 %v1119_v24 }
  0x56   :  { %739 = vmatpush.bf16.msra.mxu0 %v1118_v25 }
  0x5a   :  { %740 = vmatpush.bf16.msra.mxu0 %v1117_v26 }
  0x5e   :  { %741 = vmatpush.bf16.msra.mxu0 %v1116_v29 }
  0x61   :  { %742 = vmatmul.bf16.vlgmr.msra.gmra.mxu0 %v188_v30 }
  0x9e   :  { %v639_v31 = vpop.f32.mrf.mxu0 }
  0xa1   :  { %v652_v32 = vpop.f32.mrf.mxu1 }
  0xa2   :  { %v653_v41 = vadd.f32 %v652_v32, %v639_v31 }
  0xa5   :  { %v665_v33 = vpop.f32.mrf.mxu2 }
  0xa6   :  { %v678_v34 = vpop.f32.mrf.mxu3  ;;  %v641_v35 = vpop.f32.mrf.mxu0  ;;  %v666_v43 = vadd.f32 %v665_v33, %v653_v41 }
  0xa8   :  { %v679_v47 = vadd.f32 %v678_v34, %v666_v43 }
  0xa9   :  { %v654_v36 = vpop.f32.mrf.mxu1 }
  0xad   :  { %v667_v37 = vpop.f32.mrf.mxu2 }
  0xae   :  { %v680_v38 = vpop.f32.mrf.mxu3 }
  0xbe   :  { %v691_v39 = vpop.f32.mrf.mxu0 }
  0xbf   :  { %v692_v49 = vadd.f32 %v691_v39, %v679_v47 }
  0xc1   :  { %v704_v40 = vpop.f32.mrf.mxu1 }
  0xc2   :  { %v705_v51 = vadd.f32 %v704_v40, %v692_v49 }
  0xc5   :  { %v717_v42 = vpop.f32.mrf.mxu2 }
  0xc6   :  { %v730_v44 = vpop.f32.mrf.mxu3  ;;  %v693_v45 = vpop.f32.mrf.mxu0  ;;  %v718_v52 = vadd.f32 %v717_v42, %v705_v51 }
  0xc8   :  { %v731_v53 = vadd.f32 %v730_v44, %v718_v52 }
  0xc9   :  { %v706_v46 = vpop.f32.mrf.mxu1 }
  0xcd   :  { %v719_v48 = vpop.f32.mrf.mxu2 }
  0xce   :  { %v732_v50 = vpop.f32.mrf.mxu3 }
  0xde   :  { %v743_v55 = vpop.f32.mrf.mxu0 }
  0xdf   :  { %v744_v56 = vadd.f32 %v743_v55, %v731_v53 }
  0xe1   :  { %v751_v58 = vmul.f32 %v1124_v54, %v744_v56 }
  0xe3   :  { %v756_v59 = vadd.f32 %v1125_v57, %v751_v58 }
  0xe5   :  { %v757_v60 = vmax.f32 %v756_v59, 0.0 }
  0xe6   :  { %v745_v61 = vpop.f32.mrf.mxu0 }
  0xe7   :  { %v758_v62 = vpack.c.bf16 %v757_v60, %v757_v60 }
  0xe9   :  { %759 = vst [vmem:[%s1395_s4] sm:$0xf] %v758_v62 }

// kernel: cnn_forward.17
= control target key start
LH: loop header
LB: loop body
LE: loop exit
PB: predicated region body
PF: predicated region fallthrough
CT: control target
= control target key end

     0   :  { %s366_s0 = inlined_call_operand.vmem [shape: bf16[2,512], index: 0, kind: input, shape index: {}]   ;;  %s367_s1 = inlined_call_operand.vmem [shape: f32[128,128], index: 1, kind: input, shape index: {}]   ;;  %s368_s2 = inlined_call_operand.vmem [shape: f32[1,128], index: 2, kind: input, shape index: {}]   ;;  %s369_s3 = inlined_call_operand.vmem [shape: f32[128,32], index: 3, kind: input, shape index: {}]   ;;  %s370_s4 = inlined_call_operand.vmem [shape: f32[1,32], index: 4, kind: input, shape index: {}]   ;;  %s371_s5 = inlined_call_operand.vmem [shape: f32[32,10], index: 5, kind: input, shape index: {}]   ;;  %s372_s6 = inlined_call_operand.vmem [shape: f32[1,10], index: 6, kind: input, shape index: {}]   ;;  %s373_s7 = inlined_call_operand.hbm [shape: f32[2,10], index: 7, kind: output, shape index: {}]  }
   0x1   :  { %v54_v0 = vld [vmem:[%s367_s1 + $0x78] sm:$0xff]  ;;  %v53_v1 = vld [vmem:[%s367_s1 + $0x70] sm:$0xff]  ;;  %v52_v2 = vld [vmem:[%s367_s1 + $0x68] sm:$0xff] }
   0x2   :  { %59 = vmatpush.msra.mxu0 %v54_v0  ;;  %v51_v3 = vld [vmem:[%s367_s1 + $0x60] sm:$0xff]  ;;  %v95_v4 = vld [vmem:[%s369_s3 + $0x78] sm:$0xff]  ;;  %v94_v6 = vld [vmem:[%s369_s3 + $0x70] sm:$0xff] }
   0x3   :  { %v50_v5 = vld [vmem:[%s367_s1 + $0x58] sm:$0xff]  ;;  %100 = vmatpush.msra.mxu1 %v95_v4  ;;  %v93_v7 = vld [vmem:[%s369_s3 + $0x68] sm:$0xff]  ;;  %v49_v8 = vld [vmem:[%s367_s1 + $0x50] sm:$0xff] }
   0x4   :  { %60 = vmatpush.msra.mxu0 %v53_v1  ;;  %v92_v9 = vld [vmem:[%s369_s3 + $0x60] sm:$0xff]  ;;  %v48_v10 = vld [vmem:[%s367_s1 + $0x48] sm:$0xff]  ;;  %v91_v11 = vld [vmem:[%s369_s3 + $0x58] sm:$0xff] }
   0x5   :  { %101 = vmatpush.msra.mxu1 %v94_v6 }
   0x6   :  { %61 = vmatpush.msra.mxu0 %v52_v2 }
   0x7   :  { %102 = vmatpush.msra.mxu1 %v93_v7 }
   0x8   :  { %62 = vmatpush.msra.mxu0 %v51_v3 }
   0xa   :  { %63 = vmatpush.msra.mxu0 %v50_v5 }
   0xc   :  { %64 = vmatpush.msra.mxu0 %v49_v8 }
   0xd   :  { %12 = vsyncpa [#allocation3], 0  ;;  %v47_v12 = vld [vmem:[%s367_s1 + $0x40] sm:$0xff]  ;;  %103 = vmatpush.msra.mxu1 %v92_v9  ;;  %v90_v14 = vld [vmem:[%s369_s3 + $0x50] sm:$0xff]  ;;  %vm129_vm0 = vcmask 261120   ;;  %s202_s30 = smov [#allocation2]  }
   0xe   :  { %65 = vmatpush.msra.mxu0 %v48_v10  ;;  %v27_v13 = vld [vmem:[%s366_s0] sm:$0xf]  ;;  %v46_v15 = vld [vmem:[%s367_s1 + $0x38] sm:$0xff]  ;;  %v89_v16 = vld [vmem:[%s369_s3 + $0x48] sm:$0xff]  ;;  %s160_s8 = sshll.u32 %s202_s30, 4  ;;  %vm153_vm1 = vcmask 74752   ;;  %s161_s8 = int_to_ptr.vmem [resolvable:$true] %s160_s8 }
   0xf   :  { %104 = vmatpush.msra.mxu1 %v91_v11  ;;  %v45_v17 = vld [vmem:[%s367_s1 + $0x30] sm:$0xff]  ;;  %v28_v18 = vunpack.c.l.bf16 %v27_v13  ;;  %v88_v19 = vld [vmem:[%s369_s3 + $0x40] sm:$0xff]  ;;  %v44_v20 = vld [vmem:[%s367_s1 + $0x28] sm:$0xff] }
  0x10   :  { %66 = vmatpush.msra.mxu0 %v47_v12  ;;  %v87_v21 = vld [vmem:[%s369_s3 + $0x38] sm:$0xff]  ;;  %v43_v22 = vld [vmem:[%s367_s1 + $0x20] sm:$0xff]  ;;  %v86_v26 = vld [vmem:[%s369_s3 + $0x30] sm:$0xff] }
  0x11   :  { %105 = vmatpush.msra.mxu1 %v90_v14  ;;  %v30_v23 = vrot.slane %v28_v18, 2  ;;  %v33_v24 = vrot.slane %v28_v18, 4  ;;  %v35_v25 = vrot.slane %v28_v18, 6  ;;  %v42_v27 = vld [vmem:[%s367_s1 + $0x18] sm:$0xff]  ;;  %v85_v28 = vld [vmem:[%s369_s3 + $0x28] sm:$0xff]  ;;  %v41_v29 = vld [vmem:[%s367_s1 + $0x10] sm:$0xff] }
  0x12   :  { %67 = vmatpush.msra.mxu0 %v46_v15  ;;  %v84_v32 = vld [vmem:[%s369_s3 + $0x20] sm:$0xff]  ;;  %v40_v33 = vld [vmem:[%s367_s1 + $0x8] sm:$0xff]  ;;  %v83_v34 = vld [vmem:[%s369_s3 + $0x18] sm:$0xff] }
  0x13   :  { %106 = vmatpush.msra.mxu1 %v89_v16  ;;  %v32_v30 = vmax.f32 %v28_v18, %v30_v23  ;;  %v37_v31 = vmax.f32 %v33_v24, %v35_v25  ;;  %v39_v35 = vld [vmem:[%s367_s1] sm:$0xff]  ;;  %v82_v37 = vld [vmem:[%s369_s3 + $0x10] sm:$0xff]  ;;  %v81_v38 = vld [vmem:[%s369_s3 + $0x8] sm:$0xff] }
  0x14   :  { %68 = vmatpush.msra.mxu0 %v45_v17  ;;  %v80_v39 = vld [vmem:[%s369_s3] sm:$0xff]  ;;  %v124_v40 = vld [vmem:[%s371_s5 + $0x18] sm:$0xff]  ;;  %v123_v45 = vld [vmem:[%s371_s5 + $0x10] sm:$0xff] }
  0x15   :  { %107 = vmatpush.msra.mxu1 %v88_v19  ;;  %v38_v36 = vmax.f32 %v32_v30, %v37_v31  ;;  %145 = vmatpush.msra.mxu2 %v124_v40  ;;  %v173_v41 = vld [vmem:[%s368_s2] ss:$0 sm:$0xff]  ;;  %v122_v46 = vld [vmem:[%s371_s5 + $0x8] sm:$0xff] }
  0x16   :  { %69 = vmatpush.msra.mxu0 %v44_v20  ;;  %v121_v47 = vld [vmem:[%s371_s5] sm:$0xff]  ;;  %s162_s5 = sshll.u32 %s373_s7, 4  ;;  %s163_s5 = int_to_ptr.hbm [resolvable:$true] %s162_s5 }
  0x17   :  { %108 = vmatpush.msra.mxu1 %v87_v21  ;;  %146 = vmatpush.msra.mxu2 %v123_v45  ;;  %v174_v48 = vld [vmem:[%s370_s4] ss:$0 sm:$0xff] }
  0x18   :  { %70 = vmatpush.msra.mxu0 %v43_v22  ;;  %v175_v52 = vld [vmem:[%s372_s6] ss:$0 sm:$0xff] }
  0x19   :  { %109 = vmatpush.msra.mxu1 %v86_v26  ;;  %147 = vmatpush.msra.mxu2 %v122_v46 }
  0x1a   :  { %71 = vmatpush.msra.mxu0 %v42_v27 }
  0x1b   :  { %110 = vmatpush.msra.mxu1 %v85_v28  ;;  %148 = vmatpush.msra.mxu2 %v121_v47 }
  0x1c   :  { %72 = vmatpush.msra.mxu0 %v41_v29 }
  0x1d   :  { %111 = vmatpush.msra.mxu1 %v84_v32 }
  0x1e   :  { %73 = vmatpush.msra.mxu0 %v40_v33 }
  0x1f   :  { %112 = vmatpush.msra.mxu1 %v83_v34 }
  0x20   :  { %74 = vmatpush.msra.mxu0 %v39_v35 }
  0x21   :  { %75 = vmatmul.f32.vlgmr.msra.gmra.mxu0 %v38_v36  ;;  %113 = vmatpush.msra.mxu1 %v82_v37 }
  0x23   :  { %114 = vmatpush.msra.mxu1 %v81_v38 }
  0x25   :  { %115 = vmatpush.msra.mxu1 %v80_v39 }
  0x9e   :  { %v76_v42 = vpop.f32.mrf.mxu0 }
  0x9f   :  { %v77_v43 = vadd.f32 %v173_v41, %v76_v42 }
  0xa1   :  { %v79_v44 = vmax.f32 %v77_v43, 0.0 }
  0xa3   :  { %116 = vmatmul.f32.vlgmr.msra.gmra.mxu1 %v79_v44 }
 0x120   :  { %v117_v49 = vpop.f32.mrf.mxu1 }
 0x121   :  { %v118_v50 = vadd.f32 %v174_v48, %v117_v49 }
 0x123   :  { %v120_v51 = vmax.f32 %v118_v50, 0.0 }
 0x125   :  { %171 = vmatmul.msk.f32.vlgmr.msra.gmra.mxu2 %vm129_vm0, %v120_v51 }
 0x1a8   :  { %v150_v53 = vpop.f32.mrf.mxu2 }
 0x1a9   :  { %v151_v54 = vadd.f32 %v175_v52, %v150_v53 }
 0x1ab   :  { %154 = vst.msk [vmem:[#allocation2] sm:$0x3] %vm153_vm1, %v151_v54 }
 0x1ac   :  { %165 = dma.vmem_to_hbm [thread:$0]  %s161_s8, 32, %s163_s5, [#allocation3]  }
 0x1ad   :  { %200 = dma.done.wait [#allocation3], 32  }
 0x1ae   :  { %201 = vsyncadd [#allocation3], 4294967264 }
 0x1af   :  { %170 = vsyncpa [#allocation3], 1 }

</bundles_post_ra>
